<compile_context>
chip_gen: v7x
topology: tpu7x:2x2x1
jax: 0.10.0
libtpu: 0.0.40
codegen_flags: <defaults>
</compile_context>

<pallas_src>
import functools

import numpy as np
import jax
import jax.numpy as jnp
from jax import lax
from jax.experimental import pallas as pl
from jax.experimental.pallas import tpu as pltpu

# ---------------- configuration (small, consistent with the module) -----------------
D_MODEL = 32                       # d_model
N_HEADS = 4                        # nhead
HEAD_DIM = D_MODEL // N_HEADS
D_FFN = 64                         # dim_feedforward
NUM_LAYERS = 2                     # num_decoder_layers
NUM_ORGANS = 2
NUM_QUERIES_PER_ORGAN = 27         # must be in [1, 7, 27, 54]
NUM_QUERIES = NUM_ORGANS * NUM_QUERIES_PER_ORGAN       # 54
NQ_PAD = 64                        # queries padded 54 -> 64 (8-sublane aligned)
INPUT_SHAPE = (8, 8, 4)            # 'P5' level for num_organs != 20
N_SRC = int(np.prod(INPUT_SHAPE))  # 256 flattened source tokens
LN_EPS = 1e-5
NEG_INF = -1e30                    # finite mask sentinel (avoids -inf -> 0/0 NaN hazard)
ATTN_SCALE = 1.0 / float(HEAD_DIM) ** 0.5

# MXU operands in bf16 with f32 accumulation (2-4x MXU rate); flip to False for <=1e-5
# agreement with an f32 reference.
USE_BF16_MXU = True
MXU_DTYPE = jnp.bfloat16 if USE_BF16_MXU else jnp.float32

# ---------------- packed-slab row offsets (static, all multiples of 8) -----------------
# 32-column f32 slab: [tgt | qpos | head_mask_q | head_mask_o |
#                      hoisted cross-attn K weights | hoisted cross-attn V weights |
#                      per-layer matrix blocks].
C32_TGT = 0
C32_QPOS = C32_TGT + NQ_PAD
C32_HMQ = C32_QPOS + NQ_PAD
C32_HMO = C32_HMQ + N_HEADS * NQ_PAD
C32_CAK_ALL = C32_HMO + N_HEADS * NQ_PAD
C32_CAV_ALL = C32_CAK_ALL + NUM_LAYERS * D_MODEL
C32_LAYER0 = C32_CAV_ALL + NUM_LAYERS * D_MODEL
# per-layer matrix block layout (all matrices stored with D_MODEL columns; the second FFN
# weight is stored pre-transposed so the kernel right-multiplies it directly):
M_SAQKV = 0                        # 3*D rows: [Wq; Wk; Wv]  (torch (out,in) layout)
M_SAO = M_SAQKV + 3 * D_MODEL      # self-attn out-proj
M_CAK = M_SAO + D_MODEL            # cross-attn k_proj (also used for q: reference quirk)
M_CAO = M_CAK + D_MODEL            # cross-attn out-proj
M_FW1 = M_CAO + D_MODEL            # FFN linear1 (D_FFN, D)
M_FW2T = M_FW1 + D_FFN             # FFN linear2 weight transposed: (D_FFN, D)
M_ROWS = M_FW2T + D_FFN            # 320 rows / layer
C32_ROWS = C32_LAYER0 + NUM_LAYERS * M_ROWS

# per-layer bias / layernorm vectors: one vector per row of a (NUM_LAYERS*10, D_FFN) slab
(V_SA_BO, V_N2W, V_N2B, V_CA_BO, V_N1W, V_N1B,
 V_FB1, V_FB2, V_N3W, V_N3B) = range(10)
V_ROWS = 10


# ---------------- in-kernel helpers -----------------
def _matmul(x, w):
    # y = x @ w ; MXU in bf16 (f32 accumulation), everything else stays f32.
    return jnp.dot(x.astype(MXU_DTYPE), w.astype(MXU_DTYPE),
                   preferred_element_type=jnp.float32)


def _matmul_t(x, w):
    # y = x @ w.T  (torch nn.Linear weight layout).
    return lax.dot_general(x.astype(MXU_DTYPE), w.astype(MXU_DTYPE),
                           (((1,), (1,)), ((), ())),
                           preferred_element_type=jnp.float32)


def _layernorm(x, w, b):
    mu = jnp.mean(x, axis=-1, keepdims=True)
    xc = x - mu
    var = jnp.mean(xc * xc, axis=-1, keepdims=True)
    return xc * lax.rsqrt(var + LN_EPS) * w + b


def _softmax(x):
    m = jnp.max(x, axis=-1, keepdims=True)
    e = jnp.exp(x - m)
    # divide -> EUP reciprocal (~2^-12 rel error; acceptable next to the bf16 MXU choice)
    return e * pl.reciprocal(jnp.sum(e, axis=-1, keepdims=True), approx=True)


def _mha(q, k, v, hm_q, hm_o, attn_bias):
    # Stacked-head-blocks attention: the H per-head (Nq, Nk) score blocks are stacked
    # along rows.  hm_q keeps only head h's feature lanes in row block h AND carries the
    # 1/sqrt(head_dim) scale; one score matmul, ONE softmax pass and one value matmul
    # serve every head, and hm_o + a block-sum reassembles the concat-heads output.
    nq = q.shape[0]
    qs = jnp.broadcast_to(q[None], (N_HEADS, nq, D_MODEL)).reshape(
        N_HEADS * nq, D_MODEL) * hm_q                                       # (H*Nq, D)
    s = lax.dot_general(qs.astype(MXU_DTYPE), k.astype(MXU_DTYPE),
                        (((1,), (1,)), ((), ())),
                        preferred_element_type=jnp.float32)                 # (H*Nq, Nk)
    s = s + attn_bias
    p = _softmax(s)
    o = jnp.dot(p.astype(MXU_DTYPE), v.astype(MXU_DTYPE),
                preferred_element_type=jnp.float32)                         # (H*Nq, D)
    o = (o * hm_o).reshape(N_HEADS, nq, D_MODEL)
    return jnp.sum(o, axis=0)                                               # (Nq, D)


# ---------------- fused decoder kernel (all layers, BB batch elements / grid step) ----
def focused_decoder_kernel(src_ref, spos_ref, c32_ref, plane_ref, vec_ref, xbias_ref,
                           out_ref, *, bb):
    # ---- layer/batch-invariant constants: static ref slices, VMEM-resident ----
    tgt0 = c32_ref[C32_TGT:C32_TGT + NQ_PAD, :]                     # (NQ_PAD, D)
    qpos = c32_ref[C32_QPOS:C32_QPOS + NQ_PAD, :]                   # (NQ_PAD, D)
    hm_q = c32_ref[C32_HMQ:C32_HMQ + N_HEADS * NQ_PAD, :]           # scale folded in
    hm_o = c32_ref[C32_HMO:C32_HMO + N_HEADS * NQ_PAD, :]
    wk_all = c32_ref[C32_CAK_ALL:C32_CAK_ALL + NUM_LAYERS * D_MODEL, :]   # (L*D, D)
    wv_all = c32_ref[C32_CAV_ALL:C32_CAV_ALL + NUM_LAYERS * D_MODEL, :]   # (L*D, D)
    xbias = xbias_ref[...]                                          # (H*NQ_PAD, N_SRC)

    # Self-attention key bias: mask padded query rows 54..63 as keys (one vreg of work).
    key_idx = lax.broadcasted_iota(jnp.int32, (1, NQ_PAD), 1)
    self_bias = jnp.where(key_idx < NUM_QUERIES, 0.0, NEG_INF).astype(jnp.float32)

    def vec(l, row, n):
        r = l * V_ROWS + row
        return vec_ref[r:r + 1, :n]                                 # (1, n)

    for bi in range(bb):                       # static, unrolled batch block
        s = src_ref[bi]                        # (N_SRC, D)
        sp = spos_ref[bi]                      # (N_SRC, D)

        # Cross-attention K/V projections hoisted over ALL layers: two wide matmuls.
        k_all = _matmul_t(s + sp, wk_all)      # (N_SRC, L*D)
        v_all = _matmul_t(s, wv_all)           # (N_SRC, L*D)

        t = tgt0                               # residual stream stays on-chip
        for l in range(NUM_LAYERS):            # tiny & static -> unrolled
            mb = C32_LAYER0 + l * M_ROWS

            # ---- self-attention (nn.MultiheadAttention semantics, eval) ----
            # Single packed q|k|v projection on (t+qpos); the v-half's spurious qpos
            # contribution is removed exactly by the host-folded bias plane.
            qkv = _matmul_t(t + qpos,
                            c32_ref[mb + M_SAQKV:mb + M_SAQKV + 3 * D_MODEL, :])
            qkv = qkv + plane_ref[l]                                  # (NQ_PAD, 3D)
            sa = _mha(qkv[:, :D_MODEL], qkv[:, D_MODEL:2 * D_MODEL],
                      qkv[:, 2 * D_MODEL:], hm_q, hm_o, self_bias)
            sa = _matmul_t(sa, c32_ref[mb + M_SAO:mb + M_SAO + D_MODEL, :]) \
                + vec(l, V_SA_BO, D_MODEL)
            t = _layernorm(t + sa, vec(l, V_N2W, D_MODEL), vec(l, V_N2B, D_MODEL))

            # ---- focused cross-attention (reference quirk: q uses k_proj; no qkv bias) ----
            q = _matmul_t(t + qpos, c32_ref[mb + M_CAK:mb + M_CAK + D_MODEL, :])
            kl = k_all[:, l * D_MODEL:(l + 1) * D_MODEL]
            vl = v_all[:, l * D_MODEL:(l + 1) * D_MODEL]
            ca = _mha(q, kl, vl, hm_q, hm_o, xbias)
            # TODO(synk): per-layer attention weights are discarded by FocusedDecoderModel,
            # so they are not materialized / returned.
            ca = _matmul_t(ca, c32_ref[mb + M_CAO:mb + M_CAO + D_MODEL, :]) \
                + vec(l, V_CA_BO, D_MODEL)
            t = _layernorm(t + ca, vec(l, V_N1W, D_MODEL), vec(l, V_N1B, D_MODEL))

            # ---- FFN (relu) ----
            h = jnp.maximum(
                _matmul_t(t, c32_ref[mb + M_FW1:mb + M_FW1 + D_FFN, :])
                + vec(l, V_FB1, D_FFN), 0.0)
            t2 = _matmul(h, c32_ref[mb + M_FW2T:mb + M_FW2T + D_FFN, :]) \
                + vec(l, V_FB2, D_MODEL)
            t = _layernorm(t + t2, vec(l, V_N3W, D_MODEL), vec(l, V_N3B, D_MODEL))

        out_ref[bi] = t


def fused_decoder(src, spos, consts32, sa_plane, vecs, xbias, *, grid_steps, bb):
    kernel = functools.partial(focused_decoder_kernel, bb=bb)
    b_pad = grid_steps * bb

    def fixed(shape):
        nd = len(shape)
        return pl.BlockSpec(tuple(shape), lambda g, nd=nd: (0,) * nd)

    batched_in = pl.BlockSpec((bb, N_SRC, D_MODEL), lambda g: (g, 0, 0))
    return pl.pallas_call(
        kernel,
        out_shape=jax.ShapeDtypeStruct((b_pad, NQ_PAD, D_MODEL), jnp.float32),
        grid=(grid_steps,),
        in_specs=[batched_in, batched_in,
                  fixed(consts32.shape), fixed(sa_plane.shape),
                  fixed(vecs.shape), fixed(xbias.shape)],
        out_specs=pl.BlockSpec((bb, NQ_PAD, D_MODEL), lambda g: (g, 0, 0)),
        compiler_params=pltpu.CompilerParams(
            dimension_semantics=("parallel",)),       # >=2 steps -> both TCs on v7x
    )(src, spos, consts32, sa_plane, vecs, xbias)


# ---------------- host-side packing of weights / constants into slabs -----------------
def pack_slabs(params, tgt_pad, qpos_pad, head_mask_q, head_mask_o):
    L = NUM_LAYERS
    # 32-column slab: activations constants + head masks + hoisted cross-attn K/V weights
    # + per-layer matrices (f_w2 stored pre-transposed).
    rows = [tgt_pad, qpos_pad, head_mask_q, head_mask_o,
            params['ca_wk'].reshape(L * D_MODEL, D_MODEL),
            params['ca_wv'].reshape(L * D_MODEL, D_MODEL)]
    for l in range(L):
        rows += [params['sa_wq'][l], params['sa_wk'][l], params['sa_wv'][l],
                 params['sa_wo'][l], params['ca_wk'][l], params['ca_wo'][l],
                 params['f_w1'][l], params['f_w2'][l].T]
    consts32 = jnp.concatenate(rows, axis=0)
    assert consts32.shape == (C32_ROWS, D_MODEL), consts32.shape

    # Self-attn packed-projection bias plane: q/k halves are plain biases; the v half is
    # bv - qpos @ Wv.T so that (t+qpos) @ Wv.T + plane_v == t @ Wv.T + bv exactly.
    planes = []
    for l in range(L):
        bq = jnp.broadcast_to(params['sa_bq'][l][None, :], (NQ_PAD, D_MODEL))
        bk = jnp.broadcast_to(params['sa_bk'][l][None, :], (NQ_PAD, D_MODEL))
        bv = params['sa_bv'][l][None, :] - qpos_pad @ params['sa_wv'][l].T
        planes.append(jnp.concatenate([bq, bk, bv], axis=1))
    sa_plane = jnp.stack(planes, axis=0)                        # (L, NQ_PAD, 3D)

    # Per-layer bias / layernorm vectors, one per (D_FFN-padded) row.
    order = ('sa_bo', 'n2w', 'n2b', 'ca_bo', 'n1w', 'n1b',
             'f_b1', 'f_b2', 'n3w', 'n3b')
    vec_rows = []
    for l in range(L):
        for name in order:
            v = params[name][l]
            vec_rows.append(jnp.pad(v, (0, D_FFN - v.shape[0]))[None, :])
    vecs = jnp.concatenate(vec_rows, axis=0)                    # (L*10, D_FFN)
    return consts32, sa_plane, vecs


# ---------------- FocusedDecoder.forward glue -----------------
def focused_decoder_forward(src_ncdhw, query_embed, pos_ncdhw, params, attn_consts):
    B, C = src_ncdhw.shape[:2]
    src = src_ncdhw.reshape(B, C, -1).transpose(0, 2, 1).astype(jnp.float32)  # (B,Nsrc,C)
    pos = pos_ncdhw.reshape(B, C, -1).transpose(0, 2, 1).astype(jnp.float32)  # (B,Nsrc,C)
    qe, tgt = jnp.split(query_embed.astype(jnp.float32), 2, axis=1)  # torch.split(.., c, 1)
    pad = NQ_PAD - NUM_QUERIES
    qe = jnp.pad(qe, ((0, pad), (0, 0)))
    tgt = jnp.pad(tgt, ((0, pad), (0, 0)))

    consts32, sa_plane, vecs = pack_slabs(params, tgt, qe,
                                          attn_consts['head_mask_q'],
                                          attn_consts['head_mask_o'])

    # Batch blocking: keep >=2 parallel grid steps when possible (v7x megacore), and
    # amortize per-step overhead across BB elements per step (single-TC v5e/v6e).
    grid_steps = 2 if B >= 2 else 1
    bb = -(-B // grid_steps)
    b_pad = grid_steps * bb
    if b_pad != B:
        src = jnp.pad(src, ((0, b_pad - B), (0, 0), (0, 0)))
        pos = jnp.pad(pos, ((0, b_pad - B), (0, 0), (0, 0)))

    out = fused_decoder(src, pos, consts32, sa_plane, vecs, attn_consts['cross_bias'],
                        grid_steps=grid_steps, bb=bb)
    return out[:B, :NUM_QUERIES, :]           # drop padded batch rows / padded queries


# ---------------- attention-mask generation (generate_attn_masks) -----------------
def generate_attn_mask():
    bbox_props = {
        'organ_0': {'attn_area': [0.00, 0.00, 0.00, 0.60, 0.60, 0.75]},
        'organ_1': {'attn_area': [0.25, 0.25, 0.25, 1.00, 0.90, 1.00]},
    }
    inp = np.array(INPUT_SHAPE, dtype=np.float64)
    vols = np.stack([np.asarray(v['attn_area'], dtype=np.float64)
                     for v in bbox_props.values()], axis=0)          # (num_organs, 6)
    vols = np.repeat(vols, NUM_QUERIES_PER_ORGAN, axis=0)            # (Nq, 6)
    rep = np.concatenate([inp, inp])
    vols = np.clip(vols * rep, 0.0, rep)
    vols[:, :3] = np.floor(vols[:, :3])
    vols[:, 3:] = np.ceil(vols[:, 3:])
    vols = vols.astype(np.int32)
    mask = np.ones((NUM_QUERIES,) + INPUT_SHAPE, dtype=bool)
    for q in range(NUM_QUERIES):
        mask[q,
             vols[q, 0]:vols[q, 3],
             vols[q, 1]:vols[q, 4],
             vols[q, 2]:vols[q, 5]] = False
    return mask.reshape(NUM_QUERIES, -1)                             # restrict_attn=True


def build_attn_constants():
    # Head-block masks for the stacked-head attention; the q-side copy carries the scale.
    r = np.arange(N_HEADS * NQ_PAD)[:, None] // NQ_PAD
    c = np.arange(D_MODEL)[None, :] // HEAD_DIM
    hm = (r == c).astype(np.float32)                                 # (H*NQ_PAD, D)
    # Cross-attention additive mask, padded and pre-tiled over the stacked head blocks.
    mask_bool = generate_attn_mask()                                 # (Nq, N_src) bool
    mask_add = np.where(mask_bool, NEG_INF, 0.0).astype(np.float32)
    mask_add = np.pad(mask_add, ((0, NQ_PAD - NUM_QUERIES), (0, 0)))
    cross_bias = np.tile(mask_add, (N_HEADS, 1))                     # (H*NQ_PAD, N_src)
    return {
        'head_mask_q': jnp.asarray(hm * np.float32(ATTN_SCALE)),
        'head_mask_o': jnp.asarray(hm),
        'cross_bias': jnp.asarray(cross_bias),
    }


# ---------------- deterministic parameter init -----------------
def _xavier(key, shape):
    fan_out, fan_in = shape
    limit = float(np.sqrt(6.0 / (fan_in + fan_out)))
    return jax.random.uniform(key, shape, jnp.float32, -limit, limit)


def init_params(key, num_layers):
    layers = []
    for _ in range(num_layers):
        keys = jax.random.split(key, 10)
        key = keys[0]
        z = lambda n: jnp.zeros((n,), jnp.float32)
        o = lambda n: jnp.ones((n,), jnp.float32)
        layers.append({
            # self-attention (nn.MultiheadAttention)
            'sa_wq': _xavier(keys[1], (D_MODEL, D_MODEL)),
            'sa_wk': _xavier(keys[2], (D_MODEL, D_MODEL)),
            'sa_wv': _xavier(keys[3], (D_MODEL, D_MODEL)),
            'sa_bq': z(D_MODEL), 'sa_bk': z(D_MODEL), 'sa_bv': z(D_MODEL),
            'sa_wo': _xavier(keys[4], (D_MODEL, D_MODEL)), 'sa_bo': z(D_MODEL),
            'n2w': o(D_MODEL), 'n2b': z(D_MODEL),
            # FocusedAttn (q_proj exists in the module but is unused in forward)
            'ca_wk': _xavier(keys[5], (D_MODEL, D_MODEL)),
            'ca_wv': _xavier(keys[6], (D_MODEL, D_MODEL)),
            'ca_wo': _xavier(keys[7], (D_MODEL, D_MODEL)), 'ca_bo': z(D_MODEL),
            'n1w': o(D_MODEL), 'n1b': z(D_MODEL),
            # FFN
            'f_w1': _xavier(keys[8], (D_FFN, D_MODEL)), 'f_b1': z(D_FFN),
            'f_w2': _xavier(keys[9], (D_MODEL, D_FFN)), 'f_b2': z(D_MODEL),
            'n3w': o(D_MODEL), 'n3b': z(D_MODEL),
        })
    return {k: jnp.stack([p[k] for p in layers], axis=0) for k in layers[0]}


if __name__ == "__main__":
    key = jax.random.PRNGKey(0)
    k_src, k_pos, k_qe, k_par = jax.random.split(key, 4)

    B = 2
    src = jax.random.normal(k_src, (B, D_MODEL) + INPUT_SHAPE, dtype=jnp.float32)
    pos = jax.random.normal(k_pos, (B, D_MODEL) + INPUT_SHAPE, dtype=jnp.float32)
    query_embed = jax.random.normal(k_qe, (NUM_QUERIES, 2 * D_MODEL), dtype=jnp.float32)

    params = init_params(k_par, NUM_LAYERS)
    attn_consts = build_attn_constants()

    fwd = jax.jit(focused_decoder_forward)
    out = jax.block_until_ready(fwd(src, query_embed, pos, params, attn_consts))

    assert out.shape == (B, NUM_QUERIES, D_MODEL), out.shape
    assert bool(jnp.all(jnp.isfinite(out)))
    print("KERNEL_OK")
</pallas_src>

<mosaic_0001>
module attributes {stable_mosaic.version = 11 : i64} {
  func.func @focused_decoder_kernel(%arg0: i32, %arg1: memref<1x256x32xf32, #tpu.memory_space<vmem>>, %arg2: memref<1x256x32xf32, #tpu.memory_space<vmem>>, %arg3: memref<1408x32xf32, #tpu.memory_space<vmem>>, %arg4: memref<2x64x96xf32, #tpu.memory_space<vmem>>, %arg5: memref<20x64xf32, #tpu.memory_space<vmem>>, %arg6: memref<256x256xf32, #tpu.memory_space<vmem>>, %arg7: memref<1x64x32xf32, #tpu.memory_space<vmem>>) attributes {dimension_semantics = [#tpu.dimension_semantics<parallel>], iteration_bounds = array<i64: 2>, scalar_prefetch = 0 : i64, scratch_operands = 0 : i64, tpu.core_type = #tpu.core_type<tc>, window_params = [{transform_indices = @transform_0, window_bounds = array<i64: 1, 256, 32>}, {transform_indices = @transform_1, window_bounds = array<i64: 1, 256, 32>}, {pipeline_mode = #tpu.pipeline_mode<synchronous>, transform_indices = @transform_2, window_bounds = array<i64: 1408, 32>}, {pipeline_mode = #tpu.pipeline_mode<synchronous>, transform_indices = @transform_3, window_bounds = array<i64: 2, 64, 96>}, {pipeline_mode = #tpu.pipeline_mode<synchronous>, transform_indices = @transform_4, window_bounds = array<i64: 20, 64>}, {pipeline_mode = #tpu.pipeline_mode<synchronous>, transform_indices = @transform_5, window_bounds = array<i64: 256, 256>}, {transform_indices = @transform_6, window_bounds = array<i64: 1, 64, 32>}]} {
    %c0 = arith.constant 0 : index
    %c0_0 = arith.constant 0 : index
    %0 = vector.load %arg3[%c0, %c0_0] : memref<1408x32xf32, #tpu.memory_space<vmem>>, vector<64x32xf32>
    %c64 = arith.constant 64 : index
    %c0_1 = arith.constant 0 : index
    %1 = vector.load %arg3[%c64, %c0_1] : memref<1408x32xf32, #tpu.memory_space<vmem>>, vector<64x32xf32>
    %c128 = arith.constant 128 : index
    %c0_2 = arith.constant 0 : index
    %2 = vector.load %arg3[%c128, %c0_2] : memref<1408x32xf32, #tpu.memory_space<vmem>>, vector<256x32xf32>
    %c384 = arith.constant 384 : index
    %c0_3 = arith.constant 0 : index
    %3 = vector.load %arg3[%c384, %c0_3] : memref<1408x32xf32, #tpu.memory_space<vmem>>, vector<256x32xf32>
    %c640 = arith.constant 640 : index
    %c0_4 = arith.constant 0 : index
    %4 = vector.load %arg3[%c640, %c0_4] : memref<1408x32xf32, #tpu.memory_space<vmem>>, vector<64x32xf32>
    %c704 = arith.constant 704 : index
    %c0_5 = arith.constant 0 : index
    %5 = vector.load %arg3[%c704, %c0_5] : memref<1408x32xf32, #tpu.memory_space<vmem>>, vector<64x32xf32>
    %c0_6 = arith.constant 0 : index
    %c0_7 = arith.constant 0 : index
    %6 = vector.load %arg6[%c0_6, %c0_7] : memref<256x256xf32, #tpu.memory_space<vmem>>, vector<256x256xf32>
    %7 = tpu.iota {dimensions = array<i32: 1>} : vector<1x64xi32>
    %c54_i32 = arith.constant 54 : i32
    %8 = vector.broadcast %c54_i32 : i32 to vector<1x64xi32>
    %9 = arith.cmpi slt, %7, %8 : vector<1x64xi32>
    %cst = arith.constant 0.000000e+00 : f32
    %cst_8 = arith.constant -1.000000e+30 : f32
    %10 = vector.broadcast %cst : f32 to vector<1x64xf32>
    %11 = vector.broadcast %cst_8 : f32 to vector<1x64xf32>
    %12 = arith.select %9, %10, %11 : vector<1x64xi1>, vector<1x64xf32>
    %c0_9 = arith.constant 0 : index
    %c0_10 = arith.constant 0 : index
    %c0_11 = arith.constant 0 : index
    %13 = vector.load %arg1[%c0_9, %c0_10, %c0_11] : memref<1x256x32xf32, #tpu.memory_space<vmem>>, vector<1x256x32xf32>
    %14 = vector.shape_cast %13 : vector<1x256x32xf32> to vector<256x32xf32>
    %c0_12 = arith.constant 0 : index
    %c0_13 = arith.constant 0 : index
    %c0_14 = arith.constant 0 : index
    %15 = vector.load %arg2[%c0_12, %c0_13, %c0_14] : memref<1x256x32xf32, #tpu.memory_space<vmem>>, vector<1x256x32xf32>
    %16 = vector.shape_cast %15 : vector<1x256x32xf32> to vector<256x32xf32>
    %17 = arith.addf %14, %16 : vector<256x32xf32>
    %18 = arith.truncf %17 : vector<256x32xf32> to vector<256x32xbf16>
    %19 = arith.truncf %4 : vector<64x32xf32> to vector<64x32xbf16>
    %cst_15 = arith.constant dense<0.000000e+00> : vector<256x64xf32>
    %20 = tpu.matmul %18, %19, %cst_15 {dimension_numbers = #tpu.dot_dimension_numbers<[1], [1], [0], [0], [0, 0, 1, 0], [], []>} : vector<256x32xbf16>, vector<64x32xbf16>, vector<256x64xf32> -> vector<256x64xf32>
    %21 = arith.truncf %14 : vector<256x32xf32> to vector<256x32xbf16>
    %22 = arith.truncf %5 : vector<64x32xf32> to vector<64x32xbf16>
    %cst_16 = arith.constant dense<0.000000e+00> : vector<256x64xf32>
    %23 = tpu.matmul %21, %22, %cst_16 {dimension_numbers = #tpu.dot_dimension_numbers<[1], [1], [0], [0], [0, 0, 1, 0], [], []>} : vector<256x32xbf16>, vector<64x32xbf16>, vector<256x64xf32> -> vector<256x64xf32>
    %24 = arith.addf %0, %1 : vector<64x32xf32>
    %c768 = arith.constant 768 : index
    %c0_17 = arith.constant 0 : index
    %25 = vector.load %arg3[%c768, %c0_17] : memref<1408x32xf32, #tpu.memory_space<vmem>>, vector<96x32xf32>
    %26 = arith.truncf %24 : vector<64x32xf32> to vector<64x32xbf16>
    %27 = arith.truncf %25 : vector<96x32xf32> to vector<96x32xbf16>
    %cst_18 = arith.constant dense<0.000000e+00> : vector<64x96xf32>
    %28 = tpu.matmul %26, %27, %cst_18 {dimension_numbers = #tpu.dot_dimension_numbers<[1], [1], [0], [0], [0, 0, 1, 0], [], []>} : vector<64x32xbf16>, vector<96x32xbf16>, vector<64x96xf32> -> vector<64x96xf32>
    %c0_19 = arith.constant 0 : index
    %c0_20 = arith.constant 0 : index
    %c0_21 = arith.constant 0 : index
    %29 = vector.load %arg4[%c0_19, %c0_20, %c0_21] : memref<2x64x96xf32, #tpu.memory_space<vmem>>, vector<1x64x96xf32>
    %30 = vector.shape_cast %29 : vector<1x64x96xf32> to vector<64x96xf32>
    %31 = arith.addf %28, %30 : vector<64x96xf32>
    %32 = vector.extract_strided_slice %31 {offsets = [0, 0], sizes = [64, 32], strides = [1, 1]} : vector<64x96xf32> to vector<64x32xf32>
    %33 = vector.extract_strided_slice %31 {offsets = [0, 32], sizes = [64, 32], strides = [1, 1]} : vector<64x96xf32> to vector<64x32xf32>
    %34 = vector.extract_strided_slice %31 {offsets = [0, 64], sizes = [64, 32], strides = [1, 1]} : vector<64x96xf32> to vector<64x32xf32>
    %35 = vector.shape_cast %32 : vector<64x32xf32> to vector<1x64x32xf32>
    %36 = vector.shape_cast %35 : vector<1x64x32xf32> to vector<1x64x32xf32>
    %37 = vector.broadcast %36 : vector<1x64x32xf32> to vector<4x64x32xf32>
    %38 = vector.shape_cast %37 : vector<4x64x32xf32> to vector<256x32xf32>
    %39 = arith.mulf %38, %2 : vector<256x32xf32>
    %40 = arith.truncf %39 : vector<256x32xf32> to vector<256x32xbf16>
    %41 = arith.truncf %33 : vector<64x32xf32> to vector<64x32xbf16>
    %cst_22 = arith.constant dense<0.000000e+00> : vector<256x64xf32>
    %42 = tpu.matmul %40, %41, %cst_22 {dimension_numbers = #tpu.dot_dimension_numbers<[1], [1], [0], [0], [0, 0, 1, 0], [], []>} : vector<256x32xbf16>, vector<64x32xbf16>, vector<256x64xf32> -> vector<256x64xf32>
    %43 = vector.broadcast %12 : vector<1x64xf32> to vector<256x64xf32>
    %44 = arith.addf %42, %43 : vector<256x64xf32>
    %cst_23 = arith.constant dense<0xFF800000> : vector<256xf32>
    %45 = vector.multi_reduction <maximumf>, %44, %cst_23 [1] : vector<256x64xf32> to vector<256xf32>
    %46 = vector.shape_cast %45 : vector<256xf32> to vector<256x1xf32>
    %47 = vector.broadcast %46 : vector<256x1xf32> to vector<256x64xf32>
    %48 = arith.subf %44, %47 : vector<256x64xf32>
    %49 = math.exp %48 : vector<256x64xf32>
    %cst_24 = arith.constant dense<0.000000e+00> : vector<256xf32>
    %50 = vector.multi_reduction <add>, %49, %cst_24 [1] : vector<256x64xf32> to vector<256xf32>
    %51 = vector.shape_cast %50 : vector<256xf32> to vector<256x1xf32>
    %52 = tpu.reciprocal %51 {approx = true} : vector<256x1xf32> -> vector<256x1xf32>
    %53 = vector.broadcast %52 : vector<256x1xf32> to vector<256x64xf32>
    %54 = arith.mulf %49, %53 : vector<256x64xf32>
    %55 = arith.truncf %54 : vector<256x64xf32> to vector<256x64xbf16>
    %56 = arith.truncf %34 : vector<64x32xf32> to vector<64x32xbf16>
    %cst_25 = arith.constant dense<0.000000e+00> : vector<256x32xf32>
    %57 = tpu.matmul %55, %56, %cst_25 {dimension_numbers = #tpu.dot_dimension_numbers<[1], [0], [0], [1], [0, 0, 1, 1], [], []>} : vector<256x64xbf16>, vector<64x32xbf16>, vector<256x32xf32> -> vector<256x32xf32>
    %58 = arith.mulf %57, %3 : vector<256x32xf32>
    %59 = vector.shape_cast %58 : vector<256x32xf32> to vector<4x64x32xf32>
    %cst_26 = arith.constant dense<0.000000e+00> : vector<64x32xf32>
    %60 = vector.multi_reduction <add>, %59, %cst_26 [0] : vector<4x64x32xf32> to vector<64x32xf32>
    %c864 = arith.constant 864 : index
    %c0_27 = arith.constant 0 : index
    %61 = vector.load %arg3[%c864, %c0_27] : memref<1408x32xf32, #tpu.memory_space<vmem>>, vector<32x32xf32>
    %62 = arith.truncf %60 : vector<64x32xf32> to vector<64x32xbf16>
    %63 = arith.truncf %61 : vector<32x32xf32> to vector<32x32xbf16>
    %cst_28 = arith.constant dense<0.000000e+00> : vector<64x32xf32>
    %64 = tpu.matmul %62, %63, %cst_28 {dimension_numbers = #tpu.dot_dimension_numbers<[1], [1], [0], [0], [0, 0, 1, 0], [], []>} : vector<64x32xbf16>, vector<32x32xbf16>, vector<64x32xf32> -> vector<64x32xf32>
    %c0_29 = arith.constant 0 : index
    %c0_30 = arith.constant 0 : index
    %65 = vector.load %arg5[%c0_29, %c0_30] : memref<20x64xf32, #tpu.memory_space<vmem>>, vector<1x32xf32>
    %66 = vector.broadcast %65 : vector<1x32xf32> to vector<64x32xf32>
    %67 = arith.addf %64, %66 : vector<64x32xf32>
    %68 = arith.addf %0, %67 : vector<64x32xf32>
    %c1 = arith.constant 1 : index
    %c0_31 = arith.constant 0 : index
    %69 = vector.load %arg5[%c1, %c0_31] : memref<20x64xf32, #tpu.memory_space<vmem>>, vector<1x32xf32>
    %c2 = arith.constant 2 : index
    %c0_32 = arith.constant 0 : index
    %70 = vector.load %arg5[%c2, %c0_32] : memref<20x64xf32, #tpu.memory_space<vmem>>, vector<1x32xf32>
    %cst_33 = arith.constant dense<0.000000e+00> : vector<64xf32>
    %71 = vector.multi_reduction <add>, %68, %cst_33 [1] : vector<64x32xf32> to vector<64xf32>
    %72 = vector.shape_cast %71 : vector<64xf32> to vector<64x1xf32>
    %cst_34 = arith.constant 3.200000e+01 : f32
    %73 = vector.broadcast %cst_34 : f32 to vector<64x1xf32>
    %74 = arith.divf %72, %73 : vector<64x1xf32>
    %75 = vector.broadcast %74 : vector<64x1xf32> to vector<64x32xf32>
    %76 = arith.subf %68, %75 : vector<64x32xf32>
    %77 = arith.mulf %76, %76 : vector<64x32xf32>
    %cst_35 = arith.constant dense<0.000000e+00> : vector<64xf32>
    %78 = vector.multi_reduction <add>, %77, %cst_35 [1] : vector<64x32xf32> to vector<64xf32>
    %79 = vector.shape_cast %78 : vector<64xf32> to vector<64x1xf32>
    %cst_36 = arith.constant 3.200000e+01 : f32
    %80 = vector.broadcast %cst_36 : f32 to vector<64x1xf32>
    %81 = arith.divf %79, %80 : vector<64x1xf32>
    %cst_37 = arith.constant 9.99999974E-6 : f32
    %82 = vector.broadcast %cst_37 : f32 to vector<64x1xf32>
    %83 = arith.addf %81, %82 : vector<64x1xf32>
    %84 = math.rsqrt %83 : vector<64x1xf32>
    %85 = vector.broadcast %84 : vector<64x1xf32> to vector<64x32xf32>
    %86 = arith.mulf %76, %85 : vector<64x32xf32>
    %87 = vector.broadcast %69 : vector<1x32xf32> to vector<64x32xf32>
    %88 = arith.mulf %86, %87 : vector<64x32xf32>
    %89 = vector.broadcast %70 : vector<1x32xf32> to vector<64x32xf32>
    %90 = arith.addf %88, %89 : vector<64x32xf32>
    %91 = arith.addf %90, %1 : vector<64x32xf32>
    %c896 = arith.constant 896 : index
    %c0_38 = arith.constant 0 : index
    %92 = vector.load %arg3[%c896, %c0_38] : memref<1408x32xf32, #tpu.memory_space<vmem>>, vector<32x32xf32>
    %93 = arith.truncf %91 : vector<64x32xf32> to vector<64x32xbf16>
    %94 = arith.truncf %92 : vector<32x32xf32> to vector<32x32xbf16>
    %cst_39 = arith.constant dense<0.000000e+00> : vector<64x32xf32>
    %95 = tpu.matmul %93, %94, %cst_39 {dimension_numbers = #tpu.dot_dimension_numbers<[1], [1], [0], [0], [0, 0, 1, 0], [], []>} : vector<64x32xbf16>, vector<32x32xbf16>, vector<64x32xf32> -> vector<64x32xf32>
    %96 = vector.extract_strided_slice %20 {offsets = [0, 0], sizes = [256, 32], strides = [1, 1]} : vector<256x64xf32> to vector<256x32xf32>
    %97 = vector.extract_strided_slice %23 {offsets = [0, 0], sizes = [256, 32], strides = [1, 1]} : vector<256x64xf32> to vector<256x32xf32>
    %98 = vector.shape_cast %95 : vector<64x32xf32> to vector<1x64x32xf32>
    %99 = vector.shape_cast %98 : vector<1x64x32xf32> to vector<1x64x32xf32>
    %100 = vector.broadcast %99 : vector<1x64x32xf32> to vector<4x64x32xf32>
    %101 = vector.shape_cast %100 : vector<4x64x32xf32> to vector<256x32xf32>
    %102 = arith.mulf %101, %2 : vector<256x32xf32>
    %103 = arith.truncf %102 : vector<256x32xf32> to vector<256x32xbf16>
    %104 = arith.truncf %96 : vector<256x32xf32> to vector<256x32xbf16>
    %cst_40 = arith.constant dense<0.000000e+00> : vector<256x256xf32>
    %105 = tpu.matmul %103, %104, %cst_40 {dimension_numbers = #tpu.dot_dimension_numbers<[1], [1], [0], [0], [0, 0, 1, 0], [], []>} : vector<256x32xbf16>, vector<256x32xbf16>, vector<256x256xf32> -> vector<256x256xf32>
    %106 = arith.addf %105, %6 : vector<256x256xf32>
    %cst_41 = arith.constant dense<0xFF800000> : vector<256xf32>
    %107 = vector.multi_reduction <maximumf>, %106, %cst_41 [1] : vector<256x256xf32> to vector<256xf32>
    %108 = vector.shape_cast %107 : vector<256xf32> to vector<256x1xf32>
    %109 = vector.broadcast %108 : vector<256x1xf32> to vector<256x256xf32>
    %110 = arith.subf %106, %109 : vector<256x256xf32>
    %111 = math.exp %110 : vector<256x256xf32>
    %cst_42 = arith.constant dense<0.000000e+00> : vector<256xf32>
    %112 = vector.multi_reduction <add>, %111, %cst_42 [1] : vector<256x256xf32> to vector<256xf32>
    %113 = vector.shape_cast %112 : vector<256xf32> to vector<256x1xf32>
    %114 = tpu.reciprocal %113 {approx = true} : vector<256x1xf32> -> vector<256x1xf32>
    %115 = vector.broadcast %114 : vector<256x1xf32> to vector<256x256xf32>
    %116 = arith.mulf %111, %115 : vector<256x256xf32>
    %117 = arith.truncf %116 : vector<256x256xf32> to vector<256x256xbf16>
    %118 = arith.truncf %97 : vector<256x32xf32> to vector<256x32xbf16>
    %cst_43 = arith.constant dense<0.000000e+00> : vector<256x32xf32>
    %119 = tpu.matmul %117, %118, %cst_43 {dimension_numbers = #tpu.dot_dimension_numbers<[1], [0], [0], [1], [0, 0, 1, 1], [], []>} : vector<256x256xbf16>, vector<256x32xbf16>, vector<256x32xf32> -> vector<256x32xf32>
    %120 = arith.mulf %119, %3 : vector<256x32xf32>
    %121 = vector.shape_cast %120 : vector<256x32xf32> to vector<4x64x32xf32>
    %cst_44 = arith.constant dense<0.000000e+00> : vector<64x32xf32>
    %122 = vector.multi_reduction <add>, %121, %cst_44 [0] : vector<4x64x32xf32> to vector<64x32xf32>
    %c928 = arith.constant 928 : index
    %c0_45 = arith.constant 0 : index
    %123 = vector.load %arg3[%c928, %c0_45] : memref<1408x32xf32, #tpu.memory_space<vmem>>, vector<32x32xf32>
    %124 = arith.truncf %122 : vector<64x32xf32> to vector<64x32xbf16>
    %125 = arith.truncf %123 : vector<32x32xf32> to vector<32x32xbf16>
    %cst_46 = arith.constant dense<0.000000e+00> : vector<64x32xf32>
    %126 = tpu.matmul %124, %125, %cst_46 {dimension_numbers = #tpu.dot_dimension_numbers<[1], [1], [0], [0], [0, 0, 1, 0], [], []>} : vector<64x32xbf16>, vector<32x32xbf16>, vector<64x32xf32> -> vector<64x32xf32>
    %c3 = arith.constant 3 : index
    %c0_47 = arith.constant 0 : index
    %127 = vector.load %arg5[%c3, %c0_47] : memref<20x64xf32, #tpu.memory_space<vmem>>, vector<1x32xf32>
    %128 = vector.broadcast %127 : vector<1x32xf32> to vector<64x32xf32>
    %129 = arith.addf %126, %128 : vector<64x32xf32>
    %130 = arith.addf %90, %129 : vector<64x32xf32>
    %c4 = arith.constant 4 : index
    %c0_48 = arith.constant 0 : index
    %131 = vector.load %arg5[%c4, %c0_48] : memref<20x64xf32, #tpu.memory_space<vmem>>, vector<1x32xf32>
    %c5 = arith.constant 5 : index
    %c0_49 = arith.constant 0 : index
    %132 = vector.load %arg5[%c5, %c0_49] : memref<20x64xf32, #tpu.memory_space<vmem>>, vector<1x32xf32>
    %cst_50 = arith.constant dense<0.000000e+00> : vector<64xf32>
    %133 = vector.multi_reduction <add>, %130, %cst_50 [1] : vector<64x32xf32> to vector<64xf32>
    %134 = vector.shape_cast %133 : vector<64xf32> to vector<64x1xf32>
    %cst_51 = arith.constant 3.200000e+01 : f32
    %135 = vector.broadcast %cst_51 : f32 to vector<64x1xf32>
    %136 = arith.divf %134, %135 : vector<64x1xf32>
    %137 = vector.broadcast %136 : vector<64x1xf32> to vector<64x32xf32>
    %138 = arith.subf %130, %137 : vector<64x32xf32>
    %139 = arith.mulf %138, %138 : vector<64x32xf32>
    %cst_52 = arith.constant dense<0.000000e+00> : vector<64xf32>
    %140 = vector.multi_reduction <add>, %139, %cst_52 [1] : vector<64x32xf32> to vector<64xf32>
    %141 = vector.shape_cast %140 : vector<64xf32> to vector<64x1xf32>
    %cst_53 = arith.constant 3.200000e+01 : f32
    %142 = vector.broadcast %cst_53 : f32 to vector<64x1xf32>
    %143 = arith.divf %141, %142 : vector<64x1xf32>
    %cst_54 = arith.constant 9.99999974E-6 : f32
    %144 = vector.broadcast %cst_54 : f32 to vector<64x1xf32>
    %145 = arith.addf %143, %144 : vector<64x1xf32>
    %146 = math.rsqrt %145 : vector<64x1xf32>
    %147 = vector.broadcast %146 : vector<64x1xf32> to vector<64x32xf32>
    %148 = arith.mulf %138, %147 : vector<64x32xf32>
    %149 = vector.broadcast %131 : vector<1x32xf32> to vector<64x32xf32>
    %150 = arith.mulf %148, %149 : vector<64x32xf32>
    %151 = vector.broadcast %132 : vector<1x32xf32> to vector<64x32xf32>
    %152 = arith.addf %150, %151 : vector<64x32xf32>
    %c960 = arith.constant 960 : index
    %c0_55 = arith.constant 0 : index
    %153 = vector.load %arg3[%c960, %c0_55] : memref<1408x32xf32, #tpu.memory_space<vmem>>, vector<64x32xf32>
    %154 = arith.truncf %152 : vector<64x32xf32> to vector<64x32xbf16>
    %155 = arith.truncf %153 : vector<64x32xf32> to vector<64x32xbf16>
    %cst_56 = arith.constant dense<0.000000e+00> : vector<64x64xf32>
    %156 = tpu.matmul %154, %155, %cst_56 {dimension_numbers = #tpu.dot_dimension_numbers<[1], [1], [0], [0], [0, 0, 1, 0], [], []>} : vector<64x32xbf16>, vector<64x32xbf16>, vector<64x64xf32> -> vector<64x64xf32>
    %c6 = arith.constant 6 : index
    %c0_57 = arith.constant 0 : index
    %157 = vector.load %arg5[%c6, %c0_57] : memref<20x64xf32, #tpu.memory_space<vmem>>, vector<1x64xf32>
    %158 = vector.broadcast %157 : vector<1x64xf32> to vector<64x64xf32>
    %159 = arith.addf %156, %158 : vector<64x64xf32>
    %cst_58 = arith.constant 0.000000e+00 : f32
    %160 = vector.broadcast %cst_58 : f32 to vector<64x64xf32>
    %161 = arith.maximumf %159, %160 : vector<64x64xf32>
    %c1024 = arith.constant 1024 : index
    %c0_59 = arith.constant 0 : index
    %162 = vector.load %arg3[%c1024, %c0_59] : memref<1408x32xf32, #tpu.memory_space<vmem>>, vector<64x32xf32>
    %163 = arith.truncf %161 : vector<64x64xf32> to vector<64x64xbf16>
    %164 = arith.truncf %162 : vector<64x32xf32> to vector<64x32xbf16>
    %cst_60 = arith.constant dense<0.000000e+00> : vector<64x32xf32>
    %165 = tpu.matmul %163, %164, %cst_60 {dimension_numbers = #tpu.dot_dimension_numbers<[1], [0], [0], [1], [0, 0, 1, 1], [], []>} : vector<64x64xbf16>, vector<64x32xbf16>, vector<64x32xf32> -> vector<64x32xf32>
    %c7 = arith.constant 7 : index
    %c0_61 = arith.constant 0 : index
    %166 = vector.load %arg5[%c7, %c0_61] : memref<20x64xf32, #tpu.memory_space<vmem>>, vector<1x32xf32>
    %167 = vector.broadcast %166 : vector<1x32xf32> to vector<64x32xf32>
    %168 = arith.addf %165, %167 : vector<64x32xf32>
    %169 = arith.addf %152, %168 : vector<64x32xf32>
    %c8 = arith.constant 8 : index
    %c0_62 = arith.constant 0 : index
    %170 = vector.load %arg5[%c8, %c0_62] : memref<20x64xf32, #tpu.memory_space<vmem>>, vector<1x32xf32>
    %c9 = arith.constant 9 : index
    %c0_63 = arith.constant 0 : index
    %171 = vector.load %arg5[%c9, %c0_63] : memref<20x64xf32, #tpu.memory_space<vmem>>, vector<1x32xf32>
    %cst_64 = arith.constant dense<0.000000e+00> : vector<64xf32>
    %172 = vector.multi_reduction <add>, %169, %cst_64 [1] : vector<64x32xf32> to vector<64xf32>
    %173 = vector.shape_cast %172 : vector<64xf32> to vector<64x1xf32>
    %cst_65 = arith.constant 3.200000e+01 : f32
    %174 = vector.broadcast %cst_65 : f32 to vector<64x1xf32>
    %175 = arith.divf %173, %174 : vector<64x1xf32>
    %176 = vector.broadcast %175 : vector<64x1xf32> to vector<64x32xf32>
    %177 = arith.subf %169, %176 : vector<64x32xf32>
    %178 = arith.mulf %177, %177 : vector<64x32xf32>
    %cst_66 = arith.constant dense<0.000000e+00> : vector<64xf32>
    %179 = vector.multi_reduction <add>, %178, %cst_66 [1] : vector<64x32xf32> to vector<64xf32>
    %180 = vector.shape_cast %179 : vector<64xf32> to vector<64x1xf32>
    %cst_67 = arith.constant 3.200000e+01 : f32
    %181 = vector.broadcast %cst_67 : f32 to vector<64x1xf32>
    %182 = arith.divf %180, %181 : vector<64x1xf32>
    %cst_68 = arith.constant 9.99999974E-6 : f32
    %183 = vector.broadcast %cst_68 : f32 to vector<64x1xf32>
    %184 = arith.addf %182, %183 : vector<64x1xf32>
    %185 = math.rsqrt %184 : vector<64x1xf32>
    %186 = vector.broadcast %185 : vector<64x1xf32> to vector<64x32xf32>
    %187 = arith.mulf %177, %186 : vector<64x32xf32>
    %188 = vector.broadcast %170 : vector<1x32xf32> to vector<64x32xf32>
    %189 = arith.mulf %187, %188 : vector<64x32xf32>
    %190 = vector.broadcast %171 : vector<1x32xf32> to vector<64x32xf32>
    %191 = arith.addf %189, %190 : vector<64x32xf32>
    %192 = arith.addf %191, %1 : vector<64x32xf32>
    %c1088 = arith.constant 1088 : index
    %c0_69 = arith.constant 0 : index
    %193 = vector.load %arg3[%c1088, %c0_69] : memref<1408x32xf32, #tpu.memory_space<vmem>>, vector<96x32xf32>
    %194 = arith.truncf %192 : vector<64x32xf32> to vector<64x32xbf16>
    %195 = arith.truncf %193 : vector<96x32xf32> to vector<96x32xbf16>
    %cst_70 = arith.constant dense<0.000000e+00> : vector<64x96xf32>
    %196 = tpu.matmul %194, %195, %cst_70 {dimension_numbers = #tpu.dot_dimension_numbers<[1], [1], [0], [0], [0, 0, 1, 0], [], []>} : vector<64x32xbf16>, vector<96x32xbf16>, vector<64x96xf32> -> vector<64x96xf32>
    %c1_71 = arith.constant 1 : index
    %c0_72 = arith.constant 0 : index
    %c0_73 = arith.constant 0 : index
    %197 = vector.load %arg4[%c1_71, %c0_72, %c0_73] : memref<2x64x96xf32, #tpu.memory_space<vmem>>, vector<1x64x96xf32>
    %198 = vector.shape_cast %197 : vector<1x64x96xf32> to vector<64x96xf32>
    %199 = arith.addf %196, %198 : vector<64x96xf32>
    %200 = vector.extract_strided_slice %199 {offsets = [0, 0], sizes = [64, 32], strides = [1, 1]} : vector<64x96xf32> to vector<64x32xf32>
    %201 = vector.extract_strided_slice %199 {offsets = [0, 32], sizes = [64, 32], strides = [1, 1]} : vector<64x96xf32> to vector<64x32xf32>
    %202 = vector.extract_strided_slice %199 {offsets = [0, 64], sizes = [64, 32], strides = [1, 1]} : vector<64x96xf32> to vector<64x32xf32>
    %203 = vector.shape_cast %200 : vector<64x32xf32> to vector<1x64x32xf32>
    %204 = vector.shape_cast %203 : vector<1x64x32xf32> to vector<1x64x32xf32>
    %205 = vector.broadcast %204 : vector<1x64x32xf32> to vector<4x64x32xf32>
    %206 = vector.shape_cast %205 : vector<4x64x32xf32> to vector<256x32xf32>
    %207 = arith.mulf %206, %2 : vector<256x32xf32>
    %208 = arith.truncf %207 : vector<256x32xf32> to vector<256x32xbf16>
    %209 = arith.truncf %201 : vector<64x32xf32> to vector<64x32xbf16>
    %cst_74 = arith.constant dense<0.000000e+00> : vector<256x64xf32>
    %210 = tpu.matmul %208, %209, %cst_74 {dimension_numbers = #tpu.dot_dimension_numbers<[1], [1], [0], [0], [0, 0, 1, 0], [], []>} : vector<256x32xbf16>, vector<64x32xbf16>, vector<256x64xf32> -> vector<256x64xf32>
    %211 = vector.broadcast %12 : vector<1x64xf32> to vector<256x64xf32>
    %212 = arith.addf %210, %211 : vector<256x64xf32>
    %cst_75 = arith.constant dense<0xFF800000> : vector<256xf32>
    %213 = vector.multi_reduction <maximumf>, %212, %cst_75 [1] : vector<256x64xf32> to vector<256xf32>
    %214 = vector.shape_cast %213 : vector<256xf32> to vector<256x1xf32>
    %215 = vector.broadcast %214 : vector<256x1xf32> to vector<256x64xf32>
    %216 = arith.subf %212, %215 : vector<256x64xf32>
    %217 = math.exp %216 : vector<256x64xf32>
    %cst_76 = arith.constant dense<0.000000e+00> : vector<256xf32>
    %218 = vector.multi_reduction <add>, %217, %cst_76 [1] : vector<256x64xf32> to vector<256xf32>
    %219 = vector.shape_cast %218 : vector<256xf32> to vector<256x1xf32>
    %220 = tpu.reciprocal %219 {approx = true} : vector<256x1xf32> -> vector<256x1xf32>
    %221 = vector.broadcast %220 : vector<256x1xf32> to vector<256x64xf32>
    %222 = arith.mulf %217, %221 : vector<256x64xf32>
    %223 = arith.truncf %222 : vector<256x64xf32> to vector<256x64xbf16>
    %224 = arith.truncf %202 : vector<64x32xf32> to vector<64x32xbf16>
    %cst_77 = arith.constant dense<0.000000e+00> : vector<256x32xf32>
    %225 = tpu.matmul %223, %224, %cst_77 {dimension_numbers = #tpu.dot_dimension_numbers<[1], [0], [0], [1], [0, 0, 1, 1], [], []>} : vector<256x64xbf16>, vector<64x32xbf16>, vector<256x32xf32> -> vector<256x32xf32>
    %226 = arith.mulf %225, %3 : vector<256x32xf32>
    %227 = vector.shape_cast %226 : vector<256x32xf32> to vector<4x64x32xf32>
    %cst_78 = arith.constant dense<0.000000e+00> : vector<64x32xf32>
    %228 = vector.multi_reduction <add>, %227, %cst_78 [0] : vector<4x64x32xf32> to vector<64x32xf32>
    %c1184 = arith.constant 1184 : index
    %c0_79 = arith.constant 0 : index
    %229 = vector.load %arg3[%c1184, %c0_79] : memref<1408x32xf32, #tpu.memory_space<vmem>>, vector<32x32xf32>
    %230 = arith.truncf %228 : vector<64x32xf32> to vector<64x32xbf16>
    %231 = arith.truncf %229 : vector<32x32xf32> to vector<32x32xbf16>
    %cst_80 = arith.constant dense<0.000000e+00> : vector<64x32xf32>
    %232 = tpu.matmul %230, %231, %cst_80 {dimension_numbers = #tpu.dot_dimension_numbers<[1], [1], [0], [0], [0, 0, 1, 0], [], []>} : vector<64x32xbf16>, vector<32x32xbf16>, vector<64x32xf32> -> vector<64x32xf32>
    %c10 = arith.constant 10 : index
    %c0_81 = arith.constant 0 : index
    %233 = vector.load %arg5[%c10, %c0_81] : memref<20x64xf32, #tpu.memory_space<vmem>>, vector<1x32xf32>
    %234 = vector.broadcast %233 : vector<1x32xf32> to vector<64x32xf32>
    %235 = arith.addf %232, %234 : vector<64x32xf32>
    %236 = arith.addf %191, %235 : vector<64x32xf32>
    %c11 = arith.constant 11 : index
    %c0_82 = arith.constant 0 : index
    %237 = vector.load %arg5[%c11, %c0_82] : memref<20x64xf32, #tpu.memory_space<vmem>>, vector<1x32xf32>
    %c12 = arith.constant 12 : index
    %c0_83 = arith.constant 0 : index
    %238 = vector.load %arg5[%c12, %c0_83] : memref<20x64xf32, #tpu.memory_space<vmem>>, vector<1x32xf32>
    %cst_84 = arith.constant dense<0.000000e+00> : vector<64xf32>
    %239 = vector.multi_reduction <add>, %236, %cst_84 [1] : vector<64x32xf32> to vector<64xf32>
    %240 = vector.shape_cast %239 : vector<64xf32> to vector<64x1xf32>
    %cst_85 = arith.constant 3.200000e+01 : f32
    %241 = vector.broadcast %cst_85 : f32 to vector<64x1xf32>
    %242 = arith.divf %240, %241 : vector<64x1xf32>
    %243 = vector.broadcast %242 : vector<64x1xf32> to vector<64x32xf32>
    %244 = arith.subf %236, %243 : vector<64x32xf32>
    %245 = arith.mulf %244, %244 : vector<64x32xf32>
    %cst_86 = arith.constant dense<0.000000e+00> : vector<64xf32>
    %246 = vector.multi_reduction <add>, %245, %cst_86 [1] : vector<64x32xf32> to vector<64xf32>
    %247 = vector.shape_cast %246 : vector<64xf32> to vector<64x1xf32>
    %cst_87 = arith.constant 3.200000e+01 : f32
    %248 = vector.broadcast %cst_87 : f32 to vector<64x1xf32>
    %249 = arith.divf %247, %248 : vector<64x1xf32>
    %cst_88 = arith.constant 9.99999974E-6 : f32
    %250 = vector.broadcast %cst_88 : f32 to vector<64x1xf32>
    %251 = arith.addf %249, %250 : vector<64x1xf32>
    %252 = math.rsqrt %251 : vector<64x1xf32>
    %253 = vector.broadcast %252 : vector<64x1xf32> to vector<64x32xf32>
    %254 = arith.mulf %244, %253 : vector<64x32xf32>
    %255 = vector.broadcast %237 : vector<1x32xf32> to vector<64x32xf32>
    %256 = arith.mulf %254, %255 : vector<64x32xf32>
    %257 = vector.broadcast %238 : vector<1x32xf32> to vector<64x32xf32>
    %258 = arith.addf %256, %257 : vector<64x32xf32>
    %259 = arith.addf %258, %1 : vector<64x32xf32>
    %c1216 = arith.constant 1216 : index
    %c0_89 = arith.constant 0 : index
    %260 = vector.load %arg3[%c1216, %c0_89] : memref<1408x32xf32, #tpu.memory_space<vmem>>, vector<32x32xf32>
    %261 = arith.truncf %259 : vector<64x32xf32> to vector<64x32xbf16>
    %262 = arith.truncf %260 : vector<32x32xf32> to vector<32x32xbf16>
    %cst_90 = arith.constant dense<0.000000e+00> : vector<64x32xf32>
    %263 = tpu.matmul %261, %262, %cst_90 {dimension_numbers = #tpu.dot_dimension_numbers<[1], [1], [0], [0], [0, 0, 1, 0], [], []>} : vector<64x32xbf16>, vector<32x32xbf16>, vector<64x32xf32> -> vector<64x32xf32>
    %264 = vector.extract_strided_slice %20 {offsets = [0, 32], sizes = [256, 32], strides = [1, 1]} : vector<256x64xf32> to vector<256x32xf32>
    %265 = vector.extract_strided_slice %23 {offsets = [0, 32], sizes = [256, 32], strides = [1, 1]} : vector<256x64xf32> to vector<256x32xf32>
    %266 = vector.shape_cast %263 : vector<64x32xf32> to vector<1x64x32xf32>
    %267 = vector.shape_cast %266 : vector<1x64x32xf32> to vector<1x64x32xf32>
    %268 = vector.broadcast %267 : vector<1x64x32xf32> to vector<4x64x32xf32>
    %269 = vector.shape_cast %268 : vector<4x64x32xf32> to vector<256x32xf32>
    %270 = arith.mulf %269, %2 : vector<256x32xf32>
    %271 = arith.truncf %270 : vector<256x32xf32> to vector<256x32xbf16>
    %272 = arith.truncf %264 : vector<256x32xf32> to vector<256x32xbf16>
    %cst_91 = arith.constant dense<0.000000e+00> : vector<256x256xf32>
    %273 = tpu.matmul %271, %272, %cst_91 {dimension_numbers = #tpu.dot_dimension_numbers<[1], [1], [0], [0], [0, 0, 1, 0], [], []>} : vector<256x32xbf16>, vector<256x32xbf16>, vector<256x256xf32> -> vector<256x256xf32>
    %274 = arith.addf %273, %6 : vector<256x256xf32>
    %cst_92 = arith.constant dense<0xFF800000> : vector<256xf32>
    %275 = vector.multi_reduction <maximumf>, %274, %cst_92 [1] : vector<256x256xf32> to vector<256xf32>
    %276 = vector.shape_cast %275 : vector<256xf32> to vector<256x1xf32>
    %277 = vector.broadcast %276 : vector<256x1xf32> to vector<256x256xf32>
    %278 = arith.subf %274, %277 : vector<256x256xf32>
    %279 = math.exp %278 : vector<256x256xf32>
    %cst_93 = arith.constant dense<0.000000e+00> : vector<256xf32>
    %280 = vector.multi_reduction <add>, %279, %cst_93 [1] : vector<256x256xf32> to vector<256xf32>
    %281 = vector.shape_cast %280 : vector<256xf32> to vector<256x1xf32>
    %282 = tpu.reciprocal %281 {approx = true} : vector<256x1xf32> -> vector<256x1xf32>
    %283 = vector.broadcast %282 : vector<256x1xf32> to vector<256x256xf32>
    %284 = arith.mulf %279, %283 : vector<256x256xf32>
    %285 = arith.truncf %284 : vector<256x256xf32> to vector<256x256xbf16>
    %286 = arith.truncf %265 : vector<256x32xf32> to vector<256x32xbf16>
    %cst_94 = arith.constant dense<0.000000e+00> : vector<256x32xf32>
    %287 = tpu.matmul %285, %286, %cst_94 {dimension_numbers = #tpu.dot_dimension_numbers<[1], [0], [0], [1], [0, 0, 1, 1], [], []>} : vector<256x256xbf16>, vector<256x32xbf16>, vector<256x32xf32> -> vector<256x32xf32>
    %288 = arith.mulf %287, %3 : vector<256x32xf32>
    %289 = vector.shape_cast %288 : vector<256x32xf32> to vector<4x64x32xf32>
    %cst_95 = arith.constant dense<0.000000e+00> : vector<64x32xf32>
    %290 = vector.multi_reduction <add>, %289, %cst_95 [0] : vector<4x64x32xf32> to vector<64x32xf32>
    %c1248 = arith.constant 1248 : index
    %c0_96 = arith.constant 0 : index
    %291 = vector.load %arg3[%c1248, %c0_96] : memref<1408x32xf32, #tpu.memory_space<vmem>>, vector<32x32xf32>
    %292 = arith.truncf %290 : vector<64x32xf32> to vector<64x32xbf16>
    %293 = arith.truncf %291 : vector<32x32xf32> to vector<32x32xbf16>
    %cst_97 = arith.constant dense<0.000000e+00> : vector<64x32xf32>
    %294 = tpu.matmul %292, %293, %cst_97 {dimension_numbers = #tpu.dot_dimension_numbers<[1], [1], [0], [0], [0, 0, 1, 0], [], []>} : vector<64x32xbf16>, vector<32x32xbf16>, vector<64x32xf32> -> vector<64x32xf32>
    %c13 = arith.constant 13 : index
    %c0_98 = arith.constant 0 : index
    %295 = vector.load %arg5[%c13, %c0_98] : memref<20x64xf32, #tpu.memory_space<vmem>>, vector<1x32xf32>
    %296 = vector.broadcast %295 : vector<1x32xf32> to vector<64x32xf32>
    %297 = arith.addf %294, %296 : vector<64x32xf32>
    %298 = arith.addf %258, %297 : vector<64x32xf32>
    %c14 = arith.constant 14 : index
    %c0_99 = arith.constant 0 : index
    %299 = vector.load %arg5[%c14, %c0_99] : memref<20x64xf32, #tpu.memory_space<vmem>>, vector<1x32xf32>
    %c15 = arith.constant 15 : index
    %c0_100 = arith.constant 0 : index
    %300 = vector.load %arg5[%c15, %c0_100] : memref<20x64xf32, #tpu.memory_space<vmem>>, vector<1x32xf32>
    %cst_101 = arith.constant dense<0.000000e+00> : vector<64xf32>
    %301 = vector.multi_reduction <add>, %298, %cst_101 [1] : vector<64x32xf32> to vector<64xf32>
    %302 = vector.shape_cast %301 : vector<64xf32> to vector<64x1xf32>
    %cst_102 = arith.constant 3.200000e+01 : f32
    %303 = vector.broadcast %cst_102 : f32 to vector<64x1xf32>
    %304 = arith.divf %302, %303 : vector<64x1xf32>
    %305 = vector.broadcast %304 : vector<64x1xf32> to vector<64x32xf32>
    %306 = arith.subf %298, %305 : vector<64x32xf32>
    %307 = arith.mulf %306, %306 : vector<64x32xf32>
    %cst_103 = arith.constant dense<0.000000e+00> : vector<64xf32>
    %308 = vector.multi_reduction <add>, %307, %cst_103 [1] : vector<64x32xf32> to vector<64xf32>
    %309 = vector.shape_cast %308 : vector<64xf32> to vector<64x1xf32>
    %cst_104 = arith.constant 3.200000e+01 : f32
    %310 = vector.broadcast %cst_104 : f32 to vector<64x1xf32>
    %311 = arith.divf %309, %310 : vector<64x1xf32>
    %cst_105 = arith.constant 9.99999974E-6 : f32
    %312 = vector.broadcast %cst_105 : f32 to vector<64x1xf32>
    %313 = arith.addf %311, %312 : vector<64x1xf32>
    %314 = math.rsqrt %313 : vector<64x1xf32>
    %315 = vector.broadcast %314 : vector<64x1xf32> to vector<64x32xf32>
    %316 = arith.mulf %306, %315 : vector<64x32xf32>
    %317 = vector.broadcast %299 : vector<1x32xf32> to vector<64x32xf32>
    %318 = arith.mulf %316, %317 : vector<64x32xf32>
    %319 = vector.broadcast %300 : vector<1x32xf32> to vector<64x32xf32>
    %320 = arith.addf %318, %319 : vector<64x32xf32>
    %c1280 = arith.constant 1280 : index
    %c0_106 = arith.constant 0 : index
    %321 = vector.load %arg3[%c1280, %c0_106] : memref<1408x32xf32, #tpu.memory_space<vmem>>, vector<64x32xf32>
    %322 = arith.truncf %320 : vector<64x32xf32> to vector<64x32xbf16>
    %323 = arith.truncf %321 : vector<64x32xf32> to vector<64x32xbf16>
    %cst_107 = arith.constant dense<0.000000e+00> : vector<64x64xf32>
    %324 = tpu.matmul %322, %323, %cst_107 {dimension_numbers = #tpu.dot_dimension_numbers<[1], [1], [0], [0], [0, 0, 1, 0], [], []>} : vector<64x32xbf16>, vector<64x32xbf16>, vector<64x64xf32> -> vector<64x64xf32>
    %c16 = arith.constant 16 : index
    %c0_108 = arith.constant 0 : index
    %325 = vector.load %arg5[%c16, %c0_108] : memref<20x64xf32, #tpu.memory_space<vmem>>, vector<1x64xf32>
    %326 = vector.broadcast %325 : vector<1x64xf32> to vector<64x64xf32>
    %327 = arith.addf %324, %326 : vector<64x64xf32>
    %cst_109 = arith.constant 0.000000e+00 : f32
    %328 = vector.broadcast %cst_109 : f32 to vector<64x64xf32>
    %329 = arith.maximumf %327, %328 : vector<64x64xf32>
    %c1344 = arith.constant 1344 : index
    %c0_110 = arith.constant 0 : index
    %330 = vector.load %arg3[%c1344, %c0_110] : memref<1408x32xf32, #tpu.memory_space<vmem>>, vector<64x32xf32>
    %331 = arith.truncf %329 : vector<64x64xf32> to vector<64x64xbf16>
    %332 = arith.truncf %330 : vector<64x32xf32> to vector<64x32xbf16>
    %cst_111 = arith.constant dense<0.000000e+00> : vector<64x32xf32>
    %333 = tpu.matmul %331, %332, %cst_111 {dimension_numbers = #tpu.dot_dimension_numbers<[1], [0], [0], [1], [0, 0, 1, 1], [], []>} : vector<64x64xbf16>, vector<64x32xbf16>, vector<64x32xf32> -> vector<64x32xf32>
    %c17 = arith.constant 17 : index
    %c0_112 = arith.constant 0 : index
    %334 = vector.load %arg5[%c17, %c0_112] : memref<20x64xf32, #tpu.memory_space<vmem>>, vector<1x32xf32>
    %335 = vector.broadcast %334 : vector<1x32xf32> to vector<64x32xf32>
    %336 = arith.addf %333, %335 : vector<64x32xf32>
    %337 = arith.addf %320, %336 : vector<64x32xf32>
    %c18 = arith.constant 18 : index
    %c0_113 = arith.constant 0 : index
    %338 = vector.load %arg5[%c18, %c0_113] : memref<20x64xf32, #tpu.memory_space<vmem>>, vector<1x32xf32>
    %c19 = arith.constant 19 : index
    %c0_114 = arith.constant 0 : index
    %339 = vector.load %arg5[%c19, %c0_114] : memref<20x64xf32, #tpu.memory_space<vmem>>, vector<1x32xf32>
    %cst_115 = arith.constant dense<0.000000e+00> : vector<64xf32>
    %340 = vector.multi_reduction <add>, %337, %cst_115 [1] : vector<64x32xf32> to vector<64xf32>
    %341 = vector.shape_cast %340 : vector<64xf32> to vector<64x1xf32>
    %cst_116 = arith.constant 3.200000e+01 : f32
    %342 = vector.broadcast %cst_116 : f32 to vector<64x1xf32>
    %343 = arith.divf %341, %342 : vector<64x1xf32>
    %344 = vector.broadcast %343 : vector<64x1xf32> to vector<64x32xf32>
    %345 = arith.subf %337, %344 : vector<64x32xf32>
    %346 = arith.mulf %345, %345 : vector<64x32xf32>
    %cst_117 = arith.constant dense<0.000000e+00> : vector<64xf32>
    %347 = vector.multi_reduction <add>, %346, %cst_117 [1] : vector<64x32xf32> to vector<64xf32>
    %348 = vector.shape_cast %347 : vector<64xf32> to vector<64x1xf32>
    %cst_118 = arith.constant 3.200000e+01 : f32
    %349 = vector.broadcast %cst_118 : f32 to vector<64x1xf32>
    %350 = arith.divf %348, %349 : vector<64x1xf32>
    %cst_119 = arith.constant 9.99999974E-6 : f32
    %351 = vector.broadcast %cst_119 : f32 to vector<64x1xf32>
    %352 = arith.addf %350, %351 : vector<64x1xf32>
    %353 = math.rsqrt %352 : vector<64x1xf32>
    %354 = vector.broadcast %353 : vector<64x1xf32> to vector<64x32xf32>
    %355 = arith.mulf %345, %354 : vector<64x32xf32>
    %356 = vector.broadcast %338 : vector<1x32xf32> to vector<64x32xf32>
    %357 = arith.mulf %355, %356 : vector<64x32xf32>
    %358 = vector.broadcast %339 : vector<1x32xf32> to vector<64x32xf32>
    %359 = arith.addf %357, %358 : vector<64x32xf32>
    %c0_120 = arith.constant 0 : index
    %c0_121 = arith.constant 0 : index
    %c0_122 = arith.constant 0 : index
    %360 = vector.load %arg7[%c0_120, %c0_121, %c0_122] : memref<1x64x32xf32, #tpu.memory_space<vmem>>, vector<1x64x32xf32>
    %361 = vector.shape_cast %360 : vector<1x64x32xf32> to vector<64x32xf32>
    %362 = vector.shape_cast %359 : vector<64x32xf32> to vector<1x64x32xf32>
    tpu.vector_store %arg7[%c0_120, %c0_121, %c0_122], %362 {strides = array<i32>} : memref<1x64x32xf32, #tpu.memory_space<vmem>>, vector<1x64x32xf32>,
    return
  }
  func.func @transform_0(%arg0: i32) -> (i32, i32, i32) {
    %c0_i32 = arith.constant 0 : i32
    %c0_i32_0 = arith.constant 0 : i32
    %c0_i32_1 = arith.constant 0 : i32
    return %arg0, %c0_i32, %c0_i32_0 : i32, i32, i32
  }
  func.func @transform_1(%arg0: i32) -> (i32, i32, i32) {
    %c0_i32 = arith.constant 0 : i32
    %c0_i32_0 = arith.constant 0 : i32
    %c0_i32_1 = arith.constant 0 : i32
    return %arg0, %c0_i32, %c0_i32_0 : i32, i32, i32
  }
  func.func @transform_2(%arg0: i32) -> (i32, i32) {
    %c0_i32 = arith.constant 0 : i32
    %c0_i32_0 = arith.constant 0 : i32
    %c0_i32_1 = arith.constant 0 : i32
    return %c0_i32, %c0_i32_0 : i32, i32
  }
  func.func @transform_3(%arg0: i32) -> (i32, i32, i32) {
    %c0_i32 = arith.constant 0 : i32
    %c0_i32_0 = arith.constant 0 : i32
    %c0_i32_1 = arith.constant 0 : i32
    %c0_i32_2 = arith.constant 0 : i32
    return %c0_i32, %c0_i32_0, %c0_i32_1 : i32, i32, i32
  }
  func.func @transform_4(%arg0: i32) -> (i32, i32) {
    %c0_i32 = arith.constant 0 : i32
    %c0_i32_0 = arith.constant 0 : i32
    %c0_i32_1 = arith.constant 0 : i32
    return %c0_i32, %c0_i32_0 : i32, i32
  }
  func.func @transform_5(%arg0: i32) -> (i32, i32) {
    %c0_i32 = arith.constant 0 : i32
    %c0_i32_0 = arith.constant 0 : i32
    %c0_i32_1 = arith.constant 0 : i32
    return %c0_i32, %c0_i32_0 : i32, i32
  }
  func.func @transform_6(%arg0: i32) -> (i32, i32, i32) {
    %c0_i32 = arith.constant 0 : i32
    %c0_i32_0 = arith.constant 0 : i32
    %c0_i32_1 = arith.constant 0 : i32
    return %arg0, %c0_i32, %c0_i32_0 : i32, i32, i32
  }
}

</mosaic_0001>

<bundles_post_ra>
// kernel: focused_decoder_forward.1
= control target key start
LH: loop header
LB: loop body
LE: loop exit
PB: predicated region body
PF: predicated region fallthrough
CT: control target
= control target key end

     0   :  { %s9787_s21 = smov 0   ;;  %s15048_s0 = inlined_call_operand.vmem [shape: f32[2,256,32], index: 0, kind: input, shape index: {}]   ;;  %s15049_s1 = inlined_call_operand.vmem [shape: f32[2,256,32], index: 1, kind: input, shape index: {}]   ;;  %s15050_s2 = inlined_call_operand.vmem [shape: f32[1408,32], index: 2, kind: input, shape index: {}]   ;;  %s15051_s3 = inlined_call_operand.vmem [shape: f32[2,64,96], index: 3, kind: input, shape index: {}]   ;;  %s15052_s4 = inlined_call_operand.vmem [shape: f32[20,64], index: 4, kind: input, shape index: {}]   ;;  %s15053_s5 = inlined_call_operand.vmem [shape: f32[256,256], index: 5, kind: input, shape index: {}]   ;;  %s15054_s6 = inlined_call_operand.vmem [shape: f32[2,64,32], index: 6, kind: output, shape index: {}]  }
   0x1 LB: > { %s7478_s22 = sadd.s32 4294967295, %s9747_s21   ;;  %p7482_p0 = scmp.ge.s32.totalorder %s9747_s21, 1  ;;  %s9747_s21 = sphi %s9787_s21, %s16_s21  }
   0x2   : > { %p222_p1 = scmp.lt.s32.totalorder %s9747_s21, 3 }
   0x4   : > { %p223_p2 = pnand %p7482_p0, %p222_p1 }
   0x6   : > { %226 = sbr.rel (%p223_p2) target bundleno = 8635 (0x21bb), region = 44 }
   0xd   : > { %v353_v0 = vld [vmem:[%s15050_s2 + $0x280] sm:$0xff]  ;;  %v354_v1 = vld [vmem:[%s15050_s2 + $0x288] sm:$0xff]  ;;  %vm553_vm0 = vcmask 261120   ;;  %v355_v2 = vld [vmem:[%s15050_s2 + $0x290] sm:$0xff]  ;;  %p257_p3 = scmp.lt.s32.totalorder %s7478_s22, 1  ;;  %s9749_s12 = smov 96  }
   0xe   : > { %v549_v3 = vpack.c.bf16 %v354_v1, %v353_v0  ;;  %v356_v4 = vld [vmem:[%s15050_s2 + $0x298] sm:$0xff]  ;;  %v357_v7 = vld [vmem:[%s15050_s2 + $0x2a0] sm:$0xff]  ;;  %v358_v8 = vld [vmem:[%s15050_s2 + $0x2a8] sm:$0xff]  ;;  %s9750_s26 = smov 64   ;;  %vm1434_vm2 = vcmask 523264  }
   0xf   : > { %v550_v5 = vpack.c.bf16 %v356_v4, %v355_v2  ;;  %s15405_s22 = smov (!%p257_p3, %s7478_s22), 1  ;;  %v551_v16 = vpack.c.bf16 %v358_v8, %v357_v7  ;;  %v359_v18 = vld [vmem:[%s15050_s2 + $0x2b0] sm:$0xff]  ;;  %v360_v19 = vld [vmem:[%s15050_s2 + $0x2b8] sm:$0xff]  ;;  %v1024_v22 = vld [vmem:[%s15050_s2 + $0x300] sm:$0xff] }
  0x10   : > { %8642 = vmatprep.subr.msk.bf16.mxu0 %vm553_vm0, %v549_v3  ;;  %v603_v6 = vsel %vm553_vm0, %v549_v3, 0  ;;  %s7695_s7 = sshll.u32 %s15405_s22, 8  ;;  %v552_v21 = vpack.c.bf16 %v360_v19, %v359_v18  ;;  %v1025_v23 = vld [vmem:[%s15050_s2 + $0x308] sm:$0xff]  ;;  %v1026_v39 = vld [vmem:[%s15050_s2 + $0x310] sm:$0xff]  ;;  %v1027_v40 = vld [vmem:[%s15050_s2 + $0x318] sm:$0xff]  ;;  %s7697_s18 = sshll.u32 %s15405_s22, 6 }
  0x11   : > { %8227 = vmatpush3.bf16.xpose.msra.mxu0 %v603_v6  ;;  %s9822_s14 = scalar_lea.vmem %s15048_s0, %s7695_s7  ;;  %s9827_s17 = scalar_lea.vmem %s15049_s1, %s7695_s7  ;;  %v606_v15 = vsel %vm553_vm0, %v550_v5, 0  ;;  %v609_v20 = vsel %vm553_vm0, %v551_v16, 0  ;;  %v1040_v33 = vpack.c.bf16 %v1025_v23, %v1024_v22  ;;  %v1041_v51 = vpack.c.bf16 %v1027_v40, %v1026_v39  ;;  %v361_v52 = vld [vmem:[%s15050_s2 + $0x2c0] sm:$0xff]  ;;  %v362_v53 = vld [vmem:[%s15050_s2 + $0x2c8] sm:$0xff]  ;;  %v363_v55 = vld [vmem:[%s15050_s2 + $0x2d0] sm:$0xff] }
  0x12   : > { %8643 = vmatprep.subr.msk.bf16.mxu0 %vm553_vm0, %v550_v5  ;;  %v9830_v9 = vld [vmem:[%s9822_s14] sm:$0xff]  ;;  %v9833_v10 = vld [vmem:[%s9822_s14 + $0x8] sm:$0xff]  ;;  %v9857_v24 = vld [vmem:[%s9822_s14 + $0x10] sm:$0xff]  ;;  %v612_v29 = vsel %vm553_vm0, %v552_v21, 0  ;;  %v791_v54 = vpack.c.bf16 %v362_v53, %v361_v52 }
  0x13   : > { %v469_v11 = vld [vmem:[%s9827_s17] sm:$0xff]  ;;  %v470_v12 = vld [vmem:[%s9827_s17 + $0x8] sm:$0xff]  ;;  %v9860_v25 = vld [vmem:[%s9822_s14 + $0x18] sm:$0xff]  ;;  %v1067_v50 = vsel %vm553_vm0, %v1040_v33, 0 }
  0x14   : > { %v501_v13 = vadd.f32 %v469_v11, %v9830_v9  ;;  %v502_v14 = vadd.f32 %v470_v12, %v9833_v10  ;;  %v471_v26 = vld [vmem:[%s9827_s17 + $0x10] sm:$0xff]  ;;  %v472_v27 = vld [vmem:[%s9827_s17 + $0x18] sm:$0xff]  ;;  %v9865_v28 = vld [vmem:[%s9822_s14 + $0x20] sm:$0xff]  ;;  %v844_v62 = vsel %vm553_vm0, %v791_v54, 0  ;;  %8646 = vmatprep.subr.msk.bf16.mxu1 %vm553_vm0, %v791_v54 }
  0x15   : > { %v9869_v30 = vld [vmem:[%s9822_s14 + $0x28] sm:$0xff]  ;;  %v473_v31 = vld [vmem:[%s9827_s17 + $0x20] sm:$0xff]  ;;  %v503_v34 = vadd.f32 %v471_v26, %v9857_v24  ;;  %v504_v35 = vadd.f32 %v472_v27, %v9860_v25  ;;  %v9879_v38 = vld [vmem:[%s9822_s14 + $0x30] sm:$0xff]  ;;  %8267 = vmatpush3.bf16.xpose.msra.mxu1 %v844_v62 }
  0x16   : > { %v533_v17 = vpack.c.bf16 %v502_v14, %v501_v13  ;;  %v474_v32 = vld [vmem:[%s9827_s17 + $0x28] sm:$0xff]  ;;  %v505_v36 = vadd.f32 %v473_v31, %v9865_v28  ;;  %v9888_v42 = vld [vmem:[%s9822_s14 + $0x38] sm:$0xff]  ;;  %v475_v43 = vld [vmem:[%s9827_s17 + $0x30] sm:$0xff]  ;;  %v1070_v13 = vsel %vm553_vm0, %v1041_v51, 0 }
  0x17   : > { %v506_v37 = vadd.f32 %v474_v32, %v9869_v30  ;;  %v534_v41 = vpack.c.bf16 %v504_v35, %v503_v34  ;;  %v476_v44 = vld [vmem:[%s9827_s17 + $0x38] sm:$0xff]  ;;  %v9893_v46 = vld [vmem:[%s9822_s14 + $0x40] sm:$0xff]  ;;  %v9896_v47 = vld [vmem:[%s9822_s14 + $0x48] sm:$0xff]  ;;  %v507_v57 = vadd.f32 %v475_v43, %v9879_v38 }
  0x18   : > { %8234 = vmatprep.mubr.msk.bf16.mxu0 %vm553_vm0, %v533_v17  ;;  %v477_v48 = vld [vmem:[%s9827_s17 + $0x40] sm:$0xff]  ;;  %v478_v49 = vld [vmem:[%s9827_s17 + $0x48] sm:$0xff]  ;;  %v364_v56 = vld [vmem:[%s15050_s2 + $0x2d8] sm:$0xff]  ;;  %v508_v58 = vadd.f32 %v476_v44, %v9888_v42 }
  0x19   : > { %8229 = vmatpush3.bf16.xpose.msra.mxu0 %v606_v15  ;;  %v535_v45 = vpack.c.bf16 %v506_v37, %v505_v36  ;;  %v792_v59 = vpack.c.bf16 %v364_v56, %v363_v55  ;;  %v509_v60 = vadd.f32 %v477_v48, %v9893_v46  ;;  %v510_v61 = vadd.f32 %v478_v49, %v9896_v47  ;;  %v1028_v63 = vld [vmem:[%s15050_s2 + $0x320] sm:$0xff]  ;;  %v1029_v0 = vld [vmem:[%s15050_s2 + $0x328] sm:$0xff]  ;;  %v9929_v2 = vld [vmem:[%s9822_s14 + $0x50] sm:$0xff] }
  0x1a   : > { %8644 = vmatprep.subr.msk.bf16.mxu0 %vm553_vm0, %v551_v16  ;;  %v536_v1 = vpack.c.bf16 %v508_v58, %v507_v57  ;;  %v9932_v3 = vld [vmem:[%s9822_s14 + $0x58] sm:$0xff]  ;;  %v479_v5 = vld [vmem:[%s9827_s17 + $0x50] sm:$0xff]  ;;  %v9938_v7 = vld [vmem:[%s9822_s14 + $0x60] sm:$0xff]  ;;  %v1042_v14 = vpack.c.bf16 %v1029_v0, %v1028_v63 }
  0x1b   : > { %8647 = vmatprep.subr.msk.bf16.mxu1 %vm553_vm0, %v792_v59  ;;  %v537_v4 = vpack.c.bf16 %v510_v61, %v509_v60  ;;  %v480_v6 = vld [vmem:[%s9827_s17 + $0x58] sm:$0xff]  ;;  %v9941_v8 = vld [vmem:[%s9822_s14 + $0x68] sm:$0xff]  ;;  %v481_v11 = vld [vmem:[%s9827_s17 + $0x60] sm:$0xff]  ;;  %v511_v15 = vadd.f32 %v479_v5, %v9929_v2  ;;  %v847_v17 = vsel %vm553_vm0, %v792_v59, 0 }
  0x1c   : > { %v482_v12 = vld [vmem:[%s9827_s17 + $0x68] sm:$0xff]  ;;  %v512_v16 = vadd.f32 %v480_v6, %v9932_v3  ;;  %v513_v18 = vadd.f32 %v481_v11, %v9938_v7  ;;  %v9961_v23 = vld [vmem:[%s9822_s14 + $0x70] sm:$0xff]  ;;  %v9964_v26 = vld [vmem:[%s9822_s14 + $0x78] sm:$0xff]  ;;  %v1073_v36 = vsel %vm553_vm0, %v1042_v14, 0 }
  0x1d   : > { %v514_v19 = vadd.f32 %v482_v12, %v9941_v8  ;;  %8269 = vmatpush3.bf16.xpose.msra.mxu1 %v847_v17  ;;  %v484_v31 = vld [vmem:[%s9827_s17 + $0x78] sm:$0xff]  ;;  %v9969_v32 = vld [vmem:[%s9822_s14 + $0x80] sm:$0xff]  ;;  %v486_v35 = vld [vmem:[%s9827_s17 + $0x88] sm:$0xff] }
  0x1e   : > { %v538_v22 = vpack.c.bf16 %v512_v16, %v511_v15  ;;  %v485_v34 = vld [vmem:[%s9827_s17 + $0x80] sm:$0xff]  ;;  %v516_v40 = vadd.f32 %v484_v31, %v9964_v26  ;;  %v9991_v49 = vld [vmem:[%s9822_s14 + $0x90] sm:$0xff]  ;;  %v488_v53 = vld [vmem:[%s9827_s17 + $0x98] sm:$0xff] }
  0x1f   : > { %v539_v27 = vpack.c.bf16 %v514_v19, %v513_v18  ;;  %v1032_v44 = vld [vmem:[%s15050_s2 + $0x340] sm:$0xff]  ;;  %v487_v52 = vld [vmem:[%s9827_s17 + $0x90] sm:$0xff]  ;;  %v10002_v55 = vld [vmem:[%s9822_s14 + $0xa8] sm:$0xff] }
  0x20   : > { %v9999_v54 = vld [vmem:[%s9822_s14 + $0xa0] sm:$0xff]  ;;  %v490_v57 = vld [vmem:[%s9827_s17 + $0xa8] sm:$0xff]  ;;  %v519_v60 = vadd.f32 %v487_v52, %v9991_v49  ;;  %v1034_v0 = vld [vmem:[%s15050_s2 + $0x350] sm:$0xff] }
  0x21   : > { %8231 = vmatpush3.bf16.xpose.msra.mxu0 %v609_v20  ;;  %v1030_v20 = vld [vmem:[%s15050_s2 + $0x330] sm:$0xff]  ;;  %v489_v56 = vld [vmem:[%s9827_s17 + $0xa0] sm:$0xff]  ;;  %v522_v63 = vadd.f32 %v490_v57, %v10002_v55  ;;  %v10024_v6 = vld [vmem:[%s9822_s14 + $0xb8] sm:$0xff] }
  0x22   : > { %8645 = vmatprep.subr.msk.bf16.mxu0 %vm553_vm0, %v552_v21  ;;  %v1031_v21 = vld [vmem:[%s15050_s2 + $0x338] sm:$0xff]  ;;  %v521_v62 = vadd.f32 %v489_v56, %v9999_v54  ;;  %v10021_v5 = vld [vmem:[%s9822_s14 + $0xb0] sm:$0xff]  ;;  %v10032_v15 = vld [vmem:[%s9822_s14 + $0xc8] sm:$0xff] }
  0x23   : > { %v1043_v37 = vpack.c.bf16 %v1031_v21, %v1030_v20  ;;  %v491_v12 = vld [vmem:[%s9827_s17 + $0xb0] sm:$0xff]  ;;  %v493_v16 = vld [vmem:[%s9827_s17 + $0xc0] sm:$0xff]  ;;  %v494_v17 = vld [vmem:[%s9827_s17 + $0xc8] sm:$0xff] }
  0x24   : > { %v543_v11 = vpack.c.bf16 %v522_v63, %v521_v62  ;;  %v523_v20 = vadd.f32 %v491_v12, %v10021_v5  ;;  %v10045_v31 = vld [vmem:[%s9822_s14 + $0xd0] sm:$0xff]  ;;  %v10071_v57 = vld [vmem:[%s9822_s14 + $0xf8] sm:$0xff]  ;;  %v274_v62 = vld [vmem:[%s15050_s2 + $0x8] sm:$0xff] }
  0x25   : > { %v1076_v58 = vsel %vm553_vm0, %v1043_v37, 0  ;;  %v10068_v56 = vld [vmem:[%s9822_s14 + $0xf0] sm:$0xff]  ;;  %v281_v63 = vld [vmem:[%s15050_s2 + $0x40] sm:$0xff] }
  0x29   : > { %8233 = vmatpush3.bf16.xpose.msra.mxu0 %v612_v29  ;;  %v483_v29 = vld [vmem:[%s9827_s17 + $0x70] sm:$0xff] }
  0x2a   : > { %8650 = vmatprep.subr.msk.bf16.mxu0 %vm553_vm0, %v1040_v33  ;;  %v9972_v33 = vld [vmem:[%s9822_s14 + $0x88] sm:$0xff]  ;;  %v515_v39 = vadd.f32 %v483_v29, %v9961_v23 }
  0x2b   : > { %v518_v43 = vadd.f32 %v486_v35, %v9972_v33 }
  0x2c   : > { %v540_v48 = vpack.c.bf16 %v516_v40, %v515_v39  ;;  %v10053_v39 = vld [vmem:[%s9822_s14 + $0xe0] sm:$0xff]  ;;  %v10056_v40 = vld [vmem:[%s9822_s14 + $0xe8] sm:$0xff] }
  0x30   : > { %8235 = vmatmul.mubr.msk.bf16.vlgmr.msra.gmra.mrb[0].mxu0 %vm553_vm0, %v534_v41  ;;  %v517_v41 = vadd.f32 %v485_v34, %v9969_v32  ;;  %v10048_v34 = vld [vmem:[%s9822_s14 + $0xd8] sm:$0xff] }
  0x31   : > { %8238 = vmatprep.mubr.msk.bf16.mxu0 %vm553_vm0, %v535_v45  ;;  %8307 = vmatpush3.bf16.xpose.msra.mxu0 %v1067_v50  ;;  %v1033_v45 = vld [vmem:[%s15050_s2 + $0x348] sm:$0xff]  ;;  %v9994_v50 = vld [vmem:[%s9822_s14 + $0x98] sm:$0xff] }
  0x32   : > { %8651 = vmatprep.subr.msk.bf16.mxu0 %vm553_vm0, %v1041_v51  ;;  %v541_v51 = vpack.c.bf16 %v518_v43, %v517_v41  ;;  %v1044_v59 = vpack.c.bf16 %v1033_v45, %v1032_v44  ;;  %v520_v61 = vadd.f32 %v488_v53, %v9994_v50  ;;  %v497_v41 = vld [vmem:[%s9827_s17 + $0xe0] sm:$0xff]  ;;  %v498_v43 = vld [vmem:[%s9827_s17 + $0xe8] sm:$0xff] }
  0x33   : > { %v530_v52 = vadd.f32 %v498_v43, %v10056_v40 }
  0x34   : > { %v1079_v18 = vsel %vm553_vm0, %v1044_v59, 0 }
  0x38   : > { %8239 = vmatmul.mubr.msk.bf16.gmra.mrb[4].mxu0 %vm553_vm0, %v536_v1  ;;  %v1035_v1 = vld [vmem:[%s15050_s2 + $0x358] sm:$0xff] }
  0x39   : > { %8242 = vmatprep.mubr.msk.bf16.mxu0 %vm553_vm0, %v537_v4  ;;  %8309 = vmatpush3.bf16.xpose.msra.mxu0 %v1070_v13  ;;  %v542_v4 = vpack.c.bf16 %v520_v61, %v519_v60  ;;  %v492_v13 = vld [vmem:[%s9827_s17 + $0xb8] sm:$0xff]  ;;  %v1045_v19 = vpack.c.bf16 %v1035_v1, %v1034_v0  ;;  %v273_v61 = vld [vmem:[%s15050_s2] sm:$0xff]  ;;  %v282_v0 = vld [vmem:[%s15050_s2 + $0x48] sm:$0xff] }
  0x3a   : > { %8652 = vmatprep.subr.msk.bf16.mxu0 %vm553_vm0, %v1042_v14  ;;  %v10029_v14 = vld [vmem:[%s9822_s14 + $0xc0] sm:$0xff]  ;;  %v524_v21 = vadd.f32 %v492_v13, %v10024_v6  ;;  %v500_v60 = vld [vmem:[%s9827_s17 + $0xf8] sm:$0xff]  ;;  %v1017_v12 = vadd.f32 %v282_v0, %v274_v62  ;;  %v367_v0 = vld [vmem:[%s15050_s2 + $0x2f0] sm:$0xff] }
  0x3b   : > { %v1082_v44 = vsel %vm553_vm0, %v1045_v19, 0 }
  0x3c   : > { %v544_v29 = vpack.c.bf16 %v524_v21, %v523_v20  ;;  %v284_v20 = vld [vmem:[%s15050_s2 + $0x58] sm:$0xff]  ;;  %v277_v21 = vld [vmem:[%s15050_s2 + $0x20] sm:$0xff] }
  0x40   : > { %8243 = vmatmul.mubr.msk.bf16.gmra.mrb[8].mxu0 %vm553_vm0, %v538_v22  ;;  %v525_v22 = vadd.f32 %v493_v16, %v10029_v14  ;;  %v275_v16 = vld [vmem:[%s15050_s2 + $0x10] sm:$0xff] }
  0x41   : > { %8246 = vmatprep.mubr.msk.bf16.mxu0 %vm553_vm0, %v539_v27  ;;  %8311 = vmatpush3.bf16.xpose.msra.mxu0 %v1073_v36  ;;  %v526_v27 = vadd.f32 %v494_v17, %v10032_v15  ;;  %v495_v36 = vld [vmem:[%s9827_s17 + $0xd0] sm:$0xff]  ;;  %v276_v17 = vld [vmem:[%s15050_s2 + $0x18] sm:$0xff] }
  0x42   : > { %8653 = vmatprep.subr.msk.bf16.mxu0 %vm553_vm0, %v1043_v37  ;;  %v496_v37 = vld [vmem:[%s9827_s17 + $0xd8] sm:$0xff]  ;;  %v527_v45 = vadd.f32 %v495_v36, %v10045_v31  ;;  %v1019_v36 = vadd.f32 %v284_v20, %v276_v17  ;;  %v778_v17 = vpack.c.bf16 %v9888_v42, %v9879_v38  ;;  %v785_v38 = vpack.c.bf16 %v10002_v55, %v9999_v54 }
  0x43   : > { %v545_v35 = vpack.c.bf16 %v526_v27, %v525_v22  ;;  %v278_v22 = vld [vmem:[%s15050_s2 + $0x28] sm:$0xff]  ;;  %v285_v27 = vld [vmem:[%s15050_s2 + $0x60] sm:$0xff]  ;;  %v786_v42 = vpack.c.bf16 %v10024_v6, %v10021_v5 }
  0x48   : > { %8247 = vmatmul.mubr.msk.bf16.gmra.mrb[12].mxu0 %vm553_vm0, %v540_v48  ;;  %v528_v48 = vadd.f32 %v496_v37, %v10048_v34  ;;  %v1020_v37 = vadd.f32 %v285_v27, %v277_v21 }
  0x49   : > { %8250 = vmatprep.mubr.msk.bf16.mxu0 %vm553_vm0, %v541_v51  ;;  %8313 = vmatpush3.bf16.xpose.msra.mxu0 %v1076_v58  ;;  %v529_v51 = vadd.f32 %v497_v41, %v10053_v39 }
  0x4a   : > { %8654 = vmatprep.subr.msk.bf16.mxu0 %vm553_vm0, %v1044_v59  ;;  %v546_v53 = vpack.c.bf16 %v528_v48, %v527_v45  ;;  %v499_v59 = vld [vmem:[%s9827_s17 + $0xf0] sm:$0xff]  ;;  %v280_v48 = vld [vmem:[%s15050_s2 + $0x38] sm:$0xff]  ;;  %s15021_s17 = scalar_lea.vmem %s15054_s6, %s7697_s18 }
  0x4b   : > { %v547_v58 = vpack.c.bf16 %v530_v52, %v529_v51  ;;  %v531_v1 = vadd.f32 %v499_v59, %v10068_v56  ;;  %v287_v51 = vld [vmem:[%s15050_s2 + $0x70] sm:$0xff]  ;;  %v288_v52 = vld [vmem:[%s15050_s2 + $0x78] sm:$0xff] }
  0x50   : > { %8251 = vmatmul.mubr.msk.bf16.gmra.mrb[16].mxu0 %vm553_vm0, %v542_v4  ;;  %v532_v4 = vadd.f32 %v500_v60, %v10071_v57  ;;  %v365_v60 = vld [vmem:[%s15050_s2 + $0x2e0] sm:$0xff] }
  0x51   : > { %8254 = vmatprep.mubr.msk.bf16.mxu0 %vm553_vm0, %v543_v11  ;;  %8315 = vmatpush3.bf16.xpose.msra.mxu0 %v1079_v18  ;;  %v1016_v11 = vadd.f32 %v281_v63, %v273_v61  ;;  %v366_v61 = vld [vmem:[%s15050_s2 + $0x2e8] sm:$0xff] }
  0x52   : > { %8655 = vmatprep.subr.msk.bf16.mxu0 %vm553_vm0, %v1045_v19  ;;  %v548_v13 = vpack.c.bf16 %v532_v4, %v531_v1  ;;  %v283_v19 = vld [vmem:[%s15050_s2 + $0x50] sm:$0xff]  ;;  %v793_v62 = vpack.c.bf16 %v366_v61, %v365_v60  ;;  %v368_v1 = vld [vmem:[%s15050_s2 + $0x2f8] sm:$0xff] }
  0x53   : > { %v1036_v18 = vpack.c.bf16 %v1017_v12, %v1016_v11  ;;  %v794_v4 = vpack.c.bf16 %v368_v1, %v367_v0  ;;  %v775_v12 = vpack.c.bf16 %v9833_v10, %v9830_v9  ;;  %v779_v9 = vpack.c.bf16 %v9896_v47, %v9893_v46 }
  0x54   : > { %8648 = vmatprep.subr.msk.bf16.mxu1 %vm553_vm0, %v793_v62  ;;  %v850_v63 = vsel %vm553_vm0, %v793_v62, 0  ;;  %v780_v10 = vpack.c.bf16 %v9932_v3, %v9929_v2  ;;  %v787_v46 = vpack.c.bf16 %v10032_v15, %v10029_v14  ;;  %v788_v47 = vpack.c.bf16 %v10048_v34, %v10045_v31 }
  0x55   : > { %8271 = vmatpush3.bf16.xpose.msra.mxu1 %v850_v63  ;;  %v853_v11 = vsel %vm553_vm0, %v794_v4, 0  ;;  %8274 = vmatprep.mubr.msk.bf16.mxu1 %vm553_vm0, %v775_v12  ;;  %v789_v2 = vpack.c.bf16 %v10056_v40, %v10053_v39  ;;  %v790_v3 = vpack.c.bf16 %v10071_v57, %v10068_v56  ;;  %v1048_v12 = vld [vmem:[%s15051_s3 + $0x10] sm:$0xff] }
  0x56   : > { %8649 = vmatprep.subr.msk.bf16.mxu1 %vm553_vm0, %v794_v4 }
  0x58   : > { %8255 = vmatmul.mubr.msk.bf16.gmra.mrb[20].mxu0 %vm553_vm0, %v544_v29  ;;  %v286_v29 = vld [vmem:[%s15050_s2 + $0x68] sm:$0xff] }
  0x59   : > { %8258 = vmatprep.mubr.msk.bf16.mxu0 %vm553_vm0, %v545_v35  ;;  %8317 = vmatpush3.bf16.xpose.msra.mxu0 %v1082_v44  ;;  %v1018_v35 = vadd.f32 %v283_v19, %v275_v16  ;;  %v1021_v41 = vadd.f32 %v286_v29, %v278_v22  ;;  %v279_v44 = vld [vmem:[%s15050_s2 + $0x30] sm:$0xff]  ;;  %v777_v16 = vpack.c.bf16 %v9869_v30, %v9865_v28 }
  0x5a   : > { %v783_v28 = vpack.c.bf16 %v9972_v33, %v9969_v32  ;;  %v784_v30 = vpack.c.bf16 %v9994_v50, %v9991_v49 }
  0x5b   : > { %v1037_v43 = vpack.c.bf16 %v1019_v36, %v1018_v35  ;;  %v1038_v45 = vpack.c.bf16 %v1021_v41, %v1020_v37 }
  0x5d   : > { %8273 = vmatpush3.bf16.xpose.msra.mxu1 %v853_v11 }
  0x60   : > { %8259 = vmatmul.mubr.msk.bf16.gmra.mrb[24].mxu0 %vm553_vm0, %v546_v53  ;;  %v1022_v53 = vadd.f32 %v287_v51, %v279_v44 }
  0x61   : > { %8262 = vmatprep.mubr.msk.bf16.mxu0 %vm553_vm0, %v547_v58  ;;  %v1023_v58 = vadd.f32 %v288_v52, %v280_v48 }
  0x63   : > { %v1039_v59 = vpack.c.bf16 %v1023_v58, %v1022_v53 }
  0x68   : > { %8263 = vmatmul.mubr.msk.bf16.gmra.mrb[28].mxu0 %vm553_vm0, %v548_v13  ;;  %v776_v13 = vpack.c.bf16 %v9860_v25, %v9857_v24  ;;  %v781_v24 = vpack.c.bf16 %v9941_v8, %v9938_v7  ;;  %v782_v25 = vpack.c.bf16 %v9964_v26, %v9961_v23 }
  0x69   : > { %8318 = vmatprep.mubr.msk.bf16.mxu0 %vm553_vm0, %v1036_v18 }
  0x6a   : > { %8275 = vmatmul.mubr.msk.bf16.vlgmr.msra.gmra.mrb[0].mxu1 %vm553_vm0, %v776_v13  ;;  %v291_v13 = vld [vmem:[%s15050_s2 + $0x90] sm:$0xff] }
  0x6b   : > { %8278 = vmatprep.mubr.msk.bf16.mxu1 %vm553_vm0, %v777_v16  ;;  %v1046_v16 = vld [vmem:[%s15051_s3] sm:$0xff] }
  0x70   : > { %8319 = vmatmul.mubr.msk.bf16.vlgmr.msra.gmra.mrb[32].mxu0 %vm553_vm0, %v1037_v43 }
  0x71   : > { %8322 = vmatprep.mubr.msk.bf16.mxu0 %vm553_vm0, %v1038_v45 }
  0x72   : > { %8279 = vmatmul.mubr.msk.bf16.gmra.mrb[4].mxu1 %vm553_vm0, %v778_v17  ;;  %v1049_v17 = vld [vmem:[%s15051_s3 + $0x18] sm:$0xff] }
  0x73   : > { %8282 = vmatprep.mubr.msk.bf16.mxu1 %vm553_vm0, %v779_v9 }
  0x78   : > { %8323 = vmatmul.mubr.msk.bf16.gmra.mrb[36].mxu0 %vm553_vm0, %v1039_v59 }
  0x7a   : > { %8283 = vmatmul.mubr.msk.bf16.gmra.mrb[8].mxu1 %vm553_vm0, %v780_v10  ;;  %v1047_v10 = vld [vmem:[%s15051_s3 + $0x8] sm:$0xff] }
  0x7b   : > { %8286 = vmatprep.mubr.msk.bf16.mxu1 %vm553_vm0, %v781_v24  ;;  %v299_v24 = vld [vmem:[%s15050_s2 + $0xd0] sm:$0xff] }
  0x82   : > { %8287 = vmatmul.mubr.msk.bf16.gmra.mrb[12].mxu1 %vm553_vm0, %v782_v25  ;;  %v307_v25 = vld [vmem:[%s15050_s2 + $0x110] sm:$0xff] }
  0x83   : > { %8290 = vmatprep.mubr.msk.bf16.mxu1 %vm553_vm0, %v783_v28 }
  0x8a   : > { %8291 = vmatmul.mubr.msk.bf16.gmra.mrb[16].mxu1 %vm553_vm0, %v784_v30 }
  0x8b   : > { %8294 = vmatprep.mubr.msk.bf16.mxu1 %vm553_vm0, %v785_v38  ;;  %v289_v38 = vld [vmem:[%s15050_s2 + $0x80] sm:$0xff] }
  0x92   : > { %8295 = vmatmul.mubr.msk.bf16.gmra.mrb[20].mxu1 %vm553_vm0, %v786_v42  ;;  %v297_v42 = vld [vmem:[%s15050_s2 + $0xc0] sm:$0xff] }
  0x93   : > { %8298 = vmatprep.mubr.msk.bf16.mxu1 %vm553_vm0, %v787_v46  ;;  %v305_v46 = vld [vmem:[%s15050_s2 + $0x100] sm:$0xff] }
  0x9a   : > { %8299 = vmatmul.mubr.msk.bf16.gmra.mrb[24].mxu1 %vm553_vm0, %v788_v47 }
  0x9b   : > { %8302 = vmatprep.mubr.msk.bf16.mxu1 %vm553_vm0, %v789_v2  ;;  %v292_v2 = vld [vmem:[%s15050_s2 + $0x98] sm:$0xff] }
  0xa2   : > { %8303 = vmatmul.mubr.msk.bf16.gmra.mrb[28].mxu1 %vm553_vm0, %v790_v3 }
 0x103   : > { %v8236_v7 = vpop.f32.mrb[0].mxu0 }
 0x104   : > { %v648_v8 = vpop.f32.mrb[1].mxu0 }
 0x105   : > { %v8237_v23 = vpop.f32.mrb[2].mxu0 }
 0x106   : > { %v10196_v26 = vpack.c.bf16 %v8237_v23, %v8236_v7  ;;  %v651_v32 = vpop.f32.mrb[3].mxu0  ;;  %v300_v7 = vld [vmem:[%s15050_s2 + $0xd8] sm:$0xff] }
 0x107   : > { %v10198_v33 = vpack.c.bf16 %v651_v32, %v648_v8  ;;  %v308_v8 = vld [vmem:[%s15050_s2 + $0x118] sm:$0xff] }
 0x108   : > { %15161 = vst [vmem:[#allocation2_spill] sm:$0xff] %v10196_v26 }
 0x109   : > { %15162 = vst [vmem:[#allocation3_spill] sm:$0xff] %v10198_v33 }
 0x10b   : > { %v8240_v49 = vpop.f32.mrb[4].mxu0 }
 0x10c   : > { %v664_v50 = vpop.f32.mrb[5].mxu0 }
 0x10d   : > { %v8241_v54 = vpop.f32.mrb[6].mxu0 }
 0x10e   : > { %v10200_v55 = vpack.c.bf16 %v8241_v54, %v8240_v49  ;;  %v667_v5 = vpop.f32.mrb[7].mxu0  ;;  %v298_v54 = vld [vmem:[%s15050_s2 + $0xc8] sm:$0xff] }
 0x10f   : > { %v10202_v6 = vpack.c.bf16 %v667_v5, %v664_v50  ;;  %v290_v50 = vld [vmem:[%s15050_s2 + $0x88] sm:$0xff] }
 0x110   : > { %15163 = vst [vmem:[#allocation4_spill] sm:$0xff] %v10200_v55 }
 0x111   : > { %15164 = vst [vmem:[#allocation5_spill] sm:$0xff] %v10202_v6 }
 0x113   : > { %v8244_v14 = vpop.f32.mrb[8].mxu0 }
 0x114   : > { %v680_v15 = vpop.f32.mrb[9].mxu0 }
 0x115   : > { %v8245_v31 = vpop.f32.mrb[10].mxu0 }
 0x116   : > { %v10204_v34 = vpack.c.bf16 %v8245_v31, %v8244_v14  ;;  %v683_v39 = vpop.f32.mrb[11].mxu0  ;;  %v306_v14 = vld [vmem:[%s15050_s2 + $0x108] sm:$0xff] }
 0x117   : > { %v10206_v40 = vpack.c.bf16 %v683_v39, %v680_v15 }
 0x118   : > { %15165 = vst [vmem:[#allocation6_spill] sm:$0xff] %v10204_v34 }
 0x119   : > { %15166 = vst [vmem:[#allocation7_spill] sm:$0xff] %v10206_v40 }
 0x11b   : > { %v8248_v56 = vpop.f32.mrb[12].mxu0 }
 0x11c   : > { %v696_v57 = vpop.f32.mrb[13].mxu0 }
 0x11d   : > { %v8249_v18 = vpop.f32.mrb[14].mxu0 }
 0x11e   : > { %v10208_v19 = vpack.c.bf16 %v8249_v18, %v8248_v56  ;;  %v699_v20 = vpop.f32.mrb[15].mxu0  ;;  %v313_v18 = vld [vmem:[%s15050_s2 + $0x140] sm:$0xff] }
 0x11f   : > { %v10210_v21 = vpack.c.bf16 %v699_v20, %v696_v57 }
 0x120   : > { %15167 = vst [vmem:[#allocation8_spill] sm:$0xff] %v10208_v19 }
 0x121   : > { %15168 = vst [vmem:[#allocation9_spill] sm:$0xff] %v10210_v21 }
 0x123   : > { %v8252_v22 = vpop.f32.mrb[16].mxu0 }
 0x124   : > { %v712_v27 = vpop.f32.mrb[17].mxu0 }
 0x125   : > { %v8253_v29 = vpop.f32.mrb[18].mxu0 }
 0x126   : > { %v10212_v35 = vpack.c.bf16 %v8253_v29, %v8252_v22  ;;  %v715_v36 = vpop.f32.mrb[19].mxu0 }
 0x127   : > { %v10214_v37 = vpack.c.bf16 %v715_v36, %v712_v27  ;;  %v314_v36 = vld [vmem:[%s15050_s2 + $0x148] sm:$0xff] }
 0x128   : > { %15169 = vst [vmem:[#allocation10_spill] sm:$0xff] %v10212_v35 }
 0x129   : > { %15170 = vst [vmem:[#allocation11_spill] sm:$0xff] %v10214_v37 }
 0x12b   : > { %v8256_v41 = vpop.f32.mrb[20].mxu0 }
 0x12c   : > { %v728_v43 = vpop.f32.mrb[21].mxu0 }
 0x12d   : > { %v8257_v44 = vpop.f32.mrb[22].mxu0 }
 0x12e   : > { %v10216_v45 = vpack.c.bf16 %v8257_v44, %v8256_v41  ;;  %v731_v48 = vpop.f32.mrb[23].mxu0  ;;  %v1052_v41 = vld [vmem:[%s15051_s3 + $0x30] sm:$0xff] }
 0x12f   : > { %v10218_v51 = vpack.c.bf16 %v731_v48, %v728_v43 }
 0x130   : > { %15171 = vst [vmem:[#allocation12_spill] sm:$0xff] %v10216_v45 }
 0x131   : > { %15172 = vst [vmem:[#allocation13_spill] sm:$0xff] %v10218_v51 }
 0x133   : > { %v8260_v52 = vpop.f32.mrb[24].mxu0 }
 0x134   : > { %v744_v53 = vpop.f32.mrb[25].mxu0 }
 0x135   : > { %v8261_v58 = vpop.f32.mrb[26].mxu0 }
 0x136   : > { %v10220_v59 = vpack.c.bf16 %v8261_v58, %v8260_v52  ;;  %v747_v60 = vpop.f32.mrb[27].mxu0  ;;  %v316_v58 = vld [vmem:[%s15050_s2 + $0x158] sm:$0xff] }
 0x137   : > { %v10222_v61 = vpack.c.bf16 %v747_v60, %v744_v53  ;;  %v315_v53 = vld [vmem:[%s15050_s2 + $0x150] sm:$0xff] }
 0x138   : > { %15173 = vst [vmem:[#allocation14_spill] sm:$0xff] %v10220_v59 }
 0x139   : > { %15174 = vst [vmem:[#allocation15_spill] sm:$0xff] %v10222_v61 }
 0x13b   : > { %v8264_v62 = vpop.f32.mrb[28].mxu0 }
 0x13c   : > { %v760_v63 = vpop.f32.mrb[29].mxu0 }
 0x13d   : > { %v8265_v0 = vpop.f32.mrb[30].mxu0 }
 0x13e   : > { %v10224_v1 = vpack.c.bf16 %v8265_v0, %v8264_v62  ;;  %v763_v4 = vpop.f32.mrb[31].mxu0  ;;  %v1050_v62 = vld [vmem:[%s15051_s3 + $0x20] sm:$0xff]  ;;  %v1051_v0 = vld [vmem:[%s15051_s3 + $0x28] sm:$0xff] }
 0x13f   : > { %v10226_v11 = vpack.c.bf16 %v763_v4, %v760_v63  ;;  %v1053_v63 = vld [vmem:[%s15051_s3 + $0x38] sm:$0xff] }
 0x140   : > { %15175 = vst [vmem:[#allocation16_spill] sm:$0xff] %v10224_v1 }
 0x141   : > { %15176 = vst [vmem:[#allocation17_spill] sm:$0xff] %v10226_v11 }
 0x143   : > { %v8320_v9 = vpop.f32.mrb[32].mxu0 }
 0x144   : > { %v10249_v28 = vadd.f32 %v8320_v9, %v1048_v12  ;;  %v1118_v30 = vpop.f32.mrb[33].mxu0  ;;  %v295_v9 = vld [vmem:[%s15050_s2 + $0xb0] sm:$0xff] }
 0x145   : > { %v1119_v47 = vadd.f32 %v1118_v30, %v1046_v16  ;;  %v8321_v3 = vpop.f32.mrb[34].mxu0  ;;  %v311_v30 = vld [vmem:[%s15050_s2 + $0x130] sm:$0xff] }
 0x146   : > { %v10270_v23 = vmul.f32 %v10249_v28, %v291_v13  ;;  %v1130_v32 = vadd.f32 %v8321_v3, %v1049_v17  ;;  %v1121_v49 = vpop.f32.mrb[35].mxu0  ;;  %v10279_v5 = vmul.f32 %v10249_v28, %v299_v24  ;;  %v10285_v15 = vmul.f32 %v10249_v28, %v307_v25  ;;  %v303_v24 = vld [vmem:[%s15050_s2 + $0xf0] sm:$0xff]  ;;  %v309_v3 = vld [vmem:[%s15050_s2 + $0x120] sm:$0xff] }
 0x147   : > { %v1122_v31 = vadd.f32 %v1121_v49, %v1047_v10  ;;  %v1149_v39 = vmul.f32 %v1119_v47, %v289_v38  ;;  %v10287_v56 = vmul.f32 %v1119_v47, %v297_v42  ;;  %v10289_v57 = vmul.f32 %v1119_v47, %v305_v46  ;;  %v296_v49 = vld [vmem:[%s15050_s2 + $0xb8] sm:$0xff] }
 0x148   : > { %v10294_v20 = vmul.f32 %v1130_v32, %v292_v2  ;;  %v10297_v22 = vpack.c.bf16 %v1130_v32, %v10249_v28  ;;  %v10299_v27 = vmul.f32 %v1130_v32, %v300_v7  ;;  %v10301_v29 = vmul.f32 %v1130_v32, %v308_v8  ;;  %v301_v2 = vld [vmem:[%s15050_s2 + $0xe0] sm:$0xff] }
 0x149   : > { %v10309_v43 = vpack.c.bf16 %v1122_v31, %v1119_v47  ;;  %v1150_v44 = vmul.f32 %v1122_v31, %v290_v50  ;;  %v10311_v48 = vmul.f32 %v1122_v31, %v298_v54  ;;  %v10313_v52 = vmul.f32 %v1122_v31, %v306_v14  ;;  %v304_v50 = vld [vmem:[%s15050_s2 + $0xf8] sm:$0xff] }
 0x14a   : > { %v10336_v13 = vmul.f32 %v1119_v47, %v313_v18  ;;  %v10353_v38 = vmul.f32 %v1122_v31, %v314_v36  ;;  %v293_v47 = vld [vmem:[%s15050_s2 + $0xa0] sm:$0xff]  ;;  %v312_v54 = vld [vmem:[%s15050_s2 + $0x138] sm:$0xff]  ;;  %v10377_v31 = vmul.f32 %v10249_v28, %v315_v53  ;;  %v310_v28 = vld [vmem:[%s15050_s2 + $0x128] sm:$0xff] }
 0x14b   : > { %v8324_v16 = vpop.f32.mrb[36].mxu0  ;;  %1205 = vrot.lane.b32.xlu0 %v10309_v43, %s9749_s12  ;;  %v1181_v17 = vpack.c.bf16 %v1150_v44, %v1149_v39  ;;  %v10379_v39 = vmul.f32 %v1130_v32, %v316_v58 }
 0x14c   : > { %v1143_v42 = vadd.f32 %v8324_v16, %v1052_v41  ;;  %v1134_v46 = vpop.f32.mrb[37].mxu0  ;;  %v294_v41 = vld [vmem:[%s15050_s2 + $0xa8] sm:$0xff] }
 0x14d   : > { %v1135_v7 = vadd.f32 %v1134_v46, %v1050_v62  ;;  %v8325_v8 = vpop.f32.mrb[38].mxu0  ;;  %8334 = vmatprep.mubr.msk.bf16.mxu1 %vm553_vm0, %v1181_v17  ;;  %v302_v62 = vld [vmem:[%s15050_s2 + $0xe8] sm:$0xff] }
 0x14e   : > { %v1146_v18 = vadd.f32 %v8325_v8, %v1053_v63  ;;  %v1137_v36 = vpop.f32.mrb[39].mxu0  ;;  %v10384_v44 = vmul.f32 %v1143_v42, %v295_v9  ;;  %v10389_v16 = vmul.f32 %v1143_v42, %v303_v24  ;;  %v10394_v32 = vmul.f32 %v1143_v42, %v311_v30 }
 0x14f   : > { %v1138_v53 = vadd.f32 %v1137_v36, %v1051_v0  ;;  %1207 = vrot.lane.b32.xlu0 %v10297_v22, %s9749_s12  ;;  %v10398_v58 = vmul.f32 %v1135_v7, %v293_v47  ;;  %v10400_v63 = vmul.f32 %v1135_v7, %v301_v2  ;;  %v10402_v17 = vmul.f32 %v1135_v7, %v309_v3  ;;  %v317_v0 = vld [vmem:[%s15050_s2 + $0x160] sm:$0xff] }
 0x150   : > { %v10404_v9 = vpack.c.bf16 %v1146_v18, %v1143_v42  ;;  %v10406_v24 = vmul.f32 %v1146_v18, %v296_v49  ;;  %v10408_v46 = vmul.f32 %v1146_v18, %v304_v50  ;;  %v10410_v8 = vmul.f32 %v1146_v18, %v312_v54  ;;  %v318_v49 = vld [vmem:[%s15050_s2 + $0x168] sm:$0xff]  ;;  %v319_v50 = vld [vmem:[%s15050_s2 + $0x170] sm:$0xff]  ;;  %v320_v54 = vld [vmem:[%s15050_s2 + $0x178] sm:$0xff] }
 0x151   : > { %v10415_v30 = vpack.c.bf16 %v1138_v53, %v1135_v7  ;;  %v10417_v47 = vmul.f32 %v1138_v53, %v294_v41  ;;  %v10419_v2 = vmul.f32 %v1138_v53, %v302_v62  ;;  %v10421_v3 = vmul.f32 %v1138_v53, %v310_v28 }
 0x152   : > { %v10448_v4 = vmul.f32 %v1135_v7, %v317_v0  ;;  %v10450_v41 = vmul.f32 %v1138_v53, %v318_v49  ;;  %v10452_v62 = vmul.f32 %v1143_v42, %v319_v50  ;;  %v10454_v10 = vmul.f32 %v1146_v18, %v320_v54  ;;  %v8276_v42 = vpop.f32.mrb[0].mxu1 }
 0x153   : > { %1209 = vrot.lane.b32.xlu1 %v10415_v30, %s9749_s12  ;;  %v889_v7 = vpop.f32.mrb[1].mxu1 }
 0x154   : > { %v8277_v18 = vpop.f32.mrb[2].mxu1 }
 0x155   : > { %v10466_v53 = vpack.c.bf16 %v8277_v18, %v8276_v42  ;;  %v892_v0 = vpop.f32.mrb[3].mxu1 }
 0x156   : > { %v10468_v49 = vpack.c.bf16 %v892_v0, %v889_v7  ;;  %v8280_v50 = vpop.f32.mrb[4].mxu1 }
 0x157   : > { %1211 = vrot.lane.b32.xlu1 %v10404_v9, %s9749_s12  ;;  %15177 = vst [vmem:[#allocation18_spill] sm:$0xff] %v10466_v53  ;;  %v905_v54 = vpop.f32.mrb[5].mxu1 }
 0x158   : > { %15178 = vst [vmem:[#allocation19_spill] sm:$0xff] %v10468_v49  ;;  %v8281_v36 = vpop.f32.mrb[6].mxu1 }
 0x159   : > { %v10470_v28 = vpack.c.bf16 %v8281_v36, %v8280_v50  ;;  %v908_v25 = vpop.f32.mrb[7].mxu1 }
 0x15a   : > { %v10472_v12 = vpack.c.bf16 %v908_v25, %v905_v54 }
 0x15b   : > { %1803 = vrot.lane.b32.xlu1 %v10309_v43, %s9750_s26  ;;  %15179 = vst [vmem:[#allocation20_spill] sm:$0xff] %v10470_v28  ;;  %v8284_v43 = vpop.f32.mrb[8].mxu1 }
 0x15c   : > { %15180 = vst [vmem:[#allocation21_spill] sm:$0xff] %v10472_v12  ;;  %v921_v14 = vpop.f32.mrb[9].mxu1 }
 0x15d   : > { %v8285_v60 = vpop.f32.mrb[10].mxu1 }
 0x15e   : > { %v924_v19 = vpop.f32.mrb[11].mxu1 }
 0x15f   : > { %1805 = vrot.lane.b32.xlu1 %v10297_v22, %s9750_s26  ;;  %v10474_v22 = vpack.c.bf16 %v8285_v60, %v8284_v43  ;;  %v10476_v1 = vpack.c.bf16 %v924_v19, %v921_v14  ;;  %v8288_v42 = vpop.f32.mrb[12].mxu1 }
 0x160   : > { %v937_v18 = vpop.f32.mrb[13].mxu1 }
 0x161   : > { %15181 = vst [vmem:[#allocation22_spill] sm:$0xff] %v10474_v22  ;;  %15182 = vst [vmem:[#allocation23_spill] sm:$0xff] %v10476_v1  ;;  %v8289_v7 = vpop.f32.mrb[14].mxu1 }
 0x162   : > { %v10478_v0 = vpack.c.bf16 %v8289_v7, %v8288_v42  ;;  %v940_v53 = vpop.f32.mrb[15].mxu1 }
 0x163   : > { %v10480_v49 = vpack.c.bf16 %v940_v53, %v937_v18  ;;  %v8292_v36 = vpop.f32.mrb[16].mxu1 }
 0x164   : > { %15183 = vst [vmem:[#allocation24_spill] sm:$0xff] %v10478_v0  ;;  %v953_v50 = vpop.f32.mrb[17].mxu1 }
 0x165   : > { %15184 = vst [vmem:[#allocation25_spill] sm:$0xff] %v10480_v49  ;;  %v8293_v25 = vpop.f32.mrb[18].mxu1 }
 0x166   : > { %v10482_v54 = vpack.c.bf16 %v8293_v25, %v8292_v36  ;;  %v956_v28 = vpop.f32.mrb[19].mxu1 }
 0x167   : > { %v10484_v12 = vpack.c.bf16 %v956_v28, %v953_v50  ;;  %v8296_v60 = vpop.f32.mrb[20].mxu1 }
 0x168   : > { %15185 = vst [vmem:[#allocation26_spill] sm:$0xff] %v10482_v54  ;;  %v969_v43 = vpop.f32.mrb[21].mxu1 }
 0x169   : > { %15186 = vst [vmem:[#allocation27_spill] sm:$0xff] %v10484_v12  ;;  %v8297_v19 = vpop.f32.mrb[22].mxu1 }
 0x16a   : > { %v10486_v14 = vpack.c.bf16 %v8297_v19, %v8296_v60  ;;  %v972_v22 = vpop.f32.mrb[23].mxu1 }
 0x16b   : > { %v10488_v1 = vpack.c.bf16 %v972_v22, %v969_v43 }
 0x16c   : > { %15187 = vst [vmem:[#allocation28_spill] sm:$0xff] %v10486_v14 }
 0x16d   : > { %15188 = vst [vmem:[#allocation29_spill] sm:$0xff] %v10488_v1  ;;  %v8300_v42 = vpop.f32.mrb[24].mxu1 }
 0x16e   : > { %v985_v7 = vpop.f32.mrb[25].mxu1 }
 0x16f   : > { %v8301_v53 = vpop.f32.mrb[26].mxu1 }
 0x170   : > { %v10490_v18 = vpack.c.bf16 %v8301_v53, %v8300_v42  ;;  %v988_v0 = vpop.f32.mrb[27].mxu1 }
 0x171   : > { %v10492_v49 = vpack.c.bf16 %v988_v0, %v985_v7 }
 0x172   : > { %15189 = vst [vmem:[#allocation30_spill] sm:$0xff] %v10490_v18 }
 0x173   : > { %15190 = vst [vmem:[#allocation31_spill] sm:$0xff] %v10492_v49 }
 0x175   : > { %v8304_v36 = vpop.f32.mrb[28].mxu1 }
 0x176   : > { %v1001_v25 = vpop.f32.mrb[29].mxu1 }
 0x177   : > { %v8305_v28 = vpop.f32.mrb[30].mxu1 }
 0x178   : > { %v10494_v50 = vpack.c.bf16 %v8305_v28, %v8304_v36  ;;  %v1004_v54 = vpop.f32.mrb[31].mxu1  ;;  %v2112_v36 = vld [vmem:[%s15050_s2 + $0x360] sm:$0xff] }
 0x179   : > { %v10496_v21 = vpack.c.bf16 %v1004_v54, %v1001_v25  ;;  %v2113_v25 = vld [vmem:[%s15050_s2 + $0x368] sm:$0xff] }
 0x17a   : > { %15191 = vst [vmem:[#allocation32_spill] sm:$0xff] %v10494_v50  ;;  %v2120_v28 = vpack.c.bf16 %v2113_v25, %v2112_v36 }
 0x17b   : > { %15192 = vst [vmem:[#allocation33_spill] sm:$0xff] %v10496_v21 }
 0x1bd   : > { %v1206_v60 = vpop.permute.xlu0 %1205 }
 0x1be   : > { %8656 = vmatprep.subr.msk.bf16.mxu1 %vm553_vm0, %v1206_v60  ;;  %v1262_v22 = vsel %vm553_vm0, %v1206_v60, 0 }
 0x1bf   : > { %8327 = vmatpush3.bf16.xpose.msra.mxu1 %v1262_v22  ;;  %v2114_v22 = vld [vmem:[%s15050_s2 + $0x370] sm:$0xff] }
 0x1c1   : > { %v1208_v43 = vpop.permute.xlu0 %1207 }
 0x1c2   : > { %8657 = vmatprep.subr.msk.bf16.mxu1 %vm553_vm0, %v1208_v43  ;;  %v1265_v0 = vsel %vm553_vm0, %v1208_v43, 0  ;;  %v2115_v43 = vld [vmem:[%s15050_s2 + $0x378] sm:$0xff] }
 0x1c5   : > { %v1210_v19 = vpop.permute.xlu1 %1209 }
 0x1c6   : > { %v1268_v54 = vsel %vm553_vm0, %v1210_v19, 0 }
 0x1c7   : > { %8329 = vmatpush3.bf16.xpose.msra.mxu1 %v1265_v0  ;;  %v2121_v0 = vpack.c.bf16 %v2115_v43, %v2114_v22 }
 0x1c8   : > { %8658 = vmatprep.subr.msk.bf16.mxu1 %vm553_vm0, %v1210_v19  ;;  %v2140_v19 = vsel %vm553_vm0, %v2120_v28, 0 }
 0x1c9   : > { %v1212_v42 = vpop.permute.xlu1 %1211 }
 0x1ca   : > { %v1271_v60 = vsel %vm553_vm0, %v1212_v42, 0 }
 0x1cd   : > { %v1804_v7 = vpop.permute.xlu1 %1803 }
 0x1ce   : > { %8366 = vmatprep.subr.bf16.mxu0 %v1804_v7 }
 0x1cf   : > { %8331 = vmatpush3.bf16.xpose.msra.mxu1 %v1268_v54  ;;  %8367 = vmatpush3.bf16.msra.mxu0 %v1804_v7  ;;  %v15193_v7 = vpack.c.bf16 %v10294_v20, %v10270_v23  ;;  %v2143_v54 = vsel %vm553_vm0, %v2121_v0, 0  ;;  %v15196_v23 = vpack.c.bf16 %v10311_v48, %v10287_v56  ;;  %v15197_v20 = vpack.c.bf16 %v10299_v27, %v10279_v5 }
 0x1d0   : > { %8659 = vmatprep.subr.msk.bf16.mxu1 %vm553_vm0, %v1212_v42  ;;  %v15194_v42 = vpack.c.bf16 %v10417_v47, %v10398_v58  ;;  %v15198_v58 = vpack.c.bf16 %v10419_v2, %v10400_v63  ;;  %v15200_v56 = vpack.c.bf16 %v10313_v52, %v10289_v57  ;;  %v15201_v5 = vpack.c.bf16 %v10301_v29, %v10285_v15 }
 0x1d1   : > { %v1806_v53 = vpop.permute.xlu1 %1805  ;;  %v15202_v27 = vpack.c.bf16 %v10421_v3, %v10402_v17  ;;  %v15203_v48 = vpack.c.bf16 %v10410_v8, %v10394_v32  ;;  %v15204_v57 = vpack.c.bf16 %v10353_v38, %v10336_v13  ;;  %v15205_v15 = vpack.c.bf16 %v10379_v39, %v10377_v31 }
 0x1d2   : > { %8368 = vmatprep.subr.bf16.mxu0 %v1806_v53  ;;  %v15206_v29 = vpack.c.bf16 %v10450_v41, %v10448_v4  ;;  %v15207_v52 = vpack.c.bf16 %v10454_v10, %v10452_v62  ;;  %v9751_v13 = vmov -1e+30  }
 0x1d3   : > { %8369 = vmatpush3.bf16.msra.mxu0 %v1806_v53  ;;  %v15195_v53 = vpack.c.bf16 %v10406_v24, %v10384_v44  ;;  %v15199_v44 = vpack.c.bf16 %v10408_v46, %v10389_v16  ;;  %v433_v16 = vlaneseq }
 0x1d5   : > { %v434_v32 = vand.u32 127, %v433_v16 }
 0x1d7   : > { %8333 = vmatpush3.bf16.xpose.msra.mxu1 %v1271_v60  ;;  %vm435_vm1 = vcmp.lt.s32.totalorder %v434_v32, 54 }
 0x1d8   : > { %8660 = vmatprep.subr.msk.bf16.mxu1 %vm553_vm0, %v2120_v28  ;;  %v10584_v38 = vsel %vm435_vm1, 0.0, %v9751_v13 }
 0x1d9   : > { %15208 = vst [vmem:[#allocation34_spill] sm:$0xff] %v10584_v38 }
 0x1de   : > { %8335 = vmatmul.mubr.msk.bf16.vlgmr.msra.gmra.mrb[32].mxu1 %vm553_vm0, %v15193_v7 }
 0x1df   : > { %8338 = vmatprep.mubr.msk.bf16.mxu1 %vm553_vm0, %v15194_v42  ;;  %8407 = vmatpush3.bf16.xpose.msra.mxu1 %v2140_v19 }
 0x1e0   : > { %8661 = vmatprep.subr.msk.bf16.mxu1 %vm553_vm0, %v2121_v0 }
 0x1e6   : > { %8339 = vmatmul.mubr.msk.bf16.gmra.mrb[36].mxu1 %vm553_vm0, %v15195_v53 }
 0x1e7   : > { %8342 = vmatprep.mubr.msk.bf16.mxu1 %vm553_vm0, %v15196_v23  ;;  %8409 = vmatpush3.bf16.xpose.msra.mxu1 %v2143_v54 }
 0x1e8   : > { %8664 = vmatprep.subr.msk.bf16.mxu1 %vm553_vm0, %v10214_v37 }
 0x1ee   : > { %8343 = vmatmul.mubr.msk.bf16.gmra.mrb[40].mxu1 %vm553_vm0, %v15197_v20 }
 0x1ef   : > { %8346 = vmatprep.mubr.msk.bf16.mxu1 %vm553_vm0, %v15198_v58 }
 0x1f6   : > { %8347 = vmatmul.mubr.msk.bf16.gmra.mrb[44].mxu1 %vm553_vm0, %v15199_v44 }
 0x1f7   : > { %8350 = vmatprep.mubr.msk.bf16.mxu1 %vm553_vm0, %v15200_v56 }
 0x1fe   : > { %8351 = vmatmul.mubr.msk.bf16.gmra.mrb[48].mxu1 %vm553_vm0, %v15201_v5 }
 0x1ff   : > { %8354 = vmatprep.mubr.msk.bf16.mxu1 %vm553_vm0, %v15202_v27 }
 0x206   : > { %8355 = vmatmul.mubr.msk.bf16.gmra.mrb[52].mxu1 %vm553_vm0, %v15203_v48 }
 0x207   : > { %8358 = vmatprep.mubr.msk.bf16.mxu1 %vm553_vm0, %v15204_v57 }
 0x20e   : > { %8359 = vmatmul.mubr.msk.bf16.gmra.mrb[56].mxu1 %vm553_vm0, %v15205_v15 }
 0x20f   : > { %8362 = vmatprep.mubr.msk.bf16.mxu1 %vm553_vm0, %v15206_v29 }
 0x216   : > { %8363 = vmatmul.mubr.msk.bf16.gmra.mrb[60].mxu1 %vm553_vm0, %v15207_v52 }
 0x2b1   : > { %v8336_v63 = vpop.f32.mrb[32].mxu1 }
 0x2b2   : > { %v10587_v31 = vadd.f32 %v8336_v63, %v10584_v38  ;;  %v1307_v39 = vpop.f32.mrb[33].mxu1 }
 0x2b3   : > { %v8337_v4 = vpop.f32.mrb[34].mxu1  ;;  %v10590_v17 = vadd.f32 %v1307_v39, %v10584_v38 }
 0x2b4   : > { %v1310_v24 = vpop.f32.mrb[35].mxu1  ;;  %v1441_v10 = vsel %vm1434_vm2, %v10587_v31, -inf  ;;  %v10600_v47 = vadd.f32 %v8337_v4, %v10584_v38 }
 0x2b5   : > { %v10595_v46 = vadd.f32 %v1310_v24, %v10584_v38  ;;  %1442 = vmax.xlane.f32.xlu0 %v1441_v10  ;;  %v1435_v2 = vsel %vm1434_vm2, %v10590_v17, -inf }
 0x2b6   : > { %v1444_v43 = vsel %vm1434_vm2, %v10600_v47, -inf }
 0x2b7   : > { %v1438_v8 = vsel %vm1434_vm2, %v10595_v46, -inf }
 0x2b8   : > { %1439 = vmax.xlane.f32.xlu1 %v1438_v8 }
 0x2b9   : > { %v8340_v3 = vpop.f32.mrb[36].mxu1  ;;  %1436 = vmax.xlane.f32.xlu0 %v1435_v2 }
 0x2ba   : > { %v10605_v41 = vadd.f32 %v8340_v3, %v10584_v38  ;;  %v1323_v62 = vpop.f32.mrb[37].mxu1 }
 0x2bb   : > { %v8341_v36 = vpop.f32.mrb[38].mxu1  ;;  %v10608_v25 = vadd.f32 %v1323_v62, %v10584_v38 }
 0x2bc   : > { %v10611_v28 = vadd.f32 %v8341_v36, %v10584_v38  ;;  %v1326_v60 = vpop.f32.mrb[39].mxu1  ;;  %v1453_v22 = vsel %vm1434_vm2, %v10605_v41, -inf }
 0x2bd   : > { %1454 = vmax.xlane.f32.xlu1 %v1453_v22  ;;  %1445 = vmax.xlane.f32.xlu0 %v1444_v43  ;;  %v10618_v19 = vadd.f32 %v1326_v60, %v10584_v38  ;;  %v1447_v0 = vsel %vm1434_vm2, %v10608_v25, -inf }
 0x2be   : > { %v1456_v7 = vsel %vm1434_vm2, %v10611_v28, -inf }
 0x2bf   : > { %v1450_v5 = vsel %vm1434_vm2, %v10618_v19, -inf }
 0x2c1   : > { %v8344_v42 = vpop.f32.mrb[40].mxu1  ;;  %1448 = vmax.xlane.f32.xlu1 %v1447_v0  ;;  %1457 = vmax.xlane.f32.xlu0 %v1456_v7 }
 0x2c2   : > { %v10625_v54 = vadd.f32 %v8344_v42, %v10584_v38  ;;  %v1339_v53 = vpop.f32.mrb[41].mxu1 }
 0x2c3   : > { %v8345_v23 = vpop.f32.mrb[42].mxu1  ;;  %v10628_v20 = vadd.f32 %v1339_v53, %v10584_v38 }
 0x2c4   : > { %v10631_v58 = vadd.f32 %v8345_v23, %v10584_v38  ;;  %v1342_v44 = vpop.f32.mrb[43].mxu1  ;;  %v1465_v56 = vsel %vm1434_vm2, %v10625_v54, -inf }
 0x2c5   : > { %1466 = vmax.xlane.f32.xlu1 %v1465_v56  ;;  %1451 = vmax.xlane.f32.xlu0 %v1450_v5  ;;  %v10638_v27 = vadd.f32 %v1342_v44, %v10584_v38  ;;  %v1459_v48 = vsel %vm1434_vm2, %v10628_v20, -inf }
 0x2c6   : > { %v1468_v57 = vsel %vm1434_vm2, %v10631_v58, -inf }
 0x2c7   : > { %v1462_v4 = vsel %vm1434_vm2, %v10638_v27, -inf }
 0x2c9   : > { %v8348_v15 = vpop.f32.mrb[44].mxu1  ;;  %1460 = vmax.xlane.f32.xlu1 %v1459_v48  ;;  %1469 = vmax.xlane.f32.xlu0 %v1468_v57 }
 0x2ca   : > { %v10645_v29 = vadd.f32 %v8348_v15, %v10584_v38  ;;  %v1355_v52 = vpop.f32.mrb[45].mxu1 }
 0x2cb   : > { %v8349_v16 = vpop.f32.mrb[46].mxu1  ;;  %v10648_v32 = vadd.f32 %v1355_v52, %v10584_v38 }
 0x2cc   : > { %v10651_v13 = vadd.f32 %v8349_v16, %v10584_v38  ;;  %v1358_v63 = vpop.f32.mrb[47].mxu1  ;;  %v1477_v39 = vsel %vm1434_vm2, %v10645_v29, -inf }
 0x2cd   : > { %1478 = vmax.xlane.f32.xlu1 %v1477_v39  ;;  %1463 = vmax.xlane.f32.xlu0 %v1462_v4  ;;  %v10658_v24 = vadd.f32 %v1358_v63, %v10584_v38  ;;  %v1471_v10 = vsel %vm1434_vm2, %v10648_v32, -inf }
 0x2ce   : > { %v1480_v8 = vsel %vm1434_vm2, %v10651_v13, -inf }
 0x2cf   : > { %v1474_v7 = vsel %vm1434_vm2, %v10658_v24, -inf }
 0x2d1   : > { %v8352_v2 = vpop.f32.mrb[48].mxu1  ;;  %1472 = vmax.xlane.f32.xlu1 %v1471_v10  ;;  %1481 = vmax.xlane.f32.xlu0 %v1480_v8 }
 0x2d2   : > { %v10665_v3 = vadd.f32 %v8352_v2, %v10584_v38  ;;  %v1371_v62 = vpop.f32.mrb[49].mxu1 }
 0x2d3   : > { %v8353_v36 = vpop.f32.mrb[50].mxu1  ;;  %v10668_v60 = vadd.f32 %v1371_v62, %v10584_v38 }
 0x2d4   : > { %v10671_v22 = vadd.f32 %v8353_v36, %v10584_v38  ;;  %v1374_v43 = vpop.f32.mrb[51].mxu1  ;;  %v1489_v0 = vsel %vm1434_vm2, %v10665_v3, -inf }
 0x2d5   : > { %1490 = vmax.xlane.f32.xlu1 %v1489_v0  ;;  %1475 = vmax.xlane.f32.xlu0 %v1474_v7  ;;  %v10678_v42 = vadd.f32 %v1374_v43, %v10584_v38  ;;  %v1483_v53 = vsel %vm1434_vm2, %v10668_v60, -inf }
 0x2d6   : > { %v1492_v23 = vsel %vm1434_vm2, %v10671_v22, -inf }
 0x2d7   : > { %v1486_v63 = vsel %vm1434_vm2, %v10678_v42, -inf }
 0x2d9   : > { %v8356_v44 = vpop.f32.mrb[52].mxu1  ;;  %1484 = vmax.xlane.f32.xlu1 %v1483_v53  ;;  %1493 = vmax.xlane.f32.xlu0 %v1492_v23 }
 0x2da   : > { %v10685_v56 = vadd.f32 %v8356_v44, %v10584_v38  ;;  %v1387_v5 = vpop.f32.mrb[53].mxu1 }
 0x2db   : > { %v8357_v48 = vpop.f32.mrb[54].mxu1  ;;  %v10688_v57 = vadd.f32 %v1387_v5, %v10584_v38 }
 0x2dc   : > { %v10691_v15 = vadd.f32 %v8357_v48, %v10584_v38  ;;  %v1390_v52 = vpop.f32.mrb[55].mxu1  ;;  %v1501_v16 = vsel %vm1434_vm2, %v10685_v56, -inf }
 0x2dd   : > { %1502 = vmax.xlane.f32.xlu1 %v1501_v16  ;;  %1487 = vmax.xlane.f32.xlu0 %v1486_v63  ;;  %v10698_v39 = vadd.f32 %v1390_v52, %v10584_v38  ;;  %v1495_v4 = vsel %vm1434_vm2, %v10688_v57, -inf }
 0x2de   : > { %v1504_v10 = vsel %vm1434_vm2, %v10691_v15, -inf }
 0x2df   : > { %v1498_v23 = vsel %vm1434_vm2, %v10698_v39, -inf }
 0x2e1   : > { %v8360_v8 = vpop.f32.mrb[56].mxu1  ;;  %1496 = vmax.xlane.f32.xlu1 %v1495_v4  ;;  %1505 = vmax.xlane.f32.xlu0 %v1504_v10 }
 0x2e2   : > { %v10705_v2 = vadd.f32 %v8360_v8, %v10584_v38  ;;  %v1403_v62 = vpop.f32.mrb[57].mxu1 }
 0x2e3   : > { %v8361_v36 = vpop.f32.mrb[58].mxu1  ;;  %v10708_v43 = vadd.f32 %v1403_v62, %v10584_v38 }
 0x2e4   : > { %v10711_v0 = vadd.f32 %v8361_v36, %v10584_v38  ;;  %v1406_v7 = vpop.f32.mrb[59].mxu1  ;;  %v1513_v53 = vsel %vm1434_vm2, %v10705_v2, -inf }
 0x2e5   : > { %1514 = vmax.xlane.f32.xlu1 %v1513_v53  ;;  %1499 = vmax.xlane.f32.xlu0 %v1498_v23  ;;  %v10718_v44 = vadd.f32 %v1406_v7, %v10584_v38  ;;  %v1507_v5 = vsel %vm1434_vm2, %v10708_v43, -inf }
 0x2e6   : > { %v1516_v48 = vsel %vm1434_vm2, %v10711_v0, -inf }
 0x2e7   : > { %v1510_v36 = vsel %vm1434_vm2, %v10718_v44, -inf }
 0x2e9   : > { %v8364_v52 = vpop.f32.mrb[60].mxu1  ;;  %1508 = vmax.xlane.f32.xlu1 %v1507_v5  ;;  %1517 = vmax.xlane.f32.xlu0 %v1516_v48 }
 0x2ea   : > { %v10725_v16 = vadd.f32 %v8364_v52, %v10584_v38  ;;  %v1419_v63 = vpop.f32.mrb[61].mxu1 }
 0x2eb   : > { %v8365_v4 = vpop.f32.mrb[62].mxu1  ;;  %v10728_v10 = vadd.f32 %v1419_v63, %v10584_v38 }
 0x2ec   : > { %v1422_v8 = vpop.f32.mrb[63].mxu1  ;;  %v1525_v62 = vsel %vm1434_vm2, %v10725_v16, -inf  ;;  %v10739_v53 = vadd.f32 %v8365_v4, %v10584_v38 }
 0x2ed   : > { %1526 = vmax.xlane.f32.xlu1 %v1525_v62  ;;  %1511 = vmax.xlane.f32.xlu0 %v1510_v36  ;;  %v1519_v7 = vsel %vm1434_vm2, %v10728_v10, -inf  ;;  %v10742_v23 = vadd.f32 %v1422_v8, %v10584_v38 }
 0x2ee   : > { %v1528_v5 = vsel %vm1434_vm2, %v10739_v53, -inf }
 0x2ef   : > { %v1522_v48 = vsel %vm1434_vm2, %v10742_v23, -inf }
 0x2f1   : > { %1520 = vmax.xlane.f32.xlu1 %v1519_v7 }
 0x303   : > { %1807 = vrot.lane.b32.xlu0 %v10415_v30, %s9750_s26 }
 0x322   : > { %1529 = vmax.xlane.f32.xlu0 %v1528_v5 }
 0x326   : > { %1523 = vmax.xlane.f32.xlu0 %v1522_v48 }
 0x342   : > { %v1443_v52 = vpop.xlane.xlu0 %1442 }
 0x343   : > { %v1533_v63 = vsub.f32 %v10587_v31, %v1443_v52 }
 0x345   : > { %v1567_v62 = vmul.f32 1.442695, %v1533_v63  ;;  %v1440_v36 = vpop.xlane.xlu1 %1439 }
 0x346   : > { %v1437_v30 = vpop.xlane.xlu0 %1436  ;;  %v1532_v8 = vsub.f32 %v10595_v46, %v1440_v36 }
 0x347   : > { %8717 = vpow2.f32 %v1567_v62  ;;  %v1531_v4 = vsub.f32 %v10590_v17, %v1437_v30 }
 0x348   : > { %v1565_v18 = vmul.f32 1.442695, %v1532_v8 }
 0x349   : > { %v1563_v7 = vmul.f32 1.442695, %v1531_v4 }
 0x34a   : > { %v1455_v37 = vpop.xlane.xlu1 %1454  ;;  %v1446_v38 = vpop.xlane.xlu0 %1445 }
 0x34b   : > { %8719 = vpow2.f32 %v1563_v7  ;;  %v1537_v5 = vsub.f32 %v10605_v41, %v1455_v37  ;;  %v1534_v50 = vsub.f32 %v10600_v47, %v1446_v38 }
 0x34d   : > { %v1575_v48 = vmul.f32 1.442695, %v1537_v5  ;;  %v1569_v21 = vmul.f32 1.442695, %v1534_v50 }
 0x34e   : > { %v1449_v31 = vpop.xlane.xlu1 %1448  ;;  %v1458_v52 = vpop.xlane.xlu0 %1457 }
 0x34f   : > { %8721 = vpow2.f32 %v1575_v48  ;;  %v1535_v63 = vsub.f32 %v10608_v25, %v1449_v31  ;;  %v1538_v17 = vsub.f32 %v10611_v28, %v1458_v52 }
 0x350   : > { %8723 = vpow2.f32 %v1569_v21 }
 0x351   : > { %v10755_v62 = vpop.eup %8717  ;;  %v1571_v46 = vmul.f32 1.442695, %v1535_v63  ;;  %8725 = vpow2.f32 %v1565_v18  ;;  %v1577_v36 = vmul.f32 1.442695, %v1538_v17 }
 0x352   : > { %v1467_v30 = vpop.xlane.xlu1 %1466  ;;  %v1452_v37 = vpop.xlane.xlu0 %1451  ;;  %v1633_v38 = vsel %vm1434_vm2, %v10755_v62, 0.0 }
 0x353   : > { %8727 = vpow2.f32 %v1571_v46  ;;  %v1536_v50 = vsub.f32 %v10618_v19, %v1452_v37  ;;  %1634 = vadd.xlane.f32.xlu1 %v1633_v38  ;;  %v1541_v41 = vsub.f32 %v10625_v54, %v1467_v30 }
 0x354   : > { %8729 = vpow2.f32 %v1577_v36 }
 0x355   : > { %v10760_v47 = vpop.eup %8719  ;;  %v1573_v21 = vmul.f32 1.442695, %v1536_v50  ;;  %v1583_v8 = vmul.f32 1.442695, %v1541_v41 }
 0x356   : > { %v1461_v25 = vpop.xlane.xlu1 %1460  ;;  %v1470_v28 = vpop.xlane.xlu0 %1469  ;;  %v1627_v18 = vsel %vm1434_vm2, %v10760_v47, 0.0 }
 0x357   : > { %1628 = vadd.xlane.f32.xlu1 %v1627_v18  ;;  %8731 = vpow2.f32 %v1573_v21  ;;  %v1539_v19 = vsub.f32 %v10628_v20, %v1461_v25  ;;  %v1542_v20 = vsub.f32 %v10631_v58, %v1470_v28 }
 0x358   : > { %8733 = vpow2.f32 %v1583_v8 }
 0x359   : > { %v10765_v4 = vpop.eup %8721  ;;  %v1579_v36 = vmul.f32 1.442695, %v1539_v19  ;;  %v1585_v58 = vmul.f32 1.442695, %v1542_v20 }
 0x35a   : > { %v10767_v7 = vpop.eup %8723  ;;  %v1479_v5 = vpop.xlane.xlu1 %1478  ;;  %v1645_v54 = vsel %vm1434_vm2, %v10765_v4, 0.0 }
 0x35b   : > { %v1464_v48 = vpop.xlane.xlu0 %1463  ;;  %v1545_v31 = vsub.f32 %v10645_v29, %v1479_v5  ;;  %1646 = vadd.xlane.f32.xlu1 %v1645_v54  ;;  %v1636_v52 = vsel %vm1434_vm2, %v10767_v7, 0.0  ;;  %v10775_v63 = vpop.eup %8725 }
 0x35c   : > { %1637 = vadd.xlane.f32.xlu0 %v1636_v52  ;;  %v1630_v41 = vsel %vm1434_vm2, %v10775_v63, 0.0  ;;  %v1540_v28 = vsub.f32 %v10638_v27, %v1464_v48 }
 0x35d   : > { %v10777_v17 = vpop.eup %8727  ;;  %v1591_v46 = vmul.f32 1.442695, %v1545_v31 }
 0x35e   : > { %v1473_v30 = vpop.xlane.xlu1 %1472  ;;  %v1639_v38 = vsel %vm1434_vm2, %v10777_v17, 0.0  ;;  %v10786_v21 = vpop.eup %8729  ;;  %v1581_v5 = vmul.f32 1.442695, %v1540_v28 }
 0x35f   : > { %v1482_v37 = vpop.xlane.xlu0 %1481  ;;  %8735 = vpow2.f32 %v1591_v46  ;;  %v1543_v29 = vsub.f32 %v10648_v32, %v1473_v30  ;;  %1640 = vadd.xlane.f32.xlu1 %v1639_v38  ;;  %v1648_v32 = vsel %vm1434_vm2, %v10786_v21, 0.0 }
 0x360   : > { %v1546_v50 = vsub.f32 %v10651_v13, %v1482_v37  ;;  %1631 = vadd.xlane.f32.xlu0 %v1630_v41  ;;  %8737 = vpow2.f32 %v1579_v36 }
 0x361   : > { %v1587_v25 = vmul.f32 1.442695, %v1543_v29  ;;  %v10791_v19 = vpop.eup %8731 }
 0x362   : > { %v1593_v18 = vmul.f32 1.442695, %v1546_v50  ;;  %v1491_v13 = vpop.xlane.xlu1 %1490  ;;  %v1642_v52 = vsel %vm1434_vm2, %v10791_v19, 0.0  ;;  %v10798_v27 = vpop.eup %8733 }
 0x363   : > { %v1476_v8 = vpop.xlane.xlu0 %1475  ;;  %8739 = vpow2.f32 %v1587_v25  ;;  %v1549_v46 = vsub.f32 %v10665_v3, %v1491_v13 }
 0x364   : > { %1649 = vadd.xlane.f32.xlu0 %v1648_v32  ;;  %8741 = vpow2.f32 %v1593_v18  ;;  %v1544_v54 = vsub.f32 %v10658_v24, %v1476_v8  ;;  %v1657_v24 = vsel %vm1434_vm2, %v10798_v27, 0.0 }
 0x365   : > { %8743 = vpow2.f32 %v1585_v58  ;;  %v1599_v50 = vmul.f32 1.442695, %v1549_v46 }
 0x366   : > { %8745 = vpow2.f32 %v1581_v5  ;;  %v1589_v36 = vmul.f32 1.442695, %v1544_v54  ;;  %v1485_v37 = vpop.xlane.xlu1 %1484 }
 0x367   : > { %v10794_v31 = vpop.xlane.xlu0 %1493  ;;  %v1547_v41 = vsub.f32 %v10668_v60, %v1485_v37 }
 0x368   : > { %1643 = vadd.xlane.f32.xlu0 %v1642_v52  ;;  %8747 = vpow2.f32 %v1589_v36 }
 0x369   : > { %v10800_v48 = vpop.eup %8735  ;;  %8749 = vpow2.f32 %v1599_v50  ;;  %v1595_v32 = vmul.f32 1.442695, %v1547_v41 }
 0x36a   : > { %v1669_v30 = vsel %vm1434_vm2, %v10800_v48, 0.0  ;;  %v10807_v38 = vpop.eup %8737  ;;  %v1503_v8 = vpop.xlane.xlu1 %1502 }
 0x36b   : > { %v1488_v20 = vpop.xlane.xlu0 %1487  ;;  %1670 = vadd.xlane.f32.xlu1 %v1669_v30  ;;  %v1651_v58 = vsel %vm1434_vm2, %v10807_v38, 0.0  ;;  %8751 = vpow2.f32 %v1595_v32  ;;  %v1553_v46 = vsub.f32 %v10685_v56, %v1503_v8 }
 0x36c   : > { %1658 = vadd.xlane.f32.xlu0 %v1657_v24  ;;  %v1548_v13 = vsub.f32 %v10678_v42, %v1488_v20 }
 0x36d   : > { %v10809_v29 = vpop.eup %8739  ;;  %v1607_v24 = vmul.f32 1.442695, %v1553_v46 }
 0x36e   : > { %v1663_v25 = vsel %vm1434_vm2, %v10809_v29, 0.0  ;;  %v10814_v18 = vpop.eup %8741  ;;  %v1597_v36 = vmul.f32 1.442695, %v1548_v13  ;;  %v1497_v37 = vpop.xlane.xlu1 %1496 }
 0x36f   : > { %v1506_v3 = vpop.xlane.xlu0 %1505  ;;  %1664 = vadd.xlane.f32.xlu1 %v1663_v25  ;;  %v10818_v28 = vpop.eup %8743  ;;  %v1672_v60 = vsel %vm1434_vm2, %v10814_v18, 0.0  ;;  %v1551_v50 = vsub.f32 %v10688_v57, %v1497_v37 }
 0x370   : > { %1652 = vadd.xlane.f32.xlu0 %v1651_v58  ;;  %v1660_v54 = vsel %vm1434_vm2, %v10818_v28, 0.0  ;;  %v10825_v52 = vpop.eup %8745  ;;  %8753 = vpow2.f32 %v1597_v36  ;;  %v1554_v8 = vsub.f32 %v10691_v15, %v1506_v3 }
 0x371   : > { %v1654_v42 = vsel %vm1434_vm2, %v10825_v52, 0.0  ;;  %8755 = vpow2.f32 %v1607_v24  ;;  %v1603_v56 = vmul.f32 1.442695, %v1551_v50 }
 0x372   : > { %v10830_v20 = vpop.eup %8747  ;;  %v1515_v57 = vpop.xlane.xlu1 %1514 }
 0x373   : > { %v1500_v5 = vpop.xlane.xlu0 %1499  ;;  %1673 = vadd.xlane.f32.xlu1 %v1672_v60  ;;  %v1666_v25 = vsel %vm1434_vm2, %v10830_v20, 0.0  ;;  %v10835_v58 = vpop.eup %8749  ;;  %8757 = vpow2.f32 %v1603_v56  ;;  %v1557_v15 = vsub.f32 %v10705_v2, %v1515_v57 }
 0x374   : > { %1661 = vadd.xlane.f32.xlu0 %v1660_v54  ;;  %v1681_v13 = vsel %vm1434_vm2, %v10835_v58, 0.0  ;;  %v1609_v54 = vmul.f32 1.442695, %v1554_v8  ;;  %v1552_v46 = vsub.f32 %v10698_v39, %v1500_v5 }
 0x375   : > { %v10840_v60 = vpop.eup %8751  ;;  %v1615_v39 = vmul.f32 1.442695, %v1557_v15 }
 0x376   : > { %v1675_v36 = vsel %vm1434_vm2, %v10840_v60, 0.0  ;;  %8759 = vpow2.f32 %v1609_v54  ;;  %v1605_v3 = vmul.f32 1.442695, %v1552_v46 }
 0x377   : > { %v1518_v30 = vpop.xlane.xlu0 %1517 }
 0x378   : > { %1655 = vadd.xlane.f32.xlu0 %v1654_v42  ;;  %v1509_v42 = vpop.xlane.xlu1 %1508  ;;  %8761 = vpow2.f32 %v1605_v3  ;;  %v1558_v57 = vsub.f32 %v10711_v0, %v1518_v30 }
 0x379   : > { %v1555_v5 = vsub.f32 %v10708_v43, %v1509_v42  ;;  %8763 = vpow2.f32 %v1615_v39  ;;  %v1550_v43 = vsub.f32 %v10671_v22, %v10794_v31 }
 0x37a   : > { %v10845_v37 = vpop.eup %8753 }
 0x37b   : > { %v1512_v41 = vpop.xlane.xlu0 %1511  ;;  %v1678_v24 = vsel %vm1434_vm2, %v10845_v37, 0.0  ;;  %v10852_v50 = vpop.eup %8755  ;;  %v1611_v2 = vmul.f32 1.442695, %v1555_v5 }
 0x37c   : > { %1667 = vadd.xlane.f32.xlu0 %v1666_v25  ;;  %v1693_v25 = vsel %vm1434_vm2, %v10852_v50, 0.0  ;;  %v1556_v8 = vsub.f32 %v10718_v44, %v1512_v41  ;;  %v1601_v44 = vmul.f32 1.442695, %v1550_v43  ;;  %v1617_v41 = vmul.f32 1.442695, %v1558_v57 }
 0x37d   : > { %v10857_v56 = vpop.eup %8757  ;;  %8765 = vpow2.f32 %v1611_v2 }
 0x37e   : > { %v1613_v54 = vmul.f32 1.442695, %v1556_v8 }
 0x37f   : > { %v1808_v32 = vpop.permute.xlu0 %1807 }
 0x380   : > { %8370 = vmatprep.subr.bf16.mxu0 %v1808_v32  ;;  %1682 = vadd.xlane.f32.xlu0 %v1681_v13  ;;  %v10862_v13 = vpop.eup %8759  ;;  %8767 = vpow2.f32 %v1613_v54 }
 0x381   : > { %8371 = vmatpush3.bf16.msra.mxu0 %v1808_v32  ;;  %v1687_v32 = vsel %vm1434_vm2, %v10857_v56, 0.0  ;;  %8769 = vpow2.f32 %v1601_v44 }
 0x382   : > { %v10869_v15 = vpop.eup %8761  ;;  %8771 = vpow2.f32 %v1617_v41 }
 0x383   : > { %v1690_v42 = vsel %vm1434_vm2, %v10869_v15, 0.0  ;;  %v10874_v22 = vpop.eup %8763 }
 0x384   : > { %1676 = vadd.xlane.f32.xlu0 %v1675_v36  ;;  %1809 = vrot.lane.b32.xlu1 %v10404_v9, %s9750_s26  ;;  %v1527_v9 = vpop.xlane.xlu1 %1526  ;;  %v1696_v36 = vsel %vm1434_vm2, %v10862_v13, 0.0  ;;  %v1705_v30 = vsel %vm1434_vm2, %v10874_v22, 0.0 }
 0x385   : > { %v1561_v0 = vsub.f32 %v10725_v16, %v1527_v9 }
 0x387   : > { %v1623_v39 = vmul.f32 1.442695, %v1561_v0 }
 0x388   : > { %1679 = vadd.xlane.f32.xlu0 %v1678_v24  ;;  %v1521_v46 = vpop.xlane.xlu1 %1520  ;;  %v10879_v24 = vpop.eup %8765 }
 0x389   : > { %v1559_v3 = vsub.f32 %v10728_v10, %v1521_v46  ;;  %v1699_v10 = vsel %vm1434_vm2, %v10879_v24, 0.0 }
 0x38a   : > { %v10883_v5 = vpop.eup %8767 }
 0x38b   : > { %v1619_v31 = vmul.f32 1.442695, %v1559_v3  ;;  %v1702_v16 = vsel %vm1434_vm2, %v10883_v5, 0.0 }
 0x38c   : > { %1694 = vadd.xlane.f32.xlu0 %v1693_v25  ;;  %v10885_v25 = vpop.eup %8769 }
 0x38d   : > { %8773 = vpow2.f32 %v1619_v31  ;;  %v10889_v9 = vpop.eup %8771  ;;  %v1684_v8 = vsel %vm1434_vm2, %v10885_v25, 0.0 }
 0x38e   : > { %8775 = vpow2.f32 %v1623_v39  ;;  %v1708_v2 = vsel %vm1434_vm2, %v10889_v9, 0.0 }
 0x390   : > { %1688 = vadd.xlane.f32.xlu0 %v1687_v32 }
 0x394   : > { %1697 = vadd.xlane.f32.xlu0 %v1696_v36 }
 0x397   : > { %v10895_v32 = vpop.eup %8773 }
 0x398   : > { %1691 = vadd.xlane.f32.xlu0 %v1690_v42  ;;  %v1711_v43 = vsel %vm1434_vm2, %v10895_v32, 0.0  ;;  %v10899_v57 = vpop.eup %8775 }
 0x399   : > { %v1717_v54 = vsel %vm1434_vm2, %v10899_v57, 0.0 }
 0x39c   : > { %1706 = vadd.xlane.f32.xlu0 %v1705_v30 }
 0x3a0   : > { %1700 = vadd.xlane.f32.xlu0 %v1699_v10 }
 0x3a4   : > { %1703 = vadd.xlane.f32.xlu0 %v1702_v16 }
 0x3a8   : > { %1709 = vadd.xlane.f32.xlu0 %v1708_v2  ;;  %1685 = vadd.xlane.f32.xlu1 %v1684_v8 }
 0x3ac   : > { %1712 = vadd.xlane.f32.xlu0 %v1711_v43 }
 0x3af   : > { %v1530_v46 = vpop.xlane.xlu0 %1529 }
 0x3b0   : > { %1718 = vadd.xlane.f32.xlu0 %v1717_v54  ;;  %v1562_v36 = vsub.f32 %v10739_v53, %v1530_v46 }
 0x3b2   : > { %v1625_v3 = vmul.f32 1.442695, %v1562_v36 }
 0x3b3   : > { %v1524_v44 = vpop.xlane.xlu0 %1523 }
 0x3b4   : > { %v1560_v41 = vsub.f32 %v10742_v23, %v1524_v44 }
 0x3b6   : > { %v1621_v42 = vmul.f32 1.442695, %v1560_v41 }
 0x3b8   : > { %8777 = vpow2.f32 %v1621_v42 }
 0x3b9   : > { %8779 = vpow2.f32 %v1625_v3 }
 0x3c2   : > { %v10905_v0 = vpop.eup %8777 }
 0x3c3   : > { %v1714_v31 = vsel %vm1434_vm2, %v10905_v0, 0.0  ;;  %v10909_v30 = vpop.eup %8779 }
 0x3c4   : > { %1715 = vadd.xlane.f32.xlu1 %v1714_v31  ;;  %v1720_v39 = vsel %vm1434_vm2, %v10909_v30, 0.0 }
 0x3c8   : > { %1721 = vadd.xlane.f32.xlu1 %v1720_v39 }
 0x3e0   : > { %v1635_v53 = vpop.xlane.xlu1 %1634 }
 0x3e4   : > { %v1629_v10 = vpop.xlane.xlu1 %1628 }
 0x3e5   : > { %8781 = vrcp.f32 %v1629_v10 }
 0x3e8   : > { %v1647_v2 = vpop.xlane.xlu1 %1646 }
 0x3e9   : > { %v1638_v16 = vpop.xlane.xlu0 %1637 }
 0x3ec   : > { %v1641_v43 = vpop.xlane.xlu1 %1640 }
 0x3ed   : > { %v1632_v23 = vpop.xlane.xlu0 %1631 }
 0x3ee   : > { %8783 = vrcp.f32 %v1632_v23 }
 0x3ef   : > { %v8782_v46 = vpop.eup %8781  ;;  %8785 = vrcp.f32 %v1638_v16  ;;  %v2358_v16 = vld [vmem:[%s15050_s2 + $0x388] sm:$0xff] }
 0x3f0   : > { %v1755_v3 = vmul.f32 %v8782_v46, %v10760_v47 }
 0x3f1   : > { %v1650_v8 = vpop.xlane.xlu0 %1649 }
 0x3f5   : > { %v1644_v54 = vpop.xlane.xlu0 %1643 }
 0x3f6   : > { %8787 = vrcp.f32 %v1644_v54 }
 0x3f7   : > { %8789 = vrcp.f32 %v1635_v53  ;;  %v2357_v53 = vld [vmem:[%s15050_s2 + $0x380] sm:$0xff] }
 0x3f8   : > { %v8784_v36 = vpop.eup %8783  ;;  %v1671_v44 = vpop.xlane.xlu1 %1670  ;;  %8791 = vrcp.f32 %v1641_v43 }
 0x3f9   : > { %v1659_v41 = vpop.xlane.xlu0 %1658  ;;  %v1756_v42 = vmul.f32 %v8784_v36, %v10775_v63  ;;  %8793 = vrcp.f32 %v1650_v8  ;;  %v8786_v23 = vpop.eup %8785  ;;  %v2365_v36 = vpack.c.bf16 %v2358_v16, %v2357_v53 }
 0x3fa   : > { %8795 = vrcp.f32 %v1647_v2  ;;  %v1758_v46 = vmul.f32 %v8786_v23, %v10767_v7 }
 0x3fb   : > { %v1787_v31 = vpack.c.bf16 %v1756_v42, %v1755_v3 }
 0x3fc   : > { %v1665_v39 = vpop.xlane.xlu1 %1664 }
 0x3fd   : > { %8374 = vmatprep.mubr.msk.bf16.mxu0 %vm1434_vm2, %v1787_v31  ;;  %v1653_v10 = vpop.xlane.xlu0 %1652 }
 0x3fe   : > { %8797 = vrcp.f32 %v1653_v10 }
 0x400   : > { %v1674_v49 = vpop.xlane.xlu1 %1673  ;;  %v8788_v47 = vpop.eup %8787 }
 0x401   : > { %v1662_v43 = vpop.xlane.xlu0 %1661  ;;  %v8790_v63 = vpop.eup %8789  ;;  %v1760_v2 = vmul.f32 %v8788_v47, %v10791_v19  ;;  %v2360_v19 = vld [vmem:[%s15050_s2 + $0x398] sm:$0xff] }
 0x402   : > { %v8792_v54 = vpop.eup %8791  ;;  %v1757_v3 = vmul.f32 %v8790_v63, %v10755_v62  ;;  %8799 = vrcp.f32 %v1662_v43  ;;  %v2359_v62 = vld [vmem:[%s15050_s2 + $0x390] sm:$0xff] }
 0x403   : > { %v1759_v31 = vmul.f32 %v8792_v54, %v10777_v17  ;;  %v8794_v1 = vpop.eup %8793 }
 0x404   : > { %v1810_v8 = vpop.permute.xlu1 %1809  ;;  %v1788_v14 = vpack.c.bf16 %v1758_v46, %v1757_v3  ;;  %v8796_v23 = vpop.eup %8795  ;;  %v1762_v17 = vmul.f32 %v8794_v1, %v10786_v21 }
 0x405   : > { %v1656_v42 = vpop.xlane.xlu0 %1655  ;;  %8372 = vmatprep.subr.bf16.mxu0 %v1810_v8  ;;  %v1789_v7 = vpack.c.bf16 %v1760_v2, %v1759_v31 }
 0x406   : > { %8801 = vrcp.f32 %v1656_v42  ;;  %8373 = vmatpush3.bf16.msra.mxu0 %v1810_v8 }
 0x407   : > { %8662 = vmatprep.subr.msk.bf16.mxu0 %vm553_vm0, %v2365_v36  ;;  %8803 = vrcp.f32 %v1659_v41  ;;  %v2380_v41 = vsel %vm553_vm0, %v2365_v36, 0 }
 0x408   : > { %8805 = vrcp.f32 %v1665_v39  ;;  %v2366_v39 = vpack.c.bf16 %v2360_v19, %v2359_v62  ;;  %v8798_v16 = vpop.eup %8797 }
 0x409   : > { %v1668_v10 = vpop.xlane.xlu0 %1667  ;;  %8375 = vmatmul.mubr.msk.bf16.vlgmr.msra.gmra.mrb[40].mxu0 %vm1434_vm2, %v1788_v14  ;;  %v1761_v14 = vmul.f32 %v8796_v23, %v10765_v4  ;;  %v1763_v1 = vmul.f32 %v8798_v16, %v10807_v38 }
 0x40a   : > { %8807 = vrcp.f32 %v1668_v10  ;;  %8378 = vmatprep.mubr.msk.bf16.mxu0 %vm1434_vm2, %v1789_v7  ;;  %v2383_v2 = vsel %vm553_vm0, %v2366_v39, 0 }
 0x40b   : > { %8809 = vrcp.f32 %v1674_v49  ;;  %v1790_v43 = vpack.c.bf16 %v1762_v17, %v1761_v14 }
 0x40c   : > { %v8800_v47 = vpop.eup %8799  ;;  %8811 = vrcp.f32 %v1671_v44 }
 0x40d   : > { %v1683_v53 = vpop.xlane.xlu0 %1682  ;;  %v1766_v4 = vmul.f32 %v8800_v47, %v10818_v28 }
 0x40f   : > { %8419 = vmatpush3.bf16.xpose.msra.mxu0 %v2380_v41 }
 0x410   : > { %v8802_v63 = vpop.eup %8801  ;;  %8663 = vmatprep.subr.msk.bf16.mxu0 %vm553_vm0, %v2366_v39 }
 0x411   : > { %v1677_v54 = vpop.xlane.xlu0 %1676  ;;  %8379 = vmatmul.mubr.msk.bf16.gmra.mrb[44].mxu0 %vm1434_vm2, %v1790_v43  ;;  %v1764_v21 = vmul.f32 %v8802_v63, %v10825_v52  ;;  %v8804_v46 = vpop.eup %8803 }
 0x412   : > { %v8806_v36 = vpop.eup %8805  ;;  %8813 = vrcp.f32 %v1677_v54  ;;  %v1765_v3 = vmul.f32 %v8804_v46, %v10798_v27 }
 0x413   : > { %v1791_v8 = vpack.c.bf16 %v1764_v21, %v1763_v1  ;;  %v1767_v38 = vmul.f32 %v8806_v36, %v10809_v29 }
 0x414   : > { %v8808_v49 = vpop.eup %8807  ;;  %v1792_v52 = vpack.c.bf16 %v1766_v4, %v1765_v3 }
 0x415   : > { %8382 = vmatprep.mubr.msk.bf16.mxu0 %vm1434_vm2, %v1791_v8  ;;  %v1680_v44 = vpop.xlane.xlu0 %1679  ;;  %v1768_v42 = vmul.f32 %v8808_v49, %v10830_v20  ;;  %v8810_v31 = vpop.eup %8809 }
 0x416   : > { %8815 = vrcp.f32 %v1680_v44  ;;  %v8812_v10 = vpop.eup %8811  ;;  %v1770_v62 = vmul.f32 %v8810_v31, %v10814_v18 }
 0x417   : > { %8421 = vmatpush3.bf16.xpose.msra.mxu0 %v2383_v2  ;;  %v1793_v28 = vpack.c.bf16 %v1768_v42, %v1767_v38  ;;  %v1769_v20 = vmul.f32 %v8812_v10, %v10800_v48 }
 0x418   : > { %7848 = vmatprep.subr.bf16.mxu0 %v10484_v12 }
 0x419   : > { %v1695_v7 = vpop.xlane.xlu0 %1694  ;;  %8383 = vmatmul.mubr.msk.bf16.gmra.mrb[48].mxu0 %vm1434_vm2, %v1792_v52  ;;  %v1794_v23 = vpack.c.bf16 %v1770_v62, %v1769_v20 }
 0x41a   : > { %8386 = vmatprep.mubr.msk.bf16.mxu0 %vm1434_vm2, %v1793_v28 }
 0x41c   : > { %v8814_v19 = vpop.eup %8813 }
 0x41d   : > { %v1689_v27 = vpop.xlane.xlu0 %1688  ;;  %v1771_v41 = vmul.f32 %v8814_v19, %v10840_v60 }
 0x420   : > { %v8816_v29 = vpop.eup %8815 }
 0x421   : > { %v1698_v17 = vpop.xlane.xlu0 %1697  ;;  %8387 = vmatmul.mubr.msk.bf16.gmra.mrb[52].mxu0 %vm1434_vm2, %v1794_v23  ;;  %v1772_v39 = vmul.f32 %v8816_v29, %v10845_v37 }
 0x423   : > { %v1795_v14 = vpack.c.bf16 %v1772_v39, %v1771_v41 }
 0x425   : > { %8390 = vmatprep.mubr.msk.bf16.mxu0 %vm1434_vm2, %v1795_v14  ;;  %v1692_v16 = vpop.xlane.xlu0 %1691 }
 0x426   : > { %8817 = vrcp.f32 %v1692_v16 }
 0x427   : > { %8819 = vrcp.f32 %v1683_v53 }
 0x428   : > { %8821 = vrcp.f32 %v1689_v27 }
 0x429   : > { %v1707_v47 = vpop.xlane.xlu0 %1706 }
 0x42d   : > { %v1701_v43 = vpop.xlane.xlu0 %1700 }
 0x430   : > { %v8818_v63 = vpop.eup %8817 }
 0x431   : > { %v1704_v48 = vpop.xlane.xlu0 %1703  ;;  %v8820_v60 = vpop.eup %8819  ;;  %v1776_v21 = vmul.f32 %v8818_v63, %v10869_v15  ;;  %v331_v63 = vld [vmem:[%s15050_s2 + $0x1d0] sm:$0xff] }
 0x432   : > { %v8822_v54 = vpop.eup %8821  ;;  %v1773_v46 = vmul.f32 %v8820_v60, %v10835_v58 }
 0x433   : > { %v1775_v53 = vmul.f32 %v8822_v54, %v10857_v56  ;;  %v322_v54 = vld [vmem:[%s15050_s2 + $0x188] sm:$0xff] }
 0x435   : > { %v1686_v18 = vpop.xlane.xlu1 %1685  ;;  %v1710_v37 = vpop.xlane.xlu0 %1709  ;;  %v1797_v49 = vpack.c.bf16 %v1776_v21, %v1775_v53 }
 0x436   : > { %8823 = vrcp.f32 %v1686_v18 }
 0x437   : > { %8825 = vrcp.f32 %v1698_v17 }
 0x438   : > { %8827 = vrcp.f32 %v1704_v48  ;;  %v323_v48 = vld [vmem:[%s15050_s2 + $0x190] sm:$0xff] }
 0x439   : > { %8829 = vrcp.f32 %v1695_v7  ;;  %v1713_v42 = vpop.xlane.xlu0 %1712 }
 0x43a   : > { %8831 = vrcp.f32 %v1701_v43 }
 0x43b   : > { %8833 = vrcp.f32 %v1710_v37  ;;  %v329_v37 = vld [vmem:[%s15050_s2 + $0x1c0] sm:$0xff] }
 0x43c   : > { %8835 = vrcp.f32 %v1707_v47 }
 0x43d   : > { %8837 = vrcp.f32 %v1713_v42  ;;  %v1719_v10 = vpop.xlane.xlu0 %1718 }
 0x440   : > { %v8824_v1 = vpop.eup %8823 }
 0x441   : > { %v1774_v36 = vmul.f32 %v8824_v1, %v10885_v25  ;;  %v8826_v4 = vpop.eup %8825 }
 0x442   : > { %v8828_v2 = vpop.eup %8827  ;;  %v1778_v15 = vmul.f32 %v8826_v4, %v10862_v13  ;;  %v330_v4 = vld [vmem:[%s15050_s2 + $0x1c8] sm:$0xff] }
 0x443   : > { %v1796_v8 = vpack.c.bf16 %v1774_v36, %v1773_v46  ;;  %v8830_v44 = vpop.eup %8829  ;;  %v1780_v58 = vmul.f32 %v8828_v2, %v10883_v5  ;;  %v332_v46 = vld [vmem:[%s15050_s2 + $0x1d8] sm:$0xff] }
 0x444   : > { %v8832_v3 = vpop.eup %8831  ;;  %v1777_v25 = vmul.f32 %v8830_v44, %v10852_v50 }
 0x445   : > { %8391 = vmatmul.mubr.msk.bf16.gmra.mrb[56].mxu0 %vm1434_vm2, %v1796_v8  ;;  %v1779_v56 = vmul.f32 %v8832_v3, %v10879_v24  ;;  %v8834_v52 = vpop.eup %8833 }
 0x446   : > { %8394 = vmatprep.mubr.msk.bf16.mxu0 %vm1434_vm2, %v1797_v49  ;;  %v1798_v38 = vpack.c.bf16 %v1778_v15, %v1777_v25  ;;  %v8836_v28 = vpop.eup %8835  ;;  %v1782_v7 = vmul.f32 %v8834_v52, %v10889_v9 }
 0x447   : > { %v1799_v31 = vpack.c.bf16 %v1780_v58, %v1779_v56  ;;  %v1781_v5 = vmul.f32 %v8836_v28, %v10874_v22  ;;  %v8838_v24 = vpop.eup %8837  ;;  %v327_v56 = vld [vmem:[%s15050_s2 + $0x1b0] sm:$0xff] }
 0x448   : > { %v1783_v20 = vmul.f32 %v8838_v24, %v10895_v32 }
 0x449   : > { %v1800_v50 = vpack.c.bf16 %v1782_v7, %v1781_v5  ;;  %v325_v7 = vld [vmem:[%s15050_s2 + $0x1a0] sm:$0xff] }
 0x44d   : > { %8395 = vmatmul.mubr.msk.bf16.gmra.mrb[60].mxu0 %vm1434_vm2, %v1798_v38 }
 0x44e   : > { %8398 = vmatprep.mubr.msk.bf16.mxu0 %vm1434_vm2, %v1799_v31 }
 0x451   : > { %v1716_v13 = vpop.xlane.xlu1 %1715 }
 0x452   : > { %8839 = vrcp.f32 %v1716_v13 }
 0x453   : > { %8841 = vrcp.f32 %v1719_v10 }
 0x455   : > { %v1722_v62 = vpop.xlane.xlu1 %1721  ;;  %8399 = vmatmul.mubr.msk.bf16.gmra.mrb[64].mxu0 %vm1434_vm2, %v1800_v50  ;;  %v328_v50 = vld [vmem:[%s15050_s2 + $0x1b8] sm:$0xff] }
 0x456   : > { %8843 = vrcp.f32 %v1722_v62 }
 0x45c   : > { %v8840_v27 = vpop.eup %8839 }
 0x45d   : > { %v1784_v19 = vmul.f32 %v8840_v27, %v10905_v0  ;;  %v8842_v23 = vpop.eup %8841  ;;  %v335_v27 = vld [vmem:[%s15050_s2 + $0x1f0] sm:$0xff] }
 0x45e   : > { %v1785_v17 = vmul.f32 %v8842_v23, %v10899_v57  ;;  %v321_v57 = vld [vmem:[%s15050_s2 + $0x180] sm:$0xff] }
 0x45f   : > { %v1801_v29 = vpack.c.bf16 %v1784_v19, %v1783_v20  ;;  %v326_v19 = vld [vmem:[%s15050_s2 + $0x1a8] sm:$0xff] }
 0x460   : > { %v8844_v9 = vpop.eup %8843 }
 0x461   : > { %8402 = vmatprep.mubr.msk.bf16.mxu0 %vm1434_vm2, %v1801_v29  ;;  %v1786_v22 = vmul.f32 %v8844_v9, %v10909_v30  ;;  %v324_v30 = vld [vmem:[%s15050_s2 + $0x198] sm:$0xff]  ;;  %v333_v29 = vld [vmem:[%s15050_s2 + $0x1e0] sm:$0xff] }
 0x463   : > { %v1802_v41 = vpack.c.bf16 %v1786_v22, %v1785_v17  ;;  %v336_v22 = vld [vmem:[%s15050_s2 + $0x1f8] sm:$0xff] }
 0x465   : > { %8403 = vmatmul.mubr.msk.bf16.gmra.mrb[68].mxu0 %vm1434_vm2, %v1802_v41 }
 0x4dc   : > { %v8376_v39 = vpop.f32.mrb[40].mxu0 }
 0x4dd   : > { %v1897_v14 = vpop.f32.mrb[41].mxu0  ;;  %v2026_v60 = vmul.f32 %v8376_v39, %v323_v48 }
 0x4de   : > { %v8377_v16 = vpop.f32.mrb[42].mxu0  ;;  %v2024_v1 = vmul.f32 %v1897_v14, %v321_v57 }
 0x4df   : > { %v1900_v47 = vpop.f32.mrb[43].mxu0  ;;  %v2027_v36 = vmul.f32 %v8377_v16, %v324_v30  ;;  %v2070_v3 = vsel %vm553_vm0, %v2026_v60, 0.0  ;;  %v334_v16 = vld [vmem:[%s15050_s2 + $0x1e8] sm:$0xff] }
 0x4e0   : > { %v2025_v49 = vmul.f32 %v1900_v47, %v322_v54  ;;  %v2056_v42 = vsel %vm553_vm0, %v2024_v1, 0.0 }
 0x4e1   : > { %v2077_v28 = vsel %vm553_vm0, %v2027_v36, 0.0 }
 0x4e2   : > { %v2063_v5 = vsel %vm553_vm0, %v2025_v49, 0.0  ;;  %v337_v49 = vld [vmem:[%s15050_s2 + $0x200] sm:$0xff] }
 0x4e4   : > { %v8380_v43 = vpop.f32.mrb[44].mxu0 }
 0x4e5   : > { %v1913_v32 = vpop.f32.mrb[45].mxu0  ;;  %v2030_v20 = vmul.f32 %v8380_v43, %v327_v56 }
 0x4e6   : > { %v8381_v18 = vpop.f32.mrb[46].mxu0  ;;  %v2028_v9 = vmul.f32 %v1913_v32, %v325_v7 }
 0x4e7   : > { %v1916_v0 = vpop.f32.mrb[47].mxu0  ;;  %v2031_v41 = vmul.f32 %v8381_v18, %v328_v50  ;;  %v2098_v57 = vsel %vm553_vm0, %v2030_v20, 0.0  ;;  %v343_v20 = vld [vmem:[%s15050_s2 + $0x230] sm:$0xff] }
 0x4e8   : > { %v2029_v47 = vmul.f32 %v1916_v0, %v326_v19  ;;  %v2084_v60 = vsel %vm553_vm0, %v2028_v9, 0.0 }
 0x4e9   : > { %v2105_v1 = vsel %vm553_vm0, %v2031_v41, 0.0 }
 0x4ea   : > { %v2091_v0 = vsel %vm553_vm0, %v2029_v47, 0.0 }
 0x4ec   : > { %v8384_v21 = vpop.f32.mrb[48].mxu0 }
 0x4ed   : > { %v2034_v53 = vmul.f32 %v8384_v21, %v331_v63  ;;  %v1929_v8 = vpop.f32.mrb[49].mxu0 }
 0x4ee   : > { %v2032_v2 = vmul.f32 %v1929_v8, %v329_v37  ;;  %v8385_v44 = vpop.f32.mrb[50].mxu0 }
 0x4ef   : > { %v2071_v15 = vsel %vm553_vm0, %v2034_v53, 0.0  ;;  %v2035_v58 = vmul.f32 %v8385_v44, %v332_v46  ;;  %v1932_v25 = vpop.f32.mrb[51].mxu0  ;;  %v340_v44 = vld [vmem:[%s15050_s2 + $0x218] sm:$0xff] }
 0x4f0   : > { %v2072_v38 = vadd.f32 %v2071_v15, %v2070_v3  ;;  %v2057_v52 = vsel %vm553_vm0, %v2032_v2, 0.0  ;;  %v2033_v31 = vmul.f32 %v1932_v25, %v330_v4  ;;  %v339_v4 = vld [vmem:[%s15050_s2 + $0x210] sm:$0xff] }
 0x4f1   : > { %v2058_v10 = vadd.f32 %v2057_v52, %v2056_v42  ;;  %v2078_v13 = vsel %vm553_vm0, %v2035_v58, 0.0  ;;  %v338_v58 = vld [vmem:[%s15050_s2 + $0x208] sm:$0xff] }
 0x4f2   : > { %v2079_v62 = vadd.f32 %v2078_v13, %v2077_v28  ;;  %v2064_v24 = vsel %vm553_vm0, %v2033_v31, 0.0 }
 0x4f3   : > { %v2065_v23 = vadd.f32 %v2064_v24, %v2063_v5 }
 0x4f4   : > { %v8388_v17 = vpop.f32.mrb[52].mxu0 }
 0x4f5   : > { %v2038_v39 = vmul.f32 %v8388_v17, %v335_v27  ;;  %v1945_v14 = vpop.f32.mrb[53].mxu0 }
 0x4f6   : > { %v2036_v43 = vmul.f32 %v1945_v14, %v333_v29  ;;  %v8389_v48 = vpop.f32.mrb[54].mxu0  ;;  %v341_v29 = vld [vmem:[%s15050_s2 + $0x220] sm:$0xff] }
 0x4f7   : > { %v2099_v30 = vsel %vm553_vm0, %v2038_v39, 0.0  ;;  %v2039_v32 = vmul.f32 %v8389_v48, %v336_v22  ;;  %v1948_v63 = vpop.f32.mrb[55].mxu0 }
 0x4f8   : > { %v2100_v54 = vadd.f32 %v2099_v30, %v2098_v57  ;;  %v2085_v18 = vsel %vm553_vm0, %v2036_v43, 0.0  ;;  %v2037_v37 = vmul.f32 %v1948_v63, %v334_v16  ;;  %v347_v63 = vld [vmem:[%s15050_s2 + $0x250] sm:$0xff] }
 0x4f9   : > { %v2086_v21 = vadd.f32 %v2085_v18, %v2084_v60  ;;  %v2106_v46 = vsel %vm553_vm0, %v2039_v32, 0.0  ;;  %v345_v18 = vld [vmem:[%s15050_s2 + $0x240] sm:$0xff] }
 0x4fa   : > { %v2107_v36 = vadd.f32 %v2106_v46, %v2105_v1  ;;  %v2092_v53 = vsel %vm553_vm0, %v2037_v37, 0.0  ;;  %v346_v46 = vld [vmem:[%s15050_s2 + $0x248] sm:$0xff] }
 0x4fb   : > { %v2093_v8 = vadd.f32 %v2092_v53, %v2091_v0 }
 0x518   : > { %v8392_v2 = vpop.f32.mrb[56].mxu0 }
 0x519   : > { %v2042_v3 = vmul.f32 %v8392_v2, %v339_v4  ;;  %v1961_v15 = vpop.f32.mrb[57].mxu0 }
 0x51a   : > { %v2040_v25 = vmul.f32 %v1961_v15, %v337_v49  ;;  %v8393_v42 = vpop.f32.mrb[58].mxu0 }
 0x51b   : > { %v2073_v56 = vsel %vm553_vm0, %v2042_v3, 0.0  ;;  %v2043_v52 = vmul.f32 %v8393_v42, %v340_v44  ;;  %v1964_v31 = vpop.f32.mrb[59].mxu0 }
 0x51c   : > { %v2074_v28 = vadd.f32 %v2073_v56, %v2072_v38  ;;  %v2059_v7 = vsel %vm553_vm0, %v2040_v25, 0.0  ;;  %v2041_v13 = vmul.f32 %v1964_v31, %v338_v58  ;;  %v344_v38 = vld [vmem:[%s15050_s2 + $0x238] sm:$0xff]  ;;  %v2563_v31 = vsel %vm553_vm0, %v10198_v33, 0 }
 0x51d   : > { %v2060_v5 = vadd.f32 %v2059_v7, %v2058_v10  ;;  %v2080_v50 = vsel %vm553_vm0, %v2043_v52, 0.0  ;;  %v349_v7 = vld [vmem:[%s15050_s2 + $0x260] sm:$0xff] }
 0x51e   : > { %v2081_v24 = vadd.f32 %v2080_v50, %v2079_v62  ;;  %v2066_v27 = vsel %vm553_vm0, %v2041_v13, 0.0  ;;  %v342_v62 = vld [vmem:[%s15050_s2 + $0x228] sm:$0xff] }
 0x51f   : > { %v2067_v19 = vadd.f32 %v2066_v27, %v2065_v23  ;;  %v350_v27 = vld [vmem:[%s15050_s2 + $0x268] sm:$0xff] }
 0x520   : > { %v8396_v9 = vpop.f32.mrb[60].mxu0 }
 0x521   : > { %v2046_v10 = vmul.f32 %v8396_v9, %v343_v20  ;;  %v1977_v17 = vpop.f32.mrb[61].mxu0 }
 0x522   : > { %v2044_v22 = vmul.f32 %v1977_v17, %v341_v29  ;;  %v8397_v41 = vpop.f32.mrb[62].mxu0 }
 0x523   : > { %v2101_v39 = vsel %vm553_vm0, %v2046_v10, 0.0  ;;  %v2047_v23 = vmul.f32 %v8397_v41, %v344_v38  ;;  %v1980_v14 = vpop.f32.mrb[63].mxu0 }
 0x524   : > { %v2102_v16 = vadd.f32 %v2101_v39, %v2100_v54  ;;  %v2087_v47 = vsel %vm553_vm0, %v2044_v22, 0.0  ;;  %v2045_v43 = vmul.f32 %v1980_v14, %v342_v62  ;;  %v348_v54 = vld [vmem:[%s15050_s2 + $0x258] sm:$0xff]  ;;  %v2566_v39 = vsel %vm553_vm0, %v10196_v26, 0 }
 0x525   : > { %v2088_v48 = vadd.f32 %v2087_v47, %v2086_v21  ;;  %v2108_v57 = vsel %vm553_vm0, %v2047_v23, 0.0 }
 0x526   : > { %v2109_v30 = vadd.f32 %v2108_v57, %v2107_v36  ;;  %v2094_v32 = vsel %vm553_vm0, %v2045_v43, 0.0 }
 0x527   : > { %v2095_v60 = vadd.f32 %v2094_v32, %v2093_v8  ;;  %v2578_v32 = vsel %vm553_vm0, %v10204_v34, 0 }
 0x528   : > { %v8400_v37 = vpop.f32.mrb[64].mxu0 }
 0x529   : > { %v2050_v1 = vmul.f32 %v8400_v37, %v347_v63  ;;  %v1993_v21 = vpop.f32.mrb[65].mxu0  ;;  %v15209_v63 = vld [vmem:[#allocation9_spill] sm:$0xff]  ;;  %v15211_v37 = vld [vmem:[#allocation8_spill] sm:$0xff] }
 0x52a   : > { %v2048_v0 = vmul.f32 %v1993_v21, %v345_v18  ;;  %v8401_v36 = vpop.f32.mrb[66].mxu0  ;;  %v15210_v18 = vld [vmem:[#allocation16_spill] sm:$0xff] }
 0x52b   : > { %v2075_v53 = vsel %vm553_vm0, %v2050_v1, 0.0  ;;  %v2051_v8 = vmul.f32 %v8401_v36, %v348_v54  ;;  %v1996_v4 = vpop.f32.mrb[67].mxu0  ;;  %v2584_v54 = vsel %vm553_vm0, %v15211_v37, 0  ;;  %v7557_v1 = vld [vmem:[%s15052_s4] ss:$0 sm:$0xff] }
 0x52c   : > { %v2076_v49 = vadd.f32 %v2075_v53, %v2074_v28  ;;  %v2061_v2 = vsel %vm553_vm0, %v2048_v0, 0.0  ;;  %v2049_v44 = vmul.f32 %v1996_v4, %v346_v46  ;;  %v351_v28 = vld [vmem:[%s15050_s2 + $0x270] sm:$0xff] }
 0x52d   : > { %v2062_v3 = vadd.f32 %v2061_v2, %v2060_v5  ;;  %v2082_v15 = vsel %vm553_vm0, %v2051_v8, 0.0  ;;  %v352_v5 = vld [vmem:[%s15050_s2 + $0x278] sm:$0xff]  ;;  %v9453_v2 = vld [vmem:[%s15050_s2] sm:$0xff] }
 0x52e   : > { %v2083_v58 = vadd.f32 %v2082_v15, %v2081_v24  ;;  %v2068_v25 = vsel %vm553_vm0, %v2049_v44, 0.0  ;;  %v9454_v15 = vld [vmem:[%s15050_s2 + $0x8] sm:$0xff] }
 0x52f   : > { %v2069_v42 = vadd.f32 %v2068_v25, %v2067_v19  ;;  %v9455_v25 = vld [vmem:[%s15050_s2 + $0x10] sm:$0xff] }
 0x530   : > { %v2117_v56 = vpack.c.bf16 %v2083_v58, %v2076_v49 }
 0x531   : > { %v2116_v52 = vpack.c.bf16 %v2069_v42, %v2062_v3 }
 0x533   : > { %8410 = vmatprep.mubr.msk.bf16.mxu1 %vm553_vm0, %v2116_v52  ;;  %v9456_v52 = vld [vmem:[%s15050_s2 + $0x18] sm:$0xff] }
 0x534   : > { %8411 = vmatmul.mubr.msk.bf16.vlgmr.msra.gmra.mrb[64].mxu1 %vm553_vm0, %v2117_v56 }
 0x535   : > { %7801 = vmatpush3.bf16.xpose.msra.mxu1 %v2563_v31 }
 0x536   : > { %8665 = vmatprep.subr.msk.bf16.mxu1 %vm553_vm0, %v10212_v35 }
 0x538   : > { %v8404_v13 = vpop.f32.mrb[68].mxu0 }
 0x539   : > { %v2054_v50 = vmul.f32 %v8404_v13, %v351_v28  ;;  %v2009_v24 = vpop.f32.mrb[69].mxu0 }
 0x53a   : > { %v2052_v20 = vmul.f32 %v2009_v24, %v349_v7  ;;  %v8405_v19 = vpop.f32.mrb[70].mxu0 }
 0x53b   : > { %v2103_v29 = vsel %vm553_vm0, %v2054_v50, 0.0  ;;  %v2055_v9 = vmul.f32 %v8405_v19, %v352_v5  ;;  %v2012_v38 = vpop.f32.mrb[71].mxu0 }
 0x53c   : > { %v2104_v10 = vadd.f32 %v2103_v29, %v2102_v16  ;;  %v2089_v17 = vsel %vm553_vm0, %v2052_v20, 0.0  ;;  %v2053_v62 = vmul.f32 %v2012_v38, %v350_v27  ;;  %v2569_v16 = vsel %vm553_vm0, %v10202_v6, 0 }
 0x53d   : > { %v2090_v22 = vadd.f32 %v2089_v17, %v2088_v48  ;;  %v2110_v41 = vsel %vm553_vm0, %v2055_v9, 0.0  ;;  %7803 = vmatpush3.bf16.xpose.msra.mxu1 %v2566_v39  ;;  %v2572_v48 = vsel %vm553_vm0, %v10200_v55, 0  ;;  %v9457_v9 = vld [vmem:[%s15050_s2 + $0x20] sm:$0xff]  ;;  %v9458_v17 = vld [vmem:[%s15050_s2 + $0x28] sm:$0xff] }
 0x53e   : > { %v2111_v23 = vadd.f32 %v2110_v41, %v2109_v30  ;;  %v2096_v14 = vsel %vm553_vm0, %v2053_v62, 0.0  ;;  %8666 = vmatprep.subr.msk.bf16.mxu1 %vm553_vm0, %v10218_v51  ;;  %v2575_v30 = vsel %vm553_vm0, %v10206_v40, 0 }
 0x53f   : > { %v2097_v47 = vadd.f32 %v2096_v14, %v2095_v60  ;;  %v2581_v60 = vsel %vm553_vm0, %v15209_v63, 0 }
 0x540   : > { %v2119_v43 = vpack.c.bf16 %v2111_v23, %v2104_v10  ;;  %v9460_v23 = vld [vmem:[%s15050_s2 + $0x38] sm:$0xff] }
 0x541   : > { %v2118_v57 = vpack.c.bf16 %v2097_v47, %v2090_v22  ;;  %v9459_v22 = vld [vmem:[%s15050_s2 + $0x30] sm:$0xff] }
 0x543   : > { %8414 = vmatprep.mubr.msk.bf16.mxu1 %vm553_vm0, %v2118_v57 }
 0x544   : > { %8415 = vmatmul.mubr.msk.bf16.gmra.mrb[68].mxu1 %vm553_vm0, %v2119_v43 }
 0x545   : > { %7805 = vmatpush3.bf16.xpose.msra.mxu1 %v2569_v16 }
 0x546   : > { %8667 = vmatprep.subr.msk.bf16.mxu1 %vm553_vm0, %v10216_v45 }
 0x54d   : > { %7807 = vmatpush3.bf16.xpose.msra.mxu1 %v2572_v48 }
 0x54e   : > { %8668 = vmatprep.subr.msk.bf16.mxu1 %vm553_vm0, %v10222_v61 }
 0x555   : > { %7809 = vmatpush3.bf16.xpose.msra.mxu1 %v2575_v30 }
 0x556   : > { %8669 = vmatprep.subr.msk.bf16.mxu1 %vm553_vm0, %v10220_v59 }
 0x55d   : > { %7811 = vmatpush3.bf16.xpose.msra.mxu1 %v2578_v32 }
 0x55e   : > { %8670 = vmatprep.subr.msk.bf16.mxu1 %vm553_vm0, %v10226_v11 }
 0x565   : > { %7813 = vmatpush3.bf16.xpose.msra.mxu1 %v2581_v60 }
 0x566   : > { %8671 = vmatprep.subr.msk.bf16.mxu1 %vm553_vm0, %v15210_v18 }
 0x56d   : > { %7815 = vmatpush3.bf16.xpose.msra.mxu1 %v2584_v54 }
 0x607   : > { %v8412_v21 = vpop.f32.mrb[64].mxu1 }
 0x608   : > { %v2179_v46 = vpop.f32.mrb[65].mxu1  ;;  %v2188_v0 = vadd.f32 %v8412_v21, %v7557_v1 }
 0x609   : > { %v2180_v36 = vadd.f32 %v7557_v1, %v2179_v46  ;;  %v8413_v53 = vpop.f32.mrb[66].mxu1 }
 0x60a   : > { %v2182_v8 = vpop.f32.mrb[67].mxu1  ;;  %v2191_v4 = vadd.f32 %v8413_v53, %v7557_v1  ;;  %v2212_v42 = vadd.f32 %v9455_v25, %v2188_v0 }
 0x60b   : > { %v2183_v49 = vadd.f32 %v7557_v1, %v2182_v8  ;;  %v2210_v44 = vadd.f32 %v9453_v2, %v2180_v36 }
 0x60c   : > { %v2213_v31 = vadd.f32 %v9456_v52, %v2191_v4  ;;  %v2226_v28 = vsel %vm553_vm0, %v2212_v42, 0.0 }
 0x60d   : > { %v2220_v3 = vsel %vm553_vm0, %v2210_v44, 0.0  ;;  %v2211_v58 = vadd.f32 %v9454_v15, %v2183_v49 }
 0x60e   : > { %2221 = vadd.xlane.f32.xlu0 %v2220_v3  ;;  %v2229_v7 = vsel %vm553_vm0, %v2213_v31, 0.0 }
 0x60f   : > { %v2223_v56 = vsel %vm553_vm0, %v2211_v58, 0.0 }
 0x610   : > { %2224 = vadd.xlane.f32.xlu1 %v2223_v56 }
 0x612   : > { %2227 = vadd.xlane.f32.xlu0 %v2226_v28 }
 0x614   : > { %2230 = vadd.xlane.f32.xlu1 %v2229_v7 }
 0x617   : > { %v8416_v13 = vpop.f32.mrb[68].mxu1 }
 0x618   : > { %v2195_v5 = vpop.f32.mrb[69].mxu1  ;;  %v2204_v50 = vadd.f32 %v8416_v13, %v7557_v1 }
 0x619   : > { %v2196_v24 = vadd.f32 %v7557_v1, %v2195_v5  ;;  %v8417_v27 = vpop.f32.mrb[70].mxu1 }
 0x61a   : > { %v2198_v20 = vpop.f32.mrb[71].mxu1  ;;  %v2207_v19 = vadd.f32 %v8417_v27, %v7557_v1  ;;  %v2216_v41 = vadd.f32 %v9459_v22, %v2204_v50 }
 0x61b   : > { %v2199_v29 = vadd.f32 %v7557_v1, %v2198_v20  ;;  %v2214_v38 = vadd.f32 %v9457_v9, %v2196_v24 }
 0x61c   : > { %v2217_v14 = vadd.f32 %v9460_v23, %v2207_v19  ;;  %v2238_v47 = vsel %vm553_vm0, %v2216_v41, 0.0 }
 0x61d   : > { %v2232_v10 = vsel %vm553_vm0, %v2214_v38, 0.0  ;;  %v2215_v62 = vadd.f32 %v9458_v17, %v2199_v29 }
 0x61e   : > { %2233 = vadd.xlane.f32.xlu0 %v2232_v10  ;;  %v2241_v43 = vsel %vm553_vm0, %v2217_v14, 0.0 }
 0x61f   : > { %v2235_v39 = vsel %vm553_vm0, %v2215_v62, 0.0 }
 0x620   : > { %2236 = vadd.xlane.f32.xlu1 %v2235_v39 }
 0x622   : > { %2239 = vadd.xlane.f32.xlu0 %v2238_v47 }
 0x624   : > { %2242 = vadd.xlane.f32.xlu1 %v2241_v43 }
 0x69b   : > { %v2222_v57 = vpop.xlane.xlu0 %2221 }
 0x69c   : > { %v2245_v16 = vmul.f32 0.03125, %v2222_v57 }
 0x69d   : > { %v2225_v48 = vpop.xlane.xlu1 %2224 }
 0x69e   : > { %v11175_v30 = vsub.f32 %v2210_v44, %v2245_v16  ;;  %v2246_v32 = vmul.f32 0.03125, %v2225_v48 }
 0x69f   : > { %v2228_v60 = vpop.xlane.xlu0 %2227 }
 0x6a0   : > { %v11177_v54 = vsub.f32 %v2211_v58, %v2246_v32  ;;  %v2247_v1 = vmul.f32 0.03125, %v2228_v60  ;;  %v2261_v21 = vmul.f32 %v11175_v30, %v11175_v30 }
 0x6a1   : > { %v2231_v46 = vpop.xlane.xlu1 %2230 }
 0x6a2   : > { %v11181_v0 = vsub.f32 %v2212_v42, %v2247_v1  ;;  %v2248_v36 = vmul.f32 0.03125, %v2231_v46  ;;  %v2269_v53 = vsel %vm553_vm0, %v2261_v21, 0.0  ;;  %v2262_v8 = vmul.f32 %v11177_v54, %v11177_v54  ;;  %v11218_v1 = vld [vmem:[%s15052_s4 + $0x1] ss:$0 sm:$0xff] }
 0x6a3   : > { %2270 = vadd.xlane.f32.xlu0 %v2269_v53 }
 0x6a4   : > { %v11186_v4 = vsub.f32 %v2213_v31, %v2248_v36  ;;  %v2272_v49 = vsel %vm553_vm0, %v2262_v8, 0.0  ;;  %v2263_v2 = vmul.f32 %v11181_v0, %v11181_v0 }
 0x6a5   : > { %2273 = vadd.xlane.f32.xlu1 %v2272_v49 }
 0x6a6   : > { %v2275_v44 = vsel %vm553_vm0, %v2263_v2, 0.0  ;;  %v2264_v3 = vmul.f32 %v11186_v4, %v11186_v4  ;;  %v11225_v2 = vld [vmem:[%s15052_s4 + $0x2] ss:$0 sm:$0xff] }
 0x6a7   : > { %2276 = vadd.xlane.f32.xlu0 %v2275_v44 }
 0x6a8   : > { %v2278_v15 = vsel %vm553_vm0, %v2264_v3, 0.0 }
 0x6a9   : > { %2279 = vadd.xlane.f32.xlu1 %v2278_v15 }
 0x6ab   : > { %v2234_v58 = vpop.xlane.xlu0 %2233 }
 0x6ac   : > { %v2249_v25 = vmul.f32 0.03125, %v2234_v58 }
 0x6ad   : > { %v2237_v42 = vpop.xlane.xlu1 %2236 }
 0x6ae   : > { %v11195_v56 = vsub.f32 %v2214_v38, %v2249_v25  ;;  %v2250_v52 = vmul.f32 0.03125, %v2237_v42 }
 0x6af   : > { %v2240_v31 = vpop.xlane.xlu0 %2239 }
 0x6b0   : > { %v11197_v28 = vsub.f32 %v2215_v62, %v2250_v52  ;;  %v2251_v7 = vmul.f32 0.03125, %v2240_v31  ;;  %v2265_v13 = vmul.f32 %v11195_v56, %v11195_v56 }
 0x6b1   : > { %v2243_v5 = vpop.xlane.xlu1 %2242 }
 0x6b2   : > { %v11201_v50 = vsub.f32 %v2216_v41, %v2251_v7  ;;  %v2252_v24 = vmul.f32 0.03125, %v2243_v5  ;;  %v2281_v27 = vsel %vm553_vm0, %v2265_v13, 0.0  ;;  %v2266_v20 = vmul.f32 %v11197_v28, %v11197_v28 }
 0x6b3   : > { %2282 = vadd.xlane.f32.xlu0 %v2281_v27 }
 0x6b4   : > { %v11206_v19 = vsub.f32 %v2217_v14, %v2252_v24  ;;  %v2284_v29 = vsel %vm553_vm0, %v2266_v20, 0.0  ;;  %v2267_v9 = vmul.f32 %v11201_v50, %v11201_v50 }
 0x6b5   : > { %2285 = vadd.xlane.f32.xlu1 %v2284_v29 }
 0x6b6   : > { %v2287_v38 = vsel %vm553_vm0, %v2267_v9, 0.0  ;;  %v2268_v10 = vmul.f32 %v11206_v19, %v11206_v19 }
 0x6b7   : > { %2288 = vadd.xlane.f32.xlu0 %v2287_v38 }
 0x6b8   : > { %v2290_v17 = vsel %vm553_vm0, %v2268_v10, 0.0  ;;  %v9461_v10 = vld [vmem:[%s15050_s2 + $0x40] sm:$0xff] }
 0x6b9   : > { %2291 = vadd.xlane.f32.xlu1 %v2290_v17 }
 0x730   : > { %v2271_v62 = vpop.xlane.xlu0 %2270 }
 0x731   : > { %v2293_v22 = vmul.f32 0.03125, %v2271_v62 }
 0x732   : > { %v2274_v41 = vpop.xlane.xlu1 %2273 }
 0x733   : > { %v2301_v39 = vadd.f32 1e-05, %v2293_v22  ;;  %v2294_v23 = vmul.f32 0.03125, %v2274_v41 }
 0x734   : > { %v2277_v14 = vpop.xlane.xlu0 %2276 }
 0x735   : > { %8845 = vrsqrt.f32 %v2301_v39  ;;  %v2302_v47 = vadd.f32 1e-05, %v2294_v23  ;;  %v2295_v43 = vmul.f32 0.03125, %v2277_v14  ;;  %v9463_v39 = vld [vmem:[%s15050_s2 + $0x50] sm:$0xff]  ;;  %v9464_v14 = vld [vmem:[%s15050_s2 + $0x58] sm:$0xff] }
 0x736   : > { %v2280_v57 = vpop.xlane.xlu1 %2279 }
 0x737   : > { %8847 = vrsqrt.f32 %v2302_v47  ;;  %v2303_v16 = vadd.f32 1e-05, %v2295_v43  ;;  %v2296_v48 = vmul.f32 0.03125, %v2280_v57 }
 0x739   : > { %8849 = vrsqrt.f32 %v2303_v16  ;;  %v2304_v32 = vadd.f32 1e-05, %v2296_v48 }
 0x73b   : > { %8851 = vrsqrt.f32 %v2304_v32 }
 0x73f   : > { %v8846_v60 = vpop.eup %8845 }
 0x740   : > { %v2283_v21 = vpop.xlane.xlu0 %2282  ;;  %v2317_v46 = vmul.f32 %v8846_v60, %v11175_v30  ;;  %v15216_v60 = vld [vmem:[#allocation19_spill] sm:$0xff] }
 0x741   : > { %v2297_v36 = vmul.f32 0.03125, %v2283_v21  ;;  %v8848_v53 = vpop.eup %8847 }
 0x742   : > { %v2286_v8 = vpop.xlane.xlu1 %2285  ;;  %v2318_v49 = vmul.f32 %v8848_v53, %v11177_v54  ;;  %v2329_v15 = vmul.f32 %v11218_v1, %v2317_v46 }
 0x743   : > { %v2305_v44 = vadd.f32 1e-05, %v2297_v36  ;;  %v2298_v3 = vmul.f32 0.03125, %v2286_v8  ;;  %v8850_v58 = vpop.eup %8849  ;;  %v15217_v36 = vld [vmem:[#allocation26_spill] sm:$0xff] }
 0x744   : > { %v2289_v25 = vpop.xlane.xlu0 %2288  ;;  %v2319_v42 = vmul.f32 %v8850_v58, %v11181_v0  ;;  %v2330_v54 = vmul.f32 %v11218_v1, %v2318_v49  ;;  %v11231_v13 = vadd.f32 %v11225_v2, %v2329_v15  ;;  %v15221_v58 = vld [vmem:[#allocation29_spill] sm:$0xff] }
 0x745   : > { %8853 = vrsqrt.f32 %v2305_v44  ;;  %v2306_v30 = vadd.f32 1e-05, %v2298_v3  ;;  %v2299_v52 = vmul.f32 0.03125, %v2289_v25  ;;  %v8852_v31 = vpop.eup %8851  ;;  %v15219_v44 = vld [vmem:[#allocation18_spill] sm:$0xff] }
 0x746   : > { %v2292_v7 = vpop.xlane.xlu1 %2291  ;;  %15212 = vst [vmem:[#allocation35_spill] sm:$0xff] %v11231_v13  ;;  %v2331_v5 = vmul.f32 %v11218_v1, %v2319_v42  ;;  %v2320_v24 = vmul.f32 %v8852_v31, %v11186_v4  ;;  %v11236_v29 = vadd.f32 %v11225_v2, %v2330_v54  ;;  %v2349_v17 = vadd.f32 %v9461_v10, %v11231_v13  ;;  %v9462_v4 = vld [vmem:[%s15050_s2 + $0x48] sm:$0xff]  ;;  %v15224_v54 = vld [vmem:[#allocation28_spill] sm:$0xff] }
 0x747   : > { %8855 = vrsqrt.f32 %v2306_v30  ;;  %v2307_v27 = vadd.f32 1e-05, %v2299_v52  ;;  %v2300_v20 = vmul.f32 0.03125, %v2292_v7  ;;  %v9466_v42 = vld [vmem:[%s15050_s2 + $0x68] sm:$0xff] }
 0x748   : > { %15213 = vst [vmem:[#allocation36_spill] sm:$0xff] %v11236_v29  ;;  %v11239_v0 = vadd.f32 %v11225_v2, %v2331_v5  ;;  %v2332_v9 = vmul.f32 %v11218_v1, %v2320_v24  ;;  %v2350_v62 = vadd.f32 %v9462_v4, %v11236_v29  ;;  %v9467_v24 = vld [vmem:[%s15050_s2 + $0x70] sm:$0xff]  ;;  %v15228_v10 = vld [vmem:[#allocation23_spill] sm:$0xff]  ;;  %v15230_v4 = vld [vmem:[#allocation22_spill] sm:$0xff] }
 0x749   : > { %8857 = vrsqrt.f32 %v2307_v27  ;;  %v2308_v38 = vadd.f32 1e-05, %v2300_v20 }
 0x74a   : > { %15214 = vst [vmem:[#allocation37_spill] sm:$0xff] %v11239_v0  ;;  %v11251_v22 = vadd.f32 %v11225_v2, %v2332_v9  ;;  %v2361_v41 = vpack.c.bf16 %v2350_v62, %v2349_v17  ;;  %v2351_v23 = vadd.f32 %v9463_v39, %v11239_v0  ;;  %v15226_v9 = vld [vmem:[#allocation20_spill] sm:$0xff]  ;;  %v15229_v17 = vld [vmem:[#allocation30_spill] sm:$0xff]  ;;  %v15231_v62 = vld [vmem:[#allocation33_spill] sm:$0xff] }
 0x74b   : > { %8859 = vrsqrt.f32 %v2308_v38  ;;  %v15227_v38 = vld [vmem:[#allocation31_spill] sm:$0xff]  ;;  %v15233_v39 = vld [vmem:[#allocation32_spill] sm:$0xff] }
 0x74c   : > { %15215 = vst [vmem:[#allocation38_spill] sm:$0xff] %v11251_v22  ;;  %v2352_v47 = vadd.f32 %v9464_v14, %v11251_v22  ;;  %8422 = vmatprep.mubr.msk.bf16.mxu0 %vm553_vm0, %v2361_v41  ;;  %v15232_v41 = vld [vmem:[#allocation25_spill] sm:$0xff] }
 0x74e   : > { %v2362_v57 = vpack.c.bf16 %v2352_v47, %v2351_v23  ;;  %v15234_v23 = vld [vmem:[#allocation24_spill] sm:$0xff] }
 0x74f   : > { %v8854_v43 = vpop.eup %8853  ;;  %v9469_v47 = vld [vmem:[%s15050_s2 + $0x90] sm:$0xff] }
 0x750   : > { %v2321_v16 = vmul.f32 %v8854_v43, %v11195_v56  ;;  %8423 = vmatmul.mubr.msk.bf16.vlgmr.msra.gmra.mrb[72].mxu0 %vm553_vm0, %v2362_v57  ;;  %v9470_v57 = vld [vmem:[%s15050_s2 + $0xd0] sm:$0xff] }
 0x751   : > { %v8856_v48 = vpop.eup %8855  ;;  %7849 = vmatpush3.bf16.msra.mxu0 %v15216_v60 }
 0x752   : > { %v2322_v32 = vmul.f32 %v8856_v48, %v11197_v28  ;;  %v2333_v21 = vmul.f32 %v11218_v1, %v2321_v16  ;;  %7850 = vmatprep.subr.bf16.mxu0 %v15217_v36  ;;  %v9471_v48 = vld [vmem:[%s15050_s2 + $0x110] sm:$0xff] }
 0x753   : > { %v8858_v46 = vpop.eup %8857 }
 0x754   : > { %v2323_v53 = vmul.f32 %v8858_v46, %v11201_v50  ;;  %v2334_v8 = vmul.f32 %v11218_v1, %v2322_v32  ;;  %v11271_v49 = vadd.f32 %v11225_v2, %v2333_v21  ;;  %v9465_v50 = vld [vmem:[%s15050_s2 + $0x60] sm:$0xff]  ;;  %v9472_v21 = vld [vmem:[%s15050_s2 + $0x150] sm:$0xff] }
 0x755   : > { %v8860_v56 = vpop.eup %8859  ;;  %7851 = vmatpush3.bf16.msra.mxu0 %v15219_v44 }
 0x756   : > { %15218 = vst [vmem:[#allocation39_spill] sm:$0xff] %v11271_v49  ;;  %v11275_v3 = vadd.f32 %v11225_v2, %v2334_v8  ;;  %v2335_v28 = vmul.f32 %v11218_v1, %v2323_v53  ;;  %v2324_v15 = vmul.f32 %v8860_v56, %v11206_v19  ;;  %7852 = vmatprep.subr.bf16.mxu0 %v15221_v58  ;;  %v15223_v19 = vld [vmem:[#allocation21_spill] sm:$0xff]  ;;  %v9473_v8 = vld [vmem:[%s15050_s2 + $0x80] sm:$0xff] }
 0x757   : > { %v2353_v25 = vadd.f32 %v9465_v50, %v11271_v49  ;;  %v9475_v50 = vld [vmem:[%s15050_s2 + $0x100] sm:$0xff] }
 0x758   : > { %15220 = vst [vmem:[#allocation40_spill] sm:$0xff] %v11275_v3  ;;  %v2354_v30 = vadd.f32 %v9466_v42, %v11275_v3  ;;  %v2336_v52 = vmul.f32 %v11218_v1, %v2324_v15  ;;  %v11290_v31 = vadd.f32 %v11225_v2, %v2335_v28  ;;  %v9468_v1 = vld [vmem:[%s15050_s2 + $0x78] sm:$0xff]  ;;  %v9474_v28 = vld [vmem:[%s15050_s2 + $0xc0] sm:$0xff] }
 0x759   : > { %7853 = vmatpush3.bf16.msra.mxu0 %v15223_v19  ;;  %v9476_v42 = vld [vmem:[%s15050_s2 + $0x140] sm:$0xff] }
 0x75a   : > { %15222 = vst [vmem:[#allocation41_spill] sm:$0xff] %v11290_v31  ;;  %v2363_v7 = vpack.c.bf16 %v2354_v30, %v2353_v25  ;;  %7854 = vmatprep.subr.bf16.mxu0 %v15224_v54  ;;  %v11295_v5 = vadd.f32 %v11225_v2, %v2336_v52  ;;  %v2355_v27 = vadd.f32 %v9467_v24, %v11290_v31 }
 0x75c   : > { %15225 = vst [vmem:[#allocation42_spill] sm:$0xff] %v11295_v5  ;;  %8426 = vmatprep.mubr.msk.bf16.mxu0 %vm553_vm0, %v2363_v7  ;;  %v2356_v20 = vadd.f32 %v9468_v1, %v11295_v5  ;;  %v9477_v7 = vld [vmem:[%s15050_s2 + $0x98] sm:$0xff] }
 0x75d   : > { %7855 = vmatpush3.bf16.msra.mxu0 %v15226_v9 }
 0x75e   : > { %7856 = vmatprep.subr.bf16.mxu0 %v15227_v38  ;;  %v2364_v2 = vpack.c.bf16 %v2356_v20, %v2355_v27  ;;  %v9478_v27 = vld [vmem:[%s15050_s2 + $0xd8] sm:$0xff] }
 0x75f   : > { %v9479_v20 = vld [vmem:[%s15050_s2 + $0x118] sm:$0xff] }
 0x760   : > { %8427 = vmatmul.mubr.msk.bf16.gmra.mrb[76].mxu0 %vm553_vm0, %v2364_v2 }
 0x761   : > { %7857 = vmatpush3.bf16.msra.mxu0 %v15228_v10 }
 0x762   : > { %7858 = vmatprep.subr.bf16.mxu0 %v15229_v17 }
 0x765   : > { %7859 = vmatpush3.bf16.msra.mxu0 %v15230_v4 }
 0x766   : > { %7860 = vmatprep.subr.bf16.mxu0 %v15231_v62 }
 0x769   : > { %7861 = vmatpush3.bf16.msra.mxu0 %v15232_v41 }
 0x76a   : > { %7862 = vmatprep.subr.bf16.mxu0 %v15233_v39 }
 0x76d   : > { %7863 = vmatpush3.bf16.msra.mxu0 %v15234_v23 }
 0x823   : > { %v8424_v14 = vpop.f32.mrb[72].mxu0 }
 0x824   : > { %v2452_v43 = vmul.f32 %v9469_v47, %v8424_v14  ;;  %v2460_v16 = vmul.f32 %v9470_v57, %v8424_v14  ;;  %v2468_v32 = vmul.f32 %v9471_v48, %v8424_v14  ;;  %v2476_v46 = vmul.f32 %v9472_v21, %v8424_v14  ;;  %v2419_v53 = vpop.f32.mrb[73].mxu0  ;;  %v9480_v14 = vld [vmem:[%s15050_s2 + $0x158] sm:$0xff]  ;;  %v9481_v48 = vld [vmem:[%s15050_s2 + $0x88] sm:$0xff] }
 0x825   : > { %v2450_v56 = vmul.f32 %v9473_v8, %v2419_v53  ;;  %v2458_v15 = vmul.f32 %v9474_v28, %v2419_v53  ;;  %v2466_v25 = vmul.f32 %v9475_v50, %v2419_v53  ;;  %v2474_v30 = vmul.f32 %v9476_v42, %v2419_v53  ;;  %v8425_v52 = vpop.f32.mrb[74].mxu0  ;;  %v9482_v53 = vld [vmem:[%s15050_s2 + $0xc8] sm:$0xff] }
 0x826   : > { %v2453_v24 = vmul.f32 %v9477_v7, %v8425_v52  ;;  %v2461_v1 = vmul.f32 %v9478_v27, %v8425_v52  ;;  %v2469_v2 = vmul.f32 %v9479_v20, %v8425_v52  ;;  %v2477_v47 = vmul.f32 %v9480_v14, %v8425_v52  ;;  %v2422_v57 = vpop.f32.mrb[75].mxu0  ;;  %v9483_v28 = vld [vmem:[%s15050_s2 + $0x108] sm:$0xff] }
 0x827   : > { %v2451_v21 = vmul.f32 %v9481_v48, %v2422_v57  ;;  %v2459_v8 = vmul.f32 %v9482_v53, %v2422_v57  ;;  %v2467_v50 = vmul.f32 %v9483_v28, %v2422_v57  ;;  %v9484_v42 = vld [vmem:[%s15050_s2 + $0x148] sm:$0xff] }
 0x828   : > { %v2475_v52 = vmul.f32 %v9484_v42, %v2422_v57  ;;  %v2483_v7 = vpack.c.bf16 %v2453_v24, %v2452_v43  ;;  %v2487_v27 = vpack.c.bf16 %v2461_v1, %v2460_v16  ;;  %v11364_v20 = vpack.c.bf16 %v2469_v2, %v2468_v32  ;;  %v9485_v43 = vld [vmem:[%s15050_s2 + $0xb0] sm:$0xff]  ;;  %v9489_v1 = vld [vmem:[%s15050_s2 + $0xa0] sm:$0xff] }
 0x829   : > { %v11366_v14 = vpack.c.bf16 %v2477_v47, %v2476_v46  ;;  %v2482_v48 = vpack.c.bf16 %v2451_v21, %v2450_v56  ;;  %v2486_v39 = vpack.c.bf16 %v2459_v8, %v2458_v15  ;;  %v11368_v23 = vpack.c.bf16 %v2467_v50, %v2466_v25  ;;  %v9486_v32 = vld [vmem:[%s15050_s2 + $0xf0] sm:$0xff]  ;;  %v9490_v47 = vld [vmem:[%s15050_s2 + $0xe0] sm:$0xff] }
 0x82a   : > { %v11370_v53 = vpack.c.bf16 %v2475_v52, %v2474_v30  ;;  %v9487_v56 = vld [vmem:[%s15050_s2 + $0x130] sm:$0xff]  ;;  %v9491_v21 = vld [vmem:[%s15050_s2 + $0x120] sm:$0xff] }
 0x82b   : > { %7816 = vmatprep.mubr.msk.bf16.mxu1 %vm553_vm0, %v2482_v48  ;;  %v9488_v25 = vld [vmem:[%s15050_s2 + $0x170] sm:$0xff]  ;;  %v9492_v50 = vld [vmem:[%s15050_s2 + $0x160] sm:$0xff] }
 0x82c   : > { %7817 = vmatmul.mubr.msk.bf16.vlgmr.msra.gmra.mrb[72].mxu1 %vm553_vm0, %v2482_v48 }
 0x82d   : > { %7818 = vmatprep.mubr.msk.bf16.mxu1 %vm553_vm0, %v2483_v7 }
 0x833   : > { %v8428_v28 = vpop.f32.mrb[76].mxu0 }
 0x834   : > { %v2456_v16 = vmul.f32 %v9485_v43, %v8428_v28  ;;  %v2464_v46 = vmul.f32 %v9486_v32, %v8428_v28  ;;  %v2472_v15 = vmul.f32 %v9487_v56, %v8428_v28  ;;  %v2480_v30 = vmul.f32 %v9488_v25, %v8428_v28  ;;  %v2435_v24 = vpop.f32.mrb[77].mxu0  ;;  %7819 = vmatmul.mubr.msk.bf16.gmra.mrb[76].mxu1 %vm553_vm0, %v2483_v7  ;;  %v9493_v7 = vld [vmem:[%s15050_s2 + $0xb8] sm:$0xff] }
 0x835   : > { %v2454_v2 = vmul.f32 %v9489_v1, %v2435_v24  ;;  %v2462_v57 = vmul.f32 %v9490_v47, %v2435_v24  ;;  %v2470_v8 = vmul.f32 %v9491_v21, %v2435_v24  ;;  %v2478_v42 = vmul.f32 %v9492_v50, %v2435_v24  ;;  %v8429_v52 = vpop.f32.mrb[78].mxu0  ;;  %v9494_v28 = vld [vmem:[%s15050_s2 + $0xf8] sm:$0xff]  ;;  %v9497_v47 = vld [vmem:[%s15050_s2 + $0xa8] sm:$0xff] }
 0x836   : > { %v2457_v48 = vmul.f32 %v9493_v7, %v8429_v52  ;;  %v2465_v43 = vmul.f32 %v9494_v28, %v8429_v52  ;;  %v9495_v32 = vld [vmem:[%s15050_s2 + $0x138] sm:$0xff]  ;;  %v2438_v1 = vpop.f32.mrb[79].mxu0  ;;  %v9498_v50 = vld [vmem:[%s15050_s2 + $0xe8] sm:$0xff] }
 0x837   : > { %v2473_v56 = vmul.f32 %v9495_v32, %v8429_v52  ;;  %v9496_v25 = vld [vmem:[%s15050_s2 + $0x178] sm:$0xff]  ;;  %v2455_v21 = vmul.f32 %v9497_v47, %v2438_v1  ;;  %v2463_v7 = vmul.f32 %v9498_v50, %v2438_v1  ;;  %v9499_v28 = vld [vmem:[%s15050_s2 + $0x128] sm:$0xff] }
 0x838   : > { %v2481_v24 = vmul.f32 %v9496_v25, %v8429_v52  ;;  %v2471_v32 = vmul.f32 %v9499_v28, %v2438_v1  ;;  %v9500_v52 = vld [vmem:[%s15050_s2 + $0x168] sm:$0xff]  ;;  %v2485_v41 = vpack.c.bf16 %v2457_v48, %v2456_v16  ;;  %v2489_v62 = vpack.c.bf16 %v2465_v43, %v2464_v46  ;;  %v373_v16 = vld [vmem:[%s15053_s5 + $0x20] sm:$0xff] }
 0x839   : > { %v2479_v25 = vmul.f32 %v9500_v52, %v2438_v1  ;;  %v2493_v4 = vpack.c.bf16 %v2473_v56, %v2472_v15  ;;  %v2484_v47 = vpack.c.bf16 %v2455_v21, %v2454_v2  ;;  %v2488_v38 = vpack.c.bf16 %v2463_v7, %v2462_v57  ;;  %v374_v15 = vld [vmem:[%s15053_s5 + $0x28] sm:$0xff]  ;;  %v375_v2 = vld [vmem:[%s15053_s5 + $0x30] sm:$0xff]  ;;  %v377_v7 = vld [vmem:[%s15053_s5 + $0x40] sm:$0xff] }
 0x83a   : > { %v2497_v10 = vpack.c.bf16 %v2481_v24, %v2480_v30  ;;  %v2492_v9 = vpack.c.bf16 %v2471_v32, %v2470_v8  ;;  %v378_v28 = vld [vmem:[%s15053_s5 + $0x48] sm:$0xff]  ;;  %v379_v52 = vld [vmem:[%s15053_s5 + $0x50] sm:$0xff] }
 0x83b   : > { %v2496_v19 = vpack.c.bf16 %v2479_v25, %v2478_v42  ;;  %7820 = vmatprep.mubr.msk.bf16.mxu1 %vm553_vm0, %v2484_v47  ;;  %v376_v42 = vld [vmem:[%s15053_s5 + $0x38] sm:$0xff] }
 0x83c   : > { %7821 = vmatmul.mubr.msk.bf16.gmra.mrb[80].mxu1 %vm553_vm0, %v2484_v47 }
 0x83d   : > { %7822 = vmatprep.mubr.msk.bf16.mxu1 %vm553_vm0, %v2485_v41 }
 0x844   : > { %7823 = vmatmul.mubr.msk.bf16.gmra.mrb[84].mxu1 %vm553_vm0, %v2485_v41 }
 0x845   : > { %7824 = vmatprep.mubr.msk.bf16.mxu1 %vm553_vm0, %v2486_v39 }
 0x84c   : > { %7825 = vmatmul.mubr.msk.bf16.gmra.mrb[88].mxu1 %vm553_vm0, %v2486_v39 }
 0x84d   : > { %7826 = vmatprep.mubr.msk.bf16.mxu1 %vm553_vm0, %v2487_v27 }
 0x854   : > { %7827 = vmatmul.mubr.msk.bf16.gmra.mrb[92].mxu1 %vm553_vm0, %v2487_v27 }
 0x855   : > { %7828 = vmatprep.mubr.msk.bf16.mxu1 %vm553_vm0, %v2488_v38 }
 0x85c   : > { %7829 = vmatmul.mubr.msk.bf16.gmra.mrb[96].mxu1 %vm553_vm0, %v2488_v38  ;;  %v370_v38 = vld [vmem:[%s15053_s5 + $0x8] sm:$0xff] }
 0x85d   : > { %7830 = vmatprep.mubr.msk.bf16.mxu1 %vm553_vm0, %v2489_v62 }
 0x864   : > { %7831 = vmatmul.mubr.msk.bf16.gmra.mrb[100].mxu1 %vm553_vm0, %v2489_v62  ;;  %v371_v62 = vld [vmem:[%s15053_s5 + $0x10] sm:$0xff] }
 0x865   : > { %7832 = vmatprep.mubr.msk.bf16.mxu1 %vm553_vm0, %v11368_v23 }
 0x86c   : > { %7833 = vmatmul.mubr.msk.bf16.gmra.mrb[104].mxu1 %vm553_vm0, %v11368_v23 }
 0x86d   : > { %7834 = vmatprep.mubr.msk.bf16.mxu1 %vm553_vm0, %v11364_v20 }
 0x874   : > { %7835 = vmatmul.mubr.msk.bf16.gmra.mrb[108].mxu1 %vm553_vm0, %v11364_v20 }
 0x875   : > { %7836 = vmatprep.mubr.msk.bf16.mxu1 %vm553_vm0, %v2492_v9 }
 0x87c   : > { %7837 = vmatmul.mubr.msk.bf16.gmra.mrb[112].mxu1 %vm553_vm0, %v2492_v9  ;;  %v369_v9 = vld [vmem:[%s15053_s5] sm:$0xff] }
 0x87d   : > { %7838 = vmatprep.mubr.msk.bf16.mxu1 %vm553_vm0, %v2493_v4 }
 0x884   : > { %7839 = vmatmul.mubr.msk.bf16.gmra.mrb[116].mxu1 %vm553_vm0, %v2493_v4 }
 0x885   : > { %7840 = vmatprep.mubr.msk.bf16.mxu1 %vm553_vm0, %v11370_v53 }
 0x88c   : > { %7841 = vmatmul.mubr.msk.bf16.gmra.mrb[120].mxu1 %vm553_vm0, %v11370_v53 }
 0x88d   : > { %7842 = vmatprep.mubr.msk.bf16.mxu1 %vm553_vm0, %v11366_v14 }
 0x894   : > { %7843 = vmatmul.mubr.msk.bf16.gmra.mrb[124].mxu1 %vm553_vm0, %v11366_v14 }
 0x895   : > { %7844 = vmatprep.mubr.msk.bf16.mxu1 %vm553_vm0, %v2496_v19 }
 0x89c   : > { %7845 = vmatmul.mubr.msk.bf16.gmra.mrb[128].mxu1 %vm553_vm0, %v2496_v19 }
 0x89d   : > { %7846 = vmatprep.mubr.msk.bf16.mxu1 %vm553_vm0, %v2497_v10 }
 0x8a4   : > { %7847 = vmatmul.mubr.msk.bf16.gmra.mrb[132].mxu1 %vm553_vm0, %v2497_v10  ;;  %v372_v10 = vld [vmem:[%s15053_s5 + $0x18] sm:$0xff] }
 0x8ff   : > { %v2644_v4 = vpop.f32.mrb[72].mxu1 }
 0x900   : > { %v11469_v41 = vadd.f32 %v2644_v4, %v369_v9  ;;  %v2646_v19 = vpop.f32.mrb[73].mxu1  ;;  %v380_v9 = vld [vmem:[%s15053_s5 + $0x58] sm:$0xff] }
 0x901   : > { %v11474_v39 = vadd.f32 %v2646_v19, %v370_v38  ;;  %v2648_v23 = vpop.f32.mrb[74].mxu1 }
 0x902   : > { %v11476_v27 = vadd.f32 %v2648_v23, %v371_v62  ;;  %v2650_v20 = vpop.f32.mrb[75].mxu1 }
 0x903   : > { %v2803_v14 = vmax.f32 %v11469_v41, %v11474_v39  ;;  %v11480_v53 = vadd.f32 %v2650_v20, %v372_v10  ;;  %v381_v20 = vld [vmem:[%s15053_s5 + $0x60] sm:$0xff] }
 0x905   : > { %2804 = vmax.xlane.f32.xlu0 %v2803_v14  ;;  %v2806_v46 = vmax.f32 %v11476_v27, %v11480_v53 }
 0x907   : > { %v2654_v30 = vpop.f32.mrb[76].mxu1  ;;  %2807 = vmax.xlane.f32.xlu1 %v2806_v46 }
 0x908   : > { %v11493_v57 = vadd.f32 %v2654_v30, %v373_v16  ;;  %v2656_v8 = vpop.f32.mrb[77].mxu1  ;;  %v382_v16 = vld [vmem:[%s15053_s5 + $0x68] sm:$0xff] }
 0x909   : > { %v11498_v48 = vadd.f32 %v2656_v8, %v374_v15  ;;  %v2658_v43 = vpop.f32.mrb[78].mxu1  ;;  %v383_v15 = vld [vmem:[%s15053_s5 + $0x70] sm:$0xff]  ;;  %v384_v8 = vld [vmem:[%s15053_s5 + $0x78] sm:$0xff] }
 0x90a   : > { %v11500_v56 = vadd.f32 %v2658_v43, %v375_v2  ;;  %v2660_v24 = vpop.f32.mrb[79].mxu1 }
 0x90b   : > { %v2809_v1 = vmax.f32 %v11493_v57, %v11498_v48  ;;  %v11504_v21 = vadd.f32 %v2660_v24, %v376_v42 }
 0x90d   : > { %2810 = vmax.xlane.f32.xlu0 %v2809_v1  ;;  %v2812_v50 = vmax.f32 %v11500_v56, %v11504_v21 }
 0x90f   : > { %2813 = vmax.xlane.f32.xlu1 %v2812_v50  ;;  %v2664_v32 = vpop.f32.mrb[80].mxu1 }
 0x910   : > { %v11517_v25 = vadd.f32 %v2664_v32, %v377_v7  ;;  %v2666_v47 = vpop.f32.mrb[81].mxu1 }
 0x911   : > { %v11522_v38 = vadd.f32 %v2666_v47, %v378_v28  ;;  %v2668_v4 = vpop.f32.mrb[82].mxu1  ;;  %v385_v28 = vld [vmem:[%s15053_s5 + $0x80] sm:$0xff] }
 0x912   : > { %v11524_v62 = vadd.f32 %v2668_v4, %v379_v52  ;;  %v2670_v19 = vpop.f32.mrb[83].mxu1  ;;  %v386_v52 = vld [vmem:[%s15053_s5 + $0x88] sm:$0xff] }
 0x913   : > { %v2815_v10 = vmax.f32 %v11517_v25, %v11522_v38  ;;  %v11528_v23 = vadd.f32 %v2670_v19, %v380_v9  ;;  %v387_v9 = vld [vmem:[%s15053_s5 + $0x90] sm:$0xff] }
 0x915   : > { %2816 = vmax.xlane.f32.xlu0 %v2815_v10  ;;  %v2818_v14 = vmax.f32 %v11524_v62, %v11528_v23  ;;  %v388_v10 = vld [vmem:[%s15053_s5 + $0x98] sm:$0xff] }
 0x917   : > { %v2674_v46 = vpop.f32.mrb[84].mxu1  ;;  %2819 = vmax.xlane.f32.xlu1 %v2818_v14 }
 0x918   : > { %v11541_v30 = vadd.f32 %v2674_v46, %v381_v20  ;;  %v2676_v2 = vpop.f32.mrb[85].mxu1 }
 0x919   : > { %v11546_v42 = vadd.f32 %v2676_v2, %v382_v16  ;;  %v2678_v43 = vpop.f32.mrb[86].mxu1 }
 0x91a   : > { %v11548_v24 = vadd.f32 %v2678_v43, %v383_v15  ;;  %v2680_v1 = vpop.f32.mrb[87].mxu1 }
 0x91b   : > { %v2821_v50 = vmax.f32 %v11541_v30, %v11546_v42  ;;  %v11552_v7 = vadd.f32 %v2680_v1, %v384_v8  ;;  %v389_v8 = vld [vmem:[%s15053_s5 + $0xa0] sm:$0xff]  ;;  %v390_v1 = vld [vmem:[%s15053_s5 + $0xa8] sm:$0xff] }
 0x91d   : > { %2822 = vmax.xlane.f32.xlu0 %v2821_v50  ;;  %v2824_v32 = vmax.f32 %v11548_v24, %v11552_v7 }
 0x91f   : > { %v2684_v47 = vpop.f32.mrb[88].mxu1  ;;  %2825 = vmax.xlane.f32.xlu1 %v2824_v32 }
 0x920   : > { %v11565_v4 = vadd.f32 %v2684_v47, %v385_v28  ;;  %v2686_v19 = vpop.f32.mrb[89].mxu1  ;;  %v391_v28 = vld [vmem:[%s15053_s5 + $0xb0] sm:$0xff]  ;;  %v392_v47 = vld [vmem:[%s15053_s5 + $0xb8] sm:$0xff] }
 0x921   : > { %v11570_v20 = vadd.f32 %v2686_v19, %v386_v52  ;;  %v2688_v14 = vpop.f32.mrb[90].mxu1 }
 0x922   : > { %v11572_v16 = vadd.f32 %v2688_v14, %v387_v9  ;;  %v2690_v46 = vpop.f32.mrb[91].mxu1 }
 0x923   : > { %v2827_v15 = vmax.f32 %v11565_v4, %v11570_v20  ;;  %v11576_v2 = vadd.f32 %v2690_v46, %v388_v10 }
 0x925   : > { %2828 = vmax.xlane.f32.xlu0 %v2827_v15  ;;  %v2830_v43 = vmax.f32 %v11572_v16, %v11576_v2 }
 0x927   : > { %v2694_v50 = vpop.f32.mrb[92].mxu1  ;;  %2831 = vmax.xlane.f32.xlu1 %v2830_v43 }
 0x928   : > { %v11589_v32 = vadd.f32 %v2694_v50, %v389_v8  ;;  %v2696_v52 = vpop.f32.mrb[93].mxu1  ;;  %v393_v8 = vld [vmem:[%s15053_s5 + $0xc0] sm:$0xff] }
 0x929   : > { %v11594_v9 = vadd.f32 %v2696_v52, %v390_v1  ;;  %v2698_v19 = vpop.f32.mrb[94].mxu1  ;;  %v394_v1 = vld [vmem:[%s15053_s5 + $0xc8] sm:$0xff] }
 0x92a   : > { %v11596_v10 = vadd.f32 %v2698_v19, %v391_v28  ;;  %v2700_v14 = vpop.f32.mrb[95].mxu1  ;;  %v395_v28 = vld [vmem:[%s15053_s5 + $0xd0] sm:$0xff]  ;;  %v396_v19 = vld [vmem:[%s15053_s5 + $0xd8] sm:$0xff] }
 0x92b   : > { %v2833_v46 = vmax.f32 %v11589_v32, %v11594_v9  ;;  %v11600_v15 = vadd.f32 %v2700_v14, %v392_v47 }
 0x92d   : > { %2834 = vmax.xlane.f32.xlu0 %v2833_v46  ;;  %v2836_v43 = vmax.f32 %v11596_v10, %v11600_v15 }
 0x92f   : > { %v2704_v50 = vpop.f32.mrb[96].mxu1  ;;  %2837 = vmax.xlane.f32.xlu1 %v2836_v43 }
 0x930   : > { %v11613_v52 = vadd.f32 %v2704_v50, %v393_v8  ;;  %v2706_v47 = vpop.f32.mrb[97].mxu1  ;;  %v397_v8 = vld [vmem:[%s15053_s5 + $0xe0] sm:$0xff] }
 0x931   : > { %v11618_v14 = vadd.f32 %v2706_v47, %v394_v1  ;;  %v2708_v46 = vpop.f32.mrb[98].mxu1  ;;  %v398_v1 = vld [vmem:[%s15053_s5 + $0xe8] sm:$0xff]  ;;  %v399_v47 = vld [vmem:[%s15053_s5 + $0xf0] sm:$0xff] }
 0x932   : > { %v11620_v17 = vadd.f32 %v2708_v46, %v395_v28  ;;  %v2710_v58 = vpop.f32.mrb[99].mxu1  ;;  %v400_v46 = vld [vmem:[%s15053_s5 + $0xf8] sm:$0xff] }
 0x933   : > { %v2839_v43 = vmax.f32 %v11613_v52, %v11618_v14  ;;  %v11624_v54 = vadd.f32 %v2710_v58, %v396_v19 }
 0x935   : > { %2840 = vmax.xlane.f32.xlu0 %v2839_v43  ;;  %v2842_v50 = vmax.f32 %v11620_v17, %v11624_v54 }
 0x937   : > { %v2714_v28 = vpop.f32.mrb[100].mxu1  ;;  %2843 = vmax.xlane.f32.xlu1 %v2842_v50 }
 0x938   : > { %v11637_v58 = vadd.f32 %v2714_v28, %v397_v8  ;;  %v2716_v19 = vpop.f32.mrb[101].mxu1  ;;  %v401_v8 = vld [vmem:[%s15053_s5 + $0x100] sm:$0xff] }
 0x939   : > { %v11642_v43 = vadd.f32 %v2716_v19, %v398_v1  ;;  %v2718_v36 = vpop.f32.mrb[102].mxu1  ;;  %v402_v1 = vld [vmem:[%s15053_s5 + $0x108] sm:$0xff] }
 0x93a   : > { %v11644_v44 = vadd.f32 %v2718_v36, %v399_v47  ;;  %v2720_v12 = vpop.f32.mrb[103].mxu1  ;;  %v403_v47 = vld [vmem:[%s15053_s5 + $0x110] sm:$0xff] }
 0x93b   : > { %v2845_v50 = vmax.f32 %v11637_v58, %v11642_v43  ;;  %v11648_v60 = vadd.f32 %v2720_v12, %v400_v46  ;;  %v404_v46 = vld [vmem:[%s15053_s5 + $0x118] sm:$0xff] }
 0x93d   : > { %2846 = vmax.xlane.f32.xlu0 %v2845_v50  ;;  %v2848_v28 = vmax.f32 %v11644_v44, %v11648_v60 }
 0x93f   : > { %v2724_v36 = vpop.f32.mrb[104].mxu1  ;;  %2849 = vmax.xlane.f32.xlu1 %v2848_v28 }
 0x940   : > { %v11661_v12 = vadd.f32 %v2724_v36, %v401_v8  ;;  %v2726_v19 = vpop.f32.mrb[105].mxu1  ;;  %v405_v8 = vld [vmem:[%s15053_s5 + $0x120] sm:$0xff] }
 0x941   : > { %v11666_v50 = vadd.f32 %v2726_v19, %v402_v1  ;;  %v2728_v18 = vpop.f32.mrb[106].mxu1  ;;  %v406_v1 = vld [vmem:[%s15053_s5 + $0x128] sm:$0xff] }
 0x942   : > { %v11668_v37 = vadd.f32 %v2728_v18, %v403_v47  ;;  %v2730_v11 = vpop.f32.mrb[107].mxu1  ;;  %v407_v47 = vld [vmem:[%s15053_s5 + $0x130] sm:$0xff] }
 0x943   : > { %v2851_v28 = vmax.f32 %v11661_v12, %v11666_v50  ;;  %v11672_v63 = vadd.f32 %v2730_v11, %v404_v46  ;;  %v408_v46 = vld [vmem:[%s15053_s5 + $0x138] sm:$0xff] }
 0x945   : > { %15235 = vst [vmem:[#allocation43_spill] sm:$0xff] %v11672_v63  ;;  %2852 = vmax.xlane.f32.xlu0 %v2851_v28  ;;  %v2854_v36 = vmax.f32 %v11668_v37, %v11672_v63 }
 0x947   : > { %v2734_v18 = vpop.f32.mrb[108].mxu1  ;;  %2855 = vmax.xlane.f32.xlu1 %v2854_v36 }
 0x948   : > { %v11685_v11 = vadd.f32 %v2734_v18, %v405_v8  ;;  %v2736_v19 = vpop.f32.mrb[109].mxu1  ;;  %v409_v8 = vld [vmem:[%s15053_s5 + $0x140] sm:$0xff] }
 0x949   : > { %v11690_v28 = vadd.f32 %v2736_v19, %v406_v1  ;;  %v2738_v59 = vpop.f32.mrb[110].mxu1  ;;  %v410_v1 = vld [vmem:[%s15053_s5 + $0x148] sm:$0xff] }
 0x94a   : > { %15236 = vst [vmem:[#allocation44_spill] sm:$0xff] %v11685_v11  ;;  %v11692_v34 = vadd.f32 %v2738_v59, %v407_v47  ;;  %v2740_v61 = vpop.f32.mrb[111].mxu1  ;;  %v411_v47 = vld [vmem:[%s15053_s5 + $0x150] sm:$0xff] }
 0x94b   : > { %15237 = vst [vmem:[#allocation45_spill] sm:$0xff] %v11690_v28  ;;  %v2857_v36 = vmax.f32 %v11685_v11, %v11690_v28  ;;  %v11696_v40 = vadd.f32 %v2740_v61, %v408_v46  ;;  %v412_v46 = vld [vmem:[%s15053_s5 + $0x158] sm:$0xff] }
 0x94c   : > { %15238 = vst [vmem:[#allocation46_spill] sm:$0xff] %v11692_v34 }
 0x94d   : > { %15239 = vst [vmem:[#allocation47_spill] sm:$0xff] %v11696_v40  ;;  %2858 = vmax.xlane.f32.xlu0 %v2857_v36  ;;  %v2860_v18 = vmax.f32 %v11692_v34, %v11696_v40 }
 0x94f   : > { %v2744_v59 = vpop.f32.mrb[112].mxu1  ;;  %2861 = vmax.xlane.f32.xlu1 %v2860_v18 }
 0x950   : > { %v11709_v61 = vadd.f32 %v2744_v59, %v409_v8  ;;  %v2746_v19 = vpop.f32.mrb[113].mxu1  ;;  %v413_v8 = vld [vmem:[%s15053_s5 + $0x160] sm:$0xff] }
 0x951   : > { %v11714_v36 = vadd.f32 %v2746_v19, %v410_v1  ;;  %v2748_v45 = vpop.f32.mrb[114].mxu1  ;;  %v414_v1 = vld [vmem:[%s15053_s5 + $0x168] sm:$0xff] }
 0x952   : > { %15240 = vst [vmem:[#allocation48_spill] sm:$0xff] %v11709_v61  ;;  %v11716_v55 = vadd.f32 %v2748_v45, %v411_v47  ;;  %v2750_v51 = vpop.f32.mrb[115].mxu1  ;;  %v415_v47 = vld [vmem:[%s15053_s5 + $0x170] sm:$0xff] }
 0x953   : > { %15241 = vst [vmem:[#allocation49_spill] sm:$0xff] %v11714_v36  ;;  %v2863_v18 = vmax.f32 %v11709_v61, %v11714_v36  ;;  %v11720_v6 = vadd.f32 %v2750_v51, %v412_v46  ;;  %v416_v46 = vld [vmem:[%s15053_s5 + $0x178] sm:$0xff] }
 0x954   : > { %15242 = vst [vmem:[#allocation50_spill] sm:$0xff] %v11716_v55 }
 0x955   : > { %15243 = vst [vmem:[#allocation51_spill] sm:$0xff] %v11720_v6  ;;  %2864 = vmax.xlane.f32.xlu0 %v2863_v18  ;;  %v2866_v59 = vmax.f32 %v11716_v55, %v11720_v6 }
 0x957   : > { %v2754_v45 = vpop.f32.mrb[116].mxu1  ;;  %2867 = vmax.xlane.f32.xlu1 %v2866_v59 }
 0x958   : > { %v11733_v51 = vadd.f32 %v2754_v45, %v413_v8  ;;  %v2756_v19 = vpop.f32.mrb[117].mxu1 }
 0x959   : > { %v11738_v18 = vadd.f32 %v2756_v19, %v414_v1  ;;  %v2758_v35 = vpop.f32.mrb[118].mxu1 }
 0x95a   : > { %15244 = vst [vmem:[#allocation52_spill] sm:$0xff] %v11733_v51  ;;  %v11740_v26 = vadd.f32 %v2758_v35, %v415_v47  ;;  %v2760_v33 = vpop.f32.mrb[119].mxu1 }
 0x95b   : > { %15245 = vst [vmem:[#allocation53_spill] sm:$0xff] %v11738_v18  ;;  %v2869_v59 = vmax.f32 %v11733_v51, %v11738_v18  ;;  %v11744_v5 = vadd.f32 %v2760_v33, %v416_v46 }
 0x95c   : > { %15246 = vst [vmem:[#allocation54_spill] sm:$0xff] %v11740_v26 }
 0x95d   : > { %15247 = vst [vmem:[#allocation55_spill] sm:$0xff] %v11744_v5  ;;  %v2872_v8 = vmax.f32 %v11740_v26, %v11744_v5  ;;  %2870 = vmax.xlane.f32.xlu0 %v2869_v59 }
 0x95f   : > { %v2764_v45 = vpop.f32.mrb[120].mxu1  ;;  %2873 = vmax.xlane.f32.xlu1 %v2872_v8 }
 0x960   : > { %v2766_v3 = vpop.f32.mrb[121].mxu1 }
 0x961   : > { %v2768_v31 = vpop.f32.mrb[122].mxu1 }
 0x962   : > { %v2770_v49 = vpop.f32.mrb[123].mxu1 }
 0x967   : > { %v11748_v1 = vpop.f32.mrb[124].mxu1 }
 0x968   : > { %v11750_v19 = vpop.f32.mrb[125].mxu1 }
 0x969   : > { %v11752_v35 = vpop.f32.mrb[126].mxu1 }
 0x96a   : > { %v11754_v47 = vpop.f32.mrb[127].mxu1 }
 0x96f   : > { %v11756_v22 = vpop.f32.mrb[128].mxu1 }
 0x970   : > { %v11758_v33 = vpop.f32.mrb[129].mxu1 }
 0x971   : > { %v11760_v46 = vpop.f32.mrb[130].mxu1 }
 0x972   : > { %v11762_v59 = vpop.f32.mrb[131].mxu1 }
 0x977   : > { %v11764_v8 = vpop.f32.mrb[132].mxu1 }
 0x978   : > { %v11766_v29 = vpop.f32.mrb[133].mxu1 }
 0x979   : > { %v11768_v0 = vpop.f32.mrb[134].mxu1 }
 0x97a   : > { %v11770_v13 = vpop.f32.mrb[135].mxu1 }
 0x992   : > { %v2805_v5 = vpop.xlane.xlu0 %2804 }
 0x993   : > { %v2899_v26 = vsub.f32 %v11469_v41, %v2805_v5  ;;  %v2900_v18 = vsub.f32 %v11474_v39, %v2805_v5 }
 0x994   : > { %v2808_v51 = vpop.xlane.xlu1 %2807 }
 0x995   : > { %v2963_v6 = vmul.f32 1.442695, %v2899_v26  ;;  %v2965_v55 = vmul.f32 1.442695, %v2900_v18  ;;  %v2901_v36 = vsub.f32 %v11476_v27, %v2808_v51  ;;  %v2902_v61 = vsub.f32 %v11480_v53, %v2808_v51 }
 0x997   : > { %8861 = vpow2.f32 %v2963_v6  ;;  %v2967_v40 = vmul.f32 1.442695, %v2901_v36  ;;  %v2969_v34 = vmul.f32 1.442695, %v2902_v61  ;;  %v417_v6 = vld [vmem:[%s15053_s5 + $0x180] sm:$0xff] }
 0x998   : > { %8863 = vpow2.f32 %v2965_v55 }
 0x999   : > { %8865 = vpow2.f32 %v2967_v40 }
 0x99a   : > { %8867 = vpow2.f32 %v2969_v34  ;;  %v2811_v28 = vpop.xlane.xlu0 %2810  ;;  %v418_v34 = vld [vmem:[%s15053_s5 + $0x188] sm:$0xff] }
 0x99b   : > { %v2903_v11 = vsub.f32 %v11493_v57, %v2811_v28  ;;  %v2904_v41 = vsub.f32 %v11498_v48, %v2811_v28  ;;  %v11790_v48 = vadd.f32 %v2764_v45, %v417_v6  ;;  %v420_v28 = vld [vmem:[%s15053_s5 + $0x198] sm:$0xff]  ;;  %v421_v6 = vld [vmem:[%s15053_s5 + $0x1a0] sm:$0xff] }
 0x99c   : > { %v2814_v63 = vpop.xlane.xlu1 %2813 }
 0x99d   : > { %v2971_v5 = vmul.f32 1.442695, %v2903_v11  ;;  %v2973_v39 = vmul.f32 1.442695, %v2904_v41  ;;  %v2905_v26 = vsub.f32 %v11500_v56, %v2814_v63  ;;  %v2906_v27 = vsub.f32 %v11504_v21, %v2814_v63  ;;  %v419_v11 = vld [vmem:[%s15053_s5 + $0x190] sm:$0xff] }
 0x99e   : > { %v11794_v21 = vadd.f32 %v2766_v3, %v418_v34  ;;  %v11831_v34 = vadd.f32 %v11748_v1, %v421_v6 }
 0x99f   : > { %8869 = vpow2.f32 %v2971_v5  ;;  %v2975_v55 = vmul.f32 1.442695, %v2905_v26  ;;  %v2977_v40 = vmul.f32 1.442695, %v2906_v27  ;;  %v11810_v26 = vadd.f32 %v2768_v31, %v419_v11  ;;  %v422_v31 = vld [vmem:[%s15053_s5 + $0x1a8] sm:$0xff] }
 0x9a0   : > { %8871 = vpow2.f32 %v2973_v39  ;;  %v11812_v27 = vadd.f32 %v2770_v49, %v420_v28  ;;  %v11836_v28 = vadd.f32 %v11750_v19, %v422_v31 }
 0x9a1   : > { %v11786_v53 = vpop.eup %8861  ;;  %8873 = vpow2.f32 %v2975_v55 }
 0x9a2   : > { %v11788_v57 = vpop.eup %8863  ;;  %8875 = vpow2.f32 %v2977_v40  ;;  %v2817_v63 = vpop.xlane.xlu0 %2816  ;;  %v2878_v40 = vmax.f32 %v11810_v26, %v11812_v27  ;;  %v2881_v6 = vmax.f32 %v11831_v34, %v11836_v28 }
 0x9a3   : > { %v11792_v56 = vpop.eup %8865  ;;  %v2907_v61 = vsub.f32 %v11517_v25, %v2817_v63  ;;  %v2908_v36 = vsub.f32 %v11522_v38, %v2817_v63  ;;  %v3091_v51 = vadd.f32 %v11788_v57, %v11786_v53  ;;  %v2875_v38 = vmax.f32 %v11790_v48, %v11794_v21 }
 0x9a4   : > { %v11806_v18 = vpop.eup %8867  ;;  %v2820_v45 = vpop.xlane.xlu1 %2819 }
 0x9a5   : > { %v2979_v3 = vmul.f32 1.442695, %v2907_v61  ;;  %v2981_v41 = vmul.f32 1.442695, %v2908_v36  ;;  %v2909_v5 = vsub.f32 %v11524_v62, %v2820_v45  ;;  %v2910_v39 = vsub.f32 %v11528_v23, %v2820_v45  ;;  %3092 = vadd.xlane.f32.xlu0 %v3091_v51  ;;  %v423_v61 = vld [vmem:[%s15053_s5 + $0x1b0] sm:$0xff]  ;;  %v424_v36 = vld [vmem:[%s15053_s5 + $0x1b8] sm:$0xff] }
 0x9a6   : > { %v3094_v25 = vadd.f32 %v11806_v18, %v11792_v56 }
 0x9a7   : > { %8877 = vpow2.f32 %v2979_v3  ;;  %v2983_v55 = vmul.f32 1.442695, %v2909_v5  ;;  %v2985_v62 = vmul.f32 1.442695, %v2910_v39 }
 0x9a8   : > { %8879 = vpow2.f32 %v2981_v41  ;;  %3095 = vadd.xlane.f32.xlu1 %v3094_v25 }
 0x9a9   : > { %v11824_v49 = vpop.eup %8869  ;;  %8881 = vpow2.f32 %v2983_v55  ;;  %2876 = vmax.xlane.f32.xlu0 %v2875_v38  ;;  %v11853_v38 = vadd.f32 %v11752_v35, %v423_v61  ;;  %v425_v55 = vld [vmem:[%s15053_s5 + $0x1c0] sm:$0xff]  ;;  %v426_v35 = vld [vmem:[%s15053_s5 + $0x1c8] sm:$0xff] }
 0x9aa   : > { %v11826_v23 = vpop.eup %8871  ;;  %8883 = vpow2.f32 %v2985_v62  ;;  %v2823_v63 = vpop.xlane.xlu0 %2822 }
 0x9ab   : > { %v11833_v11 = vpop.eup %8873  ;;  %v2911_v51 = vsub.f32 %v11541_v30, %v2823_v63  ;;  %v2912_v1 = vsub.f32 %v11546_v42, %v2823_v63  ;;  %v3097_v45 = vadd.f32 %v11826_v23, %v11824_v49  ;;  %v11856_v30 = vadd.f32 %v11754_v47, %v424_v36 }
 0x9ac   : > { %v11848_v3 = vpop.eup %8875  ;;  %2879 = vmax.xlane.f32.xlu1 %v2878_v40  ;;  %v2826_v19 = vpop.xlane.xlu1 %2825  ;;  %v11875_v40 = vadd.f32 %v11756_v22, %v425_v55  ;;  %v11880_v36 = vadd.f32 %v11758_v33, %v426_v35 }
 0x9ad   : > { %v2987_v41 = vmul.f32 1.442695, %v2911_v51  ;;  %v2989_v5 = vmul.f32 1.442695, %v2912_v1  ;;  %v2913_v39 = vsub.f32 %v11548_v24, %v2826_v19  ;;  %v2914_v25 = vsub.f32 %v11552_v7, %v2826_v19  ;;  %3098 = vadd.xlane.f32.xlu0 %v3097_v45  ;;  %v427_v51 = vld [vmem:[%s15053_s5 + $0x1d0] sm:$0xff]  ;;  %v428_v1 = vld [vmem:[%s15053_s5 + $0x1d8] sm:$0xff] }
 0x9ae   : > { %v3100_v42 = vadd.f32 %v11848_v3, %v11833_v11  ;;  %v2884_v31 = vmax.f32 %v11853_v38, %v11856_v30  ;;  %v2887_v55 = vmax.f32 %v11875_v40, %v11880_v36 }
 0x9af   : > { %8885 = vpow2.f32 %v2987_v41  ;;  %v2991_v24 = vmul.f32 1.442695, %v2913_v39  ;;  %v2993_v7 = vmul.f32 1.442695, %v2914_v25 }
 0x9b0   : > { %8887 = vpow2.f32 %v2989_v5  ;;  %3101 = vadd.xlane.f32.xlu1 %v3100_v42 }
 0x9b1   : > { %v11868_v47 = vpop.eup %8877  ;;  %8889 = vpow2.f32 %v2991_v24  ;;  %2882 = vmax.xlane.f32.xlu0 %v2881_v6  ;;  %v11897_v6 = vadd.f32 %v11760_v46, %v427_v51  ;;  %v429_v24 = vld [vmem:[%s15053_s5 + $0x1e0] sm:$0xff]  ;;  %v430_v46 = vld [vmem:[%s15053_s5 + $0x1e8] sm:$0xff] }
 0x9b2   : > { %v11870_v62 = vpop.eup %8879  ;;  %8891 = vpow2.f32 %v2993_v7  ;;  %v2829_v63 = vpop.xlane.xlu0 %2828 }
 0x9b3   : > { %v11877_v61 = vpop.eup %8881  ;;  %v2915_v45 = vsub.f32 %v11565_v4, %v2829_v63  ;;  %v2916_v22 = vsub.f32 %v11570_v20, %v2829_v63  ;;  %v3103_v19 = vadd.f32 %v11870_v62, %v11868_v47  ;;  %v11900_v4 = vadd.f32 %v11762_v59, %v428_v1 }
 0x9b4   : > { %v11892_v41 = vpop.eup %8883  ;;  %2885 = vmax.xlane.f32.xlu1 %v2884_v31  ;;  %v2832_v33 = vpop.xlane.xlu1 %2831  ;;  %v11919_v31 = vadd.f32 %v11764_v8, %v429_v24  ;;  %v11924_v1 = vadd.f32 %v11766_v29, %v430_v46 }
 0x9b5   : > { %v2995_v5 = vmul.f32 1.442695, %v2915_v45  ;;  %v2997_v39 = vmul.f32 1.442695, %v2916_v22  ;;  %v2917_v25 = vsub.f32 %v11572_v16, %v2832_v33  ;;  %v2918_v42 = vsub.f32 %v11576_v2, %v2832_v33  ;;  %3104 = vadd.xlane.f32.xlu0 %v3103_v19  ;;  %v431_v45 = vld [vmem:[%s15053_s5 + $0x1f0] sm:$0xff]  ;;  %v432_v22 = vld [vmem:[%s15053_s5 + $0x1f8] sm:$0xff] }
 0x9b6   : > { %v3106_v20 = vadd.f32 %v11892_v41, %v11877_v61  ;;  %v2890_v35 = vmax.f32 %v11897_v6, %v11900_v4  ;;  %v2893_v24 = vmax.f32 %v11919_v31, %v11924_v1 }
 0x9b7   : > { %8893 = vpow2.f32 %v2995_v5  ;;  %v2999_v16 = vmul.f32 1.442695, %v2917_v25  ;;  %v3001_v2 = vmul.f32 1.442695, %v2918_v42 }
 0x9b8   : > { %8895 = vpow2.f32 %v2997_v39  ;;  %3107 = vadd.xlane.f32.xlu1 %v3106_v20 }
 0x9b9   : > { %v11912_v59 = vpop.eup %8885  ;;  %8897 = vpow2.f32 %v2999_v16  ;;  %2888 = vmax.xlane.f32.xlu0 %v2887_v55  ;;  %v11941_v55 = vadd.f32 %v11768_v0, %v431_v45 }
 0x9ba   : > { %v11914_v7 = vpop.eup %8887  ;;  %8899 = vpow2.f32 %v3001_v2  ;;  %v2835_v63 = vpop.xlane.xlu0 %2834 }
 0x9bb   : > { %v11921_v51 = vpop.eup %8889  ;;  %v2919_v19 = vsub.f32 %v11589_v32, %v2835_v63  ;;  %v2920_v8 = vsub.f32 %v11594_v9, %v2835_v63  ;;  %v3109_v33 = vadd.f32 %v11914_v7, %v11912_v59  ;;  %v11944_v32 = vadd.f32 %v11770_v13, %v432_v22 }
 0x9bc   : > { %v11936_v5 = vpop.eup %8891  ;;  %2891 = vmax.xlane.f32.xlu1 %v2890_v35  ;;  %v2838_v29 = vpop.xlane.xlu1 %2837 }
 0x9bd   : > { %v3003_v39 = vmul.f32 1.442695, %v2919_v19  ;;  %v3005_v25 = vmul.f32 1.442695, %v2920_v8  ;;  %v2921_v42 = vsub.f32 %v11596_v10, %v2838_v29  ;;  %v2922_v20 = vsub.f32 %v11600_v15, %v2838_v29  ;;  %3110 = vadd.xlane.f32.xlu0 %v3109_v33 }
 0x9be   : > { %v3112_v9 = vadd.f32 %v11936_v5, %v11921_v51  ;;  %v2896_v13 = vmax.f32 %v11941_v55, %v11944_v32 }
 0x9bf   : > { %8901 = vpow2.f32 %v3003_v39  ;;  %v3007_v16 = vmul.f32 1.442695, %v2921_v42  ;;  %v3009_v2 = vmul.f32 1.442695, %v2922_v20 }
 0x9c0   : > { %8903 = vpow2.f32 %v3005_v25  ;;  %3113 = vadd.xlane.f32.xlu1 %v3112_v9 }
 0x9c1   : > { %v11950_v10 = vpop.eup %8893  ;;  %8905 = vpow2.f32 %v3007_v16  ;;  %2894 = vmax.xlane.f32.xlu0 %v2893_v24 }
 0x9c2   : > { %v11952_v0 = vpop.eup %8895  ;;  %8907 = vpow2.f32 %v3009_v2  ;;  %v2841_v15 = vpop.xlane.xlu0 %2840 }
 0x9c3   : > { %v11956_v46 = vpop.eup %8897  ;;  %v2923_v35 = vsub.f32 %v11613_v52, %v2841_v15  ;;  %v2924_v63 = vsub.f32 %v11618_v14, %v2841_v15  ;;  %v3115_v45 = vadd.f32 %v11952_v0, %v11950_v10 }
 0x9c4   : > { %v11962_v22 = vpop.eup %8899  ;;  %2897 = vmax.xlane.f32.xlu1 %v2896_v13  ;;  %v2844_v19 = vpop.xlane.xlu1 %2843 }
 0x9c5   : > { %v3011_v8 = vmul.f32 1.442695, %v2923_v35  ;;  %v3013_v33 = vmul.f32 1.442695, %v2924_v63  ;;  %v2925_v29 = vsub.f32 %v11620_v17, %v2844_v19  ;;  %v2926_v39 = vsub.f32 %v11624_v54, %v2844_v19  ;;  %3116 = vadd.xlane.f32.xlu0 %v3115_v45 }
 0x9c6   : > { %v3118_v25 = vadd.f32 %v11962_v22, %v11956_v46 }
 0x9c7   : > { %8909 = vpow2.f32 %v3011_v8  ;;  %v3015_v52 = vmul.f32 1.442695, %v2925_v29  ;;  %v3017_v14 = vmul.f32 1.442695, %v2926_v39 }
 0x9c8   : > { %8911 = vpow2.f32 %v3013_v33  ;;  %3119 = vadd.xlane.f32.xlu1 %v3118_v25 }
 0x9c9   : > { %v11968_v42 = vpop.eup %8901  ;;  %8913 = vpow2.f32 %v3015_v52 }
 0x9ca   : > { %v11970_v20 = vpop.eup %8903  ;;  %8915 = vpow2.f32 %v3017_v14  ;;  %v2847_v9 = vpop.xlane.xlu0 %2846 }
 0x9cb   : > { %v11972_v24 = vpop.eup %8905  ;;  %v2927_v54 = vsub.f32 %v11637_v58, %v2847_v9  ;;  %v2928_v17 = vsub.f32 %v11642_v43, %v2847_v9  ;;  %v3121_v16 = vadd.f32 %v11970_v20, %v11968_v42 }
 0x9cc   : > { %v11978_v2 = vpop.eup %8907  ;;  %v2850_v13 = vpop.xlane.xlu1 %2849 }
 0x9cd   : > { %v3019_v15 = vmul.f32 1.442695, %v2927_v54  ;;  %v3021_v35 = vmul.f32 1.442695, %v2928_v17  ;;  %v2929_v63 = vsub.f32 %v11644_v44, %v2850_v13  ;;  %v2930_v45 = vsub.f32 %v11648_v60, %v2850_v13  ;;  %3122 = vadd.xlane.f32.xlu0 %v3121_v16  ;;  %v15248_v16 = vld [vmem:[#allocation43_spill] sm:$0xff] }
 0x9ce   : > { %v3124_v19 = vadd.f32 %v11978_v2, %v11972_v24 }
 0x9cf   : > { %8917 = vpow2.f32 %v3019_v15  ;;  %v3023_v58 = vmul.f32 1.442695, %v2929_v63  ;;  %v3025_v8 = vmul.f32 1.442695, %v2930_v45 }
 0x9d0   : > { %8919 = vpow2.f32 %v3021_v35  ;;  %3125 = vadd.xlane.f32.xlu1 %v3124_v19 }
 0x9d1   : > { %v11984_v43 = vpop.eup %8909  ;;  %8921 = vpow2.f32 %v3023_v58 }
 0x9d2   : > { %v11986_v33 = vpop.eup %8911  ;;  %8923 = vpow2.f32 %v3025_v8  ;;  %v2853_v29 = vpop.xlane.xlu0 %2852  ;;  %v15252_v8 = vld [vmem:[#allocation45_spill] sm:$0xff] }
 0x9d3   : > { %v11988_v39 = vpop.eup %8913  ;;  %v2931_v60 = vsub.f32 %v11661_v12, %v2853_v29  ;;  %v2932_v44 = vsub.f32 %v11666_v50, %v2853_v29  ;;  %v3127_v25 = vadd.f32 %v11986_v33, %v11984_v43 }
 0x9d4   : > { %v11994_v52 = vpop.eup %8915  ;;  %v2856_v14 = vpop.xlane.xlu1 %2855 }
 0x9d5   : > { %v3027_v9 = vmul.f32 1.442695, %v2931_v60  ;;  %v3029_v54 = vmul.f32 1.442695, %v2932_v44  ;;  %v2933_v17 = vsub.f32 %v11668_v37, %v2856_v14  ;;  %v2934_v13 = vsub.f32 %v15248_v16, %v2856_v14  ;;  %3128 = vadd.xlane.f32.xlu0 %v3127_v25  ;;  %v15251_v37 = vld [vmem:[#allocation44_spill] sm:$0xff]  ;;  %v15255_v16 = vld [vmem:[#allocation47_spill] sm:$0xff] }
 0x9d6   : > { %v3130_v15 = vadd.f32 %v11994_v52, %v11988_v39 }
 0x9d7   : > { %8925 = vpow2.f32 %v3027_v9  ;;  %v3031_v12 = vmul.f32 1.442695, %v2933_v17  ;;  %v3033_v35 = vmul.f32 1.442695, %v2934_v13 }
 0x9d8   : > { %8927 = vpow2.f32 %v3029_v54  ;;  %3131 = vadd.xlane.f32.xlu1 %v3130_v15  ;;  %v15254_v54 = vld [vmem:[#allocation46_spill] sm:$0xff] }
 0x9d9   : > { %v12000_v50 = vpop.eup %8917  ;;  %8929 = vpow2.f32 %v3031_v12 }
 0x9da   : > { %15249 = vst [vmem:[#allocation43_spill] sm:$0xff] %v12000_v50  ;;  %v12002_v63 = vpop.eup %8919  ;;  %8931 = vpow2.f32 %v3033_v35  ;;  %v2859_v45 = vpop.xlane.xlu0 %2858 }
 0x9db   : > { %v12004_v19 = vpop.eup %8921  ;;  %v2935_v58 = vsub.f32 %v15251_v37, %v2859_v45  ;;  %v2936_v29 = vsub.f32 %v15252_v8, %v2859_v45  ;;  %v3133_v60 = vadd.f32 %v12002_v63, %v12000_v50  ;;  %v15263_v50 = vld [vmem:[#allocation51_spill] sm:$0xff] }
 0x9dc   : > { %15250 = vst [vmem:[#allocation56_spill] sm:$0xff] %v12004_v19  ;;  %v12010_v44 = vpop.eup %8923  ;;  %v2862_v25 = vpop.xlane.xlu1 %2861 }
 0x9dd   : > { %15253 = vst [vmem:[#allocation44_spill] sm:$0xff] %v12010_v44  ;;  %v3035_v14 = vmul.f32 1.442695, %v2935_v58  ;;  %v3037_v9 = vmul.f32 1.442695, %v2936_v29  ;;  %v2937_v17 = vsub.f32 %v15254_v54, %v2862_v25  ;;  %v2938_v13 = vsub.f32 %v15255_v16, %v2862_v25  ;;  %3134 = vadd.xlane.f32.xlu0 %v3133_v60  ;;  %v15259_v29 = vld [vmem:[#allocation48_spill] sm:$0xff] }
 0x9de   : > { %v3136_v15 = vadd.f32 %v12010_v44, %v12004_v19  ;;  %v15260_v60 = vld [vmem:[#allocation49_spill] sm:$0xff] }
 0x9df   : > { %8933 = vpow2.f32 %v3035_v14  ;;  %v3039_v12 = vmul.f32 1.442695, %v2937_v17  ;;  %v3041_v35 = vmul.f32 1.442695, %v2938_v13 }
 0x9e0   : > { %8935 = vpow2.f32 %v3037_v9  ;;  %3137 = vadd.xlane.f32.xlu1 %v3136_v15  ;;  %v15262_v15 = vld [vmem:[#allocation50_spill] sm:$0xff] }
 0x9e1   : > { %v12016_v45 = vpop.eup %8925  ;;  %8937 = vpow2.f32 %v3039_v12 }
 0x9e2   : > { %15256 = vst [vmem:[#allocation45_spill] sm:$0xff] %v12016_v45  ;;  %v12018_v37 = vpop.eup %8927  ;;  %8939 = vpow2.f32 %v3041_v35  ;;  %v2865_v58 = vpop.xlane.xlu0 %2864 }
 0x9e3   : > { %15257 = vst [vmem:[#allocation46_spill] sm:$0xff] %v12018_v37  ;;  %v12020_v8 = vpop.eup %8929  ;;  %v2939_v25 = vsub.f32 %v15259_v29, %v2865_v58  ;;  %v2940_v54 = vsub.f32 %v15260_v60, %v2865_v58  ;;  %v3139_v14 = vadd.f32 %v12018_v37, %v12016_v45  ;;  %v15266_v45 = vld [vmem:[#allocation54_spill] sm:$0xff] }
 0x9e4   : > { %15258 = vst [vmem:[#allocation47_spill] sm:$0xff] %v12020_v8  ;;  %v12026_v17 = vpop.eup %8931  ;;  %v2868_v9 = vpop.xlane.xlu1 %2867 }
 0x9e5   : > { %15261 = vst [vmem:[#allocation48_spill] sm:$0xff] %v12026_v17  ;;  %v3043_v16 = vmul.f32 1.442695, %v2939_v25  ;;  %v3045_v13 = vmul.f32 1.442695, %v2940_v54  ;;  %v2941_v12 = vsub.f32 %v15262_v15, %v2868_v9  ;;  %v2942_v19 = vsub.f32 %v15263_v50, %v2868_v9  ;;  %3140 = vadd.xlane.f32.xlu0 %v3139_v14  ;;  %v15264_v15 = vld [vmem:[#allocation52_spill] sm:$0xff] }
 0x9e6   : > { %v3142_v35 = vadd.f32 %v12026_v17, %v12020_v8  ;;  %v15265_v14 = vld [vmem:[#allocation53_spill] sm:$0xff]  ;;  %v15267_v8 = vld [vmem:[#allocation55_spill] sm:$0xff] }
 0x9e7   : > { %8941 = vpow2.f32 %v3043_v16  ;;  %v3047_v29 = vmul.f32 1.442695, %v2941_v12  ;;  %v3049_v44 = vmul.f32 1.442695, %v2942_v19 }
 0x9e8   : > { %8943 = vpow2.f32 %v3045_v13  ;;  %3143 = vadd.xlane.f32.xlu1 %v3142_v35 }
 0x9e9   : > { %v12032_v58 = vpop.eup %8933  ;;  %8945 = vpow2.f32 %v3047_v29 }
 0x9ea   : > { %v12034_v60 = vpop.eup %8935  ;;  %8947 = vpow2.f32 %v3049_v44  ;;  %v2871_v25 = vpop.xlane.xlu0 %2870 }
 0x9eb   : > { %v12036_v54 = vpop.eup %8937  ;;  %v2943_v50 = vsub.f32 %v15264_v15, %v2871_v25  ;;  %v2944_v9 = vsub.f32 %v15265_v14, %v2871_v25  ;;  %v3145_v16 = vadd.f32 %v12034_v60, %v12032_v58 }
 0x9ec   : > { %v12042_v12 = vpop.eup %8939  ;;  %v2874_v19 = vpop.xlane.xlu1 %2873 }
 0x9ed   : > { %v3051_v13 = vmul.f32 1.442695, %v2943_v50  ;;  %v3053_v35 = vmul.f32 1.442695, %v2944_v9  ;;  %v2945_v29 = vsub.f32 %v15266_v45, %v2874_v19  ;;  %v2946_v17 = vsub.f32 %v15267_v8, %v2874_v19  ;;  %3146 = vadd.xlane.f32.xlu0 %v3145_v16 }
 0x9ee   : > { %v3148_v44 = vadd.f32 %v12042_v12, %v12036_v54 }
 0x9ef   : > { %8949 = vpow2.f32 %v3051_v13  ;;  %v3055_v15 = vmul.f32 1.442695, %v2945_v29  ;;  %v3057_v37 = vmul.f32 1.442695, %v2946_v17 }
 0x9f0   : > { %8951 = vpow2.f32 %v3053_v35  ;;  %3149 = vadd.xlane.f32.xlu1 %v3148_v44 }
 0x9f1   : > { %v12048_v25 = vpop.eup %8941  ;;  %8953 = vpow2.f32 %v3055_v15 }
 0x9f2   : > { %15268 = vst [vmem:[#allocation49_spill] sm:$0xff] %v12048_v25  ;;  %v12050_v14 = vpop.eup %8943  ;;  %8955 = vpow2.f32 %v3057_v37 }
 0x9f3   : > { %v12052_v50 = vpop.eup %8945  ;;  %v3151_v45 = vadd.f32 %v12050_v14, %v12048_v25 }
 0x9f4   : > { %15269 = vst [vmem:[#allocation50_spill] sm:$0xff] %v12052_v50  ;;  %v12056_v8 = vpop.eup %8947 }
 0x9f5   : > { %15270 = vst [vmem:[#allocation51_spill] sm:$0xff] %v12056_v8  ;;  %3152 = vadd.xlane.f32.xlu0 %v3151_v45  ;;  %v3154_v9 = vadd.f32 %v12056_v8, %v12052_v50 }
 0x9f7   : > { %3155 = vadd.xlane.f32.xlu1 %v3154_v9 }
 0x9f9   : > { %v12060_v17 = vpop.eup %8949 }
 0x9fa   : > { %15271 = vst [vmem:[#allocation52_spill] sm:$0xff] %v12060_v17  ;;  %v12062_v16 = vpop.eup %8951 }
 0x9fb   : > { %15272 = vst [vmem:[#allocation53_spill] sm:$0xff] %v12062_v16  ;;  %v12064_v19 = vpop.eup %8953  ;;  %v3157_v37 = vadd.f32 %v12062_v16, %v12060_v17 }
 0x9fc   : > { %15273 = vst [vmem:[#allocation54_spill] sm:$0xff] %v12064_v19  ;;  %v12068_v13 = vpop.eup %8955 }
 0x9fd   : > { %15274 = vst [vmem:[#allocation55_spill] sm:$0xff] %v12068_v13  ;;  %3158 = vadd.xlane.f32.xlu0 %v3157_v37  ;;  %v3160_v35 = vadd.f32 %v12068_v13, %v12064_v19 }
 0x9ff   : > { %3161 = vadd.xlane.f32.xlu1 %v3160_v35 }
 0xa32   : > { %v3093_v29 = vpop.xlane.xlu0 %3092 }
 0xa33   : > { %8957 = vrcp.f32 %v3093_v29 }
 0xa35   : > { %v3096_v44 = vpop.xlane.xlu1 %3095 }
 0xa36   : > { %8959 = vrcp.f32 %v3096_v44  ;;  %v2877_v15 = vpop.xlane.xlu0 %2876 }
 0xa37   : > { %v2947_v45 = vsub.f32 %v11790_v48, %v2877_v15  ;;  %v2948_v9 = vsub.f32 %v11794_v21, %v2877_v15 }
 0xa39   : > { %v3059_v25 = vmul.f32 1.442695, %v2947_v45  ;;  %v3061_v50 = vmul.f32 1.442695, %v2948_v9  ;;  %v2880_v8 = vpop.xlane.xlu1 %2879 }
 0xa3a   : > { %v2949_v17 = vsub.f32 %v11810_v26, %v2880_v8  ;;  %v2950_v37 = vsub.f32 %v11812_v27, %v2880_v8  ;;  %v3099_v16 = vpop.xlane.xlu0 %3098 }
 0xa3b   : > { %8961 = vpow2.f32 %v3059_v25 }
 0xa3c   : > { %8963 = vpow2.f32 %v3061_v50  ;;  %v3063_v35 = vmul.f32 1.442695, %v2949_v17  ;;  %v3065_v19 = vmul.f32 1.442695, %v2950_v37 }
 0xa3d   : > { %v8958_v29 = vpop.eup %8957  ;;  %8965 = vrcp.f32 %v3099_v16  ;;  %v3102_v44 = vpop.xlane.xlu1 %3101 }
 0xa3e   : > { %8967 = vpow2.f32 %v3063_v35  ;;  %v2883_v13 = vpop.xlane.xlu0 %2882  ;;  %v3219_v26 = vmul.f32 %v8958_v29, %v11786_v53  ;;  %v3220_v27 = vmul.f32 %v8958_v29, %v11788_v57 }
 0xa3f   : > { %8969 = vpow2.f32 %v3065_v19  ;;  %v2951_v48 = vsub.f32 %v11831_v34, %v2883_v13  ;;  %v2952_v21 = vsub.f32 %v11836_v28, %v2883_v13 }
 0xa40   : > { %v8960_v15 = vpop.eup %8959  ;;  %8971 = vrcp.f32 %v3102_v44 }
 0xa41   : > { %v3221_v25 = vmul.f32 %v8960_v15, %v11792_v56  ;;  %v3067_v50 = vmul.f32 1.442695, %v2951_v48  ;;  %v3069_v8 = vmul.f32 1.442695, %v2952_v21  ;;  %v2886_v17 = vpop.xlane.xlu1 %2885  ;;  %v3222_v16 = vmul.f32 %v8960_v15, %v11806_v18 }
 0xa42   : > { %v2953_v45 = vsub.f32 %v11853_v38, %v2886_v17  ;;  %v2954_v19 = vsub.f32 %v11856_v30, %v2886_v17  ;;  %v3105_v34 = vpop.xlane.xlu0 %3104 }
 0xa43   : > { %8973 = vpow2.f32 %v3067_v50  ;;  %v3284_v28 = vpack.c.bf16 %v3222_v16, %v3220_v27  ;;  %v3283_v13 = vpack.c.bf16 %v3221_v25, %v3219_v26 }
 0xa44   : > { %8975 = vpow2.f32 %v3069_v8  ;;  %v3071_v53 = vmul.f32 1.442695, %v2953_v45  ;;  %v3073_v9 = vmul.f32 1.442695, %v2954_v19 }
 0xa45   : > { %v12084_v37 = vpop.eup %8961  ;;  %8977 = vrcp.f32 %v3105_v34  ;;  %v3108_v57 = vpop.xlane.xlu1 %3107  ;;  %3363 = vmatprep.mubr.bf16.mxu0 %v3284_v28 }
 0xa46   : > { %v12086_v56 = vpop.eup %8963  ;;  %8979 = vpow2.f32 %v3071_v53  ;;  %3364 = vmatmul.mubr.bf16.vlgmr.msra.gmra.mrb[80].mxu0 %v3283_v13  ;;  %v2889_v18 = vpop.xlane.xlu0 %2888 }
 0xa47   : > { %v8966_v38 = vpop.eup %8965  ;;  %8981 = vpow2.f32 %v3073_v9  ;;  %v2955_v30 = vsub.f32 %v11875_v40, %v2889_v18  ;;  %v2956_v35 = vsub.f32 %v11880_v36, %v2889_v18  ;;  %v3163_v29 = vadd.f32 %v12086_v56, %v12084_v37 }
 0xa48   : > { %v12092_v44 = vpop.eup %8967  ;;  %8983 = vrcp.f32 %v3108_v57  ;;  %v3224_v8 = vmul.f32 %v8966_v38, %v11826_v23  ;;  %v3223_v16 = vmul.f32 %v8966_v38, %v11824_v49 }
 0xa49   : > { %v12094_v48 = vpop.eup %8969  ;;  %v3075_v21 = vmul.f32 1.442695, %v2955_v30  ;;  %v3077_v15 = vmul.f32 1.442695, %v2956_v35  ;;  %v2892_v26 = vpop.xlane.xlu1 %2891  ;;  %3164 = vadd.xlane.f32.xlu0 %v3163_v29 }
 0xa4a   : > { %v8972_v27 = vpop.eup %8971  ;;  %v2957_v25 = vsub.f32 %v11897_v6, %v2892_v26  ;;  %v2958_v50 = vsub.f32 %v11900_v4, %v2892_v26  ;;  %v3166_v40 = vadd.f32 %v12094_v48, %v12092_v44  ;;  %v3111_v36 = vpop.xlane.xlu0 %3110 }
 0xa4b   : > { %8985 = vpow2.f32 %v3075_v21  ;;  %v3226_v17 = vmul.f32 %v8972_v27, %v11848_v3  ;;  %v3225_v45 = vmul.f32 %v8972_v27, %v11833_v11 }
 0xa4c   : > { %8987 = vpow2.f32 %v3077_v15  ;;  %v3079_v19 = vmul.f32 1.442695, %v2957_v25  ;;  %v3081_v34 = vmul.f32 1.442695, %v2958_v50  ;;  %3167 = vadd.xlane.f32.xlu1 %v3166_v40 }
 0xa4d   : > { %v12104_v6 = vpop.eup %8973  ;;  %8989 = vrcp.f32 %v3111_v36  ;;  %v3114_v4 = vpop.xlane.xlu1 %3113  ;;  %v3286_v28 = vpack.c.bf16 %v3226_v17, %v3224_v8  ;;  %v3285_v13 = vpack.c.bf16 %v3225_v45, %v3223_v16 }
 0xa4e   : > { %v12106_v53 = vpop.eup %8975  ;;  %8991 = vpow2.f32 %v3079_v19  ;;  %v2895_v23 = vpop.xlane.xlu0 %2894 }
 0xa4f   : > { %v8978_v9 = vpop.eup %8977  ;;  %8993 = vpow2.f32 %v3081_v34  ;;  %3371 = vmatprep.mubr.bf16.mxu0 %v3286_v28  ;;  %v2959_v49 = vsub.f32 %v11919_v31, %v2895_v23  ;;  %v2960_v11 = vsub.f32 %v11924_v1, %v2895_v23  ;;  %v3169_v3 = vadd.f32 %v12106_v53, %v12104_v6 }
 0xa50   : > { %v12112_v57 = vpop.eup %8979  ;;  %8995 = vrcp.f32 %v3114_v4  ;;  %3372 = vmatmul.mubr.bf16.gmra.mrb[84].mxu0 %v3285_v13  ;;  %v3228_v26 = vmul.f32 %v8978_v9, %v11870_v62  ;;  %v3227_v25 = vmul.f32 %v8978_v9, %v11868_v47 }
 0xa51   : > { %v12114_v18 = vpop.eup %8981  ;;  %v3083_v38 = vmul.f32 1.442695, %v2959_v49  ;;  %v3085_v30 = vmul.f32 1.442695, %v2960_v11  ;;  %v2898_v35 = vpop.xlane.xlu1 %2897  ;;  %3170 = vadd.xlane.f32.xlu0 %v3169_v3 }
 0xa52   : > { %v8984_v29 = vpop.eup %8983  ;;  %v2961_v21 = vsub.f32 %v11941_v55, %v2898_v35  ;;  %v2962_v31 = vsub.f32 %v11944_v32, %v2898_v35  ;;  %v3172_v1 = vadd.f32 %v12114_v18, %v12112_v57  ;;  %v3117_v15 = vpop.xlane.xlu0 %3116 }
 0xa53   : > { %8997 = vpow2.f32 %v3083_v38  ;;  %v3230_v27 = vmul.f32 %v8984_v29, %v11892_v41  ;;  %v3229_v50 = vmul.f32 %v8984_v29, %v11877_v61 }
 0xa54   : > { %8999 = vpow2.f32 %v3085_v30  ;;  %v3087_v40 = vmul.f32 1.442695, %v2961_v21  ;;  %v3089_v36 = vmul.f32 1.442695, %v2962_v31  ;;  %3173 = vadd.xlane.f32.xlu1 %v3172_v1 }
 0xa55   : > { %v12124_v55 = vpop.eup %8985  ;;  %9001 = vrcp.f32 %v3117_v15  ;;  %v3120_v32 = vpop.xlane.xlu1 %3119  ;;  %v3288_v8 = vpack.c.bf16 %v3230_v27, %v3228_v26  ;;  %v3287_v17 = vpack.c.bf16 %v3229_v50, %v3227_v25 }
 0xa56   : > { %v12126_v16 = vpop.eup %8987  ;;  %9003 = vpow2.f32 %v3087_v40 }
 0xa57   : > { %v8990_v62 = vpop.eup %8989  ;;  %9005 = vpow2.f32 %v3089_v36  ;;  %3379 = vmatprep.mubr.bf16.mxu0 %v3288_v8  ;;  %v3175_v47 = vadd.f32 %v12126_v16, %v12124_v55 }
 0xa58   : > { %v12130_v61 = vpop.eup %8991  ;;  %9007 = vrcp.f32 %v3120_v32  ;;  %3380 = vmatmul.mubr.bf16.gmra.mrb[88].mxu0 %v3287_v17  ;;  %v3232_v4 = vmul.f32 %v8990_v62, %v11914_v7  ;;  %v3231_v13 = vmul.f32 %v8990_v62, %v11912_v59 }
 0xa59   : > { %v12132_v41 = vpop.eup %8993  ;;  %3176 = vadd.xlane.f32.xlu0 %v3175_v47 }
 0xa5a   : > { %v8996_v45 = vpop.eup %8995  ;;  %v3178_v19 = vadd.f32 %v12132_v41, %v12130_v61  ;;  %v3123_v34 = vpop.xlane.xlu0 %3122 }
 0xa5b   : > { %v3234_v28 = vmul.f32 %v8996_v45, %v11936_v5  ;;  %v3233_v23 = vmul.f32 %v8996_v45, %v11921_v51  ;;  %9009 = vrcp.f32 %v3123_v34 }
 0xa5c   : > { %3179 = vadd.xlane.f32.xlu1 %v3178_v19 }
 0xa5d   : > { %v12140_v9 = vpop.eup %8997  ;;  %v3126_v49 = vpop.xlane.xlu1 %3125  ;;  %v3290_v11 = vpack.c.bf16 %v3234_v28, %v3232_v4  ;;  %v3289_v3 = vpack.c.bf16 %v3233_v23, %v3231_v13 }
 0xa5e   : > { %v12142_v38 = vpop.eup %8999  ;;  %9011 = vrcp.f32 %v3126_v49  ;;  %v15275_v49 = vld [vmem:[#allocation44_spill] sm:$0xff] }
 0xa5f   : > { %v9002_v30 = vpop.eup %9001  ;;  %3387 = vmatprep.mubr.bf16.mxu0 %v3290_v11  ;;  %v3181_v7 = vadd.f32 %v12142_v38, %v12140_v9  ;;  %v15276_v11 = vld [vmem:[#allocation56_spill] sm:$0xff] }
 0xa60   : > { %v12146_v5 = vpop.eup %9003  ;;  %3388 = vmatmul.mubr.bf16.gmra.mrb[92].mxu0 %v3289_v3  ;;  %v3236_v21 = vmul.f32 %v9002_v30, %v11952_v0  ;;  %v3235_v1 = vmul.f32 %v9002_v30, %v11950_v10 }
 0xa61   : > { %v12148_v59 = vpop.eup %9005  ;;  %3182 = vadd.xlane.f32.xlu0 %v3181_v7 }
 0xa62   : > { %v9008_v51 = vpop.eup %9007  ;;  %v3184_v35 = vadd.f32 %v12148_v59, %v12146_v5  ;;  %v3129_v29 = vpop.xlane.xlu0 %3128 }
 0xa63   : > { %v3238_v31 = vmul.f32 %v9008_v51, %v11962_v22  ;;  %v3237_v15 = vmul.f32 %v9008_v51, %v11956_v46  ;;  %9013 = vrcp.f32 %v3129_v29 }
 0xa64   : > { %3185 = vadd.xlane.f32.xlu1 %v3184_v35 }
 0xa65   : > { %v3132_v26 = vpop.xlane.xlu1 %3131  ;;  %v3292_v27 = vpack.c.bf16 %v3238_v31, %v3236_v21  ;;  %v3291_v25 = vpack.c.bf16 %v3237_v15, %v3235_v1  ;;  %v9010_v50 = vpop.eup %9009  ;;  %v15278_v21 = vld [vmem:[#allocation46_spill] sm:$0xff]  ;;  %v15279_v1 = vld [vmem:[#allocation48_spill] sm:$0xff]  ;;  %v15280_v15 = vld [vmem:[#allocation47_spill] sm:$0xff] }
 0xa66   : > { %9015 = vrcp.f32 %v3132_v26  ;;  %v3240_v36 = vmul.f32 %v9010_v50, %v11970_v20  ;;  %v3239_v10 = vmul.f32 %v9010_v50, %v11968_v42 }
 0xa67   : > { %3395 = vmatprep.mubr.bf16.mxu0 %v3292_v27 }
 0xa68   : > { %v9012_v40 = vpop.eup %9011  ;;  %3396 = vmatmul.mubr.bf16.gmra.mrb[96].mxu0 %v3291_v25  ;;  %v15281_v25 = vld [vmem:[#allocation45_spill] sm:$0xff] }
 0xa69   : > { %v3242_v0 = vmul.f32 %v9012_v40, %v11978_v2  ;;  %v3241_v22 = vmul.f32 %v9012_v40, %v11972_v24 }
 0xa6a   : > { %v3135_v32 = vpop.xlane.xlu0 %3134 }
 0xa6b   : > { %v3294_v46 = vpack.c.bf16 %v3242_v0, %v3240_v36  ;;  %9017 = vrcp.f32 %v3135_v32  ;;  %v3293_v8 = vpack.c.bf16 %v3241_v22, %v3239_v10 }
 0xa6d   : > { %v3138_v17 = vpop.xlane.xlu1 %3137  ;;  %3403 = vmatprep.mubr.bf16.mxu0 %v3294_v46  ;;  %v9014_v62 = vpop.eup %9013 }
 0xa6e   : > { %9019 = vrcp.f32 %v3138_v17  ;;  %v3244_v45 = vmul.f32 %v9014_v62, %v11986_v33  ;;  %v3243_v24 = vmul.f32 %v9014_v62, %v11984_v43 }
 0xa70   : > { %v9016_v47 = vpop.eup %9015  ;;  %3404 = vmatmul.mubr.bf16.gmra.mrb[100].mxu0 %v3293_v8 }
 0xa71   : > { %v3246_v20 = vmul.f32 %v9016_v47, %v11994_v52  ;;  %v3245_v2 = vmul.f32 %v9016_v47, %v11988_v39  ;;  %v15277_v39 = vld [vmem:[#allocation43_spill] sm:$0xff] }
 0xa72   : > { %v3141_v19 = vpop.xlane.xlu0 %3140 }
 0xa73   : > { %v3296_v34 = vpack.c.bf16 %v3246_v20, %v3244_v45  ;;  %9021 = vrcp.f32 %v3141_v19  ;;  %v3295_v42 = vpack.c.bf16 %v3245_v2, %v3243_v24 }
 0xa75   : > { %v3144_v4 = vpop.xlane.xlu1 %3143  ;;  %3411 = vmatprep.mubr.bf16.mxu0 %v3296_v34  ;;  %v9018_v28 = vpop.eup %9017  ;;  %v15282_v34 = vld [vmem:[#allocation51_spill] sm:$0xff] }
 0xa76   : > { %9023 = vrcp.f32 %v3144_v4  ;;  %v3248_v23 = vmul.f32 %v9018_v28, %v12002_v63  ;;  %v3247_v30 = vmul.f32 %v9018_v28, %v15277_v39 }
 0xa78   : > { %v9020_v13 = vpop.eup %9019  ;;  %3412 = vmatmul.mubr.bf16.gmra.mrb[104].mxu0 %v3295_v42  ;;  %v15283_v42 = vld [vmem:[#allocation50_spill] sm:$0xff] }
 0xa79   : > { %v3250_v33 = vmul.f32 %v9020_v13, %v15275_v49  ;;  %v3249_v52 = vmul.f32 %v9020_v13, %v15276_v11  ;;  %v15285_v49 = vld [vmem:[#allocation53_spill] sm:$0xff]  ;;  %v15286_v11 = vld [vmem:[#allocation55_spill] sm:$0xff] }
 0xa7a   : > { %v3147_v3 = vpop.xlane.xlu0 %3146 }
 0xa7b   : > { %v3298_v7 = vpack.c.bf16 %v3250_v33, %v3248_v23  ;;  %9025 = vrcp.f32 %v3147_v3  ;;  %v3297_v43 = vpack.c.bf16 %v3249_v52, %v3247_v30  ;;  %v15287_v3 = vld [vmem:[#allocation54_spill] sm:$0xff] }
 0xa7d   : > { %v3150_v51 = vpop.xlane.xlu1 %3149  ;;  %3419 = vmatprep.mubr.bf16.mxu0 %v3298_v7  ;;  %v9022_v35 = vpop.eup %9021 }
 0xa7e   : > { %9027 = vrcp.f32 %v3150_v51  ;;  %v3252_v31 = vmul.f32 %v9022_v35, %v15278_v21  ;;  %v3251_v50 = vmul.f32 %v9022_v35, %v15281_v25 }
 0xa80   : > { %v9024_v29 = vpop.eup %9023  ;;  %3420 = vmatmul.mubr.bf16.gmra.mrb[108].mxu0 %v3297_v43 }
 0xa81   : > { %v3254_v63 = vmul.f32 %v9024_v29, %v15279_v1  ;;  %v3253_v26 = vmul.f32 %v9024_v29, %v15280_v15 }
 0xa82   : > { %v3153_v27 = vpop.xlane.xlu0 %3152 }
 0xa83   : > { %9029 = vrcp.f32 %v3153_v27  ;;  %v3300_v40 = vpack.c.bf16 %v3254_v63, %v3252_v31  ;;  %v3299_v0 = vpack.c.bf16 %v3253_v26, %v3251_v50 }
 0xa84   : > { %v3156_v36 = vpop.xlane.xlu1 %3155 }
 0xa85   : > { %9031 = vrcp.f32 %v3156_v36  ;;  %3427 = vmatprep.mubr.bf16.mxu0 %v3300_v40  ;;  %v9026_v22 = vpop.eup %9025 }
 0xa86   : > { %v3256_v10 = vmul.f32 %v9026_v22, %v12034_v60  ;;  %v3255_v62 = vmul.f32 %v9026_v22, %v12032_v58 }
 0xa88   : > { %v9028_v32 = vpop.eup %9027  ;;  %3428 = vmatmul.mubr.bf16.gmra.mrb[112].mxu0 %v3299_v0 }
 0xa89   : > { %v3258_v46 = vmul.f32 %v9028_v32, %v12042_v12  ;;  %v3257_v8 = vmul.f32 %v9028_v32, %v12036_v54  ;;  %v15284_v54 = vld [vmem:[#allocation49_spill] sm:$0xff] }
 0xa8a   : > { %v3159_v17 = vpop.xlane.xlu0 %3158 }
 0xa8b   : > { %9033 = vrcp.f32 %v3159_v17  ;;  %v3302_v47 = vpack.c.bf16 %v3258_v46, %v3256_v10  ;;  %v3301_v20 = vpack.c.bf16 %v3257_v8, %v3255_v62 }
 0xa8c   : > { %v3162_v45 = vpop.xlane.xlu1 %3161 }
 0xa8d   : > { %v9030_v2 = vpop.eup %9029  ;;  %9035 = vrcp.f32 %v3162_v45  ;;  %3435 = vmatprep.mubr.bf16.mxu0 %v3302_v47 }
 0xa8e   : > { %v3260_v24 = vmul.f32 %v9030_v2, %v12050_v14  ;;  %v3259_v28 = vmul.f32 %v9030_v2, %v15284_v54  ;;  %v15288_v14 = vld [vmem:[#allocation52_spill] sm:$0xff] }
 0xa8f   : > { %v9032_v19 = vpop.eup %9031 }
 0xa90   : > { %3436 = vmatmul.mubr.bf16.gmra.mrb[116].mxu0 %v3301_v20  ;;  %v3262_v60 = vmul.f32 %v9032_v19, %v15282_v34  ;;  %v3261_v12 = vmul.f32 %v9032_v19, %v15283_v42 }
 0xa92   : > { %v3304_v4 = vpack.c.bf16 %v3262_v60, %v3260_v24  ;;  %v3303_v58 = vpack.c.bf16 %v3261_v12, %v3259_v28 }
 0xa94   : > { %3443 = vmatprep.mubr.bf16.mxu0 %v3304_v4 }
 0xa95   : > { %v9034_v13 = vpop.eup %9033 }
 0xa96   : > { %v3264_v33 = vmul.f32 %v9034_v13, %v15285_v49  ;;  %v3263_v7 = vmul.f32 %v9034_v13, %v15288_v14 }
 0xa97   : > { %v9036_v23 = vpop.eup %9035 }
 0xa98   : > { %3444 = vmatmul.mubr.bf16.gmra.mrb[120].mxu0 %v3303_v58  ;;  %v3266_v52 = vmul.f32 %v9036_v23, %v15286_v11  ;;  %v3265_v39 = vmul.f32 %v9036_v23, %v15287_v3 }
 0xa9a   : > { %v3306_v30 = vpack.c.bf16 %v3266_v52, %v3264_v33  ;;  %v3305_v43 = vpack.c.bf16 %v3265_v39, %v3263_v7 }
 0xa9c   : > { %3451 = vmatprep.mubr.bf16.mxu0 %v3306_v30 }
 0xaa0   : > { %3452 = vmatmul.mubr.bf16.gmra.mrb[124].mxu0 %v3305_v43 }
 0xad6   : > { %v3165_v51 = vpop.xlane.xlu0 %3164 }
 0xad7   : > { %9037 = vrcp.f32 %v3165_v51 }
 0xad9   : > { %v3168_v35 = vpop.xlane.xlu1 %3167 }
 0xada   : > { %9039 = vrcp.f32 %v3168_v35 }
 0xade   : > { %v3171_v29 = vpop.xlane.xlu0 %3170 }
 0xadf   : > { %9041 = vrcp.f32 %v3171_v29 }
 0xae1   : > { %v3174_v21 = vpop.xlane.xlu1 %3173  ;;  %v9038_v31 = vpop.eup %9037 }
 0xae2   : > { %9043 = vrcp.f32 %v3174_v21  ;;  %v3268_v63 = vmul.f32 %v9038_v31, %v12086_v56  ;;  %v3267_v26 = vmul.f32 %v9038_v31, %v12084_v37 }
 0xae4   : > { %v9040_v1 = vpop.eup %9039 }
 0xae5   : > { %v3270_v15 = vmul.f32 %v9040_v1, %v12094_v48  ;;  %v3269_v27 = vmul.f32 %v9040_v1, %v12092_v44 }
 0xae6   : > { %v3177_v25 = vpop.xlane.xlu0 %3176 }
 0xae7   : > { %9045 = vrcp.f32 %v3177_v25  ;;  %v3308_v50 = vpack.c.bf16 %v3270_v15, %v3268_v63  ;;  %v3307_v40 = vpack.c.bf16 %v3269_v27, %v3267_v26  ;;  %v9501_v25 = vld [vmem:[%s15050_s2 + $0x180] sm:$0xff] }
 0xae9   : > { %v3180_v36 = vpop.xlane.xlu1 %3179  ;;  %3459 = vmatprep.mubr.bf16.mxu0 %v3308_v50  ;;  %v9042_v0 = vpop.eup %9041 }
 0xaea   : > { %9047 = vrcp.f32 %v3180_v36  ;;  %3460 = vmatmul.mubr.bf16.gmra.mrb[128].mxu0 %v3307_v40  ;;  %v3272_v32 = vmul.f32 %v9042_v0, %v12106_v53  ;;  %v3271_v48 = vmul.f32 %v9042_v0, %v12104_v6  ;;  %v3580_v53 = vld [vmem:[%s15050_s2 + $0x3a0] sm:$0xff]  ;;  %v3581_v6 = vld [vmem:[%s15050_s2 + $0x3a8] sm:$0xff] }
 0xaeb   : > { %v3588_v20 = vpack.c.bf16 %v3581_v6, %v3580_v53 }
 0xaec   : > { %v9044_v22 = vpop.eup %9043 }
 0xaed   : > { %v3274_v56 = vmul.f32 %v9044_v22, %v12114_v18  ;;  %v3273_v37 = vmul.f32 %v9044_v22, %v12112_v57  ;;  %8672 = vmatprep.subr.msk.bf16.mxu0 %vm553_vm0, %v3588_v20  ;;  %v3608_v24 = vsel %vm553_vm0, %v3588_v20, 0  ;;  %v9502_v22 = vld [vmem:[%s15050_s2 + $0x188] sm:$0xff] }
 0xaee   : > { %v3183_v10 = vpop.xlane.xlu0 %3182  ;;  %8431 = vmatpush3.bf16.xpose.msra.mxu0 %v3608_v24 }
 0xaef   : > { %9049 = vrcp.f32 %v3183_v10  ;;  %v3310_v44 = vpack.c.bf16 %v3274_v56, %v3272_v32  ;;  %v3309_v46 = vpack.c.bf16 %v3273_v37, %v3271_v48  ;;  %v9503_v56 = vld [vmem:[%s15050_s2 + $0x1c0] sm:$0xff] }
 0xaf1   : > { %v9046_v8 = vpop.eup %9045  ;;  %v3186_v17 = vpop.xlane.xlu1 %3185  ;;  %3467 = vmatprep.mubr.bf16.mxu0 %v3310_v44 }
 0xaf2   : > { %9051 = vrcp.f32 %v3186_v17  ;;  %3468 = vmatmul.mubr.bf16.gmra.mrb[132].mxu0 %v3309_v46  ;;  %v3276_v47 = vmul.f32 %v9046_v8, %v12126_v16  ;;  %v3275_v18 = vmul.f32 %v9046_v8, %v12124_v55  ;;  %v3582_v55 = vld [vmem:[%s15050_s2 + $0x3b0] sm:$0xff]  ;;  %v9504_v46 = vld [vmem:[%s15050_s2 + $0x1c8] sm:$0xff] }
 0xaf4   : > { %v9048_v62 = vpop.eup %9047 }
 0xaf5   : > { %v3278_v57 = vmul.f32 %v9048_v62, %v12132_v41  ;;  %v3277_v45 = vmul.f32 %v9048_v62, %v12130_v61  ;;  %v3583_v61 = vld [vmem:[%s15050_s2 + $0x3b8] sm:$0xff] }
 0xaf6   : > { %v3589_v4 = vpack.c.bf16 %v3583_v61, %v3582_v55 }
 0xaf7   : > { %v3312_v2 = vpack.c.bf16 %v3278_v57, %v3276_v47  ;;  %v3311_v19 = vpack.c.bf16 %v3277_v45, %v3275_v18  ;;  %v9505_v18 = vld [vmem:[%s15050_s2 + $0x190] sm:$0xff] }
 0xaf8   : > { %8673 = vmatprep.subr.msk.bf16.mxu0 %vm553_vm0, %v3589_v4 }
 0xaf9   : > { %v9050_v16 = vpop.eup %9049  ;;  %3475 = vmatprep.mubr.bf16.mxu0 %v3312_v2 }
 0xafa   : > { %3476 = vmatmul.mubr.bf16.gmra.mrb[136].mxu0 %v3311_v19  ;;  %v3280_v60 = vmul.f32 %v9050_v16, %v12142_v38  ;;  %v3279_v42 = vmul.f32 %v9050_v16, %v12140_v9  ;;  %v3611_v38 = vsel %vm553_vm0, %v3589_v4, 0  ;;  %v9506_v16 = vld [vmem:[%s15050_s2 + $0x198] sm:$0xff] }
 0xafb   : > { %8433 = vmatpush3.bf16.xpose.msra.mxu0 %v3611_v38 }
 0xafc   : > { %v9052_v34 = vpop.eup %9051 }
 0xafd   : > { %v3282_v41 = vmul.f32 %v9052_v34, %v12148_v59  ;;  %v3281_v12 = vmul.f32 %v9052_v34, %v12146_v5  ;;  %v9507_v34 = vld [vmem:[%s15050_s2 + $0x1d0] sm:$0xff] }
 0xaff   : > { %v3314_v54 = vpack.c.bf16 %v3282_v41, %v3280_v60  ;;  %v3313_v28 = vpack.c.bf16 %v3281_v12, %v3279_v42  ;;  %v9508_v42 = vld [vmem:[%s15050_s2 + $0x1d8] sm:$0xff] }
 0xb01   : > { %3483 = vmatprep.mubr.bf16.mxu0 %v3314_v54 }
 0xb02   : > { %3484 = vmatmul.mubr.bf16.gmra.mrb[140].mxu0 %v3313_v28 }
 0xb19   : > { %v7864_v58 = vpop.f32.mrb[80].mxu0 }
 0xb1a   : > { %v7865_v13 = vpop.f32.mrb[81].mxu0 }
 0xb1b   : > { %v7866_v23 = vadd.f32 %v7865_v13, %v7864_v58  ;;  %v7867_v49 = vpop.f32.mrb[82].mxu0 }
 0xb1c   : > { %v7868_v33 = vpop.f32.mrb[83].mxu0 }
 0xb1d   : > { %v7869_v59 = vadd.f32 %v7868_v33, %v7867_v49  ;;  %v3492_v50 = vmul.f32 %v9501_v25, %v7866_v23  ;;  %v9509_v23 = vld [vmem:[%s15050_s2 + $0x1a0] sm:$0xff] }
 0xb1f   : > { %v3493_v32 = vmul.f32 %v9502_v22, %v7869_v59  ;;  %v3524_v10 = vsel %vm553_vm0, %v3492_v50, 0.0  ;;  %v9515_v22 = vld [vmem:[%s15050_s2 + $0x1f0] sm:$0xff] }
 0xb21   : > { %v3531_v62 = vsel %vm553_vm0, %v3493_v32, 0.0 }
 0xb23   : > { %v7870_v11 = vpop.f32.mrb[84].mxu0 }
 0xb24   : > { %v7871_v9 = vpop.f32.mrb[85].mxu0 }
 0xb25   : > { %v7872_v52 = vadd.f32 %v7871_v9, %v7870_v11  ;;  %v7873_v5 = vpop.f32.mrb[86].mxu0  ;;  %v9510_v9 = vld [vmem:[%s15050_s2 + $0x1a8] sm:$0xff] }
 0xb26   : > { %v7874_v3 = vpop.f32.mrb[87].mxu0 }
 0xb27   : > { %v7875_v39 = vadd.f32 %v7874_v3, %v7873_v5  ;;  %v3494_v45 = vmul.f32 %v9505_v18, %v7872_v52  ;;  %v9511_v5 = vld [vmem:[%s15050_s2 + $0x1e0] sm:$0xff] }
 0xb29   : > { %v3495_v24 = vmul.f32 %v9506_v16, %v7875_v39  ;;  %v3538_v61 = vsel %vm553_vm0, %v3494_v45, 0.0  ;;  %v9517_v45 = vld [vmem:[%s15050_s2 + $0x200] sm:$0xff]  ;;  %v9518_v16 = vld [vmem:[%s15050_s2 + $0x208] sm:$0xff] }
 0xb2b   : > { %v7876_v30 = vpop.f32.mrb[88].mxu0  ;;  %v3545_v54 = vsel %vm553_vm0, %v3495_v24, 0.0 }
 0xb2c   : > { %v7877_v14 = vpop.f32.mrb[89].mxu0 }
 0xb2d   : > { %v7878_v7 = vadd.f32 %v7877_v14, %v7876_v30  ;;  %v7879_v43 = vpop.f32.mrb[90].mxu0 }
 0xb2e   : > { %v7880_v51 = vpop.f32.mrb[91].mxu0 }
 0xb2f   : > { %v7881_v35 = vadd.f32 %v7880_v51, %v7879_v43  ;;  %v3496_v49 = vmul.f32 %v9509_v23, %v7878_v7  ;;  %v9512_v7 = vld [vmem:[%s15050_s2 + $0x1e8] sm:$0xff] }
 0xb31   : > { %v3497_v52 = vmul.f32 %v9510_v9, %v7881_v35  ;;  %v3552_v30 = vsel %vm553_vm0, %v3496_v49, 0.0 }
 0xb33   : > { %v7882_v29 = vpop.f32.mrb[92].mxu0 }
 0xb34   : > { %v7883_v21 = vpop.f32.mrb[93].mxu0 }
 0xb35   : > { %v12216_v31 = vadd.f32 %v7883_v21, %v7882_v29  ;;  %v7885_v1 = vpop.f32.mrb[94].mxu0  ;;  %v3559_v29 = vsel %vm553_vm0, %v3497_v52, 0.0 }
 0xb36   : > { %v7886_v63 = vpop.f32.mrb[95].mxu0 }
 0xb37   : > { %v12218_v15 = vadd.f32 %v7886_v63, %v7885_v1 }
 0xb3b   : > { %v7888_v26 = vpop.f32.mrb[96].mxu0 }
 0xb3c   : > { %v7889_v27 = vpop.f32.mrb[97].mxu0 }
 0xb3d   : > { %v7890_v40 = vadd.f32 %v7889_v27, %v7888_v26  ;;  %v7891_v36 = vpop.f32.mrb[98].mxu0  ;;  %v9513_v26 = vld [vmem:[%s15050_s2 + $0x1b0] sm:$0xff] }
 0xb3e   : > { %v7892_v0 = vpop.f32.mrb[99].mxu0  ;;  %v3498_v27 = vmul.f32 %v9513_v26, %v12216_v31  ;;  %v9516_v31 = vld [vmem:[%s15050_s2 + $0x1f8] sm:$0xff] }
 0xb3f   : > { %v3500_v48 = vmul.f32 %v9503_v56, %v7890_v40  ;;  %v7893_v37 = vadd.f32 %v7892_v0, %v7891_v36  ;;  %v9514_v36 = vld [vmem:[%s15050_s2 + $0x1b8] sm:$0xff] }
 0xb40   : > { %v3499_v0 = vmul.f32 %v9514_v36, %v12218_v15 }
 0xb41   : > { %v3525_v44 = vsel %vm553_vm0, %v3500_v48, 0.0  ;;  %v3501_v8 = vmul.f32 %v9504_v46, %v7893_v37  ;;  %v3566_v48 = vsel %vm553_vm0, %v3498_v27, 0.0 }
 0xb42   : > { %v12234_v17 = vadd.f32 %v3525_v44, %v3524_v10  ;;  %v3573_v46 = vsel %vm553_vm0, %v3499_v0, 0.0 }
 0xb43   : > { %v3532_v47 = vsel %vm553_vm0, %v3501_v8, 0.0  ;;  %v7894_v53 = vpop.f32.mrb[100].mxu0 }
 0xb44   : > { %v12238_v6 = vadd.f32 %v3532_v47, %v3531_v62  ;;  %v7895_v57 = vpop.f32.mrb[101].mxu0 }
 0xb45   : > { %v7896_v20 = vadd.f32 %v7895_v57, %v7894_v53  ;;  %v7897_v2 = vpop.f32.mrb[102].mxu0 }
 0xb46   : > { %v7898_v19 = vpop.f32.mrb[103].mxu0 }
 0xb47   : > { %v3502_v60 = vmul.f32 %v9507_v34, %v7896_v20  ;;  %v7899_v55 = vadd.f32 %v7898_v19, %v7897_v2 }
 0xb49   : > { %v3539_v41 = vsel %vm553_vm0, %v3502_v60, 0.0  ;;  %v3503_v12 = vmul.f32 %v9508_v42, %v7899_v55 }
 0xb4a   : > { %v12254_v4 = vadd.f32 %v3539_v41, %v3538_v61 }
 0xb4b   : > { %v3546_v28 = vsel %vm553_vm0, %v3503_v12, 0.0  ;;  %v7900_v38 = vpop.f32.mrb[104].mxu0 }
 0xb4c   : > { %v12258_v58 = vadd.f32 %v3546_v28, %v3545_v54  ;;  %v7901_v13 = vpop.f32.mrb[105].mxu0  ;;  %v9519_v28 = vld [vmem:[%s15050_s2 + $0x210] sm:$0xff] }
 0xb4d   : > { %v7902_v33 = vadd.f32 %v7901_v13, %v7900_v38  ;;  %v7903_v59 = vpop.f32.mrb[106].mxu0 }
 0xb4e   : > { %v7904_v11 = vpop.f32.mrb[107].mxu0 }
 0xb4f   : > { %v3504_v3 = vmul.f32 %v9511_v5, %v7902_v33  ;;  %v7905_v39 = vadd.f32 %v7904_v11, %v7903_v59 }
 0xb51   : > { %v3553_v14 = vsel %vm553_vm0, %v3504_v3, 0.0  ;;  %v3505_v43 = vmul.f32 %v9512_v7, %v7905_v39  ;;  %v9521_v39 = vld [vmem:[%s15050_s2 + $0x220] sm:$0xff] }
 0xb52   : > { %v12274_v51 = vadd.f32 %v3553_v14, %v3552_v30 }
 0xb53   : > { %v3560_v35 = vsel %vm553_vm0, %v3505_v43, 0.0  ;;  %v7906_v21 = vpop.f32.mrb[108].mxu0 }
 0xb54   : > { %v3561_v1 = vadd.f32 %v3560_v35, %v3559_v29  ;;  %v7907_v63 = vpop.f32.mrb[109].mxu0 }
 0xb55   : > { %v7908_v25 = vadd.f32 %v7907_v63, %v7906_v21  ;;  %v7909_v50 = vpop.f32.mrb[110].mxu0 }
 0xb56   : > { %v7910_v40 = vpop.f32.mrb[111].mxu0 }
 0xb57   : > { %v3506_v32 = vmul.f32 %v9515_v22, %v7908_v25  ;;  %v7911_v56 = vadd.f32 %v7910_v40, %v7909_v50  ;;  %v9523_v50 = vld [vmem:[%s15050_s2 + $0x230] sm:$0xff] }
 0xb59   : > { %v3567_v37 = vsel %vm553_vm0, %v3506_v32, 0.0  ;;  %v3507_v10 = vmul.f32 %v9516_v31, %v7911_v56 }
 0xb5a   : > { %v3568_v44 = vadd.f32 %v3567_v37, %v3566_v48 }
 0xb5b   : > { %v3574_v15 = vsel %vm553_vm0, %v3507_v10, 0.0  ;;  %v7912_v8 = vpop.f32.mrb[112].mxu0 }
 0xb5c   : > { %v3575_v62 = vadd.f32 %v3574_v15, %v3573_v46  ;;  %v7913_v47 = vpop.f32.mrb[113].mxu0  ;;  %v9525_v15 = vld [vmem:[%s15050_s2 + $0x240] sm:$0xff] }
 0xb5d   : > { %v7914_v53 = vadd.f32 %v7913_v47, %v7912_v8  ;;  %v7915_v57 = vpop.f32.mrb[114].mxu0 }
 0xb5e   : > { %v7916_v18 = vpop.f32.mrb[115].mxu0 }
 0xb5f   : > { %v3508_v20 = vmul.f32 %v9517_v45, %v7914_v53  ;;  %v7917_v2 = vadd.f32 %v7916_v18, %v7915_v57 }
 0xb61   : > { %v3527_v19 = vsel %vm553_vm0, %v3508_v20, 0.0  ;;  %v3509_v24 = vmul.f32 %v9518_v16, %v7917_v2 }
 0xb62   : > { %v3528_v34 = vadd.f32 %v3527_v19, %v12234_v17  ;;  %v9520_v17 = vld [vmem:[%s15050_s2 + $0x218] sm:$0xff] }
 0xb63   : > { %v3534_v60 = vsel %vm553_vm0, %v3509_v24, 0.0  ;;  %v7918_v55 = vpop.f32.mrb[116].mxu0 }
 0xb64   : > { %v3535_v61 = vadd.f32 %v3534_v60, %v12238_v6  ;;  %v7919_v41 = vpop.f32.mrb[117].mxu0 }
 0xb65   : > { %v7920_v42 = vadd.f32 %v7919_v41, %v7918_v55  ;;  %v7921_v12 = vpop.f32.mrb[118].mxu0  ;;  %v9527_v55 = vld [vmem:[%s15050_s2 + $0x250] sm:$0xff] }
 0xb66   : > { %v7922_v54 = vpop.f32.mrb[119].mxu0 }
 0xb67   : > { %v3510_v38 = vmul.f32 %v9519_v28, %v7920_v42  ;;  %v7923_v13 = vadd.f32 %v7922_v54, %v7921_v12 }
 0xb69   : > { %v3541_v23 = vsel %vm553_vm0, %v3510_v38, 0.0  ;;  %v3511_v49 = vmul.f32 %v9520_v17, %v7923_v13 }
 0xb6a   : > { %v3542_v33 = vadd.f32 %v3541_v23, %v12254_v4  ;;  %v9522_v4 = vld [vmem:[%s15050_s2 + $0x228] sm:$0xff] }
 0xb6b   : > { %v3548_v6 = vsel %vm553_vm0, %v3511_v49, 0.0  ;;  %v7924_v59 = vpop.f32.mrb[120].mxu0 }
 0xb6c   : > { %v3549_v11 = vadd.f32 %v3548_v6, %v12258_v58  ;;  %v7925_v9 = vpop.f32.mrb[121].mxu0 }
 0xb6d   : > { %v7926_v52 = vadd.f32 %v7925_v9, %v7924_v59  ;;  %v7927_v5 = vpop.f32.mrb[122].mxu0  ;;  %v9529_v9 = vld [vmem:[%s15050_s2 + $0x260] sm:$0xff] }
 0xb6e   : > { %v7928_v3 = vpop.f32.mrb[123].mxu0 }
 0xb6f   : > { %v3512_v30 = vmul.f32 %v9521_v39, %v7926_v52  ;;  %v7929_v14 = vadd.f32 %v7928_v3, %v7927_v5 }
 0xb71   : > { %v3555_v7 = vsel %vm553_vm0, %v3512_v30, 0.0  ;;  %v3513_v43 = vmul.f32 %v9522_v4, %v7929_v14 }
 0xb72   : > { %v3556_v29 = vadd.f32 %v3555_v7, %v12274_v51  ;;  %v9524_v51 = vld [vmem:[%s15050_s2 + $0x238] sm:$0xff] }
 0xb73   : > { %v3562_v58 = vsel %vm553_vm0, %v3513_v43, 0.0  ;;  %v7930_v35 = vpop.f32.mrb[124].mxu0 }
 0xb74   : > { %v3563_v21 = vadd.f32 %v3562_v58, %v3561_v1  ;;  %v7931_v63 = vpop.f32.mrb[125].mxu0 }
 0xb75   : > { %v7932_v26 = vadd.f32 %v7931_v63, %v7930_v35  ;;  %v7933_v27 = vpop.f32.mrb[126].mxu0 }
 0xb76   : > { %v7934_v25 = vpop.f32.mrb[127].mxu0 }
 0xb77   : > { %v3514_v40 = vmul.f32 %v9523_v50, %v7932_v26  ;;  %v7935_v36 = vadd.f32 %v7934_v25, %v7933_v27  ;;  %v9531_v26 = vld [vmem:[%s15050_s2 + $0x270] sm:$0xff] }
 0xb79   : > { %v3569_v0 = vsel %vm553_vm0, %v3514_v40, 0.0  ;;  %v3515_v22 = vmul.f32 %v9524_v51, %v7935_v36 }
 0xb7a   : > { %v3570_v32 = vadd.f32 %v3569_v0, %v3568_v44  ;;  %v9526_v44 = vld [vmem:[%s15050_s2 + $0x248] sm:$0xff] }
 0xb7b   : > { %v3576_v1 = vsel %vm553_vm0, %v3515_v22, 0.0  ;;  %v7584_v22 = vld [vmem:[%s15052_s4 + $0x3] ss:$0 sm:$0xff] }
 0xb7c   : > { %v3577_v56 = vadd.f32 %v3576_v1, %v3575_v62 }
 0xbbd   : > { %v7936_v48 = vpop.f32.mrb[128].mxu0 }
 0xbbe   : > { %v7937_v37 = vpop.f32.mrb[129].mxu0 }
 0xbbf   : > { %v7938_v31 = vadd.f32 %v7937_v37, %v7936_v48  ;;  %v7939_v10 = vpop.f32.mrb[130].mxu0 }
 0xbc0   : > { %v7940_v46 = vpop.f32.mrb[131].mxu0 }
 0xbc1   : > { %v3516_v8 = vmul.f32 %v9525_v15, %v7938_v31  ;;  %v7941_v47 = vadd.f32 %v7940_v46, %v7939_v10  ;;  %v15289_v15 = vld [vmem:[#allocation35_spill] sm:$0xff] }
 0xbc3   : > { %v3529_v53 = vsel %vm553_vm0, %v3516_v8, 0.0  ;;  %v3517_v57 = vmul.f32 %v9526_v44, %v7941_v47 }
 0xbc4   : > { %v3530_v18 = vadd.f32 %v3529_v53, %v3528_v34  ;;  %v9528_v34 = vld [vmem:[%s15050_s2 + $0x258] sm:$0xff] }
 0xbc5   : > { %v3536_v62 = vsel %vm553_vm0, %v3517_v57, 0.0  ;;  %v7942_v45 = vpop.f32.mrb[132].mxu0  ;;  %v15290_v53 = vld [vmem:[#allocation37_spill] sm:$0xff] }
 0xbc6   : > { %v3537_v20 = vadd.f32 %v3536_v62, %v3535_v61  ;;  %v7943_v2 = vpop.f32.mrb[133].mxu0  ;;  %v15292_v62 = vld [vmem:[#allocation38_spill] sm:$0xff] }
 0xbc7   : > { %v7944_v19 = vadd.f32 %v7943_v2, %v7942_v45  ;;  %v7945_v16 = vpop.f32.mrb[134].mxu0 }
 0xbc8   : > { %v7946_v24 = vpop.f32.mrb[135].mxu0  ;;  %v3584_v60 = vpack.c.bf16 %v3537_v20, %v3530_v18 }
 0xbc9   : > { %v3518_v41 = vmul.f32 %v9527_v55, %v7944_v19  ;;  %v7947_v42 = vadd.f32 %v7946_v24, %v7945_v16 }
 0xbca   : > { %8434 = vmatprep.mubr.msk.bf16.mxu0 %vm553_vm0, %v3584_v60 }
 0xbcb   : > { %v3543_v12 = vsel %vm553_vm0, %v3518_v41, 0.0  ;;  %v3519_v61 = vmul.f32 %v9528_v34, %v7947_v42 }
 0xbcc   : > { %v3544_v54 = vadd.f32 %v3543_v12, %v3542_v33  ;;  %v9530_v33 = vld [vmem:[%s15050_s2 + $0x268] sm:$0xff] }
 0xbcd   : > { %v3550_v28 = vsel %vm553_vm0, %v3519_v61, 0.0  ;;  %v7948_v38 = vpop.f32.mrb[136].mxu0  ;;  %v15293_v12 = vld [vmem:[#allocation39_spill] sm:$0xff] }
 0xbce   : > { %v3551_v13 = vadd.f32 %v3550_v28, %v3549_v11  ;;  %v7949_v23 = vpop.f32.mrb[137].mxu0  ;;  %v15294_v28 = vld [vmem:[#allocation41_spill] sm:$0xff] }
 0xbcf   : > { %v7950_v17 = vadd.f32 %v7949_v23, %v7948_v38  ;;  %v7951_v49 = vpop.f32.mrb[138].mxu0 }
 0xbd0   : > { %v3585_v6 = vpack.c.bf16 %v3551_v13, %v3544_v54  ;;  %v7952_v59 = vpop.f32.mrb[139].mxu0  ;;  %v15295_v13 = vld [vmem:[#allocation40_spill] sm:$0xff] }
 0xbd1   : > { %v3520_v52 = vmul.f32 %v9529_v9, %v7950_v17  ;;  %v7953_v5 = vadd.f32 %v7952_v59, %v7951_v49  ;;  %v15296_v49 = vld [vmem:[#allocation42_spill] sm:$0xff] }
 0xbd2   : > { %8435 = vmatmul.mubr.msk.bf16.vlgmr.msra.gmra.mrb[144].mxu0 %vm553_vm0, %v3585_v6 }
 0xbd3   : > { %v3557_v3 = vsel %vm553_vm0, %v3520_v52, 0.0  ;;  %v3521_v11 = vmul.f32 %v9530_v33, %v7953_v5  ;;  %v3816_v5 = vld [vmem:[%s15050_s2 + $0x3c0] sm:$0xff]  ;;  %v3818_v33 = vld [vmem:[%s15050_s2 + $0x3d0] sm:$0xff] }
 0xbd4   : > { %v3558_v39 = vadd.f32 %v3557_v3, %v3556_v29  ;;  %v9532_v29 = vld [vmem:[%s15050_s2 + $0x278] sm:$0xff]  ;;  %v3817_v3 = vld [vmem:[%s15050_s2 + $0x3c8] sm:$0xff] }
 0xbd5   : > { %v3564_v30 = vsel %vm553_vm0, %v3521_v11, 0.0  ;;  %v7954_v14 = vpop.f32.mrb[140].mxu0  ;;  %v3828_v11 = vpack.c.bf16 %v3817_v3, %v3816_v5 }
 0xbd6   : > { %v3565_v7 = vadd.f32 %v3564_v30, %v3563_v21  ;;  %v7955_v4 = vpop.f32.mrb[141].mxu0 }
 0xbd7   : > { %v7956_v43 = vadd.f32 %v7955_v4, %v7954_v14  ;;  %v7957_v58 = vpop.f32.mrb[142].mxu0  ;;  %8674 = vmatprep.subr.msk.bf16.mxu1 %vm553_vm0, %v3828_v11  ;;  %v3850_v14 = vsel %vm553_vm0, %v3828_v11, 0  ;;  %v3821_v4 = vld [vmem:[%s15050_s2 + $0x3e8] sm:$0xff] }
 0xbd8   : > { %v7958_v35 = vpop.f32.mrb[143].mxu0  ;;  %v3586_v63 = vpack.c.bf16 %v3565_v7, %v3558_v39  ;;  %v3819_v39 = vld [vmem:[%s15050_s2 + $0x3d8] sm:$0xff]  ;;  %8443 = vmatpush3.bf16.xpose.msra.mxu1 %v3850_v14  ;;  %v3820_v7 = vld [vmem:[%s15050_s2 + $0x3e0] sm:$0xff] }
 0xbd9   : > { %v3522_v27 = vmul.f32 %v9531_v26, %v7956_v43  ;;  %v7959_v25 = vadd.f32 %v7958_v35, %v7957_v58  ;;  %v3829_v30 = vpack.c.bf16 %v3819_v39, %v3818_v33  ;;  %v3830_v58 = vpack.c.bf16 %v3821_v4, %v3820_v7 }
 0xbda   : > { %8438 = vmatprep.mubr.msk.bf16.mxu0 %vm553_vm0, %v3586_v63 }
 0xbdb   : > { %v3571_v50 = vsel %vm553_vm0, %v3522_v27, 0.0  ;;  %v3523_v21 = vmul.f32 %v9532_v29, %v7959_v25  ;;  %8675 = vmatprep.subr.msk.bf16.mxu1 %vm553_vm0, %v3829_v30  ;;  %v3853_v43 = vsel %vm553_vm0, %v3829_v30, 0  ;;  %v3856_v35 = vsel %vm553_vm0, %v3830_v58, 0 }
 0xbdc   : > { %v3572_v40 = vadd.f32 %v3571_v50, %v3570_v32 }
 0xbdd   : > { %v3578_v36 = vsel %vm553_vm0, %v3523_v21, 0.0 }
 0xbde   : > { %v3579_v0 = vadd.f32 %v3578_v36, %v3577_v56  ;;  %v15291_v56 = vld [vmem:[#allocation36_spill] sm:$0xff] }
 0xbe0   : > { %v3587_v51 = vpack.c.bf16 %v3579_v0, %v3572_v40  ;;  %8445 = vmatpush3.bf16.xpose.msra.mxu1 %v3853_v43 }
 0xbe1   : > { %8676 = vmatprep.subr.msk.bf16.mxu1 %vm553_vm0, %v3830_v58 }
 0xbe2   : > { %8439 = vmatmul.mubr.msk.bf16.gmra.mrb[148].mxu0 %vm553_vm0, %v3587_v51 }
 0xbe8   : > { %8447 = vmatpush3.bf16.xpose.msra.mxu1 %v3856_v35  ;;  %v7589_v35 = vld [vmem:[%s15052_s4 + $0x4] ss:$0 sm:$0xff] }
 0xca5   : > { %v8436_v1 = vpop.f32.mrb[144].mxu0 }
 0xca6   : > { %v3647_v48 = vpop.f32.mrb[145].mxu0  ;;  %v3656_v37 = vadd.f32 %v8436_v1, %v7584_v22 }
 0xca7   : > { %v3648_v31 = vadd.f32 %v7584_v22, %v3647_v48  ;;  %v8437_v10 = vpop.f32.mrb[146].mxu0 }
 0xca8   : > { %v3650_v46 = vpop.f32.mrb[147].mxu0  ;;  %v3659_v47 = vadd.f32 %v8437_v10, %v7584_v22  ;;  %v3680_v44 = vadd.f32 %v3656_v37, %v15290_v53 }
 0xca9   : > { %v3678_v8 = vadd.f32 %v3648_v31, %v15289_v15  ;;  %v3651_v32 = vadd.f32 %v7584_v22, %v3650_v46 }
 0xcaa   : > { %v3681_v45 = vadd.f32 %v3659_v47, %v15292_v62  ;;  %v3694_v2 = vsel %vm553_vm0, %v3680_v44, 0.0 }
 0xcab   : > { %v3679_v57 = vadd.f32 %v3651_v32, %v15291_v56  ;;  %v3688_v18 = vsel %vm553_vm0, %v3678_v8, 0.0 }
 0xcac   : > { %3689 = vadd.xlane.f32.xlu0 %v3688_v18  ;;  %v3697_v19 = vsel %vm553_vm0, %v3681_v45, 0.0 }
 0xcad   : > { %v3691_v20 = vsel %vm553_vm0, %v3679_v57, 0.0 }
 0xcae   : > { %3692 = vadd.xlane.f32.xlu1 %v3691_v20 }
 0xcb0   : > { %3695 = vadd.xlane.f32.xlu0 %v3694_v2 }
 0xcb2   : > { %3698 = vadd.xlane.f32.xlu1 %v3697_v19 }
 0xcb5   : > { %v8440_v16 = vpop.f32.mrb[148].mxu0 }
 0xcb6   : > { %v3663_v24 = vpop.f32.mrb[149].mxu0  ;;  %v3672_v60 = vadd.f32 %v8440_v16, %v7584_v22 }
 0xcb7   : > { %v3664_v55 = vadd.f32 %v7584_v22, %v3663_v24  ;;  %v8441_v41 = vpop.f32.mrb[150].mxu0 }
 0xcb8   : > { %v3666_v42 = vpop.f32.mrb[151].mxu0  ;;  %v3675_v61 = vadd.f32 %v8441_v41, %v7584_v22  ;;  %v12382_v38 = vadd.f32 %v3672_v60, %v15294_v28 }
 0xcb9   : > { %v3682_v34 = vadd.f32 %v3664_v55, %v15293_v12  ;;  %v3667_v54 = vadd.f32 %v7584_v22, %v3666_v42 }
 0xcba   : > { %v12387_v6 = vadd.f32 %v3675_v61, %v15296_v49  ;;  %v3706_v9 = vsel %vm553_vm0, %v12382_v38, 0.0  ;;  %v3822_v61 = vld [vmem:[%s15050_s2 + $0x3f0] sm:$0xff] }
 0xcbb   : > { %v3683_v23 = vadd.f32 %v3667_v54, %v15295_v13  ;;  %v3700_v17 = vsel %vm553_vm0, %v3682_v34, 0.0  ;;  %v3823_v54 = vld [vmem:[%s15050_s2 + $0x3f8] sm:$0xff]  ;;  %v3934_v13 = vld [vmem:[%s15050_s2 + $0x400] sm:$0xff] }
 0xcbc   : > { %3701 = vadd.xlane.f32.xlu0 %v3700_v17  ;;  %v3709_v52 = vsel %vm553_vm0, %v12387_v6, 0.0  ;;  %v3831_v28 = vpack.c.bf16 %v3823_v54, %v3822_v61  ;;  %v3936_v17 = vld [vmem:[%s15050_s2 + $0x410] sm:$0xff] }
 0xcbd   : > { %v3703_v59 = vsel %vm553_vm0, %v3683_v23, 0.0 }
 0xcbe   : > { %3704 = vadd.xlane.f32.xlu1 %v3703_v59  ;;  %8677 = vmatprep.subr.msk.bf16.mxu1 %vm553_vm0, %v3831_v28 }
 0xcc0   : > { %3707 = vadd.xlane.f32.xlu0 %v3706_v9 }
 0xcc2   : > { %3710 = vadd.xlane.f32.xlu1 %v3709_v52 }
 0xd39   : > { %v3690_v63 = vpop.xlane.xlu0 %3689 }
 0xd3a   : > { %v3712_v26 = vmul.f32 0.03125, %v3690_v63 }
 0xd3b   : > { %v3693_v27 = vpop.xlane.xlu1 %3692 }
 0xd3c   : > { %v12418_v25 = vsub.f32 %v3678_v8, %v3712_v26  ;;  %v3713_v50 = vmul.f32 0.03125, %v3693_v27 }
 0xd3d   : > { %v3696_v29 = vpop.xlane.xlu0 %3695 }
 0xd3e   : > { %v12420_v21 = vsub.f32 %v3679_v57, %v3713_v50  ;;  %v3714_v40 = vmul.f32 0.03125, %v3696_v29  ;;  %v3728_v36 = vmul.f32 %v12418_v25, %v12418_v25 }
 0xd3f   : > { %v3699_v0 = vpop.xlane.xlu1 %3698 }
 0xd40   : > { %v12424_v51 = vsub.f32 %v3680_v44, %v3714_v40  ;;  %v3715_v22 = vmul.f32 0.03125, %v3699_v0  ;;  %v3736_v1 = vsel %vm553_vm0, %v3728_v36, 0.0  ;;  %v3729_v48 = vmul.f32 %v12420_v21, %v12420_v21 }
 0xd41   : > { %3737 = vadd.xlane.f32.xlu0 %v3736_v1 }
 0xd42   : > { %v12429_v37 = vsub.f32 %v3681_v45, %v3715_v22  ;;  %v3739_v31 = vsel %vm553_vm0, %v3729_v48, 0.0  ;;  %v3730_v10 = vmul.f32 %v12424_v51, %v12424_v51  ;;  %v7590_v22 = vld [vmem:[%s15052_s4 + $0x5] ss:$0 sm:$0xff] }
 0xd43   : > { %3740 = vadd.xlane.f32.xlu1 %v3739_v31 }
 0xd44   : > { %v3742_v46 = vsel %vm553_vm0, %v3730_v10, 0.0  ;;  %v3731_v15 = vmul.f32 %v12429_v37, %v12429_v37 }
 0xd45   : > { %3743 = vadd.xlane.f32.xlu0 %v3742_v46 }
 0xd46   : > { %v3745_v8 = vsel %vm553_vm0, %v3731_v15, 0.0 }
 0xd47   : > { %3746 = vadd.xlane.f32.xlu1 %v3745_v8 }
 0xd49   : > { %v3702_v47 = vpop.xlane.xlu0 %3701 }
 0xd4a   : > { %v3716_v32 = vmul.f32 0.03125, %v3702_v47 }
 0xd4b   : > { %v3705_v53 = vpop.xlane.xlu1 %3704 }
 0xd4c   : > { %v12438_v44 = vsub.f32 %v3682_v34, %v3716_v32  ;;  %v3717_v56 = vmul.f32 0.03125, %v3705_v53 }
 0xd4d   : > { %v3708_v57 = vpop.xlane.xlu0 %3707 }
 0xd4e   : > { %v12440_v18 = vsub.f32 %v3683_v23, %v3717_v56  ;;  %v3718_v62 = vmul.f32 0.03125, %v3708_v57  ;;  %v3732_v45 = vmul.f32 %v12438_v44, %v12438_v44  ;;  %v3935_v23 = vld [vmem:[%s15050_s2 + $0x408] sm:$0xff] }
 0xd4f   : > { %v3711_v20 = vpop.xlane.xlu1 %3710  ;;  %v3946_v49 = vpack.c.bf16 %v3935_v23, %v3934_v13 }
 0xd50   : > { %v12445_v2 = vsub.f32 %v12382_v38, %v3718_v62  ;;  %v3719_v19 = vmul.f32 0.03125, %v3711_v20  ;;  %v3748_v16 = vsel %vm553_vm0, %v3732_v45, 0.0  ;;  %v3733_v24 = vmul.f32 %v12440_v18, %v12440_v18 }
 0xd51   : > { %3749 = vadd.xlane.f32.xlu0 %v3748_v16  ;;  %v3859_v38 = vsel %vm553_vm0, %v3831_v28, 0  ;;  %8458 = vmatprep.subr.bf16.mxu0 %v3946_v49 }
 0xd52   : > { %v12451_v60 = vsub.f32 %v12387_v6, %v3719_v19  ;;  %v3751_v55 = vsel %vm553_vm0, %v3733_v24, 0.0  ;;  %v3734_v41 = vmul.f32 %v12445_v2, %v12445_v2  ;;  %8449 = vmatpush3.bf16.xpose.msra.mxu1 %v3859_v38  ;;  %v3937_v6 = vld [vmem:[%s15050_s2 + $0x418] sm:$0xff]  ;;  %8459 = vmatpush3.bf16.msra.mxu0 %v3946_v49 }
 0xd53   : > { %3752 = vadd.xlane.f32.xlu1 %v3751_v55  ;;  %v3947_v59 = vpack.c.bf16 %v3937_v6, %v3936_v17 }
 0xd54   : > { %v3754_v42 = vsel %vm553_vm0, %v3734_v41, 0.0  ;;  %v3735_v12 = vmul.f32 %v12451_v60, %v12451_v60 }
 0xd55   : > { %3755 = vadd.xlane.f32.xlu0 %v3754_v42  ;;  %8460 = vmatprep.subr.bf16.mxu0 %v3947_v59 }
 0xd56   : > { %v3757_v34 = vsel %vm553_vm0, %v3735_v12, 0.0  ;;  %8461 = vmatpush3.bf16.msra.mxu0 %v3947_v59  ;;  %v3939_v59 = vld [vmem:[%s15050_s2 + $0x428] sm:$0xff] }
 0xd57   : > { %3758 = vadd.xlane.f32.xlu1 %v3757_v34 }
 0xdce   : > { %v3738_v9 = vpop.xlane.xlu0 %3737 }
 0xdcf   : > { %v3760_v52 = vmul.f32 0.03125, %v3738_v9 }
 0xdd0   : > { %v3741_v5 = vpop.xlane.xlu1 %3740 }
 0xdd1   : > { %v3768_v3 = vadd.f32 1e-05, %v3760_v52  ;;  %v3761_v33 = vmul.f32 0.03125, %v3741_v5  ;;  %v3940_v52 = vld [vmem:[%s15050_s2 + $0x430] sm:$0xff]  ;;  %v3941_v5 = vld [vmem:[%s15050_s2 + $0x438] sm:$0xff] }
 0xdd2   : > { %v3744_v11 = vpop.xlane.xlu0 %3743 }
 0xdd3   : > { %9053 = vrsqrt.f32 %v3768_v3  ;;  %v3769_v39 = vadd.f32 1e-05, %v3761_v33  ;;  %v3762_v30 = vmul.f32 0.03125, %v3744_v11  ;;  %v3949_v3 = vpack.c.bf16 %v3941_v5, %v3940_v52  ;;  %v7591_v33 = vld [vmem:[%s15052_s4 + $0x6] ss:$0 sm:$0xff] }
 0xdd4   : > { %v3747_v14 = vpop.xlane.xlu1 %3746 }
 0xdd5   : > { %9055 = vrsqrt.f32 %v3769_v39  ;;  %v3770_v7 = vadd.f32 1e-05, %v3762_v30  ;;  %v3763_v4 = vmul.f32 0.03125, %v3747_v14 }
 0xdd7   : > { %9057 = vrsqrt.f32 %v3770_v7  ;;  %v3771_v43 = vadd.f32 1e-05, %v3763_v4 }
 0xdd9   : > { %9059 = vrsqrt.f32 %v3771_v43 }
 0xddd   : > { %v9054_v58 = vpop.eup %9053 }
 0xdde   : > { %v3750_v63 = vpop.xlane.xlu0 %3749  ;;  %v3784_v26 = vmul.f32 %v9054_v58, %v12418_v25 }
 0xddf   : > { %v9056_v27 = vpop.eup %9055  ;;  %v3764_v50 = vmul.f32 0.03125, %v3750_v63 }
 0xde0   : > { %v3753_v29 = vpop.xlane.xlu1 %3752  ;;  %v3785_v40 = vmul.f32 %v9056_v27, %v12420_v21  ;;  %v3796_v36 = vmul.f32 %v7589_v35, %v3784_v26 }
 0xde1   : > { %v9058_v0 = vpop.eup %9057  ;;  %v3772_v1 = vadd.f32 1e-05, %v3764_v50  ;;  %v3765_v48 = vmul.f32 0.03125, %v3753_v29 }
 0xde2   : > { %v3786_v31 = vmul.f32 %v9058_v0, %v12424_v51  ;;  %v3756_v10 = vpop.xlane.xlu0 %3755  ;;  %v3797_v46 = vmul.f32 %v7589_v35, %v3785_v40  ;;  %v12490_v53 = vadd.f32 %v7590_v22, %v3796_v36 }
 0xde3   : > { %v9060_v15 = vpop.eup %9059  ;;  %9061 = vrsqrt.f32 %v3772_v1  ;;  %v3773_v25 = vadd.f32 1e-05, %v3765_v48  ;;  %v3766_v8 = vmul.f32 0.03125, %v3756_v10 }
 0xde4   : > { %v3798_v47 = vmul.f32 %v7589_v35, %v3786_v31  ;;  %v3787_v32 = vmul.f32 %v9060_v15, %v12429_v37  ;;  %v3759_v21 = vpop.xlane.xlu1 %3758  ;;  %v12492_v56 = vadd.f32 %v7590_v22, %v3797_v46 }
 0xde5   : > { %9063 = vrsqrt.f32 %v3773_v25  ;;  %v3774_v57 = vadd.f32 1e-05, %v3766_v8  ;;  %v3767_v62 = vmul.f32 0.03125, %v3759_v21  ;;  %v7596_v21 = vld [vmem:[%s15052_s4 + $0x7] ss:$0 sm:$0xff] }
 0xde6   : > { %v3799_v45 = vmul.f32 %v7589_v35, %v3787_v32  ;;  %v3824_v51 = vpack.c.bf16 %v12492_v56, %v12490_v53  ;;  %v12496_v19 = vadd.f32 %v7590_v22, %v3798_v47 }
 0xde7   : > { %9065 = vrsqrt.f32 %v3774_v57  ;;  %v3775_v20 = vadd.f32 1e-05, %v3767_v62 }
 0xde8   : > { %v12498_v16 = vadd.f32 %v7590_v22, %v3799_v45  ;;  %8450 = vmatprep.mubr.msk.bf16.mxu1 %vm553_vm0, %v3824_v51 }
 0xde9   : > { %9067 = vrsqrt.f32 %v3775_v20 }
 0xdea   : > { %v3825_v37 = vpack.c.bf16 %v12498_v16, %v12496_v19 }
 0xdec   : > { %8451 = vmatmul.mubr.msk.bf16.vlgmr.msra.gmra.mrb[136].mxu1 %vm553_vm0, %v3825_v37 }
 0xded   : > { %v9062_v24 = vpop.eup %9061 }
 0xdee   : > { %v3788_v55 = vmul.f32 %v9062_v24, %v12438_v44 }
 0xdef   : > { %v9064_v41 = vpop.eup %9063 }
 0xdf0   : > { %v3789_v42 = vmul.f32 %v9064_v41, %v12440_v18  ;;  %v3800_v12 = vmul.f32 %v7589_v35, %v3788_v55 }
 0xdf1   : > { %v9066_v34 = vpop.eup %9065 }
 0xdf2   : > { %v3801_v61 = vmul.f32 %v7589_v35, %v3789_v42  ;;  %v3790_v54 = vmul.f32 %v9066_v34, %v12445_v2  ;;  %v12507_v38 = vadd.f32 %v7590_v22, %v3800_v12 }
 0xdf3   : > { %v9068_v28 = vpop.eup %9067 }
 0xdf4   : > { %v12509_v13 = vadd.f32 %v7590_v22, %v3801_v61  ;;  %v3791_v23 = vmul.f32 %v9068_v28, %v12451_v60  ;;  %v3802_v17 = vmul.f32 %v7589_v35, %v3790_v54  ;;  %v3938_v60 = vld [vmem:[%s15050_s2 + $0x420] sm:$0xff] }
 0xdf5   : > { %v3948_v9 = vpack.c.bf16 %v3939_v59, %v3938_v60 }
 0xdf6   : > { %v3826_v49 = vpack.c.bf16 %v12509_v13, %v12507_v38  ;;  %v3803_v44 = vmul.f32 %v7589_v35, %v3791_v23  ;;  %v12515_v18 = vadd.f32 %v7590_v22, %v3802_v17 }
 0xdf7   : > { %8462 = vmatprep.subr.bf16.mxu0 %v3948_v9 }
 0xdf8   : > { %8454 = vmatprep.mubr.msk.bf16.mxu1 %vm553_vm0, %v3826_v49  ;;  %v12517_v6 = vadd.f32 %v7590_v22, %v3803_v44  ;;  %8463 = vmatpush3.bf16.msra.mxu0 %v3948_v9 }
 0xdf9   : > { %8464 = vmatprep.subr.bf16.mxu0 %v3949_v3 }
 0xdfa   : > { %v3827_v2 = vpack.c.bf16 %v12517_v6, %v12515_v18 }
 0xdfc   : > { %8455 = vmatmul.mubr.msk.bf16.gmra.mrb[140].mxu1 %vm553_vm0, %v3827_v2  ;;  %8465 = vmatpush3.bf16.msra.mxu0 %v3949_v3 }
 0xebf   : > { %v8452_v11 = vpop.f32.mrb[136].mxu1 }
 0xec0   : > { %v3904_v39 = vadd.f32 %v8452_v11, %v7591_v33  ;;  %v3895_v30 = vpop.f32.mrb[137].mxu1 }
 0xec1   : > { %v3896_v14 = vadd.f32 %v7591_v33, %v3895_v30  ;;  %v8453_v7 = vpop.f32.mrb[138].mxu1 }
 0xec2   : > { %v3907_v4 = vadd.f32 %v8453_v7, %v7591_v33  ;;  %v3898_v43 = vpop.f32.mrb[139].mxu1  ;;  %v3928_v35 = vmax.f32 %v3904_v39, 0.0  ;;  %v4181_v39 = vld [vmem:[%s15050_s2 + $0x458] sm:$0xff]  ;;  %v4182_v7 = vld [vmem:[%s15050_s2 + $0x460] sm:$0xff] }
 0xec3   : > { %v3899_v58 = vadd.f32 %v7591_v33, %v3898_v43  ;;  %v3926_v26 = vmax.f32 %v3896_v14, 0.0 }
 0xec4   : > { %v3929_v63 = vmax.f32 %v3907_v4, 0.0  ;;  %v4183_v4 = vld [vmem:[%s15050_s2 + $0x468] sm:$0xff] }
 0xec5   : > { %v3927_v27 = vmax.f32 %v3899_v58, 0.0  ;;  %v4196_v58 = vpack.c.bf16 %v4183_v4, %v4182_v7 }
 0xec6   : > { %v3943_v50 = vpack.c.bf16 %v3929_v63, %v3928_v35 }
 0xec7   : > { %v3942_v29 = vpack.c.bf16 %v3927_v27, %v3926_v26 }
 0xec9   : > { %8466 = vmatprep.mubr.msk.bf16.mxu0 %vm1434_vm2, %v3942_v29 }
 0xeca   : > { %8467 = vmatmul.mubr.msk.bf16.vlgmr.msra.gmra.mrb[152].mxu0 %vm1434_vm2, %v3943_v50 }
 0xecf   : > { %v8456_v40 = vpop.f32.mrb[140].mxu1 }
 0xed0   : > { %v3920_v36 = vadd.f32 %v8456_v40, %v7591_v33  ;;  %v3911_v0 = vpop.f32.mrb[141].mxu1 }
 0xed1   : > { %v3912_v22 = vadd.f32 %v7591_v33, %v3911_v0  ;;  %v8457_v1 = vpop.f32.mrb[142].mxu1 }
 0xed2   : > { %v3923_v48 = vadd.f32 %v8457_v1, %v7591_v33  ;;  %v3914_v31 = vpop.f32.mrb[143].mxu1  ;;  %v3932_v46 = vmax.f32 %v3920_v36, 0.0 }
 0xed3   : > { %v3915_v10 = vadd.f32 %v7591_v33, %v3914_v31  ;;  %v3930_v25 = vmax.f32 %v3912_v22, 0.0 }
 0xed4   : > { %v3933_v15 = vmax.f32 %v3923_v48, 0.0 }
 0xed5   : > { %v3931_v8 = vmax.f32 %v3915_v10, 0.0 }
 0xed6   : > { %v3945_v47 = vpack.c.bf16 %v3933_v15, %v3932_v46 }
 0xed7   : > { %v3944_v32 = vpack.c.bf16 %v3931_v8, %v3930_v25 }
 0xed9   : > { %8470 = vmatprep.mubr.msk.bf16.mxu0 %vm1434_vm2, %v3944_v32 }
 0xeda   : > { %8471 = vmatmul.mubr.msk.bf16.gmra.mrb[156].mxu0 %vm1434_vm2, %v3945_v47 }
 0xf9d   : > { %v8468_v57 = vpop.f32.mrb[152].mxu0 }
 0xf9e   : > { %v4001_v62 = vpop.f32.mrb[153].mxu0  ;;  %v4010_v45 = vadd.f32 %v8468_v57, %v7596_v21 }
 0xf9f   : > { %v4002_v51 = vadd.f32 %v7596_v21, %v4001_v62  ;;  %v8469_v20 = vpop.f32.mrb[154].mxu0 }
 0xfa0   : > { %v4004_v37 = vpop.f32.mrb[155].mxu0  ;;  %v4013_v55 = vadd.f32 %v8469_v20, %v7596_v21  ;;  %v4034_v42 = vadd.f32 %v4010_v45, %v12496_v19 }
 0xfa1   : > { %v4032_v24 = vadd.f32 %v4002_v51, %v12490_v53  ;;  %v4005_v41 = vadd.f32 %v7596_v21, %v4004_v37 }
 0xfa2   : > { %v4035_v61 = vadd.f32 %v4013_v55, %v12498_v16  ;;  %v4048_v28 = vsel %vm553_vm0, %v4034_v42, 0.0 }
 0xfa3   : > { %v4033_v12 = vadd.f32 %v4005_v41, %v12492_v56  ;;  %v4042_v34 = vsel %vm553_vm0, %v4032_v24, 0.0 }
 0xfa4   : > { %4043 = vadd.xlane.f32.xlu0 %v4042_v34  ;;  %v4051_v23 = vsel %vm553_vm0, %v4035_v61, 0.0 }
 0xfa5   : > { %v4045_v54 = vsel %vm553_vm0, %v4033_v12, 0.0 }
 0xfa6   : > { %4046 = vadd.xlane.f32.xlu1 %v4045_v54 }
 0xfa8   : > { %4049 = vadd.xlane.f32.xlu0 %v4048_v28 }
 0xfaa   : > { %4052 = vadd.xlane.f32.xlu1 %v4051_v23 }
 0xfad   : > { %v8472_v53 = vpop.f32.mrb[156].mxu0 }
 0xfae   : > { %v4017_v17 = vpop.f32.mrb[157].mxu0  ;;  %v4026_v49 = vadd.f32 %v8472_v53, %v7596_v21  ;;  %v4228_v53 = vsel %vm553_vm0, %v4196_v58, 0 }
 0xfaf   : > { %v4018_v19 = vadd.f32 %v7596_v21, %v4017_v17  ;;  %v8473_v44 = vpop.f32.mrb[158].mxu0 }
 0xfb0   : > { %v4020_v56 = vpop.f32.mrb[159].mxu0  ;;  %v4029_v60 = vadd.f32 %v8473_v44, %v7596_v21  ;;  %v4038_v16 = vadd.f32 %v4026_v49, %v12515_v18  ;;  %v4180_v18 = vld [vmem:[%s15050_s2 + $0x450] sm:$0xff] }
 0xfb1   : > { %v4036_v2 = vadd.f32 %v4018_v19, %v12507_v38  ;;  %v4021_v59 = vadd.f32 %v7596_v21, %v4020_v56  ;;  %v4178_v38 = vld [vmem:[%s15050_s2 + $0x440] sm:$0xff]  ;;  %v4195_v30 = vpack.c.bf16 %v4181_v39, %v4180_v18  ;;  %v4184_v44 = vld [vmem:[%s15050_s2 + $0x470] sm:$0xff]  ;;  %v4185_v56 = vld [vmem:[%s15050_s2 + $0x478] sm:$0xff] }
 0xfb2   : > { %v4039_v5 = vadd.f32 %v4029_v60, %v12517_v6  ;;  %v4060_v33 = vsel %vm553_vm0, %v4038_v16, 0.0 }
 0xfb3   : > { %v4037_v9 = vadd.f32 %v4021_v59, %v12509_v13  ;;  %v4054_v52 = vsel %vm553_vm0, %v4036_v2, 0.0  ;;  %v4179_v13 = vld [vmem:[%s15050_s2 + $0x448] sm:$0xff]  ;;  %v4225_v43 = vsel %vm553_vm0, %v4195_v30, 0  ;;  %v4186_v59 = vld [vmem:[%s15050_s2 + $0x480] sm:$0xff] }
 0xfb4   : > { %4055 = vadd.xlane.f32.xlu0 %v4054_v52  ;;  %v4063_v11 = vsel %vm553_vm0, %v4039_v5, 0.0  ;;  %v4194_v6 = vpack.c.bf16 %v4179_v13, %v4178_v38 }
 0xfb5   : > { %v4057_v3 = vsel %vm553_vm0, %v4037_v9, 0.0 }
 0xfb6   : > { %4058 = vadd.xlane.f32.xlu1 %v4057_v3  ;;  %8678 = vmatprep.subr.msk.bf16.mxu0 %vm553_vm0, %v4194_v6  ;;  %v4222_v14 = vsel %vm553_vm0, %v4194_v6, 0  ;;  %v4189_v3 = vld [vmem:[%s15050_s2 + $0x498] sm:$0xff] }
 0xfb7   : > { %8475 = vmatpush3.bf16.xpose.msra.mxu0 %v4222_v14 }
 0xfb8   : > { %4061 = vadd.xlane.f32.xlu0 %v4060_v33  ;;  %8679 = vmatprep.subr.msk.bf16.mxu0 %vm553_vm0, %v4195_v30 }
 0xfba   : > { %4064 = vadd.xlane.f32.xlu1 %v4063_v11 }
 0xfbf   : > { %8477 = vmatpush3.bf16.xpose.msra.mxu0 %v4225_v43 }
 0xfc0   : > { %8680 = vmatprep.subr.msk.bf16.mxu0 %vm553_vm0, %v4196_v58 }
 0xfc7   : > { %8479 = vmatpush3.bf16.xpose.msra.mxu0 %v4228_v53 }
0x1031   : > { %v4044_v35 = vpop.xlane.xlu0 %4043 }
0x1032   : > { %v4066_v63 = vmul.f32 0.03125, %v4044_v35 }
0x1033   : > { %v4047_v26 = vpop.xlane.xlu1 %4046 }
0x1034   : > { %v12583_v27 = vsub.f32 %v4032_v24, %v4066_v63  ;;  %v4067_v50 = vmul.f32 0.03125, %v4047_v26  ;;  %v7601_v26 = vld [vmem:[%s15052_s4 + $0x8] ss:$0 sm:$0xff] }
0x1035   : > { %v4050_v29 = vpop.xlane.xlu0 %4049 }
0x1036   : > { %v12585_v40 = vsub.f32 %v4033_v12, %v4067_v50  ;;  %v4068_v36 = vmul.f32 0.03125, %v4050_v29  ;;  %v4082_v0 = vmul.f32 %v12583_v27, %v12583_v27 }
0x1037   : > { %v4053_v22 = vpop.xlane.xlu1 %4052 }
0x1038   : > { %v12589_v1 = vsub.f32 %v4034_v42, %v4068_v36  ;;  %v4069_v48 = vmul.f32 0.03125, %v4053_v22  ;;  %v4090_v31 = vsel %vm553_vm0, %v4082_v0, 0.0  ;;  %v4083_v10 = vmul.f32 %v12585_v40, %v12585_v40  ;;  %v7602_v0 = vld [vmem:[%s15052_s4 + $0x9] ss:$0 sm:$0xff] }
0x1039   : > { %4091 = vadd.xlane.f32.xlu0 %v4090_v31 }
0x103a   : > { %v12594_v46 = vsub.f32 %v4035_v61, %v4069_v48  ;;  %v4093_v15 = vsel %vm553_vm0, %v4083_v10, 0.0  ;;  %v4084_v25 = vmul.f32 %v12589_v1, %v12589_v1 }
0x103b   : > { %4094 = vadd.xlane.f32.xlu1 %v4093_v15 }
0x103c   : > { %v4096_v8 = vsel %vm553_vm0, %v4084_v25, 0.0  ;;  %v4085_v47 = vmul.f32 %v12594_v46, %v12594_v46 }
0x103d   : > { %4097 = vadd.xlane.f32.xlu0 %v4096_v8 }
0x103e   : > { %v4099_v32 = vsel %vm553_vm0, %v4085_v47, 0.0 }
0x103f   : > { %4100 = vadd.xlane.f32.xlu1 %v4099_v32 }
0x1041   : > { %v4056_v21 = vpop.xlane.xlu0 %4055 }
0x1042   : > { %v4070_v57 = vmul.f32 0.03125, %v4056_v21 }
0x1043   : > { %v4059_v62 = vpop.xlane.xlu1 %4058 }
0x1044   : > { %v12603_v45 = vsub.f32 %v4036_v2, %v4070_v57  ;;  %v4071_v51 = vmul.f32 0.03125, %v4059_v62  ;;  %v4197_v2 = vpack.c.bf16 %v4185_v56, %v4184_v44  ;;  %v9536_v56 = vld [vmem:[%s15050_s2 + $0x58] sm:$0xff] }
0x1045   : > { %v4062_v20 = vpop.xlane.xlu0 %4061 }
0x1046   : > { %v12605_v37 = vsub.f32 %v4037_v9, %v4071_v51  ;;  %v4072_v24 = vmul.f32 0.03125, %v4062_v20  ;;  %v4086_v55 = vmul.f32 %v12603_v45, %v12603_v45  ;;  %8681 = vmatprep.subr.msk.bf16.mxu0 %vm553_vm0, %v4197_v2  ;;  %v4231_v60 = vsel %vm553_vm0, %v4197_v2, 0 }
0x1047   : > { %v4065_v41 = vpop.xlane.xlu1 %4064  ;;  %8481 = vmatpush3.bf16.xpose.msra.mxu0 %v4231_v60 }
0x1048   : > { %v12609_v42 = vsub.f32 %v4038_v16, %v4072_v24  ;;  %v4073_v12 = vmul.f32 0.03125, %v4065_v41  ;;  %v4102_v34 = vsel %vm553_vm0, %v4086_v55, 0.0  ;;  %v4087_v61 = vmul.f32 %v12605_v37, %v12605_v37  ;;  %v4187_v16 = vld [vmem:[%s15050_s2 + $0x488] sm:$0xff] }
0x1049   : > { %4103 = vadd.xlane.f32.xlu0 %v4102_v34  ;;  %v4198_v9 = vpack.c.bf16 %v4187_v16, %v4186_v59 }
0x104a   : > { %v12614_v54 = vsub.f32 %v4039_v5, %v4073_v12  ;;  %v4105_v28 = vsel %vm553_vm0, %v4087_v61, 0.0  ;;  %v4088_v23 = vmul.f32 %v12609_v42, %v12609_v42  ;;  %v4188_v5 = vld [vmem:[%s15050_s2 + $0x490] sm:$0xff]  ;;  %v9533_v61 = vld [vmem:[%s15050_s2 + $0x40] sm:$0xff] }
0x104b   : > { %4106 = vadd.xlane.f32.xlu1 %v4105_v28  ;;  %8682 = vmatprep.subr.msk.bf16.mxu0 %vm553_vm0, %v4198_v9  ;;  %v4234_v52 = vsel %vm553_vm0, %v4198_v9, 0  ;;  %v4199_v33 = vpack.c.bf16 %v4189_v3, %v4188_v5 }
0x104c   : > { %v4108_v17 = vsel %vm553_vm0, %v4088_v23, 0.0  ;;  %v4089_v49 = vmul.f32 %v12614_v54, %v12614_v54  ;;  %v9534_v23 = vld [vmem:[%s15050_s2 + $0x48] sm:$0xff] }
0x104d   : > { %4109 = vadd.xlane.f32.xlu0 %v4108_v17  ;;  %v4237_v11 = vsel %vm553_vm0, %v4199_v33, 0 }
0x104e   : > { %v4111_v19 = vsel %vm553_vm0, %v4089_v49, 0.0 }
0x104f   : > { %4112 = vadd.xlane.f32.xlu1 %v4111_v19  ;;  %8483 = vmatpush3.bf16.xpose.msra.mxu0 %v4234_v52  ;;  %v9535_v19 = vld [vmem:[%s15050_s2 + $0x50] sm:$0xff] }
0x1050   : > { %8683 = vmatprep.subr.msk.bf16.mxu0 %vm553_vm0, %v4199_v33 }
0x1057   : > { %8485 = vmatpush3.bf16.xpose.msra.mxu0 %v4237_v11 }
0x10c6   : > { %v4092_v38 = vpop.xlane.xlu0 %4091 }
0x10c7   : > { %v4114_v13 = vmul.f32 0.03125, %v4092_v38 }
0x10c8   : > { %v4095_v18 = vpop.xlane.xlu1 %4094 }
0x10c9   : > { %v4122_v6 = vadd.f32 1e-05, %v4114_v13  ;;  %v4115_v39 = vmul.f32 0.03125, %v4095_v18 }
0x10ca   : > { %v4098_v30 = vpop.xlane.xlu0 %4097 }
0x10cb   : > { %9069 = vrsqrt.f32 %v4122_v6  ;;  %v4123_v14 = vadd.f32 1e-05, %v4115_v39  ;;  %v4116_v7 = vmul.f32 0.03125, %v4098_v30 }
0x10cc   : > { %v4101_v4 = vpop.xlane.xlu1 %4100 }
0x10cd   : > { %9071 = vrsqrt.f32 %v4123_v14  ;;  %v4124_v43 = vadd.f32 1e-05, %v4116_v7  ;;  %v4117_v58 = vmul.f32 0.03125, %v4101_v4 }
0x10cf   : > { %9073 = vrsqrt.f32 %v4124_v43  ;;  %v4125_v35 = vadd.f32 1e-05, %v4117_v58  ;;  %v9539_v43 = vld [vmem:[%s15050_s2 + $0x70] sm:$0xff] }
0x10d1   : > { %9075 = vrsqrt.f32 %v4125_v35  ;;  %v9540_v35 = vld [vmem:[%s15050_s2 + $0x78] sm:$0xff] }
0x10d5   : > { %v9070_v63 = vpop.eup %9069 }
0x10d6   : > { %v4138_v50 = vmul.f32 %v9070_v63, %v12583_v27  ;;  %v4104_v29 = vpop.xlane.xlu0 %4103 }
0x10d7   : > { %v9072_v36 = vpop.eup %9071  ;;  %v4118_v22 = vmul.f32 0.03125, %v4104_v29  ;;  %v7603_v29 = vld [vmem:[%s15051_s3 + $0x40] sm:$0xff] }
0x10d8   : > { %v4139_v48 = vmul.f32 %v9072_v36, %v12585_v40  ;;  %v4107_v31 = vpop.xlane.xlu1 %4106  ;;  %v4150_v10 = vmul.f32 %v7601_v26, %v4138_v50  ;;  %v7605_v50 = vld [vmem:[%s15051_s3 + $0x50] sm:$0xff] }
0x10d9   : > { %v9074_v15 = vpop.eup %9073  ;;  %v4126_v25 = vadd.f32 1e-05, %v4118_v22  ;;  %v4119_v8 = vmul.f32 0.03125, %v4107_v31  ;;  %v7604_v31 = vld [vmem:[%s15051_s3 + $0x48] sm:$0xff] }
0x10da   : > { %v4140_v47 = vmul.f32 %v9074_v15, %v12589_v1  ;;  %v4110_v32 = vpop.xlane.xlu0 %4109  ;;  %v4151_v21 = vmul.f32 %v7601_v26, %v4139_v48  ;;  %v12657_v57 = vadd.f32 %v7602_v0, %v4150_v10 }
0x10db   : > { %v9076_v27 = vpop.eup %9075  ;;  %9077 = vrsqrt.f32 %v4126_v25  ;;  %v4127_v62 = vadd.f32 1e-05, %v4119_v8  ;;  %v4120_v51 = vmul.f32 0.03125, %v4110_v32  ;;  %v9541_v25 = vld [vmem:[%s15050_s2 + $0x90] sm:$0xff] }
0x10dc   : > { %v4152_v20 = vmul.f32 %v7601_v26, %v4140_v47  ;;  %v4141_v24 = vmul.f32 %v9076_v27, %v12594_v46  ;;  %v4113_v55 = vpop.xlane.xlu1 %4112  ;;  %v12660_v40 = vadd.f32 %v7602_v0, %v4151_v21  ;;  %v4170_v28 = vadd.f32 %v9533_v61, %v12657_v57  ;;  %v9542_v21 = vld [vmem:[%s15050_s2 + $0xd0] sm:$0xff] }
0x10dd   : > { %9079 = vrsqrt.f32 %v4127_v62  ;;  %v4128_v41 = vadd.f32 1e-05, %v4120_v51  ;;  %v4121_v12 = vmul.f32 0.03125, %v4113_v55  ;;  %v9543_v62 = vld [vmem:[%s15050_s2 + $0x110] sm:$0xff] }
0x10de   : > { %v12662_v34 = vadd.f32 %v7602_v0, %v4152_v20  ;;  %v4153_v1 = vmul.f32 %v7601_v26, %v4141_v24  ;;  %v4171_v46 = vadd.f32 %v9534_v23, %v12660_v40  ;;  %v9544_v24 = vld [vmem:[%s15050_s2 + $0x80] sm:$0xff] }
0x10df   : > { %9081 = vrsqrt.f32 %v4128_v41  ;;  %v4129_v53 = vadd.f32 1e-05, %v4121_v12  ;;  %v9545_v41 = vld [vmem:[%s15050_s2 + $0xc0] sm:$0xff] }
0x10e0   : > { %v12672_v17 = vadd.f32 %v7602_v0, %v4153_v1  ;;  %v4190_v49 = vpack.c.bf16 %v4171_v46, %v4170_v28  ;;  %v4172_v44 = vadd.f32 %v9535_v19, %v12662_v34  ;;  %v9546_v1 = vld [vmem:[%s15050_s2 + $0x100] sm:$0xff]  ;;  %v9547_v28 = vld [vmem:[%s15050_s2 + $0x98] sm:$0xff] }
0x10e1   : > { %9083 = vrsqrt.f32 %v4129_v53  ;;  %v9548_v53 = vld [vmem:[%s15050_s2 + $0xd8] sm:$0xff] }
0x10e2   : > { %8486 = vmatprep.mubr.msk.bf16.mxu0 %vm553_vm0, %v4190_v49  ;;  %v4173_v2 = vadd.f32 %v9536_v56, %v12672_v17  ;;  %v9549_v19 = vld [vmem:[%s15050_s2 + $0x118] sm:$0xff] }
0x10e4   : > { %v4191_v60 = vpack.c.bf16 %v4173_v2, %v4172_v44  ;;  %v9550_v2 = vld [vmem:[%s15050_s2 + $0x88] sm:$0xff] }
0x10e5   : > { %v9078_v59 = vpop.eup %9077 }
0x10e6   : > { %v4142_v16 = vmul.f32 %v9078_v59, %v12603_v45  ;;  %8487 = vmatmul.mubr.msk.bf16.vlgmr.msra.gmra.mrb[160].mxu0 %vm553_vm0, %v4191_v60  ;;  %v9537_v45 = vld [vmem:[%s15050_s2 + $0x60] sm:$0xff]  ;;  %v9551_v59 = vld [vmem:[%s15050_s2 + $0xc8] sm:$0xff] }
0x10e7   : > { %v9080_v9 = vpop.eup %9079 }
0x10e8   : > { %v4143_v52 = vmul.f32 %v9080_v9, %v12605_v37  ;;  %v4154_v5 = vmul.f32 %v7601_v26, %v4142_v16  ;;  %v9538_v37 = vld [vmem:[%s15050_s2 + $0x68] sm:$0xff] }
0x10e9   : > { %v9082_v3 = vpop.eup %9081  ;;  %v9552_v9 = vld [vmem:[%s15050_s2 + $0x108] sm:$0xff] }
0x10ea   : > { %v4144_v33 = vmul.f32 %v9082_v3, %v12609_v42  ;;  %v4155_v11 = vmul.f32 %v7601_v26, %v4143_v52  ;;  %v12687_v38 = vadd.f32 %v7602_v0, %v4154_v5 }
0x10eb   : > { %v9084_v13 = vpop.eup %9083 }
0x10ec   : > { %v4145_v18 = vmul.f32 %v9084_v13, %v12614_v54  ;;  %v12690_v6 = vadd.f32 %v7602_v0, %v4155_v11  ;;  %v4156_v39 = vmul.f32 %v7601_v26, %v4144_v33  ;;  %v4174_v30 = vadd.f32 %v9537_v45, %v12687_v38  ;;  %v9553_v11 = vld [vmem:[%s15050_s2 + $0x140] sm:$0xff] }
0x10ee   : > { %v4175_v42 = vadd.f32 %v9538_v37, %v12690_v6  ;;  %v4157_v14 = vmul.f32 %v7601_v26, %v4145_v18  ;;  %v12700_v7 = vadd.f32 %v7602_v0, %v4156_v39 }
0x10f0   : > { %v4192_v4 = vpack.c.bf16 %v4175_v42, %v4174_v30  ;;  %v12702_v54 = vadd.f32 %v7602_v0, %v4157_v14  ;;  %v4176_v58 = vadd.f32 %v9539_v43, %v12700_v7  ;;  %v7606_v0 = vld [vmem:[%s15051_s3 + $0x58] sm:$0xff]  ;;  %v9554_v30 = vld [vmem:[%s15050_s2 + $0x148] sm:$0xff]  ;;  %v9555_v42 = vld [vmem:[%s15050_s2 + $0x150] sm:$0xff] }
0x10f2   : > { %8490 = vmatprep.mubr.msk.bf16.mxu0 %vm553_vm0, %v4192_v4  ;;  %v4177_v63 = vadd.f32 %v9540_v35, %v12702_v54  ;;  %v9556_v4 = vld [vmem:[%s15050_s2 + $0x158] sm:$0xff] }
0x10f4   : > { %v4193_v26 = vpack.c.bf16 %v4177_v63, %v4176_v58  ;;  %v7609_v63 = vld [vmem:[%s15051_s3 + $0x70] sm:$0xff] }
0x10f6   : > { %8491 = vmatmul.mubr.msk.bf16.gmra.mrb[164].mxu0 %vm553_vm0, %v4193_v26  ;;  %v7607_v26 = vld [vmem:[%s15051_s3 + $0x60] sm:$0xff] }
0x11b9   : > { %v8488_v36 = vpop.f32.mrb[160].mxu0 }
0x11ba   : > { %v4282_v22 = vadd.f32 %v8488_v36, %v7605_v50  ;;  %v4273_v48 = vpop.f32.mrb[161].mxu0 }
0x11bb   : > { %v4274_v10 = vadd.f32 %v7603_v29, %v4273_v48  ;;  %v8489_v15 = vpop.f32.mrb[162].mxu0  ;;  %v7610_v29 = vld [vmem:[%s15051_s3 + $0x78] sm:$0xff] }
0x11bc   : > { %v12729_v8 = vmul.f32 %v9541_v25, %v4282_v22  ;;  %v4285_v47 = vadd.f32 %v8489_v15, %v7606_v0  ;;  %v4276_v32 = vpop.f32.mrb[163].mxu0  ;;  %v12734_v27 = vmul.f32 %v9542_v21, %v4282_v22  ;;  %v12739_v51 = vmul.f32 %v9543_v62, %v4282_v22  ;;  %v9557_v25 = vld [vmem:[%s15050_s2 + $0xb0] sm:$0xff] }
0x11bd   : > { %v4277_v20 = vadd.f32 %v7604_v31, %v4276_v32  ;;  %v4304_v55 = vmul.f32 %v9544_v24, %v4274_v10  ;;  %v12747_v12 = vmul.f32 %v9545_v41, %v4274_v10  ;;  %v12752_v61 = vmul.f32 %v9546_v1, %v4274_v10  ;;  %v9558_v32 = vld [vmem:[%s15050_s2 + $0xf0] sm:$0xff]  ;;  %v9561_v1 = vld [vmem:[%s15050_s2 + $0xe0] sm:$0xff] }
0x11be   : > { %v12757_v23 = vmul.f32 %v9547_v28, %v4285_v47  ;;  %v12759_v46 = vpack.c.bf16 %v4285_v47, %v4282_v22  ;;  %v12764_v49 = vmul.f32 %v9548_v53, %v4285_v47  ;;  %v12769_v44 = vmul.f32 %v9549_v19, %v4285_v47  ;;  %v9559_v62 = vld [vmem:[%s15050_s2 + $0x130] sm:$0xff]  ;;  %v9562_v53 = vld [vmem:[%s15050_s2 + $0x120] sm:$0xff] }
0x11bf   : > { %v12771_v56 = vpack.c.bf16 %v4277_v20, %v4274_v10  ;;  %v4305_v60 = vmul.f32 %v9550_v2, %v4277_v20  ;;  %v12779_v16 = vmul.f32 %v9551_v59, %v4277_v20  ;;  %v12784_v52 = vmul.f32 %v9552_v9, %v4277_v20  ;;  %v9564_v9 = vld [vmem:[%s15050_s2 + $0xf8] sm:$0xff] }
0x11c0   : > { %v4337_v5 = vpack.c.bf16 %v12757_v23, %v12729_v8  ;;  %4362 = vrot.lane.b32.xlu1 %v12759_v46, %s9749_s12  ;;  %v4341_v3 = vpack.c.bf16 %v12764_v49, %v12734_v27  ;;  %v4345_v33 = vpack.c.bf16 %v12769_v44, %v12739_v51  ;;  %v12797_v13 = vmul.f32 %v9553_v11, %v4274_v10  ;;  %v15297_v27 = vld [vmem:[#allocation34_spill] sm:$0xff] }
0x11c1   : > { %4360 = vrot.lane.b32.xlu0 %v12771_v56, %s9749_s12  ;;  %v4336_v18 = vpack.c.bf16 %v4305_v60, %v4304_v55  ;;  %v4340_v39 = vpack.c.bf16 %v12779_v16, %v12747_v12  ;;  %v4344_v45 = vpack.c.bf16 %v12784_v52, %v12752_v61  ;;  %v12808_v37 = vmul.f32 %v9554_v30, %v4277_v20  ;;  %v9560_v55 = vld [vmem:[%s15050_s2 + $0xa0] sm:$0xff]  ;;  %v9563_v60 = vld [vmem:[%s15050_s2 + $0xb8] sm:$0xff] }
0x11c2   : > { %v12813_v14 = vmul.f32 %v9555_v42, %v4282_v22  ;;  %v12818_v43 = vmul.f32 %v9556_v4, %v4285_v47  ;;  %v7608_v22 = vld [vmem:[%s15051_s3 + $0x68] sm:$0xff] }
0x11c3   : > { %8502 = vmatprep.mubr.msk.bf16.mxu1 %vm553_vm0, %v4336_v18  ;;  %v4348_v58 = vpack.c.bf16 %v12808_v37, %v12797_v13  ;;  %v9565_v18 = vld [vmem:[%s15050_s2 + $0x138] sm:$0xff]  ;;  %v9566_v4 = vld [vmem:[%s15050_s2 + $0xa8] sm:$0xff] }
0x11c4   : > { %v4349_v35 = vpack.c.bf16 %v12818_v43, %v12813_v14 }
0x11c9   : > { %v8492_v50 = vpop.f32.mrb[164].mxu0 }
0x11ca   : > { %v4298_v36 = vadd.f32 %v8492_v50, %v7609_v63  ;;  %v4289_v0 = vpop.f32.mrb[165].mxu0 }
0x11cb   : > { %v4290_v48 = vadd.f32 %v7607_v26, %v4289_v0  ;;  %v8493_v31 = vpop.f32.mrb[166].mxu0  ;;  %v9567_v26 = vld [vmem:[%s15050_s2 + $0xe8] sm:$0xff] }
0x11cc   : > { %v4301_v10 = vadd.f32 %v8493_v31, %v7610_v29  ;;  %v4292_v15 = vpop.f32.mrb[167].mxu0  ;;  %v12840_v47 = vmul.f32 %v9557_v25, %v4298_v36  ;;  %v12845_v21 = vmul.f32 %v9558_v32, %v4298_v36  ;;  %v12850_v20 = vmul.f32 %v9559_v62, %v4298_v36  ;;  %v9568_v29 = vld [vmem:[%s15050_s2 + $0x128] sm:$0xff]  ;;  %v9569_v25 = vld [vmem:[%s15050_s2 + $0x160] sm:$0xff] }
0x11cd   : > { %v4293_v24 = vadd.f32 %v7608_v22, %v4292_v15  ;;  %v4308_v41 = vmul.f32 %v9560_v55, %v4290_v48  ;;  %v4316_v28 = vmul.f32 %v9561_v1, %v4290_v48  ;;  %v12861_v19 = vmul.f32 %v9562_v53, %v4290_v48 }
0x11ce   : > { %v12863_v2 = vpack.c.bf16 %v4301_v10, %v4298_v36  ;;  %v4311_v59 = vmul.f32 %v9563_v60, %v4301_v10  ;;  %v4319_v11 = vmul.f32 %v9564_v9, %v4301_v10  ;;  %v4327_v30 = vmul.f32 %v9565_v18, %v4301_v10 }
0x11cf   : > { %v12874_v42 = vpack.c.bf16 %v4293_v24, %v4290_v48  ;;  %v4309_v63 = vmul.f32 %v9566_v4, %v4293_v24  ;;  %v4317_v50 = vmul.f32 %v9567_v26, %v4293_v24  ;;  %v4325_v0 = vmul.f32 %v9568_v29, %v4293_v24 }
0x11d0   : > { %4366 = vrot.lane.b32.xlu0 %v12863_v2, %s9749_s12  ;;  %v4339_v22 = vpack.c.bf16 %v4311_v59, %v12840_v47  ;;  %v4343_v31 = vpack.c.bf16 %v4319_v11, %v12845_v21  ;;  %v4347_v15 = vpack.c.bf16 %v4327_v30, %v12850_v20  ;;  %v4332_v32 = vmul.f32 %v9569_v25, %v4290_v48  ;;  %v9570_v47 = vld [vmem:[%s15050_s2 + $0x168] sm:$0xff]  ;;  %v9571_v21 = vld [vmem:[%s15050_s2 + $0x170] sm:$0xff]  ;;  %v9572_v48 = vld [vmem:[%s15050_s2 + $0x178] sm:$0xff] }
0x11d1   : > { %4364 = vrot.lane.b32.xlu1 %v12874_v42, %s9749_s12  ;;  %v4338_v62 = vpack.c.bf16 %v4309_v63, %v4308_v41  ;;  %v4342_v55 = vpack.c.bf16 %v4317_v50, %v4316_v28  ;;  %v4346_v1 = vpack.c.bf16 %v4325_v0, %v12861_v19  ;;  %v4333_v53 = vmul.f32 %v9570_v47, %v4293_v24 }
0x11d2   : > { %v4334_v20 = vmul.f32 %v9571_v21, %v4298_v36  ;;  %v4335_v60 = vmul.f32 %v9572_v48, %v4301_v10 }
0x11d3   : > { %v4350_v59 = vpack.c.bf16 %v4333_v53, %v4332_v32 }
0x11d4   : > { %4957 = vrot.lane.b32.xlu0 %v12771_v56, %s9750_s26  ;;  %v4351_v41 = vpack.c.bf16 %v4335_v60, %v4334_v20 }
0x1232   : > { %v4363_v19 = vpop.permute.xlu1 %4362 }
0x1233   : > { %v4361_v28 = vpop.permute.xlu0 %4360  ;;  %v4420_v36 = vsel %vm553_vm0, %v4363_v19, 0 }
0x1234   : > { %8684 = vmatprep.subr.msk.bf16.mxu1 %vm553_vm0, %v4361_v28  ;;  %v4417_v24 = vsel %vm553_vm0, %v4361_v28, 0 }
0x1235   : > { %8495 = vmatpush3.bf16.xpose.msra.mxu1 %v4417_v24 }
0x1236   : > { %8685 = vmatprep.subr.msk.bf16.mxu1 %vm553_vm0, %v4363_v19 }
0x123d   : > { %8497 = vmatpush3.bf16.xpose.msra.mxu1 %v4420_v36 }
0x1242   : > { %v4367_v9 = vpop.permute.xlu0 %4366 }
0x1243   : > { %v4365_v11 = vpop.permute.xlu1 %4364  ;;  %v4426_v18 = vsel %vm553_vm0, %v4367_v9, 0 }
0x1244   : > { %8686 = vmatprep.subr.msk.bf16.mxu1 %vm553_vm0, %v4365_v11  ;;  %v4423_v10 = vsel %vm553_vm0, %v4365_v11, 0 }
0x1245   : > { %8499 = vmatpush3.bf16.xpose.msra.mxu1 %v4423_v10 }
0x1246   : > { %8687 = vmatprep.subr.msk.bf16.mxu1 %vm553_vm0, %v4367_v9  ;;  %v4958_v56 = vpop.permute.xlu0 %4957 }
0x1247   : > { %8534 = vmatprep.subr.bf16.mxu0 %v4958_v56 }
0x1248   : > { %8535 = vmatpush3.bf16.msra.mxu0 %v4958_v56 }
0x124d   : > { %8501 = vmatpush3.bf16.xpose.msra.mxu1 %v4426_v18 }
0x1254   : > { %8503 = vmatmul.mubr.msk.bf16.vlgmr.msra.gmra.mrb[144].mxu1 %vm553_vm0, %v4337_v5 }
0x1255   : > { %8506 = vmatprep.mubr.msk.bf16.mxu1 %vm553_vm0, %v4338_v62 }
0x125c   : > { %8507 = vmatmul.mubr.msk.bf16.gmra.mrb[148].mxu1 %vm553_vm0, %v4339_v22 }
0x125d   : > { %8510 = vmatprep.mubr.msk.bf16.mxu1 %vm553_vm0, %v4340_v39 }
0x1264   : > { %8511 = vmatmul.mubr.msk.bf16.gmra.mrb[152].mxu1 %vm553_vm0, %v4341_v3 }
0x1265   : > { %8514 = vmatprep.mubr.msk.bf16.mxu1 %vm553_vm0, %v4342_v55 }
0x126c   : > { %8515 = vmatmul.mubr.msk.bf16.gmra.mrb[156].mxu1 %vm553_vm0, %v4343_v31 }
0x126d   : > { %8518 = vmatprep.mubr.msk.bf16.mxu1 %vm553_vm0, %v4344_v45 }
0x1274   : > { %8519 = vmatmul.mubr.msk.bf16.gmra.mrb[160].mxu1 %vm553_vm0, %v4345_v33 }
0x1275   : > { %8522 = vmatprep.mubr.msk.bf16.mxu1 %vm553_vm0, %v4346_v1 }
0x127c   : > { %8523 = vmatmul.mubr.msk.bf16.gmra.mrb[164].mxu1 %vm553_vm0, %v4347_v15 }
0x127d   : > { %8526 = vmatprep.mubr.msk.bf16.mxu1 %vm553_vm0, %v4348_v58 }
0x1284   : > { %8527 = vmatmul.mubr.msk.bf16.gmra.mrb[168].mxu1 %vm553_vm0, %v4349_v35 }
0x1285   : > { %8530 = vmatprep.mubr.msk.bf16.mxu1 %vm553_vm0, %v4350_v59 }
0x128c   : > { %8531 = vmatmul.mubr.msk.bf16.gmra.mrb[172].mxu1 %vm553_vm0, %v4351_v41 }
0x1327   : > { %v8504_v8 = vpop.f32.mrb[144].mxu1 }
0x1328   : > { %v12952_v51 = vadd.f32 %v8504_v8, %v15297_v27  ;;  %v4462_v12 = vpop.f32.mrb[145].mxu1 }
0x1329   : > { %v12955_v61 = vadd.f32 %v4462_v12, %v15297_v27  ;;  %v8505_v23 = vpop.f32.mrb[146].mxu1 }
0x132a   : > { %v4465_v49 = vpop.f32.mrb[147].mxu1  ;;  %v4595_v44 = vsel %vm1434_vm2, %v12952_v51, -inf  ;;  %v12960_v16 = vadd.f32 %v8505_v23, %v15297_v27 }
0x132b   : > { %v12963_v52 = vadd.f32 %v4465_v49, %v15297_v27  ;;  %4596 = vmax.xlane.f32.xlu0 %v4595_v44  ;;  %v4589_v5 = vsel %vm1434_vm2, %v12955_v61, -inf }
0x132c   : > { %4590 = vmax.xlane.f32.xlu1 %v4589_v5  ;;  %v4598_v13 = vsel %vm1434_vm2, %v12960_v16, -inf }
0x132d   : > { %v4592_v3 = vsel %vm1434_vm2, %v12963_v52, -inf }
0x132f   : > { %v8508_v33 = vpop.f32.mrb[148].mxu1  ;;  %4593 = vmax.xlane.f32.xlu0 %v4592_v3 }
0x1330   : > { %v12972_v39 = vadd.f32 %v8508_v33, %v15297_v27  ;;  %v4478_v45 = vpop.f32.mrb[149].mxu1  ;;  %4599 = vmax.xlane.f32.xlu1 %v4598_v13 }
0x1331   : > { %v8509_v37 = vpop.f32.mrb[150].mxu1  ;;  %v12975_v14 = vadd.f32 %v4478_v45, %v15297_v27 }
0x1332   : > { %v12978_v43 = vadd.f32 %v8509_v37, %v15297_v27  ;;  %v4481_v58 = vpop.f32.mrb[151].mxu1  ;;  %v4607_v35 = vsel %vm1434_vm2, %v12972_v39, -inf }
0x1333   : > { %4608 = vmax.xlane.f32.xlu0 %v4607_v35  ;;  %v12983_v30 = vadd.f32 %v4481_v58, %v15297_v27  ;;  %v4601_v63 = vsel %vm1434_vm2, %v12975_v14, -inf }
0x1334   : > { %v4610_v4 = vsel %vm1434_vm2, %v12978_v43, -inf }
0x1335   : > { %4611 = vmax.xlane.f32.xlu1 %v4610_v4  ;;  %v4604_v0 = vsel %vm1434_vm2, %v12983_v30, -inf }
0x1337   : > { %v8512_v26 = vpop.f32.mrb[152].mxu1  ;;  %4602 = vmax.xlane.f32.xlu0 %v4601_v63 }
0x1338   : > { %v12990_v50 = vadd.f32 %v8512_v26, %v15297_v27  ;;  %v4494_v29 = vpop.f32.mrb[153].mxu1 }
0x1339   : > { %v8513_v22 = vpop.f32.mrb[154].mxu1  ;;  %4605 = vmax.xlane.f32.xlu1 %v4604_v0  ;;  %v12995_v31 = vadd.f32 %v4494_v29, %v15297_v27 }
0x133a   : > { %v12998_v15 = vadd.f32 %v8513_v22, %v15297_v27  ;;  %v4497_v25 = vpop.f32.mrb[155].mxu1  ;;  %v4619_v32 = vsel %vm1434_vm2, %v12990_v50, -inf }
0x133b   : > { %4620 = vmax.xlane.f32.xlu0 %v4619_v32  ;;  %v13003_v62 = vadd.f32 %v4497_v25, %v15297_v27  ;;  %v4613_v1 = vsel %vm1434_vm2, %v12995_v31, -inf }
0x133c   : > { %v4622_v55 = vsel %vm1434_vm2, %v12998_v15, -inf }
0x133d   : > { %4623 = vmax.xlane.f32.xlu1 %v4622_v55  ;;  %v4616_v20 = vsel %vm1434_vm2, %v13003_v62, -inf }
0x133f   : > { %v8516_v47 = vpop.f32.mrb[156].mxu1  ;;  %4614 = vmax.xlane.f32.xlu0 %v4613_v1 }
0x1340   : > { %v13010_v53 = vadd.f32 %v8516_v47, %v15297_v27  ;;  %v4510_v21 = vpop.f32.mrb[157].mxu1 }
0x1341   : > { %v8517_v48 = vpop.f32.mrb[158].mxu1  ;;  %4617 = vmax.xlane.f32.xlu1 %v4616_v20  ;;  %v13015_v60 = vadd.f32 %v4510_v21, %v15297_v27 }
0x1342   : > { %v13018_v59 = vadd.f32 %v8517_v48, %v15297_v27  ;;  %v4513_v41 = vpop.f32.mrb[159].mxu1  ;;  %v4631_v28 = vsel %vm1434_vm2, %v13010_v53, -inf }
0x1343   : > { %4632 = vmax.xlane.f32.xlu0 %v4631_v28  ;;  %v13023_v24 = vadd.f32 %v4513_v41, %v15297_v27  ;;  %v4625_v36 = vsel %vm1434_vm2, %v13015_v60, -inf }
0x1344   : > { %v4634_v19 = vsel %vm1434_vm2, %v13018_v59, -inf }
0x1345   : > { %4635 = vmax.xlane.f32.xlu1 %v4634_v19  ;;  %v4628_v56 = vsel %vm1434_vm2, %v13023_v24, -inf }
0x1347   : > { %v8520_v9 = vpop.f32.mrb[160].mxu1  ;;  %4626 = vmax.xlane.f32.xlu0 %v4625_v36 }
0x1348   : > { %v13030_v11 = vadd.f32 %v8520_v9, %v15297_v27  ;;  %v4526_v10 = vpop.f32.mrb[161].mxu1 }
0x1349   : > { %v8521_v18 = vpop.f32.mrb[162].mxu1  ;;  %4629 = vmax.xlane.f32.xlu1 %v4628_v56  ;;  %v13035_v8 = vadd.f32 %v4526_v10, %v15297_v27 }
0x134a   : > { %v13038_v12 = vadd.f32 %v8521_v18, %v15297_v27  ;;  %v4529_v23 = vpop.f32.mrb[163].mxu1  ;;  %v4643_v49 = vsel %vm1434_vm2, %v13030_v11, -inf }
0x134b   : > { %4644 = vmax.xlane.f32.xlu0 %v4643_v49  ;;  %v13043_v44 = vadd.f32 %v4529_v23, %v15297_v27  ;;  %v4637_v3 = vsel %vm1434_vm2, %v13035_v8, -inf }
0x134c   : > { %v4646_v5 = vsel %vm1434_vm2, %v13038_v12, -inf }
0x134d   : > { %4647 = vmax.xlane.f32.xlu1 %v4646_v5  ;;  %v4640_v37 = vsel %vm1434_vm2, %v13043_v44, -inf }
0x134f   : > { %v8524_v33 = vpop.f32.mrb[164].mxu1  ;;  %4638 = vmax.xlane.f32.xlu0 %v4637_v3 }
0x1350   : > { %v13050_v13 = vadd.f32 %v8524_v33, %v15297_v27  ;;  %v4542_v45 = vpop.f32.mrb[165].mxu1 }
0x1351   : > { %v8525_v58 = vpop.f32.mrb[166].mxu1  ;;  %4641 = vmax.xlane.f32.xlu1 %v4640_v37  ;;  %v13055_v35 = vadd.f32 %v4542_v45, %v15297_v27 }
0x1352   : > { %v13058_v4 = vadd.f32 %v8525_v58, %v15297_v27  ;;  %v4545_v63 = vpop.f32.mrb[167].mxu1  ;;  %v4655_v26 = vsel %vm1434_vm2, %v13050_v13, -inf }
0x1353   : > { %4656 = vmax.xlane.f32.xlu0 %v4655_v26  ;;  %v13063_v29 = vadd.f32 %v4545_v63, %v15297_v27  ;;  %v4649_v22 = vsel %vm1434_vm2, %v13055_v35, -inf }
0x1354   : > { %v4658_v0 = vsel %vm1434_vm2, %v13058_v4, -inf }
0x1355   : > { %4659 = vmax.xlane.f32.xlu1 %v4658_v0  ;;  %v4652_v1 = vsel %vm1434_vm2, %v13063_v29, -inf }
0x1357   : > { %v8528_v25 = vpop.f32.mrb[168].mxu1  ;;  %4650 = vmax.xlane.f32.xlu0 %v4649_v22 }
0x1358   : > { %v13070_v32 = vadd.f32 %v8528_v25, %v15297_v27  ;;  %v4558_v55 = vpop.f32.mrb[169].mxu1 }
0x1359   : > { %v8529_v47 = vpop.f32.mrb[170].mxu1  ;;  %4653 = vmax.xlane.f32.xlu1 %v4652_v1  ;;  %v13075_v21 = vadd.f32 %v4558_v55, %v15297_v27 }
0x135a   : > { %v13078_v20 = vadd.f32 %v8529_v47, %v15297_v27  ;;  %v4561_v48 = vpop.f32.mrb[171].mxu1  ;;  %v4667_v41 = vsel %vm1434_vm2, %v13070_v32, -inf }
0x135b   : > { %4668 = vmax.xlane.f32.xlu0 %v4667_v41  ;;  %v13083_v28 = vadd.f32 %v4561_v48, %v15297_v27  ;;  %v4661_v36 = vsel %vm1434_vm2, %v13075_v21, -inf }
0x135c   : > { %v4670_v19 = vsel %vm1434_vm2, %v13078_v20, -inf }
0x135d   : > { %4671 = vmax.xlane.f32.xlu1 %v4670_v19  ;;  %v4664_v56 = vsel %vm1434_vm2, %v13083_v28, -inf }
0x135f   : > { %v8532_v9 = vpop.f32.mrb[172].mxu1  ;;  %4662 = vmax.xlane.f32.xlu0 %v4661_v36 }
0x1360   : > { %v4574_v10 = vpop.f32.mrb[173].mxu1  ;;  %v13096_v49 = vadd.f32 %v8532_v9, %v15297_v27 }
0x1361   : > { %v8533_v18 = vpop.f32.mrb[174].mxu1  ;;  %4665 = vmax.xlane.f32.xlu1 %v4664_v56  ;;  %v13102_v3 = vadd.f32 %v4574_v10, %v15297_v27 }
0x1362   : > { %v4577_v23 = vpop.f32.mrb[175].mxu1  ;;  %v13099_v5 = vadd.f32 %v8533_v18, %v15297_v27  ;;  %v4679_v33 = vsel %vm1434_vm2, %v13096_v49, -inf }
0x1363   : > { %v13107_v45 = vadd.f32 %v4577_v23, %v15297_v27 }
0x1365   : > { %v4676_v37 = vsel %vm1434_vm2, %v13107_v45, -inf }
0x1372   : > { %4959 = vrot.lane.b32.xlu1 %v12759_v46, %s9750_s26  ;;  %v4682_v46 = vsel %vm1434_vm2, %v13099_v5, -inf }
0x1375   : > { %4961 = vrot.lane.b32.xlu0 %v12874_v42, %s9750_s26  ;;  %v4673_v42 = vsel %vm1434_vm2, %v13102_v3, -inf }
0x1394   : > { %4680 = vmax.xlane.f32.xlu0 %v4679_v33 }
0x1396   : > { %4683 = vmax.xlane.f32.xlu1 %v4682_v46 }
0x1398   : > { %4674 = vmax.xlane.f32.xlu0 %v4673_v42 }
0x139a   : > { %4677 = vmax.xlane.f32.xlu1 %v4676_v37 }
0x13b8   : > { %v4597_v58 = vpop.xlane.xlu0 %4596 }
0x13b9   : > { %v4687_v63 = vsub.f32 %v12952_v51, %v4597_v58  ;;  %v4591_v26 = vpop.xlane.xlu1 %4590 }
0x13ba   : > { %v4685_v0 = vsub.f32 %v12955_v61, %v4591_v26 }
0x13bb   : > { %v4721_v27 = vmul.f32 1.442695, %v4687_v63 }
0x13bc   : > { %v4717_v22 = vmul.f32 1.442695, %v4685_v0  ;;  %v4594_v25 = vpop.xlane.xlu0 %4593 }
0x13bd   : > { %9085 = vpow2.f32 %v4721_v27  ;;  %v4686_v55 = vsub.f32 %v12963_v52, %v4594_v25  ;;  %v4600_v1 = vpop.xlane.xlu1 %4599 }
0x13be   : > { %v4688_v47 = vsub.f32 %v12960_v16, %v4600_v1  ;;  %9087 = vpow2.f32 %v4717_v22 }
0x13bf   : > { %v4719_v48 = vmul.f32 1.442695, %v4686_v55 }
0x13c0   : > { %v4723_v41 = vmul.f32 1.442695, %v4688_v47  ;;  %v4609_v19 = vpop.xlane.xlu0 %4608 }
0x13c1   : > { %v4691_v36 = vsub.f32 %v12972_v39, %v4609_v19 }
0x13c2   : > { %9089 = vpow2.f32 %v4723_v41  ;;  %v4612_v51 = vpop.xlane.xlu1 %4611 }
0x13c3   : > { %v4729_v9 = vmul.f32 1.442695, %v4691_v36  ;;  %v4692_v61 = vsub.f32 %v12978_v43, %v4612_v51  ;;  %9091 = vpow2.f32 %v4719_v48 }
0x13c4   : > { %v4603_v10 = vpop.xlane.xlu0 %4602 }
0x13c5   : > { %9093 = vpow2.f32 %v4729_v9  ;;  %v4731_v56 = vmul.f32 1.442695, %v4692_v61  ;;  %v4689_v52 = vsub.f32 %v12975_v14, %v4603_v10 }
0x13c6   : > { %v4606_v18 = vpop.xlane.xlu1 %4605 }
0x13c7   : > { %v13122_v23 = vpop.eup %9085  ;;  %v4725_v16 = vmul.f32 1.442695, %v4689_v52  ;;  %v4690_v33 = vsub.f32 %v12983_v30, %v4606_v18  ;;  %9095 = vpow2.f32 %v4731_v56 }
0x13c8   : > { %v4621_v46 = vpop.xlane.xlu0 %4620  ;;  %v4787_v39 = vsel %vm1434_vm2, %v13122_v23, 0.0  ;;  %v13127_v42 = vpop.eup %9087 }
0x13c9   : > { %9097 = vpow2.f32 %v4725_v16  ;;  %v4727_v43 = vmul.f32 1.442695, %v4690_v33  ;;  %v4695_v37 = vsub.f32 %v12990_v50, %v4621_v46  ;;  %4788 = vadd.xlane.f32.xlu0 %v4787_v39  ;;  %v4781_v30 = vsel %vm1434_vm2, %v13127_v42, 0.0 }
0x13ca   : > { %v4624_v58 = vpop.xlane.xlu1 %4623 }
0x13cb   : > { %9099 = vpow2.f32 %v4727_v43  ;;  %v4737_v63 = vmul.f32 1.442695, %v4695_v37  ;;  %v4696_v55 = vsub.f32 %v12998_v15, %v4624_v58 }
0x13cc   : > { %v13130_v14 = vpop.eup %9089  ;;  %v4615_v26 = vpop.xlane.xlu0 %4614 }
0x13cd   : > { %v4693_v0 = vsub.f32 %v12995_v31, %v4615_v26  ;;  %4782 = vadd.xlane.f32.xlu0 %v4781_v30  ;;  %v4790_v27 = vsel %vm1434_vm2, %v13130_v14, 0.0  ;;  %v13137_v22 = vpop.eup %9091  ;;  %9101 = vpow2.f32 %v4737_v63  ;;  %v4739_v61 = vmul.f32 1.442695, %v4696_v55 }
0x13ce   : > { %4791 = vadd.xlane.f32.xlu1 %v4790_v27  ;;  %v4618_v50 = vpop.xlane.xlu1 %4617  ;;  %v4784_v41 = vsel %vm1434_vm2, %v13137_v22, 0.0 }
0x13cf   : > { %v13139_v25 = vpop.eup %9093  ;;  %v4733_v1 = vmul.f32 1.442695, %v4693_v0  ;;  %v4694_v10 = vsub.f32 %v13003_v62, %v4618_v50 }
0x13d0   : > { %v4633_v47 = vpop.xlane.xlu0 %4632  ;;  %v4799_v48 = vsel %vm1434_vm2, %v13139_v25, 0.0 }
0x13d1   : > { %v4699_v31 = vsub.f32 %v13010_v53, %v4633_v47  ;;  %4800 = vadd.xlane.f32.xlu0 %v4799_v48  ;;  %v13147_v19 = vpop.eup %9095  ;;  %9103 = vpow2.f32 %v4733_v1  ;;  %v4735_v39 = vmul.f32 1.442695, %v4694_v10 }
0x13d2   : > { %v4636_v36 = vpop.xlane.xlu1 %4635  ;;  %4785 = vadd.xlane.f32.xlu1 %v4784_v41  ;;  %v4802_v18 = vsel %vm1434_vm2, %v13147_v19, 0.0 }
0x13d3   : > { %v13149_v51 = vpop.eup %9097  ;;  %v4745_v9 = vmul.f32 1.442695, %v4699_v31  ;;  %v4700_v15 = vsub.f32 %v13018_v59, %v4636_v36 }
0x13d4   : > { %v4627_v56 = vpop.xlane.xlu0 %4626  ;;  %v4793_v53 = vsel %vm1434_vm2, %v13149_v51, 0.0 }
0x13d5   : > { %9105 = vpow2.f32 %v4745_v9  ;;  %v4697_v52 = vsub.f32 %v13015_v60, %v4627_v56  ;;  %4794 = vadd.xlane.f32.xlu0 %v4793_v53  ;;  %v13158_v16 = vpop.eup %9099  ;;  %v4747_v59 = vmul.f32 1.442695, %v4700_v15 }
0x13d6   : > { %v4630_v33 = vpop.xlane.xlu1 %4629  ;;  %4803 = vadd.xlane.f32.xlu1 %v4802_v18  ;;  %9107 = vpow2.f32 %v4739_v61  ;;  %v4796_v37 = vsel %vm1434_vm2, %v13158_v16, 0.0 }
0x13d7   : > { %v4741_v46 = vmul.f32 1.442695, %v4697_v52  ;;  %v4698_v62 = vsub.f32 %v13023_v24, %v4630_v33  ;;  %v13163_v60 = vpop.eup %9101 }
0x13d8   : > { %v4645_v43 = vpop.xlane.xlu0 %4644  ;;  %v4811_v0 = vsel %vm1434_vm2, %v13163_v60, 0.0 }
0x13d9   : > { %9109 = vpow2.f32 %v4741_v46  ;;  %v4743_v63 = vmul.f32 1.442695, %v4698_v62  ;;  %v4703_v26 = vsub.f32 %v13030_v11, %v4645_v43 }
0x13da   : > { %v4648_v58 = vpop.xlane.xlu1 %4647  ;;  %4797 = vadd.xlane.f32.xlu1 %v4796_v37  ;;  %9111 = vpow2.f32 %v4747_v59 }
0x13db   : > { %9113 = vpow2.f32 %v4735_v39  ;;  %v13168_v27 = vpop.eup %9103  ;;  %v4753_v55 = vmul.f32 1.442695, %v4703_v26  ;;  %v4704_v9 = vsub.f32 %v13038_v12, %v4648_v58 }
0x13dc   : > { %v4639_v30 = vpop.xlane.xlu0 %4638  ;;  %9115 = vpow2.f32 %v4743_v63  ;;  %v4805_v11 = vsel %vm1434_vm2, %v13168_v27, 0.0 }
0x13dd   : > { %v4701_v1 = vsub.f32 %v13035_v8, %v4639_v30  ;;  %9117 = vpow2.f32 %v4753_v55  ;;  %v4755_v18 = vmul.f32 1.442695, %v4704_v9 }
0x13de   : > { %v4642_v24 = vpop.xlane.xlu1 %4641  ;;  %4812 = vadd.xlane.f32.xlu1 %v4811_v0 }
0x13df   : > { %v13170_v50 = vpop.eup %9105  ;;  %v4749_v15 = vmul.f32 1.442695, %v4701_v1  ;;  %v4702_v12 = vsub.f32 %v13043_v44, %v4642_v24 }
0x13e0   : > { %v4657_v47 = vpop.xlane.xlu0 %4656  ;;  %v4823_v48 = vsel %vm1434_vm2, %v13170_v50, 0.0  ;;  %v13177_v31 = vpop.eup %9107 }
0x13e1   : > { %4824 = vadd.xlane.f32.xlu0 %v4823_v48  ;;  %v4814_v56 = vsel %vm1434_vm2, %v13177_v31, 0.0  ;;  %9119 = vpow2.f32 %v4749_v15  ;;  %v4751_v43 = vmul.f32 1.442695, %v4702_v12  ;;  %v4707_v37 = vsub.f32 %v13050_v13, %v4657_v47 }
0x13e2   : > { %v4660_v41 = vpop.xlane.xlu1 %4659  ;;  %4806 = vadd.xlane.f32.xlu1 %v4805_v11  ;;  %9121 = vpow2.f32 %v4755_v18 }
0x13e3   : > { %v13179_v36 = vpop.eup %9109  ;;  %9123 = vpow2.f32 %v4751_v43  ;;  %v4761_v30 = vmul.f32 1.442695, %v4707_v37  ;;  %v4708_v0 = vsub.f32 %v13058_v4, %v4660_v41 }
0x13e4   : > { %v13182_v61 = vpop.xlane.xlu0 %4650  ;;  %v4817_v8 = vsel %vm1434_vm2, %v13179_v36, 0.0  ;;  %v13186_v10 = vpop.eup %9111 }
0x13e5   : > { %4818 = vadd.xlane.f32.xlu0 %v4817_v8  ;;  %v13190_v53 = vpop.eup %9113  ;;  %v4826_v59 = vsel %vm1434_vm2, %v13186_v10, 0.0  ;;  %9125 = vpow2.f32 %v4761_v30  ;;  %v4763_v13 = vmul.f32 1.442695, %v4708_v0 }
0x13e6   : > { %v4654_v52 = vpop.xlane.xlu1 %4653  ;;  %4815 = vadd.xlane.f32.xlu1 %v4814_v56  ;;  %v4808_v46 = vsel %vm1434_vm2, %v13190_v53, 0.0  ;;  %v13197_v39 = vpop.eup %9115 }
0x13e7   : > { %v4820_v58 = vsel %vm1434_vm2, %v13197_v39, 0.0  ;;  %v13202_v44 = vpop.eup %9117  ;;  %v4706_v47 = vsub.f32 %v13063_v29, %v4654_v52  ;;  %9127 = vpow2.f32 %v4763_v13 }
0x13e8   : > { %v4669_v33 = vpop.xlane.xlu0 %4668  ;;  %v4835_v24 = vsel %vm1434_vm2, %v13202_v44, 0.0 }
0x13e9   : > { %4827 = vadd.xlane.f32.xlu0 %v4826_v59  ;;  %v4759_v4 = vmul.f32 1.442695, %v4706_v47  ;;  %v4711_v41 = vsub.f32 %v13070_v32, %v4669_v33 }
0x13ea   : > { %v4672_v62 = vpop.xlane.xlu1 %4671  ;;  %4809 = vadd.xlane.f32.xlu1 %v4808_v46 }
0x13eb   : > { %v13207_v55 = vpop.eup %9119  ;;  %9129 = vpow2.f32 %v4759_v4  ;;  %v4769_v29 = vmul.f32 1.442695, %v4711_v41 }
0x13ec   : > { %v4663_v63 = vpop.xlane.xlu0 %4662  ;;  %v4829_v11 = vsel %vm1434_vm2, %v13207_v55, 0.0  ;;  %v13212_v9 = vpop.eup %9121 }
0x13ed   : > { %v4838_v15 = vsel %vm1434_vm2, %v13212_v9, 0.0  ;;  %v13217_v8 = vpop.eup %9123  ;;  %v4709_v56 = vsub.f32 %v13075_v21, %v4663_v63  ;;  %9131 = vpow2.f32 %v4769_v29  ;;  %v4712_v21 = vsub.f32 %v13078_v20, %v4672_v62 }
0x13ee   : > { %v4666_v26 = vpop.xlane.xlu1 %4665  ;;  %4821 = vadd.xlane.f32.xlu1 %v4820_v58  ;;  %v4832_v52 = vsel %vm1434_vm2, %v13217_v8, 0.0 }
0x13ef   : > { %v13222_v18 = vpop.eup %9125  ;;  %v4765_v32 = vmul.f32 1.442695, %v4709_v56  ;;  %v4710_v12 = vsub.f32 %v13083_v28, %v4666_v26  ;;  %v4771_v28 = vmul.f32 1.442695, %v4712_v21 }
0x13f0   : > { %v4962_v48 = vpop.permute.xlu0 %4961  ;;  %v4847_v33 = vsel %vm1434_vm2, %v13222_v18, 0.0 }
0x13f1   : > { %v13229_v59 = vpop.eup %9127  ;;  %9133 = vpow2.f32 %v4765_v32  ;;  %v4767_v46 = vmul.f32 1.442695, %v4710_v12 }
0x13f2   : > { %v4960_v1 = vpop.permute.xlu1 %4959  ;;  %4836 = vadd.xlane.f32.xlu1 %v4835_v24  ;;  %v4850_v43 = vsel %vm1434_vm2, %v13229_v59, 0.0 }
0x13f3   : > { %8536 = vmatprep.subr.bf16.mxu0 %v4960_v1  ;;  %9135 = vpow2.f32 %v4767_v46 }
0x13f4   : > { %8537 = vmatpush3.bf16.msra.mxu0 %v4960_v1  ;;  %9137 = vpow2.f32 %v4771_v28 }
0x13f5   : > { %8538 = vmatprep.subr.bf16.mxu0 %v4962_v48  ;;  %v13234_v37 = vpop.eup %9129 }
0x13f6   : > { %4830 = vadd.xlane.f32.xlu1 %v4829_v11  ;;  %v4844_v58 = vsel %vm1434_vm2, %v13234_v37, 0.0 }
0x13f7   : > { %v13240_v63 = vpop.eup %9131 }
0x13f8   : > { %8539 = vmatpush3.bf16.msra.mxu0 %v4962_v48  ;;  %v4859_v62 = vsel %vm1434_vm2, %v13240_v63, 0.0 }
0x13fa   : > { %4839 = vadd.xlane.f32.xlu1 %v4838_v15 }
0x13fb   : > { %v13244_v26 = vpop.eup %9133 }
0x13fe   : > { %4833 = vadd.xlane.f32.xlu1 %v4832_v52 }
0x13ff   : > { %4963 = vrot.lane.b32.xlu0 %v12863_v2, %s9750_s26  ;;  %v4705_v2 = vsub.f32 %v13055_v35, %v13182_v61  ;;  %v4853_v35 = vsel %vm1434_vm2, %v13244_v26, 0.0  ;;  %v13248_v61 = vpop.eup %9135 }
0x1400   : > { %v4856_v30 = vsel %vm1434_vm2, %v13248_v61, 0.0  ;;  %v13252_v0 = vpop.eup %9137 }
0x1401   : > { %v4757_v20 = vmul.f32 1.442695, %v4705_v2  ;;  %v4862_v24 = vsel %vm1434_vm2, %v13252_v0, 0.0 }
0x1402   : > { %4848 = vadd.xlane.f32.xlu1 %v4847_v33 }
0x1403   : > { %9139 = vpow2.f32 %v4757_v20 }
0x1406   : > { %4851 = vadd.xlane.f32.xlu1 %v4850_v43 }
0x140a   : > { %4845 = vadd.xlane.f32.xlu1 %v4844_v58 }
0x140d   : > { %v13256_v1 = vpop.eup %9139 }
0x140e   : > { %4860 = vadd.xlane.f32.xlu1 %v4859_v62  ;;  %v4841_v13 = vsel %vm1434_vm2, %v13256_v1, 0.0 }
0x1412   : > { %4854 = vadd.xlane.f32.xlu1 %v4853_v35 }
0x1416   : > { %4857 = vadd.xlane.f32.xlu1 %v4856_v30 }
0x141a   : > { %4863 = vadd.xlane.f32.xlu1 %v4862_v24 }
0x141e   : > { %4842 = vadd.xlane.f32.xlu0 %v4841_v13 }
0x1421   : > { %v4681_v47 = vpop.xlane.xlu0 %4680 }
0x1422   : > { %v4715_v48 = vsub.f32 %v13096_v49, %v4681_v47 }
0x1423   : > { %v4684_v11 = vpop.xlane.xlu1 %4683 }
0x1424   : > { %v4716_v41 = vsub.f32 %v13099_v5, %v4684_v11  ;;  %v4777_v29 = vmul.f32 1.442695, %v4715_v48 }
0x1425   : > { %v4675_v4 = vpop.xlane.xlu0 %4674 }
0x1426   : > { %v4713_v15 = vsub.f32 %v13102_v3, %v4675_v4  ;;  %v4779_v12 = vmul.f32 1.442695, %v4716_v41 }
0x1427   : > { %v4678_v56 = vpop.xlane.xlu1 %4677 }
0x1428   : > { %v4773_v52 = vmul.f32 1.442695, %v4713_v15  ;;  %v4714_v32 = vsub.f32 %v13107_v45, %v4678_v56 }
0x142a   : > { %9141 = vpow2.f32 %v4773_v52  ;;  %v4775_v33 = vmul.f32 1.442695, %v4714_v32 }
0x142b   : > { %9143 = vpow2.f32 %v4777_v29 }
0x142c   : > { %9145 = vpow2.f32 %v4775_v33 }
0x142d   : > { %9147 = vpow2.f32 %v4779_v12 }
0x1434   : > { %v13264_v21 = vpop.eup %9141 }
0x1435   : > { %v13266_v49 = vpop.eup %9143  ;;  %v4865_v5 = vsel %vm1434_vm2, %v13264_v21, 0.0 }
0x1436   : > { %v13270_v46 = vpop.eup %9145  ;;  %4866 = vadd.xlane.f32.xlu1 %v4865_v5  ;;  %v4871_v43 = vsel %vm1434_vm2, %v13266_v49, 0.0 }
0x1437   : > { %v4868_v3 = vsel %vm1434_vm2, %v13270_v46, 0.0  ;;  %v13274_v45 = vpop.eup %9147 }
0x1438   : > { %4869 = vadd.xlane.f32.xlu0 %v4868_v3  ;;  %v4874_v2 = vsel %vm1434_vm2, %v13274_v45, 0.0 }
0x143a   : > { %4872 = vadd.xlane.f32.xlu1 %v4871_v43 }
0x143c   : > { %4875 = vadd.xlane.f32.xlu0 %v4874_v2 }
0x1456   : > { %v4789_v28 = vpop.xlane.xlu0 %4788 }
0x145a   : > { %v4783_v58 = vpop.xlane.xlu0 %4782 }
0x145b   : > { %v4792_v20 = vpop.xlane.xlu1 %4791  ;;  %9149 = vrcp.f32 %v4783_v58 }
0x145e   : > { %v4801_v30 = vpop.xlane.xlu0 %4800 }
0x145f   : > { %v4786_v62 = vpop.xlane.xlu1 %4785 }
0x1460   : > { %9151 = vrcp.f32 %v4786_v62 }
0x1461   : > { %9153 = vrcp.f32 %v4792_v20 }
0x1462   : > { %v4795_v48 = vpop.xlane.xlu0 %4794 }
0x1463   : > { %v4804_v35 = vpop.xlane.xlu1 %4803 }
0x1465   : > { %v9150_v13 = vpop.eup %9149 }
0x1466   : > { %v4909_v4 = vmul.f32 %v9150_v13, %v13127_v42 }
0x1467   : > { %v4798_v24 = vpop.xlane.xlu1 %4797 }
0x1468   : > { %9155 = vrcp.f32 %v4798_v24 }
0x1469   : > { %9157 = vrcp.f32 %v4789_v28 }
0x146a   : > { %v9152_v47 = vpop.eup %9151  ;;  %9159 = vrcp.f32 %v4795_v48 }
0x146b   : > { %v4813_v11 = vpop.xlane.xlu1 %4812  ;;  %v4910_v41 = vmul.f32 %v9152_v47, %v13137_v22  ;;  %9161 = vrcp.f32 %v4804_v35  ;;  %v9154_v12 = vpop.eup %9153 }
0x146c   : > { %9163 = vrcp.f32 %v4801_v30  ;;  %v4912_v43 = vmul.f32 %v9154_v12, %v13130_v14 }
0x146d   : > { %v4941_v15 = vpack.c.bf16 %v4910_v41, %v4909_v4 }
0x146e   : > { %v4825_v29 = vpop.xlane.xlu0 %4824 }
0x146f   : > { %v4807_v56 = vpop.xlane.xlu1 %4806  ;;  %8542 = vmatprep.mubr.msk.bf16.mxu0 %vm1434_vm2, %v4941_v15 }
0x1470   : > { %9165 = vrcp.f32 %v4807_v56 }
0x1472   : > { %v4819_v52 = vpop.xlane.xlu0 %4818  ;;  %v9156_v5 = vpop.eup %9155 }
0x1473   : > { %v4816_v32 = vpop.xlane.xlu1 %4815  ;;  %v9158_v3 = vpop.eup %9157  ;;  %v4914_v28 = vmul.f32 %v9156_v5, %v13158_v16 }
0x1474   : > { %v9160_v22 = vpop.eup %9159  ;;  %v4911_v58 = vmul.f32 %v9158_v3, %v13122_v23 }
0x1475   : > { %v4913_v62 = vmul.f32 %v9160_v22, %v13149_v51  ;;  %v9162_v30 = vpop.eup %9161 }
0x1476   : > { %v4828_v33 = vpop.xlane.xlu0 %4827  ;;  %v4942_v35 = vpack.c.bf16 %v4912_v43, %v4911_v58  ;;  %v9164_v13 = vpop.eup %9163  ;;  %v4916_v23 = vmul.f32 %v9162_v30, %v13147_v19 }
0x1477   : > { %v4810_v42 = vpop.xlane.xlu1 %4809  ;;  %v4943_v24 = vpack.c.bf16 %v4914_v28, %v4913_v62  ;;  %v4915_v4 = vmul.f32 %v9164_v13, %v13139_v25 }
0x1478   : > { %9167 = vrcp.f32 %v4810_v42 }
0x1479   : > { %9169 = vrcp.f32 %v4816_v32 }
0x147a   : > { %v4964_v2 = vpop.permute.xlu0 %4963  ;;  %v9166_v14 = vpop.eup %9165 }
0x147b   : > { %v4822_v20 = vpop.xlane.xlu1 %4821  ;;  %8540 = vmatprep.subr.bf16.mxu0 %v4964_v2  ;;  %v4917_v51 = vmul.f32 %v9166_v14, %v13168_v27 }
0x147c   : > { %8541 = vmatpush3.bf16.msra.mxu0 %v4964_v2  ;;  %9171 = vrcp.f32 %v4822_v20 }
0x147d   : > { %9173 = vrcp.f32 %v4813_v11  ;;  %v4944_v11 = vpack.c.bf16 %v4916_v23, %v4915_v4 }
0x147e   : > { %9175 = vrcp.f32 %v4819_v52 }
0x147f   : > { %v4837_v47 = vpop.xlane.xlu1 %4836  ;;  %8543 = vmatmul.mubr.msk.bf16.vlgmr.msra.gmra.mrb[168].mxu0 %vm1434_vm2, %v4942_v35  ;;  %9177 = vrcp.f32 %v4828_v33 }
0x1480   : > { %8546 = vmatprep.mubr.msk.bf16.mxu0 %vm1434_vm2, %v4943_v24  ;;  %9179 = vrcp.f32 %v4825_v29 }
0x1482   : > { %v9168_v16 = vpop.eup %9167 }
0x1483   : > { %v4831_v48 = vpop.xlane.xlu1 %4830  ;;  %v4918_v41 = vmul.f32 %v9168_v16, %v13190_v53  ;;  %v9170_v56 = vpop.eup %9169 }
0x1484   : > { %v4920_v5 = vmul.f32 %v9170_v56, %v13177_v31  ;;  %9181 = vrcp.f32 %v4831_v48 }
0x1485   : > { %v4945_v15 = vpack.c.bf16 %v4918_v41, %v4917_v51 }
0x1486   : > { %v9172_v52 = vpop.eup %9171 }
0x1487   : > { %v4840_v32 = vpop.xlane.xlu1 %4839  ;;  %8547 = vmatmul.mubr.msk.bf16.gmra.mrb[172].mxu0 %vm1434_vm2, %v4944_v11  ;;  %v9174_v12 = vpop.eup %9173  ;;  %v4922_v25 = vmul.f32 %v9172_v52, %v13197_v39 }
0x1488   : > { %8550 = vmatprep.mubr.msk.bf16.mxu0 %vm1434_vm2, %v4945_v15  ;;  %v9176_v19 = vpop.eup %9175  ;;  %9183 = vrcp.f32 %v4840_v32  ;;  %v4919_v53 = vmul.f32 %v9174_v12, %v13163_v60 }
0x1489   : > { %v4921_v29 = vmul.f32 %v9176_v19, %v13179_v36  ;;  %v9178_v42 = vpop.eup %9177 }
0x148a   : > { %v4946_v33 = vpack.c.bf16 %v4920_v5, %v4919_v53  ;;  %v9180_v43 = vpop.eup %9179  ;;  %v4924_v31 = vmul.f32 %v9178_v42, %v13186_v10 }
0x148b   : > { %v4834_v27 = vpop.xlane.xlu1 %4833  ;;  %v4947_v3 = vpack.c.bf16 %v4922_v25, %v4921_v29  ;;  %v4923_v2 = vmul.f32 %v9180_v43, %v13170_v50 }
0x148c   : > { %9185 = vrcp.f32 %v4834_v27 }
0x148d   : > { %9187 = vrcp.f32 %v4837_v47  ;;  %v4948_v58 = vpack.c.bf16 %v4924_v31, %v4923_v2  ;;  %v5266_v2 = vld [vmem:[%s15050_s2 + $0x4a0] sm:$0xff] }
0x148e   : > { %v9182_v28 = vpop.eup %9181 }
0x148f   : > { %v4849_v22 = vpop.xlane.xlu1 %4848  ;;  %8551 = vmatmul.mubr.msk.bf16.gmra.mrb[176].mxu0 %vm1434_vm2, %v4946_v33  ;;  %v4925_v62 = vmul.f32 %v9182_v28, %v13207_v55 }
0x1490   : > { %8554 = vmatprep.mubr.msk.bf16.mxu0 %vm1434_vm2, %v4947_v3  ;;  %9189 = vrcp.f32 %v4849_v22 }
0x1492   : > { %v9184_v60 = vpop.eup %9183 }
0x1493   : > { %v4852_v39 = vpop.xlane.xlu1 %4851  ;;  %v4928_v13 = vmul.f32 %v9184_v60, %v13212_v9 }
0x1494   : > { %9191 = vrcp.f32 %v4852_v39 }
0x1496   : > { %v9186_v20 = vpop.eup %9185 }
0x1497   : > { %v4846_v36 = vpop.xlane.xlu1 %4845  ;;  %8555 = vmatmul.mubr.msk.bf16.gmra.mrb[180].mxu0 %vm1434_vm2, %v4948_v58  ;;  %v4926_v35 = vmul.f32 %v9186_v20, %v13217_v8  ;;  %v9188_v30 = vpop.eup %9187 }
0x1498   : > { %v4927_v50 = vmul.f32 %v9188_v30, %v13202_v44  ;;  %9193 = vrcp.f32 %v4846_v36 }
0x1499   : > { %v4949_v24 = vpack.c.bf16 %v4926_v35, %v4925_v62 }
0x149a   : > { %v4950_v10 = vpack.c.bf16 %v4928_v13, %v4927_v50  ;;  %v9190_v16 = vpop.eup %9189  ;;  %v9573_v50 = vld [vmem:[%s15050_s2 + $0x190] sm:$0xff] }
0x149b   : > { %v4861_v47 = vpop.xlane.xlu1 %4860  ;;  %8558 = vmatprep.mubr.msk.bf16.mxu0 %vm1434_vm2, %v4949_v24  ;;  %v4931_v52 = vmul.f32 %v9190_v16, %v13222_v18 }
0x149e   : > { %v9192_v9 = vpop.eup %9191 }
0x149f   : > { %8559 = vmatmul.mubr.msk.bf16.gmra.mrb[184].mxu0 %vm1434_vm2, %v4950_v10  ;;  %v4855_v14 = vpop.xlane.xlu1 %4854  ;;  %v4932_v41 = vmul.f32 %v9192_v9, %v13229_v59  ;;  %v9576_v9 = vld [vmem:[%s15050_s2 + $0x1d0] sm:$0xff] }
0x14a1   : > { %v4952_v19 = vpack.c.bf16 %v4932_v41, %v4931_v52  ;;  %v9578_v41 = vld [vmem:[%s15050_s2 + $0x1c0] sm:$0xff] }
0x14a2   : > { %v9194_v48 = vpop.eup %9193 }
0x14a3   : > { %v4858_v23 = vpop.xlane.xlu1 %4857  ;;  %v4930_v15 = vmul.f32 %v9194_v48, %v13234_v37 }
0x14a4   : > { %9195 = vrcp.f32 %v4858_v23 }
0x14a5   : > { %9197 = vrcp.f32 %v4855_v14  ;;  %v9574_v14 = vld [vmem:[%s15050_s2 + $0x180] sm:$0xff] }
0x14a7   : > { %v4864_v8 = vpop.xlane.xlu1 %4863 }
0x14ab   : > { %v4843_v55 = vpop.xlane.xlu0 %4842 }
0x14ac   : > { %9199 = vrcp.f32 %v4843_v55 }
0x14ad   : > { %9201 = vrcp.f32 %v4864_v8  ;;  %v9575_v8 = vld [vmem:[%s15050_s2 + $0x198] sm:$0xff] }
0x14ae   : > { %9203 = vrcp.f32 %v4861_v47  ;;  %v9196_v4 = vpop.eup %9195 }
0x14af   : > { %v9198_v44 = vpop.eup %9197  ;;  %v4934_v56 = vmul.f32 %v9196_v4, %v13248_v61 }
0x14b0   : > { %v4933_v12 = vmul.f32 %v9198_v44, %v13244_v26  ;;  %v9577_v44 = vld [vmem:[%s15050_s2 + $0x188] sm:$0xff] }
0x14b2   : > { %v4953_v25 = vpack.c.bf16 %v4934_v56, %v4933_v12 }
0x14b6   : > { %v9200_v51 = vpop.eup %9199 }
0x14b7   : > { %v4929_v11 = vmul.f32 %v9200_v51, %v13256_v1  ;;  %v9202_v5 = vpop.eup %9201 }
0x14b8   : > { %v9204_v27 = vpop.eup %9203  ;;  %v4936_v59 = vmul.f32 %v9202_v5, %v13252_v0 }
0x14b9   : > { %v4951_v32 = vpack.c.bf16 %v4930_v15, %v4929_v11  ;;  %v4935_v37 = vmul.f32 %v9204_v27, %v13240_v63 }
0x14bb   : > { %8562 = vmatprep.mubr.msk.bf16.mxu0 %vm1434_vm2, %v4951_v32  ;;  %v4954_v61 = vpack.c.bf16 %v4936_v59, %v4935_v37  ;;  %v9579_v32 = vld [vmem:[%s15050_s2 + $0x1d8] sm:$0xff]  ;;  %v9580_v59 = vld [vmem:[%s15050_s2 + $0x1c8] sm:$0xff] }
0x14bc   : > { %8563 = vmatmul.mubr.msk.bf16.gmra.mrb[188].mxu0 %vm1434_vm2, %v4952_v19 }
0x14bd   : > { %8566 = vmatprep.mubr.msk.bf16.mxu0 %vm1434_vm2, %v4953_v25 }
0x14c3   : > { %v4867_v1 = vpop.xlane.xlu1 %4866 }
0x14c4   : > { %9205 = vrcp.f32 %v4867_v1  ;;  %8567 = vmatmul.mubr.msk.bf16.gmra.mrb[192].mxu0 %vm1434_vm2, %v4954_v61 }
0x14c5   : > { %v4870_v18 = vpop.xlane.xlu0 %4869 }
0x14c6   : > { %9207 = vrcp.f32 %v4870_v18 }
0x14c7   : > { %v4873_v26 = vpop.xlane.xlu1 %4872 }
0x14c8   : > { %9209 = vrcp.f32 %v4873_v26 }
0x14c9   : > { %v4876_v53 = vpop.xlane.xlu0 %4875 }
0x14ca   : > { %9211 = vrcp.f32 %v4876_v53 }
0x14ce   : > { %v9206_v29 = vpop.eup %9205 }
0x14cf   : > { %v4937_v42 = vmul.f32 %v9206_v29, %v13264_v21  ;;  %v5267_v21 = vld [vmem:[%s15050_s2 + $0x4a8] sm:$0xff] }
0x14d0   : > { %v9208_v33 = vpop.eup %9207 }
0x14d1   : > { %v4938_v3 = vmul.f32 %v9208_v33, %v13270_v46  ;;  %v5274_v46 = vpack.c.bf16 %v5267_v21, %v5266_v2  ;;  %v9581_v33 = vld [vmem:[%s15050_s2 + $0x1b0] sm:$0xff] }
0x14d2   : > { %v9210_v0 = vpop.eup %9209 }
0x14d3   : > { %v4955_v22 = vpack.c.bf16 %v4938_v3, %v4937_v42  ;;  %v4939_v43 = vmul.f32 %v9210_v0, %v13266_v49  ;;  %8688 = vmatprep.subr.msk.bf16.mxu1 %vm553_vm0, %v5274_v46  ;;  %v5294_v28 = vsel %vm553_vm0, %v5274_v46, 0  ;;  %v5268_v49 = vld [vmem:[%s15050_s2 + $0x4b0] sm:$0xff]  ;;  %v9582_v0 = vld [vmem:[%s15050_s2 + $0x1a0] sm:$0xff]  ;;  %v9585_v46 = vld [vmem:[%s15050_s2 + $0x1a8] sm:$0xff] }
0x14d4   : > { %v9212_v63 = vpop.eup %9211  ;;  %8575 = vmatpush3.bf16.xpose.msra.mxu1 %v5294_v28 }
0x14d5   : > { %8570 = vmatprep.mubr.msk.bf16.mxu0 %vm1434_vm2, %v4955_v22  ;;  %v4940_v31 = vmul.f32 %v9212_v63, %v13274_v45  ;;  %v5269_v45 = vld [vmem:[%s15050_s2 + $0x4b8] sm:$0xff] }
0x14d6   : > { %v5275_v60 = vpack.c.bf16 %v5269_v45, %v5268_v49  ;;  %v9586_v49 = vld [vmem:[%s15050_s2 + $0x1e0] sm:$0xff] }
0x14d7   : > { %v4956_v39 = vpack.c.bf16 %v4940_v31, %v4939_v43  ;;  %v9583_v43 = vld [vmem:[%s15050_s2 + $0x1b8] sm:$0xff] }
0x14d8   : > { %8689 = vmatprep.subr.msk.bf16.mxu1 %vm553_vm0, %v5275_v60  ;;  %v5297_v58 = vsel %vm553_vm0, %v5275_v60, 0 }
0x14d9   : > { %8571 = vmatmul.mubr.msk.bf16.gmra.mrb[196].mxu0 %vm1434_vm2, %v4956_v39  ;;  %v9584_v39 = vld [vmem:[%s15050_s2 + $0x1f0] sm:$0xff] }
0x14dc   : > { %8577 = vmatpush3.bf16.xpose.msra.mxu1 %v5297_v58 }
0x1552   : > { %v8544_v20 = vpop.f32.mrb[168].mxu0 }
0x1553   : > { %v5051_v36 = vpop.f32.mrb[169].mxu0  ;;  %v5180_v10 = vmul.f32 %v9573_v50, %v8544_v20 }
0x1554   : > { %v8545_v62 = vpop.f32.mrb[170].mxu0  ;;  %v5178_v23 = vmul.f32 %v9574_v14, %v5051_v36  ;;  %v9587_v36 = vld [vmem:[%s15050_s2 + $0x1f8] sm:$0xff] }
0x1555   : > { %v5054_v35 = vpop.f32.mrb[171].mxu0  ;;  %v5181_v16 = vmul.f32 %v9575_v8, %v8545_v62  ;;  %v5224_v56 = vsel %vm553_vm0, %v5180_v10, 0.0 }
0x1556   : > { %v5179_v51 = vmul.f32 %v9577_v44, %v5054_v35  ;;  %v5210_v5 = vsel %vm553_vm0, %v5178_v23, 0.0 }
0x1557   : > { %v5231_v61 = vsel %vm553_vm0, %v5181_v16, 0.0 }
0x1558   : > { %v5217_v26 = vsel %vm553_vm0, %v5179_v51, 0.0 }
0x155a   : > { %v8548_v30 = vpop.f32.mrb[172].mxu0 }
0x155b   : > { %v5067_v24 = vpop.f32.mrb[173].mxu0  ;;  %v5184_v42 = vmul.f32 %v9581_v33, %v8548_v30 }
0x155c   : > { %v8549_v13 = vpop.f32.mrb[174].mxu0  ;;  %v5182_v22 = vmul.f32 %v9582_v0, %v5067_v24 }
0x155d   : > { %v5070_v47 = vpop.f32.mrb[175].mxu0  ;;  %v5185_v31 = vmul.f32 %v9583_v43, %v8549_v13  ;;  %v5252_v58 = vsel %vm553_vm0, %v5184_v42, 0.0  ;;  %v9593_v42 = vld [vmem:[%s15050_s2 + $0x230] sm:$0xff] }
0x155e   : > { %v5183_v28 = vmul.f32 %v9585_v46, %v5070_v47  ;;  %v5238_v30 = vsel %vm553_vm0, %v5182_v22, 0.0  ;;  %v9588_v47 = vld [vmem:[%s15050_s2 + $0x1e8] sm:$0xff]  ;;  %v9594_v22 = vld [vmem:[%s15050_s2 + $0x220] sm:$0xff] }
0x155f   : > { %v5259_v10 = vsel %vm553_vm0, %v5185_v31, 0.0 }
0x1562   : > { %v8552_v55 = vpop.f32.mrb[176].mxu0 }
0x1563   : > { %v5188_v48 = vmul.f32 %v9576_v9, %v8552_v55  ;;  %v5083_v4 = vpop.f32.mrb[177].mxu0  ;;  %v5245_v55 = vsel %vm553_vm0, %v5183_v28, 0.0 }
0x1564   : > { %v5186_v11 = vmul.f32 %v9578_v41, %v5083_v4  ;;  %v8553_v15 = vpop.f32.mrb[178].mxu0  ;;  %v9589_v4 = vld [vmem:[%s15050_s2 + $0x210] sm:$0xff]  ;;  %v9590_v41 = vld [vmem:[%s15050_s2 + $0x200] sm:$0xff] }
0x1565   : > { %v5225_v52 = vsel %vm553_vm0, %v5188_v48, 0.0  ;;  %v5189_v12 = vmul.f32 %v9579_v32, %v8553_v15  ;;  %v5086_v19 = vpop.f32.mrb[179].mxu0 }
0x1566   : > { %v5226_v25 = vadd.f32 %v5225_v52, %v5224_v56  ;;  %v5211_v27 = vsel %vm553_vm0, %v5186_v11, 0.0  ;;  %v5187_v37 = vmul.f32 %v9580_v59, %v5086_v19  ;;  %v9591_v52 = vld [vmem:[%s15050_s2 + $0x218] sm:$0xff] }
0x1567   : > { %v5212_v1 = vadd.f32 %v5211_v27, %v5210_v5  ;;  %v5232_v18 = vsel %vm553_vm0, %v5189_v12, 0.0  ;;  %v9592_v27 = vld [vmem:[%s15050_s2 + $0x208] sm:$0xff] }
0x1568   : > { %v5233_v53 = vadd.f32 %v5232_v18, %v5231_v61  ;;  %v5218_v29 = vsel %vm553_vm0, %v5187_v37, 0.0 }
0x1569   : > { %v5219_v3 = vadd.f32 %v5218_v29, %v5217_v26 }
0x156a   : > { %v8556_v63 = vpop.f32.mrb[180].mxu0 }
0x156b   : > { %v5192_v2 = vmul.f32 %v9584_v39, %v8556_v63  ;;  %v5099_v21 = vpop.f32.mrb[181].mxu0 }
0x156c   : > { %v5190_v45 = vmul.f32 %v9586_v49, %v5099_v21  ;;  %v8557_v60 = vpop.f32.mrb[182].mxu0  ;;  %v9596_v21 = vld [vmem:[%s15050_s2 + $0x228] sm:$0xff] }
0x156d   : > { %v5253_v20 = vsel %vm553_vm0, %v5192_v2, 0.0  ;;  %v5193_v62 = vmul.f32 %v9587_v36, %v8557_v60  ;;  %v5102_v35 = vpop.f32.mrb[183].mxu0  ;;  %v9597_v36 = vld [vmem:[%s15050_s2 + $0x250] sm:$0xff] }
0x156e   : > { %v5254_v24 = vadd.f32 %v5253_v20, %v5252_v58  ;;  %v5239_v13 = vsel %vm553_vm0, %v5190_v45, 0.0  ;;  %v5191_v50 = vmul.f32 %v9588_v47, %v5102_v35 }
0x156f   : > { %v5240_v14 = vadd.f32 %v5239_v13, %v5238_v30  ;;  %v5260_v23 = vsel %vm553_vm0, %v5193_v62, 0.0  ;;  %v9598_v30 = vld [vmem:[%s15050_s2 + $0x240] sm:$0xff] }
0x1570   : > { %v5261_v8 = vadd.f32 %v5260_v23, %v5259_v10  ;;  %v5246_v16 = vsel %vm553_vm0, %v5191_v50, 0.0  ;;  %v9599_v50 = vld [vmem:[%s15050_s2 + $0x258] sm:$0xff] }
0x1571   : > { %v5247_v9 = vadd.f32 %v5246_v16, %v5245_v55 }
0x1572   : > { %v8560_v48 = vpop.f32.mrb[184].mxu0 }
0x1573   : > { %v5196_v44 = vmul.f32 %v9589_v4, %v8560_v48  ;;  %v5115_v51 = vpop.f32.mrb[185].mxu0 }
0x1574   : > { %v5194_v11 = vmul.f32 %v9590_v41, %v5115_v51  ;;  %v8561_v15 = vpop.f32.mrb[186].mxu0 }
0x1575   : > { %v5227_v56 = vsel %vm553_vm0, %v5196_v44, 0.0  ;;  %v5197_v32 = vmul.f32 %v9591_v52, %v8561_v15  ;;  %v5118_v12 = vpop.f32.mrb[187].mxu0 }
0x1576   : > { %v5228_v19 = vadd.f32 %v5227_v56, %v5226_v25  ;;  %v5213_v5 = vsel %vm553_vm0, %v5194_v11, 0.0  ;;  %v5195_v59 = vmul.f32 %v9592_v27, %v5118_v12  ;;  %v9601_v56 = vld [vmem:[%s15050_s2 + $0x270] sm:$0xff]  ;;  %v9602_v12 = vld [vmem:[%s15050_s2 + $0x260] sm:$0xff] }
0x1577   : > { %v5214_v37 = vadd.f32 %v5213_v5, %v5212_v1  ;;  %v5234_v61 = vsel %vm553_vm0, %v5197_v32, 0.0 }
0x1578   : > { %v5235_v18 = vadd.f32 %v5234_v61, %v5233_v53  ;;  %v5220_v26 = vsel %vm553_vm0, %v5195_v59, 0.0  ;;  %v9595_v53 = vld [vmem:[%s15050_s2 + $0x238] sm:$0xff] }
0x1579   : > { %v5221_v29 = vadd.f32 %v5220_v26, %v5219_v3  ;;  %v9603_v59 = vld [vmem:[%s15050_s2 + $0x278] sm:$0xff] }
0x158f   : > { %v8564_v33 = vpop.f32.mrb[188].mxu0 }
0x1590   : > { %v5200_v25 = vmul.f32 %v9593_v42, %v8564_v33  ;;  %v5131_v0 = vpop.f32.mrb[189].mxu0 }
0x1591   : > { %v5198_v63 = vmul.f32 %v9594_v22, %v5131_v0  ;;  %v8565_v43 = vpop.f32.mrb[190].mxu0 }
0x1592   : > { %v5255_v1 = vsel %vm553_vm0, %v5200_v25, 0.0  ;;  %v5201_v3 = vmul.f32 %v9595_v53, %v8565_v43  ;;  %v5134_v31 = vpop.f32.mrb[191].mxu0  ;;  %v7647_v53 = vld [vmem:[%s15052_s4 + $0xa] ss:$0 sm:$0xff] }
0x1593   : > { %v5256_v39 = vadd.f32 %v5255_v1, %v5254_v24  ;;  %v5241_v2 = vsel %vm553_vm0, %v5198_v63, 0.0  ;;  %v5199_v46 = vmul.f32 %v9596_v21, %v5134_v31 }
0x1594   : > { %v5242_v28 = vadd.f32 %v5241_v2, %v5240_v14  ;;  %v5262_v49 = vsel %vm553_vm0, %v5201_v3, 0.0 }
0x1595   : > { %v5263_v45 = vadd.f32 %v5262_v49, %v5261_v8  ;;  %v5248_v60 = vsel %vm553_vm0, %v5199_v46, 0.0  ;;  %v9600_v8 = vld [vmem:[%s15050_s2 + $0x248] sm:$0xff] }
0x1596   : > { %v5249_v58 = vadd.f32 %v5248_v60, %v5247_v9 }
0x1597   : > { %v8568_v20 = vpop.f32.mrb[192].mxu0 }
0x1598   : > { %v5204_v62 = vmul.f32 %v9597_v36, %v8568_v20  ;;  %v5147_v35 = vpop.f32.mrb[193].mxu0 }
0x1599   : > { %v5202_v24 = vmul.f32 %v9598_v30, %v5147_v35  ;;  %v8569_v13 = vpop.f32.mrb[194].mxu0 }
0x159a   : > { %v5229_v47 = vsel %vm553_vm0, %v5204_v62, 0.0  ;;  %v5205_v10 = vmul.f32 %v9599_v50, %v8569_v13  ;;  %v5150_v14 = vpop.f32.mrb[195].mxu0 }
0x159b   : > { %v5230_v23 = vadd.f32 %v5229_v47, %v5228_v19  ;;  %v5215_v55 = vsel %vm553_vm0, %v5202_v24, 0.0  ;;  %v5203_v16 = vmul.f32 %v9600_v8, %v5150_v14 }
0x159c   : > { %v5216_v9 = vadd.f32 %v5215_v55, %v5214_v37  ;;  %v5236_v48 = vsel %vm553_vm0, %v5205_v10, 0.0 }
0x159d   : > { %v5237_v4 = vadd.f32 %v5236_v48, %v5235_v18  ;;  %v5222_v44 = vsel %vm553_vm0, %v5203_v16, 0.0 }
0x159e   : > { %v5223_v51 = vadd.f32 %v5222_v44, %v5221_v29  ;;  %v9604_v29 = vld [vmem:[%s15050_s2 + $0x268] sm:$0xff] }
0x159f   : > { %v5271_v41 = vpack.c.bf16 %v5237_v4, %v5230_v23 }
0x15a0   : > { %v5270_v11 = vpack.c.bf16 %v5223_v51, %v5216_v9 }
0x15a2   : > { %8578 = vmatprep.mubr.msk.bf16.mxu1 %vm553_vm0, %v5270_v11 }
0x15a3   : > { %8579 = vmatmul.mubr.msk.bf16.vlgmr.msra.gmra.mrb[176].mxu1 %vm553_vm0, %v5271_v41 }
0x15ac   : > { %v8572_v15 = vpop.f32.mrb[196].mxu0 }
0x15ad   : > { %v5208_v52 = vmul.f32 %v9601_v56, %v8572_v15  ;;  %v5163_v32 = vpop.f32.mrb[197].mxu0 }
0x15ae   : > { %v5206_v19 = vmul.f32 %v9602_v12, %v5163_v32  ;;  %v8573_v5 = vpop.f32.mrb[198].mxu0 }
0x15af   : > { %v5257_v27 = vsel %vm553_vm0, %v5208_v52, 0.0  ;;  %v5209_v37 = vmul.f32 %v9603_v59, %v8573_v5  ;;  %v5166_v61 = vpop.f32.mrb[199].mxu0 }
0x15b0   : > { %v5258_v18 = vadd.f32 %v5257_v27, %v5256_v39  ;;  %v5243_v26 = vsel %vm553_vm0, %v5206_v19, 0.0  ;;  %v5207_v33 = vmul.f32 %v9604_v29, %v5166_v61 }
0x15b1   : > { %v5244_v42 = vadd.f32 %v5243_v26, %v5242_v28  ;;  %v5264_v25 = vsel %vm553_vm0, %v5209_v37, 0.0 }
0x15b2   : > { %v5265_v0 = vadd.f32 %v5264_v25, %v5263_v45  ;;  %v5250_v22 = vsel %vm553_vm0, %v5207_v33, 0.0 }
0x15b3   : > { %v5251_v63 = vadd.f32 %v5250_v22, %v5249_v58 }
0x15b4   : > { %v5273_v43 = vpack.c.bf16 %v5265_v0, %v5258_v18 }
0x15b5   : > { %v5272_v1 = vpack.c.bf16 %v5251_v63, %v5244_v42 }
0x15b7   : > { %8582 = vmatprep.mubr.msk.bf16.mxu1 %vm553_vm0, %v5272_v1 }
0x15b8   : > { %8583 = vmatmul.mubr.msk.bf16.gmra.mrb[180].mxu1 %vm553_vm0, %v5273_v43 }
0x1676   : > { %v8580_v3 = vpop.f32.mrb[176].mxu1 }
0x1677   : > { %v5333_v31 = vpop.f32.mrb[177].mxu1  ;;  %v5342_v39 = vadd.f32 %v8580_v3, %v7647_v53 }
0x1678   : > { %v5334_v2 = vadd.f32 %v7647_v53, %v5333_v31  ;;  %v8581_v21 = vpop.f32.mrb[178].mxu1 }
0x1679   : > { %v5336_v46 = vpop.f32.mrb[179].mxu1  ;;  %v5345_v49 = vadd.f32 %v8581_v21, %v7647_v53  ;;  %v5366_v60 = vadd.f32 %v5342_v39, %v12662_v34 }
0x167a   : > { %v5364_v28 = vadd.f32 %v5334_v2, %v12657_v57  ;;  %v5337_v45 = vadd.f32 %v7647_v53, %v5336_v46 }
0x167b   : > { %v5367_v36 = vadd.f32 %v5345_v49, %v12672_v17  ;;  %v5380_v35 = vsel %vm553_vm0, %v5366_v60, 0.0 }
0x167c   : > { %v5365_v58 = vadd.f32 %v5337_v45, %v12660_v40  ;;  %v5374_v20 = vsel %vm553_vm0, %v5364_v28, 0.0  ;;  %v5510_v45 = vld [vmem:[%s15050_s2 + $0x4c0] sm:$0xff] }
0x167d   : > { %5375 = vadd.xlane.f32.xlu1 %v5374_v20  ;;  %v5383_v30 = vsel %vm553_vm0, %v5367_v36, 0.0 }
0x167e   : > { %v5377_v62 = vsel %vm553_vm0, %v5365_v58, 0.0 }
0x167f   : > { %5378 = vadd.xlane.f32.xlu0 %v5377_v62  ;;  %v5513_v62 = vld [vmem:[%s15050_s2 + $0x4d8] sm:$0xff] }
0x1681   : > { %5381 = vadd.xlane.f32.xlu1 %v5380_v35 }
0x1683   : > { %5384 = vadd.xlane.f32.xlu0 %v5383_v30  ;;  %v15298_v30 = vld [vmem:[#allocation3_spill] sm:$0xff] }
0x168b   : > { %v8584_v57 = vpop.f32.mrb[180].mxu1 }
0x168c   : > { %v5349_v24 = vpop.f32.mrb[181].mxu1  ;;  %v5358_v13 = vadd.f32 %v8584_v57, %v7647_v53 }
0x168d   : > { %v5350_v34 = vadd.f32 %v7647_v53, %v5349_v24  ;;  %v8585_v47 = vpop.f32.mrb[182].mxu1  ;;  %v15299_v24 = vld [vmem:[#allocation2_spill] sm:$0xff] }
0x168e   : > { %v5352_v40 = vpop.f32.mrb[183].mxu1  ;;  %v5361_v10 = vadd.f32 %v8585_v47, %v7647_v53  ;;  %v5370_v17 = vadd.f32 %v5358_v13, %v12700_v7  ;;  %v15300_v13 = vld [vmem:[#allocation11_spill] sm:$0xff]  ;;  %v15302_v47 = vld [vmem:[#allocation5_spill] sm:$0xff] }
0x168f   : > { %v5368_v50 = vadd.f32 %v5350_v34, %v12687_v38  ;;  %v5353_v14 = vadd.f32 %v7647_v53, %v5352_v40  ;;  %v15301_v34 = vld [vmem:[#allocation10_spill] sm:$0xff]  ;;  %v15303_v40 = vld [vmem:[#allocation13_spill] sm:$0xff] }
0x1690   : > { %v5371_v8 = vadd.f32 %v5361_v10, %v12702_v54  ;;  %v5392_v9 = vsel %vm553_vm0, %v5370_v17, 0.0  ;;  %v15305_v10 = vld [vmem:[#allocation12_spill] sm:$0xff] }
0x1691   : > { %v5369_v23 = vadd.f32 %v5353_v14, %v12690_v6  ;;  %v5386_v55 = vsel %vm553_vm0, %v5368_v50, 0.0  ;;  %v15306_v14 = vld [vmem:[#allocation7_spill] sm:$0xff] }
0x1692   : > { %5387 = vadd.xlane.f32.xlu1 %v5386_v55  ;;  %v5395_v48 = vsel %vm553_vm0, %v5371_v8, 0.0  ;;  %v15309_v55 = vld [vmem:[#allocation14_spill] sm:$0xff] }
0x1693   : > { %v5389_v16 = vsel %vm553_vm0, %v5369_v23, 0.0 }
0x1694   : > { %5390 = vadd.xlane.f32.xlu0 %v5389_v16  ;;  %v15311_v16 = vld [vmem:[#allocation17_spill] sm:$0xff] }
0x1696   : > { %5393 = vadd.xlane.f32.xlu1 %v5392_v9  ;;  %v15312_v9 = vld [vmem:[#allocation8_spill] sm:$0xff] }
0x1698   : > { %5396 = vadd.xlane.f32.xlu0 %v5395_v48  ;;  %v15313_v48 = vld [vmem:[#allocation16_spill] sm:$0xff] }
0x170a   : > { %v5376_v38 = vpop.xlane.xlu1 %5375 }
0x170b   : > { %v5398_v4 = vmul.f32 0.03125, %v5376_v38  ;;  %v15314_v38 = vld [vmem:[#allocation19_spill] sm:$0xff] }
0x170c   : > { %v5379_v44 = vpop.xlane.xlu0 %5378 }
0x170d   : > { %v13495_v7 = vsub.f32 %v5364_v28, %v5398_v4  ;;  %v5399_v6 = vmul.f32 0.03125, %v5379_v44  ;;  %v15315_v4 = vld [vmem:[#allocation27_spill] sm:$0xff]  ;;  %v15316_v44 = vld [vmem:[#allocation18_spill] sm:$0xff] }
0x170e   : > { %v5382_v51 = vpop.xlane.xlu1 %5381 }
0x170f   : > { %v13497_v41 = vsub.f32 %v5365_v58, %v5399_v6  ;;  %v5400_v11 = vmul.f32 0.03125, %v5382_v51  ;;  %v5414_v54 = vmul.f32 %v13495_v7, %v13495_v7  ;;  %v15317_v6 = vld [vmem:[#allocation26_spill] sm:$0xff]  ;;  %v15318_v51 = vld [vmem:[#allocation28_spill] sm:$0xff] }
0x1710   : > { %v5385_v15 = vpop.xlane.xlu0 %5384 }
0x1711   : > { %v13501_v56 = vsub.f32 %v5366_v60, %v5400_v11  ;;  %v5401_v52 = vmul.f32 0.03125, %v5385_v15  ;;  %v5422_v32 = vsel %vm553_vm0, %v5414_v54, 0.0  ;;  %v5415_v12 = vmul.f32 %v13497_v41, %v13497_v41  ;;  %v5511_v60 = vld [vmem:[%s15050_s2 + $0x4c8] sm:$0xff]  ;;  %v15319_v11 = vld [vmem:[#allocation29_spill] sm:$0xff]  ;;  %v15320_v54 = vld [vmem:[#allocation30_spill] sm:$0xff] }
0x1712   : > { %5423 = vadd.xlane.f32.xlu1 %v5422_v32  ;;  %v5518_v58 = vpack.c.bf16 %v5511_v60, %v5510_v45  ;;  %v15321_v15 = vld [vmem:[#allocation21_spill] sm:$0xff]  ;;  %v15323_v32 = vld [vmem:[#allocation31_spill] sm:$0xff] }
0x1713   : > { %v13506_v19 = vsub.f32 %v5367_v36, %v5401_v52  ;;  %v5425_v5 = vsel %vm553_vm0, %v5415_v12, 0.0  ;;  %v5416_v27 = vmul.f32 %v13501_v56, %v13501_v56  ;;  %v5512_v36 = vld [vmem:[%s15050_s2 + $0x4d0] sm:$0xff]  ;;  %v15324_v12 = vld [vmem:[#allocation23_spill] sm:$0xff] }
0x1714   : > { %5426 = vadd.xlane.f32.xlu0 %v5425_v5  ;;  %8690 = vmatprep.subr.msk.bf16.mxu1 %vm553_vm0, %v5518_v58  ;;  %v5533_v20 = vsel %vm553_vm0, %v5518_v58, 0  ;;  %v5519_v35 = vpack.c.bf16 %v5513_v62, %v5512_v36  ;;  %v15322_v52 = vld [vmem:[#allocation20_spill] sm:$0xff]  ;;  %v15325_v5 = vld [vmem:[#allocation22_spill] sm:$0xff] }
0x1715   : > { %v5428_v59 = vsel %vm553_vm0, %v5416_v27, 0.0  ;;  %v5417_v37 = vmul.f32 %v13506_v19, %v13506_v19  ;;  %8587 = vmatpush3.bf16.xpose.msra.mxu1 %v5533_v20  ;;  %v15326_v27 = vld [vmem:[#allocation33_spill] sm:$0xff] }
0x1716   : > { %5429 = vadd.xlane.f32.xlu1 %v5428_v59  ;;  %8691 = vmatprep.subr.msk.bf16.mxu1 %vm553_vm0, %v5519_v35  ;;  %v5536_v57 = vsel %vm553_vm0, %v5519_v35, 0 }
0x1717   : > { %v5431_v61 = vsel %vm553_vm0, %v5417_v37, 0.0 }
0x1718   : > { %5432 = vadd.xlane.f32.xlu0 %v5431_v61 }
0x171d   : > { %8589 = vmatpush3.bf16.xpose.msra.mxu1 %v5536_v57 }
0x171f   : > { %v5388_v18 = vpop.xlane.xlu1 %5387 }
0x1720   : > { %v5402_v26 = vmul.f32 0.03125, %v5388_v18 }
0x1721   : > { %v5391_v29 = vpop.xlane.xlu0 %5390 }
0x1722   : > { %v13515_v33 = vsub.f32 %v5368_v50, %v5402_v26  ;;  %v5403_v42 = vmul.f32 0.03125, %v5391_v29  ;;  %v15304_v50 = vld [vmem:[#allocation4_spill] sm:$0xff] }
0x1723   : > { %v5394_v25 = vpop.xlane.xlu1 %5393 }
0x1724   : > { %v13517_v0 = vsub.f32 %v5369_v23, %v5403_v42  ;;  %v5404_v22 = vmul.f32 0.03125, %v5394_v25  ;;  %v5418_v63 = vmul.f32 %v13515_v33, %v13515_v33  ;;  %v15308_v23 = vld [vmem:[#allocation6_spill] sm:$0xff] }
0x1725   : > { %v5397_v43 = vpop.xlane.xlu0 %5396 }
0x1726   : > { %v13521_v1 = vsub.f32 %v5370_v17, %v5404_v22  ;;  %v5405_v53 = vmul.f32 0.03125, %v5397_v43  ;;  %v5434_v3 = vsel %vm553_vm0, %v5418_v63, 0.0  ;;  %v5419_v31 = vmul.f32 %v13517_v0, %v13517_v0  ;;  %v15307_v17 = vld [vmem:[#allocation15_spill] sm:$0xff] }
0x1727   : > { %5435 = vadd.xlane.f32.xlu1 %v5434_v3 }
0x1728   : > { %v13526_v39 = vsub.f32 %v5371_v8, %v5405_v53  ;;  %v5437_v2 = vsel %vm553_vm0, %v5419_v31, 0.0  ;;  %v5420_v21 = vmul.f32 %v13521_v1, %v13521_v1  ;;  %v15310_v8 = vld [vmem:[#allocation9_spill] sm:$0xff]  ;;  %v13612_v31 = vld [vmem:[%s15052_s4 + $0xb] ss:$0 sm:$0xff] }
0x1729   : > { %5438 = vadd.xlane.f32.xlu0 %v5437_v2 }
0x172a   : > { %v5440_v46 = vsel %vm553_vm0, %v5420_v21, 0.0  ;;  %v5421_v28 = vmul.f32 %v13526_v39, %v13526_v39 }
0x172b   : > { %5441 = vadd.xlane.f32.xlu1 %v5440_v46 }
0x172c   : > { %v5443_v49 = vsel %vm553_vm0, %v5421_v28, 0.0  ;;  %v13619_v28 = vld [vmem:[%s15052_s4 + $0xc] ss:$0 sm:$0xff] }
0x172d   : > { %5444 = vadd.xlane.f32.xlu0 %v5443_v49 }
0x173c   : > { %5667 = vrot.lane.b32.xlu1 %v15298_v30, %s9749_s12 }
0x1740   : > { %5669 = vrot.lane.b32.xlu1 %v15299_v24, %s9749_s12 }
0x1743   : > { %5683 = vrot.lane.b32.xlu0 %v15300_v13, %s9749_s12 }
0x1744   : > { %5685 = vrot.lane.b32.xlu1 %v15301_v34, %s9749_s12 }
0x1747   : > { %5671 = vrot.lane.b32.xlu0 %v15302_v47, %s9749_s12 }
0x1748   : > { %5687 = vrot.lane.b32.xlu1 %v15303_v40, %s9749_s12  ;;  %v9605_v40 = vld [vmem:[%s15050_s2 + $0x40] sm:$0xff] }
0x174b   : > { %5673 = vrot.lane.b32.xlu0 %v15304_v50, %s9749_s12 }
0x174c   : > { %5689 = vrot.lane.b32.xlu1 %v15305_v10, %s9749_s12 }
0x174f   : > { %5675 = vrot.lane.b32.xlu0 %v15306_v14, %s9749_s12 }
0x1750   : > { %5691 = vrot.lane.b32.xlu1 %v15307_v17, %s9749_s12 }
0x1753   : > { %5677 = vrot.lane.b32.xlu0 %v15308_v23, %s9749_s12 }
0x1754   : > { %5693 = vrot.lane.b32.xlu1 %v15309_v55, %s9749_s12 }
0x1757   : > { %5679 = vrot.lane.b32.xlu0 %v15310_v8, %s9749_s12 }
0x1758   : > { %5695 = vrot.lane.b32.xlu1 %v15311_v16, %s9749_s12  ;;  %v9607_v16 = vld [vmem:[%s15050_s2 + $0x50] sm:$0xff] }
0x175b   : > { %5681 = vrot.lane.b32.xlu0 %v15312_v9, %s9749_s12 }
0x175c   : > { %5697 = vrot.lane.b32.xlu1 %v15313_v48, %s9749_s12 }
0x175f   : > { %6516 = vrot.lane.b32.xlu0 %v15314_v38, %s9749_s12 }
0x1760   : > { %6532 = vrot.lane.b32.xlu1 %v15315_v4, %s9749_s12  ;;  %v9608_v4 = vld [vmem:[%s15050_s2 + $0x58] sm:$0xff] }
0x1763   : > { %6518 = vrot.lane.b32.xlu0 %v15316_v44, %s9749_s12 }
0x1764   : > { %6534 = vrot.lane.b32.xlu1 %v15317_v6, %s9749_s12 }
0x1767   : > { %6538 = vrot.lane.b32.xlu0 %v15318_v51, %s9749_s12 }
0x1768   : > { %6536 = vrot.lane.b32.xlu1 %v15319_v11, %s9749_s12 }
0x176b   : > { %6542 = vrot.lane.b32.xlu0 %v15320_v54, %s9749_s12 }
0x176c   : > { %6520 = vrot.lane.b32.xlu1 %v15321_v15, %s9749_s12 }
0x1770   : > { %6522 = vrot.lane.b32.xlu1 %v15322_v52, %s9749_s12 }
0x1774   : > { %6540 = vrot.lane.b32.xlu1 %v15323_v32, %s9749_s12 }
0x1778   : > { %6524 = vrot.lane.b32.xlu1 %v15324_v12, %s9749_s12 }
0x177c   : > { %6526 = vrot.lane.b32.xlu1 %v15325_v5, %s9749_s12 }
0x1780   : > { %6544 = vrot.lane.b32.xlu1 %v15326_v27, %s9749_s12 }
0x179f   : > { %v5424_v59 = vpop.xlane.xlu1 %5423 }
0x17a0   : > { %v5446_v37 = vmul.f32 0.03125, %v5424_v59 }
0x17a1   : > { %v5427_v61 = vpop.xlane.xlu0 %5426 }
0x17a2   : > { %v5454_v18 = vadd.f32 1e-05, %v5446_v37  ;;  %v5447_v26 = vmul.f32 0.03125, %v5427_v61 }
0x17a3   : > { %v5430_v29 = vpop.xlane.xlu1 %5429 }
0x17a4   : > { %9213 = vrsqrt.f32 %v5454_v18  ;;  %v5455_v42 = vadd.f32 1e-05, %v5447_v26  ;;  %v5448_v25 = vmul.f32 0.03125, %v5430_v29 }
0x17a5   : > { %v5433_v22 = vpop.xlane.xlu0 %5432 }
0x17a6   : > { %9215 = vrsqrt.f32 %v5455_v42  ;;  %v5456_v63 = vadd.f32 1e-05, %v5448_v25  ;;  %v5449_v43 = vmul.f32 0.03125, %v5433_v22 }
0x17a8   : > { %9217 = vrsqrt.f32 %v5456_v63  ;;  %v5457_v53 = vadd.f32 1e-05, %v5449_v43 }
0x17aa   : > { %9219 = vrsqrt.f32 %v5457_v53 }
0x17ae   : > { %v9214_v3 = vpop.eup %9213 }
0x17af   : > { %v5470_v2 = vmul.f32 %v9214_v3, %v13495_v7 }
0x17b0   : > { %v9216_v21 = vpop.eup %9215 }
0x17b1   : > { %v5471_v46 = vmul.f32 %v9216_v21, %v13497_v41  ;;  %v5482_v49 = vmul.f32 %v13612_v31, %v5470_v2 }
0x17b2   : > { %v9218_v45 = vpop.eup %9217 }
0x17b3   : > { %v5472_v60 = vmul.f32 %v9218_v45, %v13501_v56  ;;  %v5483_v58 = vmul.f32 %v13612_v31, %v5471_v46  ;;  %v13625_v62 = vadd.f32 %v13619_v28, %v5482_v49  ;;  %v9610_v46 = vld [vmem:[%s15050_s2 + $0x68] sm:$0xff] }
0x17b4   : > { %v9220_v20 = vpop.eup %9219  ;;  %v5436_v36 = vpop.xlane.xlu1 %5435 }
0x17b5   : > { %15327 = vst [vmem:[#allocation44_spill] sm:$0xff] %v13625_v62  ;;  %v5484_v7 = vmul.f32 %v13612_v31, %v5472_v60  ;;  %v5473_v41 = vmul.f32 %v9220_v20, %v13506_v19  ;;  %v5450_v35 = vmul.f32 0.03125, %v5436_v36  ;;  %v13630_v30 = vadd.f32 %v13619_v28, %v5483_v58  ;;  %v9606_v19 = vld [vmem:[%s15050_s2 + $0x48] sm:$0xff] }
0x17b6   : > { %v5439_v57 = vpop.xlane.xlu0 %5438  ;;  %v5502_v50 = vadd.f32 %v9605_v40, %v13625_v62 }
0x17b7   : > { %15328 = vst [vmem:[#allocation56_spill] sm:$0xff] %v13630_v30  ;;  %v13633_v24 = vadd.f32 %v13619_v28, %v5484_v7  ;;  %v5485_v56 = vmul.f32 %v13612_v31, %v5473_v41  ;;  %v5458_v13 = vadd.f32 1e-05, %v5450_v35  ;;  %v5451_v34 = vmul.f32 0.03125, %v5439_v57  ;;  %v9611_v41 = vld [vmem:[%s15050_s2 + $0x70] sm:$0xff]  ;;  %v9612_v35 = vld [vmem:[%s15050_s2 + $0x78] sm:$0xff] }
0x17b8   : > { %v5442_v47 = vpop.xlane.xlu1 %5441  ;;  %v5503_v10 = vadd.f32 %v9606_v19, %v13630_v30 }
0x17b9   : > { %15329 = vst [vmem:[#allocation43_spill] sm:$0xff] %v13633_v24  ;;  %v13645_v14 = vadd.f32 %v13619_v28, %v5485_v56  ;;  %9221 = vrsqrt.f32 %v5458_v13  ;;  %v5459_v17 = vadd.f32 1e-05, %v5451_v34  ;;  %v5452_v23 = vmul.f32 0.03125, %v5442_v47 }
0x17ba   : > { %v5445_v55 = vpop.xlane.xlu0 %5444  ;;  %v5514_v8 = vpack.c.bf16 %v5503_v10, %v5502_v50  ;;  %v5504_v9 = vadd.f32 %v9607_v16, %v13633_v24 }
0x17bb   : > { %15330 = vst [vmem:[#allocation46_spill] sm:$0xff] %v13645_v14  ;;  %9223 = vrsqrt.f32 %v5459_v17  ;;  %v5460_v48 = vadd.f32 1e-05, %v5452_v23  ;;  %v5453_v38 = vmul.f32 0.03125, %v5445_v55  ;;  %v5505_v44 = vadd.f32 %v9608_v4, %v13645_v14  ;;  %v9698_v14 = vld [vmem:[%s15053_s5 + $0x1a8] sm:$0xff] }
0x17bc   : > { %8590 = vmatprep.mubr.msk.bf16.mxu1 %vm553_vm0, %v5514_v8  ;;  %v5668_v6 = vpop.permute.xlu1 %5667 }
0x17bd   : > { %9225 = vrsqrt.f32 %v5460_v48  ;;  %v5461_v51 = vadd.f32 1e-05, %v5453_v38  ;;  %v5515_v11 = vpack.c.bf16 %v5505_v44, %v5504_v9  ;;  %v5748_v15 = vsel %vm553_vm0, %v5668_v6, 0 }
0x17be   : > { %v5684_v54 = vpop.permute.xlu0 %5683 }
0x17bf   : > { %9227 = vrsqrt.f32 %v5461_v51  ;;  %8591 = vmatmul.mubr.msk.bf16.vlgmr.msra.gmra.mrb[184].mxu1 %vm553_vm0, %v5515_v11  ;;  %8692 = vmatprep.subr.msk.bf16.mxu0 %vm553_vm0, %v5684_v54 }
0x17c0   : > { %v5670_v52 = vpop.permute.xlu1 %5669  ;;  %8045 = vmatpush3.bf16.xpose.msra.mxu0 %v5748_v15 }
0x17c1   : > { %v5751_v29 = vsel %vm553_vm0, %v5670_v52, 0 }
0x17c2   : > { %v5672_v32 = vpop.permute.xlu0 %5671 }
0x17c3   : > { %v9222_v12 = vpop.eup %9221  ;;  %v5754_v36 = vsel %vm553_vm0, %v5672_v32, 0  ;;  %v9613_v32 = vld [vmem:[%s15050_s2 + $0x90] sm:$0xff] }
0x17c4   : > { %v5474_v5 = vmul.f32 %v9222_v12, %v13515_v33  ;;  %v5686_v27 = vpop.permute.xlu1 %5685 }
0x17c5   : > { %v9224_v59 = vpop.eup %9223  ;;  %8693 = vmatprep.subr.msk.bf16.mxu0 %vm553_vm0, %v5686_v27 }
0x17c6   : > { %v5475_v37 = vmul.f32 %v9224_v59, %v13517_v0  ;;  %v5674_v61 = vpop.permute.xlu0 %5673  ;;  %v5486_v18 = vmul.f32 %v13612_v31, %v5474_v5  ;;  %v9614_v5 = vld [vmem:[%s15050_s2 + $0xd0] sm:$0xff] }
0x17c7   : > { %v9226_v26 = vpop.eup %9225  ;;  %v5757_v34 = vsel %vm553_vm0, %v5674_v61, 0  ;;  %v9615_v59 = vld [vmem:[%s15050_s2 + $0x110] sm:$0xff] }
0x17c8   : > { %v5476_v42 = vmul.f32 %v9226_v26, %v13521_v1  ;;  %v5688_v25 = vpop.permute.xlu1 %5687  ;;  %8047 = vmatpush3.bf16.xpose.msra.mxu0 %v5751_v29  ;;  %v5487_v22 = vmul.f32 %v13612_v31, %v5475_v37  ;;  %v13667_v33 = vadd.f32 %v13619_v28, %v5486_v18  ;;  %v9609_v1 = vld [vmem:[%s15050_s2 + $0x60] sm:$0xff]  ;;  %v9616_v61 = vld [vmem:[%s15050_s2 + $0x150] sm:$0xff] }
0x17c9   : > { %v9228_v63 = vpop.eup %9227  ;;  %8694 = vmatprep.subr.msk.bf16.mxu0 %vm553_vm0, %v5688_v25  ;;  %v9617_v29 = vld [vmem:[%s15050_s2 + $0x80] sm:$0xff] }
0x17ca   : > { %15331 = vst [vmem:[#allocation48_spill] sm:$0xff] %v13667_v33  ;;  %v5477_v0 = vmul.f32 %v9228_v63, %v13526_v39  ;;  %v5676_v43 = vpop.permute.xlu0 %5675  ;;  %v13672_v53 = vadd.f32 %v13619_v28, %v5487_v22  ;;  %v5488_v3 = vmul.f32 %v13612_v31, %v5476_v42  ;;  %v5506_v21 = vadd.f32 %v9609_v1, %v13667_v33  ;;  %v9618_v25 = vld [vmem:[%s15050_s2 + $0xc0] sm:$0xff]  ;;  %v9621_v1 = vld [vmem:[%s15050_s2 + $0x98] sm:$0xff] }
0x17cb   : > { %v5760_v19 = vsel %vm553_vm0, %v5676_v43, 0  ;;  %v9619_v63 = vld [vmem:[%s15050_s2 + $0x100] sm:$0xff] }
0x17cc   : > { %15332 = vst [vmem:[#allocation47_spill] sm:$0xff] %v13672_v53  ;;  %v5690_v2 = vpop.permute.xlu1 %5689  ;;  %v5507_v49 = vadd.f32 %v9610_v46, %v13672_v53  ;;  %v5489_v39 = vmul.f32 %v13612_v31, %v5477_v0  ;;  %v13685_v45 = vadd.f32 %v13619_v28, %v5488_v3  ;;  %v9620_v43 = vld [vmem:[%s15050_s2 + $0x140] sm:$0xff]  ;;  %v9622_v46 = vld [vmem:[%s15050_s2 + $0xd8] sm:$0xff] }
0x17ce   : > { %15333 = vst [vmem:[#allocation45_spill] sm:$0xff] %v13685_v45  ;;  %v5678_v60 = vpop.permute.xlu0 %5677  ;;  %v5516_v58 = vpack.c.bf16 %v5507_v49, %v5506_v21  ;;  %v13688_v20 = vadd.f32 %v13619_v28, %v5489_v39  ;;  %v5508_v31 = vadd.f32 %v9611_v41, %v13685_v45  ;;  %v9623_v39 = vld [vmem:[%s15050_s2 + $0x118] sm:$0xff]  ;;  %v9625_v41 = vld [vmem:[%s15050_s2 + $0x88] sm:$0xff] }
0x17cf   : > { %v5763_v8 = vsel %vm553_vm0, %v5678_v60, 0 }
0x17d0   : > { %15334 = vst [vmem:[#allocation51_spill] sm:$0xff] %v13688_v20  ;;  %v5692_v7 = vpop.permute.xlu1 %5691  ;;  %8594 = vmatprep.mubr.msk.bf16.mxu1 %vm553_vm0, %v5516_v58  ;;  %8049 = vmatpush3.bf16.xpose.msra.mxu0 %v5754_v36  ;;  %v5509_v57 = vadd.f32 %v9612_v35, %v13688_v20  ;;  %v9624_v58 = vld [vmem:[%s15050_s2 + $0x158] sm:$0xff]  ;;  %v9626_v35 = vld [vmem:[%s15050_s2 + $0xc8] sm:$0xff] }
0x17d1   : > { %8695 = vmatprep.subr.msk.bf16.mxu0 %vm553_vm0, %v5690_v2 }
0x17d2   : > { %v5517_v28 = vpack.c.bf16 %v5509_v57, %v5508_v31  ;;  %v5680_v56 = vpop.permute.xlu0 %5679 }
0x17d3   : > { %v5766_v38 = vsel %vm553_vm0, %v5680_v56, 0 }
0x17d4   : > { %v5694_v13 = vpop.permute.xlu1 %5693  ;;  %8595 = vmatmul.mubr.msk.bf16.gmra.mrb[188].mxu1 %vm553_vm0, %v5517_v28  ;;  %v9627_v28 = vld [vmem:[%s15050_s2 + $0x108] sm:$0xff] }
0x17d6   : > { %v5682_v40 = vpop.permute.xlu0 %5681 }
0x17d7   : > { %v5769_v6 = vsel %vm553_vm0, %v5682_v40, 0 }
0x17d8   : > { %v5696_v47 = vpop.permute.xlu1 %5695  ;;  %8051 = vmatpush3.bf16.xpose.msra.mxu0 %v5757_v34 }
0x17d9   : > { %8696 = vmatprep.subr.msk.bf16.mxu0 %vm553_vm0, %v5692_v7 }
0x17da   : > { %v6517_v10 = vpop.permute.xlu0 %6516 }
0x17dc   : > { %v5698_v50 = vpop.permute.xlu1 %5697 }
0x17de   : > { %v6519_v55 = vpop.permute.xlu0 %6518 }
0x17e0   : > { %v6533_v17 = vpop.permute.xlu1 %6532  ;;  %8053 = vmatpush3.bf16.xpose.msra.mxu0 %v5760_v19 }
0x17e1   : > { %8697 = vmatprep.subr.msk.bf16.mxu0 %vm553_vm0, %v5694_v13  ;;  %8092 = vmatprep.subr.bf16.mxu1 %v6533_v17  ;;  %v9628_v13 = vld [vmem:[%s15050_s2 + $0x148] sm:$0xff] }
0x17e2   : > { %8093 = vmatpush3.bf16.msra.mxu1 %v6517_v10  ;;  %v6539_v48 = vpop.permute.xlu0 %6538 }
0x17e4   : > { %v6535_v23 = vpop.permute.xlu1 %6534 }
0x17e5   : > { %8094 = vmatprep.subr.bf16.mxu1 %v6535_v23 }
0x17e6   : > { %8095 = vmatpush3.bf16.msra.mxu1 %v6519_v55  ;;  %v6543_v11 = vpop.permute.xlu0 %6542 }
0x17e8   : > { %v6537_v16 = vpop.permute.xlu1 %6536  ;;  %8055 = vmatpush3.bf16.xpose.msra.mxu0 %v5763_v8 }
0x17e9   : > { %8698 = vmatprep.subr.msk.bf16.mxu0 %vm553_vm0, %v5696_v47  ;;  %8096 = vmatprep.subr.bf16.mxu1 %v6537_v16  ;;  %v9629_v16 = vld [vmem:[%s15050_s2 + $0xb0] sm:$0xff] }
0x17ec   : > { %v6521_v9 = vpop.permute.xlu1 %6520 }
0x17ed   : > { %8097 = vmatpush3.bf16.msra.mxu1 %v6521_v9 }
0x17ee   : > { %8098 = vmatprep.subr.bf16.mxu1 %v6539_v48  ;;  %v9630_v48 = vld [vmem:[%s15050_s2 + $0xf0] sm:$0xff] }
0x17f0   : > { %v6523_v4 = vpop.permute.xlu1 %6522  ;;  %8057 = vmatpush3.bf16.xpose.msra.mxu0 %v5766_v38 }
0x17f1   : > { %8699 = vmatprep.subr.msk.bf16.mxu0 %vm553_vm0, %v5698_v50  ;;  %8099 = vmatpush3.bf16.msra.mxu1 %v6523_v4  ;;  %v9631_v4 = vld [vmem:[%s15050_s2 + $0x130] sm:$0xff] }
0x17f4   : > { %v6541_v44 = vpop.permute.xlu1 %6540 }
0x17f5   : > { %8100 = vmatprep.subr.bf16.mxu1 %v6541_v44 }
0x17f8   : > { %v6525_v51 = vpop.permute.xlu1 %6524  ;;  %8059 = vmatpush3.bf16.xpose.msra.mxu0 %v5769_v6  ;;  %v9632_v6 = vld [vmem:[%s15050_s2 + $0x170] sm:$0xff] }
0x17f9   : > { %8101 = vmatpush3.bf16.msra.mxu1 %v6525_v51 }
0x17fa   : > { %8102 = vmatprep.subr.bf16.mxu1 %v6543_v11 }
0x17fc   : > { %v6527_v54 = vpop.permute.xlu1 %6526 }
0x17fd   : > { %8103 = vmatpush3.bf16.msra.mxu1 %v6527_v54  ;;  %v9633_v54 = vld [vmem:[%s15050_s2 + $0xa0] sm:$0xff] }
0x1800   : > { %v6545_v15 = vpop.permute.xlu1 %6544 }
0x1801   : > { %8104 = vmatprep.subr.bf16.mxu1 %v6545_v15 }
0x1892   : > { %v8592_v52 = vpop.f32.mrb[184].mxu1 }
0x1893   : > { %v5605_v12 = vmul.f32 %v9613_v32, %v8592_v52  ;;  %v5613_v27 = vmul.f32 %v9614_v5, %v8592_v52  ;;  %v5621_v37 = vmul.f32 %v9615_v59, %v8592_v52  ;;  %v5629_v18 = vmul.f32 %v9616_v61, %v8592_v52  ;;  %v5572_v26 = vpop.f32.mrb[185].mxu1  ;;  %v9634_v52 = vld [vmem:[%s15050_s2 + $0xe0] sm:$0xff]  ;;  %v9637_v61 = vld [vmem:[%s15050_s2 + $0xb8] sm:$0xff] }
0x1894   : > { %v5603_v42 = vmul.f32 %v9617_v29, %v5572_v26  ;;  %v5611_v22 = vmul.f32 %v9618_v25, %v5572_v26  ;;  %v5619_v0 = vmul.f32 %v9619_v63, %v5572_v26  ;;  %v5627_v3 = vmul.f32 %v9620_v43, %v5572_v26  ;;  %v8593_v2 = vpop.f32.mrb[186].mxu1  ;;  %v9638_v26 = vld [vmem:[%s15050_s2 + $0xf8] sm:$0xff]  ;;  %v9641_v43 = vld [vmem:[%s15050_s2 + $0xa8] sm:$0xff] }
0x1895   : > { %v5606_v21 = vmul.f32 %v9621_v1, %v8593_v2  ;;  %v5614_v49 = vmul.f32 %v9622_v46, %v8593_v2  ;;  %v5622_v60 = vmul.f32 %v9623_v39, %v8593_v2  ;;  %v5630_v36 = vmul.f32 %v9624_v58, %v8593_v2  ;;  %v5575_v7 = vpop.f32.mrb[187].mxu1  ;;  %v9642_v2 = vld [vmem:[%s15050_s2 + $0xe8] sm:$0xff] }
0x1896   : > { %v5604_v31 = vmul.f32 %v9625_v41, %v5575_v7  ;;  %v5612_v57 = vmul.f32 %v9626_v35, %v5575_v7  ;;  %v5620_v56 = vmul.f32 %v9627_v28, %v5575_v7  ;;  %v5628_v34 = vmul.f32 %v9628_v13, %v5575_v7 }
0x1897   : > { %v5636_v47 = vpack.c.bf16 %v5606_v21, %v5605_v12  ;;  %v5640_v40 = vpack.c.bf16 %v5614_v49, %v5613_v27  ;;  %v13759_v50 = vpack.c.bf16 %v5622_v60, %v5621_v37  ;;  %v13761_v19 = vpack.c.bf16 %v5630_v36, %v5629_v18  ;;  %v9635_v12 = vld [vmem:[%s15050_s2 + $0x120] sm:$0xff]  ;;  %v9643_v21 = vld [vmem:[%s15050_s2 + $0x128] sm:$0xff] }
0x1898   : > { %v5635_v10 = vpack.c.bf16 %v5604_v31, %v5603_v42  ;;  %v5639_v17 = vpack.c.bf16 %v5612_v57, %v5611_v22  ;;  %v13763_v23 = vpack.c.bf16 %v5620_v56, %v5619_v0  ;;  %v13765_v55 = vpack.c.bf16 %v5628_v34, %v5627_v3  ;;  %v9636_v27 = vld [vmem:[%s15050_s2 + $0x160] sm:$0xff]  ;;  %v9639_v42 = vld [vmem:[%s15050_s2 + $0x138] sm:$0xff]  ;;  %v9644_v49 = vld [vmem:[%s15050_s2 + $0x168] sm:$0xff] }
0x1899   : > { %v9640_v22 = vld [vmem:[%s15050_s2 + $0x178] sm:$0xff]  ;;  %v9645_v56 = vld [vmem:[%s15053_s5] sm:$0xff] }
0x189a   : > { %8060 = vmatprep.mubr.msk.bf16.mxu0 %vm553_vm0, %v5635_v10 }
0x189b   : > { %8061 = vmatmul.mubr.msk.bf16.vlgmr.msra.gmra.mrb[200].mxu0 %vm553_vm0, %v5635_v10 }
0x189c   : > { %8062 = vmatprep.mubr.msk.bf16.mxu0 %vm553_vm0, %v5636_v47 }
0x18a3   : > { %8063 = vmatmul.mubr.msk.bf16.gmra.mrb[204].mxu0 %vm553_vm0, %v5636_v47  ;;  %v9646_v47 = vld [vmem:[%s15053_s5 + $0x8] sm:$0xff] }
0x18a7   : > { %v8596_v8 = vpop.f32.mrb[188].mxu1 }
0x18a8   : > { %v5609_v9 = vmul.f32 %v9629_v16, %v8596_v8  ;;  %v5617_v38 = vmul.f32 %v9630_v48, %v8596_v8  ;;  %v5625_v44 = vmul.f32 %v9631_v4, %v8596_v8  ;;  %v5633_v51 = vmul.f32 %v9632_v6, %v8596_v8  ;;  %v5588_v11 = vpop.f32.mrb[189].mxu1  ;;  %v9649_v48 = vld [vmem:[%s15053_s5 + $0x20] sm:$0xff] }
0x18a9   : > { %v5607_v15 = vmul.f32 %v9633_v54, %v5588_v11  ;;  %v5615_v32 = vmul.f32 %v9634_v52, %v5588_v11  ;;  %v5623_v5 = vmul.f32 %v9635_v12, %v5588_v11  ;;  %v5631_v59 = vmul.f32 %v9636_v27, %v5588_v11  ;;  %v8597_v37 = vpop.f32.mrb[190].mxu1 }
0x18aa   : > { %v5610_v18 = vmul.f32 %v9637_v61, %v8597_v37  ;;  %v5618_v29 = vmul.f32 %v9638_v26, %v8597_v37  ;;  %v5626_v25 = vmul.f32 %v9639_v42, %v8597_v37  ;;  %v5634_v63 = vmul.f32 %v9640_v22, %v8597_v37  ;;  %v5591_v0 = vpop.f32.mrb[191].mxu1  ;;  %v9653_v61 = vld [vmem:[%s15053_s5 + $0x50] sm:$0xff] }
0x18ab   : > { %v5608_v3 = vmul.f32 %v9641_v43, %v5591_v0  ;;  %v5616_v1 = vmul.f32 %v9642_v2, %v5591_v0  ;;  %v5624_v46 = vmul.f32 %v9643_v21, %v5591_v0  ;;  %v5632_v39 = vmul.f32 %v9644_v49, %v5591_v0  ;;  %v9656_v21 = vld [vmem:[%s15053_s5 + $0x78] sm:$0xff] }
0x18ac   : > { %v5638_v60 = vpack.c.bf16 %v5610_v18, %v5609_v9  ;;  %v5642_v58 = vpack.c.bf16 %v5618_v29, %v5617_v38  ;;  %v5646_v36 = vpack.c.bf16 %v5626_v25, %v5625_v44  ;;  %v5650_v7 = vpack.c.bf16 %v5634_v63, %v5633_v51  ;;  %v9650_v44 = vld [vmem:[%s15053_s5 + $0x28] sm:$0xff]  ;;  %v9654_v29 = vld [vmem:[%s15053_s5 + $0x58] sm:$0xff] }
0x18ad   : > { %v5637_v41 = vpack.c.bf16 %v5608_v3, %v5607_v15  ;;  %v5641_v31 = vpack.c.bf16 %v5616_v1, %v5615_v32  ;;  %v5645_v35 = vpack.c.bf16 %v5624_v46, %v5623_v5  ;;  %v5649_v57 = vpack.c.bf16 %v5632_v39, %v5631_v59  ;;  %v9651_v15 = vld [vmem:[%s15053_s5 + $0x30] sm:$0xff]  ;;  %v9652_v32 = vld [vmem:[%s15053_s5 + $0x38] sm:$0xff] }
0x18ae   : > { %v15335_v25 = vld [vmem:[#allocation25_spill] sm:$0xff]  ;;  %v9655_v3 = vld [vmem:[%s15053_s5 + $0x70] sm:$0xff] }
0x18af   : > { %8064 = vmatprep.mubr.msk.bf16.mxu0 %vm553_vm0, %v5637_v41 }
0x18b0   : > { %8065 = vmatmul.mubr.msk.bf16.gmra.mrb[208].mxu0 %vm553_vm0, %v5637_v41 }
0x18b1   : > { %8066 = vmatprep.mubr.msk.bf16.mxu0 %vm553_vm0, %v5638_v60 }
0x18b8   : > { %8067 = vmatmul.mubr.msk.bf16.gmra.mrb[212].mxu0 %vm553_vm0, %v5638_v60 }
0x18b9   : > { %8068 = vmatprep.mubr.msk.bf16.mxu0 %vm553_vm0, %v5639_v17 }
0x18c0   : > { %8069 = vmatmul.mubr.msk.bf16.gmra.mrb[216].mxu0 %vm553_vm0, %v5639_v17 }
0x18c1   : > { %8070 = vmatprep.mubr.msk.bf16.mxu0 %vm553_vm0, %v5640_v40 }
0x18c8   : > { %8071 = vmatmul.mubr.msk.bf16.gmra.mrb[220].mxu0 %vm553_vm0, %v5640_v40 }
0x18c9   : > { %8072 = vmatprep.mubr.msk.bf16.mxu0 %vm553_vm0, %v5641_v31 }
0x18d0   : > { %8073 = vmatmul.mubr.msk.bf16.gmra.mrb[224].mxu0 %vm553_vm0, %v5641_v31  ;;  %v9658_v31 = vld [vmem:[%s15053_s5 + $0x98] sm:$0xff] }
0x18d1   : > { %8074 = vmatprep.mubr.msk.bf16.mxu0 %vm553_vm0, %v5642_v58 }
0x18d8   : > { %8075 = vmatmul.mubr.msk.bf16.gmra.mrb[228].mxu0 %vm553_vm0, %v5642_v58 }
0x18d9   : > { %8076 = vmatprep.mubr.msk.bf16.mxu0 %vm553_vm0, %v13763_v23 }
0x18e0   : > { %8077 = vmatmul.mubr.msk.bf16.gmra.mrb[232].mxu0 %vm553_vm0, %v13763_v23 }
0x18e1   : > { %8078 = vmatprep.mubr.msk.bf16.mxu0 %vm553_vm0, %v13759_v50 }
0x18e8   : > { %8079 = vmatmul.mubr.msk.bf16.gmra.mrb[236].mxu0 %vm553_vm0, %v13759_v50 }
0x18e9   : > { %8080 = vmatprep.mubr.msk.bf16.mxu0 %vm553_vm0, %v5645_v35 }
0x18f0   : > { %8081 = vmatmul.mubr.msk.bf16.gmra.mrb[240].mxu0 %vm553_vm0, %v5645_v35 }
0x18f1   : > { %8082 = vmatprep.mubr.msk.bf16.mxu0 %vm553_vm0, %v5646_v36 }
0x18f8   : > { %8083 = vmatmul.mubr.msk.bf16.gmra.mrb[244].mxu0 %vm553_vm0, %v5646_v36  ;;  %v9657_v36 = vld [vmem:[%s15053_s5 + $0x90] sm:$0xff] }
0x18f9   : > { %8084 = vmatprep.mubr.msk.bf16.mxu0 %vm553_vm0, %v13765_v55 }
0x1900   : > { %8085 = vmatmul.mubr.msk.bf16.gmra.mrb[248].mxu0 %vm553_vm0, %v13765_v55  ;;  %v9648_v55 = vld [vmem:[%s15053_s5 + $0x18] sm:$0xff] }
0x1901   : > { %8086 = vmatprep.mubr.msk.bf16.mxu0 %vm553_vm0, %v13761_v19 }
0x1908   : > { %8087 = vmatmul.mubr.msk.bf16.gmra.mrb[252].mxu0 %vm553_vm0, %v13761_v19  ;;  %v9647_v19 = vld [vmem:[%s15053_s5 + $0x10] sm:$0xff] }
0x1909   : > { %8088 = vmatprep.mubr.msk.bf16.mxu0 %vm553_vm0, %v5649_v57 }
0x1910   : > { %8089 = vmatmul.mubr.msk.bf16.gmra.mrb[0].mxu0 %vm553_vm0, %v5649_v57 }
0x1911   : > { %8090 = vmatprep.mubr.msk.bf16.mxu0 %vm553_vm0, %v5650_v7 }
0x1918   : > { %8091 = vmatmul.mubr.msk.bf16.gmra.mrb[4].mxu0 %vm553_vm0, %v5650_v7 }
0x196e   : > { %v5829_v28 = vpop.f32.mrb[200].mxu0 }
0x196f   : > { %v13858_v13 = vadd.f32 %v9645_v56, %v5829_v28  ;;  %v5831_v34 = vpop.f32.mrb[201].mxu0 }
0x1970   : > { %v13863_v40 = vadd.f32 %v9646_v47, %v5831_v34  ;;  %v5833_v50 = vpop.f32.mrb[202].mxu0  ;;  %v9659_v47 = vld [vmem:[%s15053_s5 + $0xb0] sm:$0xff] }
0x1971   : > { %v13868_v10 = vadd.f32 %v9647_v19, %v5833_v50  ;;  %v5835_v17 = vpop.f32.mrb[203].mxu0 }
0x1972   : > { %v5988_v23 = vmax.f32 %v13858_v13, %v13863_v40  ;;  %v13875_v8 = vadd.f32 %v9648_v55, %v5835_v17  ;;  %v9660_v17 = vld [vmem:[%s15053_s5 + $0xb8] sm:$0xff] }
0x1974   : > { %v5991_v16 = vmax.f32 %v13868_v10, %v13875_v8  ;;  %5989 = vmax.xlane.f32.xlu0 %v5988_v23 }
0x1976   : > { %v5839_v9 = vpop.f32.mrb[204].mxu0  ;;  %5992 = vmax.xlane.f32.xlu1 %v5991_v16 }
0x1977   : > { %v13882_v38 = vadd.f32 %v9649_v48, %v5839_v9  ;;  %v5841_v4 = vpop.f32.mrb[205].mxu0  ;;  %v9661_v48 = vld [vmem:[%s15053_s5 + $0x40] sm:$0xff] }
0x1978   : > { %v13887_v6 = vadd.f32 %v9650_v44, %v5841_v4  ;;  %v5843_v51 = vpop.f32.mrb[206].mxu0  ;;  %v9662_v44 = vld [vmem:[%s15053_s5 + $0x48] sm:$0xff] }
0x1979   : > { %v5845_v11 = vpop.f32.mrb[207].mxu0  ;;  %v13894_v52 = vadd.f32 %v9651_v15, %v5843_v51 }
0x197a   : > { %v5994_v54 = vmax.f32 %v13882_v38, %v13887_v6  ;;  %v13899_v12 = vadd.f32 %v9652_v32, %v5845_v11 }
0x197c   : > { %5995 = vmax.xlane.f32.xlu0 %v5994_v54  ;;  %v5997_v5 = vmax.f32 %v13894_v52, %v13899_v12  ;;  %v9663_v54 = vld [vmem:[%s15053_s5 + $0xd0] sm:$0xff] }
0x1980   : > { %5998 = vmax.xlane.f32.xlu0 %v5997_v5  ;;  %v9664_v5 = vld [vmem:[%s15053_s5 + $0xd8] sm:$0xff] }
0x1983   : > { %v5849_v27 = vpop.f32.mrb[208].mxu0 }
0x1984   : > { %v5851_v59 = vpop.f32.mrb[209].mxu0  ;;  %v13956_v4 = vadd.f32 %v9661_v48, %v5849_v27 }
0x1985   : > { %v5853_v37 = vpop.f32.mrb[210].mxu0  ;;  %v13961_v51 = vadd.f32 %v9662_v44, %v5851_v59  ;;  %v9665_v59 = vld [vmem:[%s15053_s5 + $0x60] sm:$0xff] }
0x1986   : > { %v13906_v18 = vadd.f32 %v9653_v61, %v5853_v37  ;;  %v5855_v26 = vpop.f32.mrb[211].mxu0 }
0x1987   : > { %v13911_v42 = vadd.f32 %v9654_v29, %v5855_v26  ;;  %6528 = vrot.lane.b32.xlu1 %v15335_v25, %s9749_s12  ;;  %v6000_v37 = vmax.f32 %v13956_v4, %v13961_v51  ;;  %v9666_v26 = vld [vmem:[%s15053_s5 + $0x68] sm:$0xff] }
0x1989   : > { %v6003_v22 = vmax.f32 %v13906_v18, %v13911_v42 }
0x198b   : > { %v5859_v63 = vpop.f32.mrb[212].mxu0  ;;  %6004 = vmax.xlane.f32.xlu0 %v6003_v22 }
0x198c   : > { %v5861_v0 = vpop.f32.mrb[213].mxu0  ;;  %v13978_v61 = vadd.f32 %v9665_v59, %v5859_v63  ;;  %v9667_v63 = vld [vmem:[%s15053_s5 + $0x80] sm:$0xff] }
0x198d   : > { %v5863_v43 = vpop.f32.mrb[214].mxu0  ;;  %v13983_v29 = vadd.f32 %v9666_v26, %v5861_v0  ;;  %v9668_v0 = vld [vmem:[%s15053_s5 + $0x88] sm:$0xff]  ;;  %v9676_v26 = vld [vmem:[%s15053_s5 + $0x118] sm:$0xff] }
0x198e   : > { %v13920_v2 = vadd.f32 %v9655_v3, %v5863_v43  ;;  %v5865_v1 = vpop.f32.mrb[215].mxu0 }
0x198f   : > { %v13925_v46 = vadd.f32 %v9656_v21, %v5865_v1  ;;  %v6006_v3 = vmax.f32 %v13978_v61, %v13983_v29 }
0x1991   : > { %v6009_v49 = vmax.f32 %v13920_v2, %v13925_v46 }
0x1993   : > { %v5869_v39 = vpop.f32.mrb[216].mxu0  ;;  %6010 = vmax.xlane.f32.xlu0 %v6009_v49 }
0x1994   : > { %v5871_v60 = vpop.f32.mrb[217].mxu0  ;;  %v13992_v1 = vadd.f32 %v9667_v63, %v5869_v39  ;;  %v9678_v63 = vld [vmem:[%s15053_s5 + $0xe8] sm:$0xff] }
0x1995   : > { %v5873_v58 = vpop.f32.mrb[218].mxu0  ;;  %v13997_v21 = vadd.f32 %v9668_v0, %v5871_v60  ;;  %v9671_v60 = vld [vmem:[%s15053_s5 + $0xa0] sm:$0xff] }
0x1996   : > { %v13932_v7 = vadd.f32 %v9657_v36, %v5873_v58  ;;  %v5875_v41 = vpop.f32.mrb[219].mxu0  ;;  %v9669_v58 = vld [vmem:[%s15053_s5 + $0xf0] sm:$0xff] }
0x1997   : > { %v13937_v35 = vadd.f32 %v9658_v31, %v5875_v41  ;;  %v9670_v31 = vld [vmem:[%s15053_s5 + $0xf8] sm:$0xff] }
0x1999   : > { %v6015_v57 = vmax.f32 %v13932_v7, %v13937_v35 }
0x199b   : > { %v5879_v28 = vpop.f32.mrb[220].mxu0  ;;  %6016 = vmax.xlane.f32.xlu0 %v6015_v57  ;;  %v6012_v57 = vmax.f32 %v13992_v1, %v13997_v21 }
0x199c   : > { %v5881_v56 = vpop.f32.mrb[221].mxu0 }
0x199d   : > { %v5883_v34 = vpop.f32.mrb[222].mxu0 }
0x199e   : > { %v13944_v50 = vadd.f32 %v9659_v47, %v5883_v34  ;;  %v5885_v19 = vpop.f32.mrb[223].mxu0  ;;  %v14014_v34 = vadd.f32 %v9671_v60, %v5879_v28  ;;  %v9672_v47 = vld [vmem:[%s15053_s5 + $0xa8] sm:$0xff]  ;;  %v9673_v28 = vld [vmem:[%s15053_s5 + $0xc0] sm:$0xff] }
0x199f   : > { %v13949_v23 = vadd.f32 %v9660_v17, %v5885_v19  ;;  %v14019_v19 = vadd.f32 %v9672_v47, %v5881_v56  ;;  %v9674_v56 = vld [vmem:[%s15053_s5 + $0xc8] sm:$0xff] }
0x19a1   : > { %v6021_v55 = vmax.f32 %v13944_v50, %v13949_v23  ;;  %v6018_v44 = vmax.f32 %v14014_v34, %v14019_v19 }
0x19a3   : > { %v5889_v16 = vpop.f32.mrb[224].mxu0  ;;  %6022 = vmax.xlane.f32.xlu0 %v6021_v55 }
0x19a4   : > { %v5891_v9 = vpop.f32.mrb[225].mxu0 }
0x19a5   : > { %v5893_v11 = vpop.f32.mrb[226].mxu0 }
0x19a6   : > { %v13966_v15 = vadd.f32 %v9663_v54, %v5893_v11  ;;  %v5895_v32 = vpop.f32.mrb[227].mxu0  ;;  %v14028_v11 = vadd.f32 %v9673_v28, %v5889_v16  ;;  %v14033_v54 = vadd.f32 %v9674_v56, %v5891_v9  ;;  %v9677_v9 = vld [vmem:[%s15053_s5 + $0xe0] sm:$0xff]  ;;  %v9682_v56 = vld [vmem:[%s15053_s5 + $0x138] sm:$0xff] }
0x19a7   : > { %v13971_v27 = vadd.f32 %v9664_v5, %v5895_v32  ;;  %v9675_v5 = vld [vmem:[%s15053_s5 + $0x110] sm:$0xff] }
0x19a9   : > { %v6027_v25 = vmax.f32 %v13966_v15, %v13971_v27 }
0x19ab   : > { %v5899_v22 = vpop.f32.mrb[228].mxu0  ;;  %6001 = vmax.xlane.f32.xlu1 %v6000_v37  ;;  %6028 = vmax.xlane.f32.xlu0 %v6027_v25  ;;  %v6024_v25 = vmax.f32 %v14028_v11, %v14033_v54 }
0x19ac   : > { %v5901_v43 = vpop.f32.mrb[229].mxu0 }
0x19ad   : > { %v5903_v49 = vpop.f32.mrb[230].mxu0  ;;  %v14055_v0 = vadd.f32 %v9678_v63, %v5901_v43  ;;  %v9680_v43 = vld [vmem:[%s15053_s5 + $0x108] sm:$0xff] }
0x19ae   : > { %v14002_v36 = vadd.f32 %v9669_v58, %v5903_v49  ;;  %v5905_v41 = vpop.f32.mrb[231].mxu0 }
0x19af   : > { %v14007_v39 = vadd.f32 %v9670_v31, %v5905_v41  ;;  %6007 = vmax.xlane.f32.xlu1 %v6006_v3  ;;  %v14050_v3 = vadd.f32 %v9677_v9, %v5899_v22  ;;  %v9679_v22 = vld [vmem:[%s15053_s5 + $0x100] sm:$0xff] }
0x19b1   : > { %v6033_v17 = vmax.f32 %v14002_v36, %v14007_v39  ;;  %v6030_v31 = vmax.f32 %v14050_v3, %v14055_v0 }
0x19b3   : > { %v5909_v55 = vpop.f32.mrb[232].mxu0  ;;  %6013 = vmax.xlane.f32.xlu1 %v6012_v57  ;;  %6034 = vmax.xlane.f32.xlu0 %v6033_v17  ;;  %v9681_v17 = vld [vmem:[%s15053_s5 + $0x130] sm:$0xff] }
0x19b4   : > { %v5911_v48 = vpop.f32.mrb[233].mxu0  ;;  %v14064_v57 = vadd.f32 %v9679_v22, %v5909_v55 }
0x19b5   : > { %v5913_v32 = vpop.f32.mrb[234].mxu0  ;;  %v14069_v60 = vadd.f32 %v9680_v43, %v5911_v48  ;;  %v9683_v48 = vld [vmem:[%s15053_s5 + $0x120] sm:$0xff] }
0x19b6   : > { %v14038_v37 = vadd.f32 %v9675_v5, %v5913_v32  ;;  %v5915_v59 = vpop.f32.mrb[235].mxu0 }
0x19b7   : > { %v14043_v16 = vadd.f32 %v9676_v26, %v5915_v59  ;;  %6019 = vmax.xlane.f32.xlu1 %v6018_v44  ;;  %v6036_v32 = vmax.f32 %v14064_v57, %v14069_v60  ;;  %v9684_v59 = vld [vmem:[%s15053_s5 + $0x128] sm:$0xff] }
0x19b9   : > { %v6039_v49 = vmax.f32 %v14038_v37, %v14043_v16 }
0x19bb   : > { %v5919_v58 = vpop.f32.mrb[236].mxu0  ;;  %6025 = vmax.xlane.f32.xlu1 %v6024_v25  ;;  %6040 = vmax.xlane.f32.xlu0 %v6039_v49 }
0x19bc   : > { %v5921_v41 = vpop.f32.mrb[237].mxu0  ;;  %v14086_v5 = vadd.f32 %v9683_v48, %v5919_v58  ;;  %v9685_v58 = vld [vmem:[%s15053_s5 + $0x140] sm:$0xff] }
0x19bd   : > { %v5923_v47 = vpop.f32.mrb[238].mxu0  ;;  %v14091_v26 = vadd.f32 %v9684_v59, %v5921_v41  ;;  %v9686_v41 = vld [vmem:[%s15053_s5 + $0x148] sm:$0xff] }
0x19be   : > { %v14074_v44 = vadd.f32 %v9681_v17, %v5923_v47  ;;  %v5925_v28 = vpop.f32.mrb[239].mxu0  ;;  %v9687_v47 = vld [vmem:[%s15053_s5 + $0x150] sm:$0xff] }
0x19bf   : > { %v14079_v55 = vadd.f32 %v9682_v56, %v5925_v28  ;;  %6031 = vmax.xlane.f32.xlu1 %v6030_v31  ;;  %v6042_v49 = vmax.f32 %v14086_v5, %v14091_v26  ;;  %v9688_v56 = vld [vmem:[%s15053_s5 + $0x158] sm:$0xff] }
0x19c0   : > { %15336 = vst [vmem:[#allocation50_spill] sm:$0xff] %v14074_v44 }
0x19c1   : > { %15337 = vst [vmem:[#allocation49_spill] sm:$0xff] %v14079_v55  ;;  %v6045_v25 = vmax.f32 %v14074_v44, %v14079_v55 }
0x19c3   : > { %v5929_v9 = vpop.f32.mrb[240].mxu0  ;;  %6037 = vmax.xlane.f32.xlu1 %v6036_v32  ;;  %6046 = vmax.xlane.f32.xlu0 %v6045_v25 }
0x19c4   : > { %v5931_v63 = vpop.f32.mrb[241].mxu0  ;;  %v14100_v31 = vadd.f32 %v9685_v58, %v5929_v9  ;;  %v9689_v9 = vld [vmem:[%s15053_s5 + $0x160] sm:$0xff] }
0x19c5   : > { %v14105_v22 = vadd.f32 %v9686_v41, %v5931_v63  ;;  %v5933_v43 = vpop.f32.mrb[242].mxu0 }
0x19c6   : > { %v14110_v17 = vadd.f32 %v9687_v47, %v5933_v43  ;;  %v5935_v28 = vpop.f32.mrb[243].mxu0 }
0x19c7   : > { %v14115_v32 = vadd.f32 %v9688_v56, %v5935_v28  ;;  %6043 = vmax.xlane.f32.xlu1 %v6042_v49  ;;  %v6048_v48 = vmax.f32 %v14100_v31, %v14105_v22  ;;  %v9690_v49 = vld [vmem:[%s15053_s5 + $0x168] sm:$0xff]  ;;  %v9691_v56 = vld [vmem:[%s15053_s5 + $0x170] sm:$0xff] }
0x19c8   : > { %15338 = vst [vmem:[#allocation53_spill] sm:$0xff] %v14110_v17 }
0x19c9   : > { %15339 = vst [vmem:[#allocation55_spill] sm:$0xff] %v14115_v32  ;;  %v6051_v59 = vmax.f32 %v14110_v17, %v14115_v32 }
0x19cb   : > { %v5939_v25 = vpop.f32.mrb[244].mxu0  ;;  %6049 = vmax.xlane.f32.xlu1 %v6048_v48  ;;  %6052 = vmax.xlane.f32.xlu0 %v6051_v59  ;;  %v9692_v59 = vld [vmem:[%s15053_s5 + $0x178] sm:$0xff] }
0x19cc   : > { %v14124_v63 = vadd.f32 %v9689_v9, %v5939_v25  ;;  %v5941_v58 = vpop.f32.mrb[245].mxu0 }
0x19cd   : > { %v14129_v41 = vadd.f32 %v9690_v49, %v5941_v58  ;;  %v5943_v43 = vpop.f32.mrb[246].mxu0  ;;  %v9693_v49 = vld [vmem:[%s15053_s5 + $0x180] sm:$0xff] }
0x19ce   : > { %v5945_v47 = vpop.f32.mrb[247].mxu0  ;;  %v14136_v48 = vadd.f32 %v9691_v56, %v5943_v43  ;;  %v9694_v43 = vld [vmem:[%s15053_s5 + $0x188] sm:$0xff] }
0x19cf   : > { %v6054_v28 = vmax.f32 %v14124_v63, %v14129_v41  ;;  %v14141_v25 = vadd.f32 %v9692_v59, %v5945_v47 }
0x19d0   : > { %15340 = vst [vmem:[#allocation54_spill] sm:$0xff] %v14136_v48 }
0x19d1   : > { %15341 = vst [vmem:[#allocation52_spill] sm:$0xff] %v14141_v25  ;;  %6055 = vmax.xlane.f32.xlu0 %v6054_v28  ;;  %v6057_v9 = vmax.f32 %v14136_v48, %v14141_v25  ;;  %v9695_v28 = vld [vmem:[%s15053_s5 + $0x190] sm:$0xff] }
0x19d3   : > { %v5949_v58 = vpop.f32.mrb[248].mxu0 }
0x19d4   : > { %v14148_v20 = vadd.f32 %v9693_v49, %v5949_v58  ;;  %v5951_v53 = vpop.f32.mrb[249].mxu0  ;;  %v9696_v49 = vld [vmem:[%s15053_s5 + $0x198] sm:$0xff] }
0x19d5   : > { %v14153_v56 = vadd.f32 %v9694_v43, %v5951_v53  ;;  %v5953_v47 = vpop.f32.mrb[250].mxu0  ;;  %6058 = vmax.xlane.f32.xlu0 %v6057_v9  ;;  %v9697_v43 = vld [vmem:[%s15053_s5 + $0x1a0] sm:$0xff] }
0x19d6   : > { %v14158_v59 = vadd.f32 %v9695_v28, %v5953_v47  ;;  %v5955_v45 = vpop.f32.mrb[251].mxu0 }
0x19d7   : > { %v6060_v58 = vmax.f32 %v14148_v20, %v14153_v56  ;;  %v14165_v33 = vadd.f32 %v9696_v49, %v5955_v45 }
0x19d8   : > { %15342 = vst [vmem:[#allocation35_spill] sm:$0xff] %v14158_v59 }
0x19d9   : > { %15343 = vst [vmem:[#allocation37_spill] sm:$0xff] %v14165_v33  ;;  %v6063_v53 = vmax.f32 %v14158_v59, %v14165_v33  ;;  %6061 = vmax.xlane.f32.xlu1 %v6060_v58  ;;  %v9699_v58 = vld [vmem:[%s15053_s5 + $0x1b0] sm:$0xff]  ;;  %v9702_v33 = vld [vmem:[%s15053_s5 + $0x1c8] sm:$0xff] }
0x19db   : > { %v5959_v9 = vpop.f32.mrb[252].mxu0  ;;  %6064 = vmax.xlane.f32.xlu0 %v6063_v53 }
0x19dc   : > { %v14172_v47 = vadd.f32 %v9697_v43, %v5959_v9  ;;  %v5961_v28 = vpop.f32.mrb[253].mxu0  ;;  %v9700_v9 = vld [vmem:[%s15053_s5 + $0x1b8] sm:$0xff] }
0x19dd   : > { %v14177_v30 = vadd.f32 %v9698_v14, %v5961_v28  ;;  %v5963_v45 = vpop.f32.mrb[254].mxu0 }
0x19de   : > { %v14182_v49 = vadd.f32 %v9699_v58, %v5963_v45  ;;  %v5965_v53 = vpop.f32.mrb[255].mxu0  ;;  %v9701_v45 = vld [vmem:[%s15053_s5 + $0x1c0] sm:$0xff] }
0x19df   : > { %v6066_v24 = vmax.f32 %v14172_v47, %v14177_v30  ;;  %v14189_v43 = vadd.f32 %v9700_v9, %v5965_v53 }
0x19e0   : > { %15344 = vst [vmem:[#allocation36_spill] sm:$0xff] %v14182_v49 }
0x19e1   : > { %15345 = vst [vmem:[#allocation38_spill] sm:$0xff] %v14189_v43  ;;  %v6069_v14 = vmax.f32 %v14182_v49, %v14189_v43  ;;  %6067 = vmax.xlane.f32.xlu1 %v6066_v24  ;;  %v9703_v24 = vld [vmem:[%s15053_s5 + $0x1d0] sm:$0xff] }
0x19e3   : > { %v5969_v28 = vpop.f32.mrb[0].mxu0  ;;  %6070 = vmax.xlane.f32.xlu0 %v6069_v14 }
0x19e4   : > { %v14196_v58 = vadd.f32 %v9701_v45, %v5969_v28  ;;  %v5971_v62 = vpop.f32.mrb[1].mxu0  ;;  %v9704_v28 = vld [vmem:[%s15053_s5 + $0x1d8] sm:$0xff] }
0x19e5   : > { %v14201_v59 = vadd.f32 %v9702_v33, %v5971_v62  ;;  %v5973_v53 = vpop.f32.mrb[2].mxu0 }
0x19e6   : > { %v14206_v9 = vadd.f32 %v9703_v24, %v5973_v53  ;;  %v5975_v14 = vpop.f32.mrb[3].mxu0 }
0x19e7   : > { %v6072_v43 = vmax.f32 %v14196_v58, %v14201_v59  ;;  %v14213_v45 = vadd.f32 %v9704_v28, %v5975_v14 }
0x19e8   : > { %15346 = vst [vmem:[#allocation39_spill] sm:$0xff] %v14206_v9 }
0x19e9   : > { %15347 = vst [vmem:[#allocation41_spill] sm:$0xff] %v14213_v45  ;;  %v6075_v62 = vmax.f32 %v14206_v9, %v14213_v45  ;;  %6073 = vmax.xlane.f32.xlu1 %v6072_v43 }
0x19eb   : > { %v14217_v33 = vpop.f32.mrb[4].mxu0  ;;  %6076 = vmax.xlane.f32.xlu0 %v6075_v62 }
0x19ec   : > { %v14219_v49 = vpop.f32.mrb[5].mxu0 }
0x19ed   : > { %v14221_v53 = vpop.f32.mrb[6].mxu0 }
0x19ee   : > { %v14223_v24 = vpop.f32.mrb[7].mxu0 }
0x1a01   : > { %v5990_v25 = vpop.xlane.xlu0 %5989 }
0x1a02   : > { %v6084_v48 = vsub.f32 %v13858_v13, %v5990_v25  ;;  %v6085_v32 = vsub.f32 %v13863_v40, %v5990_v25 }
0x1a03   : > { %v5993_v14 = vpop.xlane.xlu1 %5992 }
0x1a04   : > { %v6148_v28 = vmul.f32 1.442695, %v6084_v48  ;;  %v6150_v17 = vmul.f32 1.442695, %v6085_v32  ;;  %v6086_v45 = vsub.f32 %v13868_v10, %v5993_v14  ;;  %v6087_v43 = vsub.f32 %v13875_v8, %v5993_v14 }
0x1a06   : > { %9229 = vpow2.f32 %v6148_v28  ;;  %v6152_v62 = vmul.f32 1.442695, %v6086_v45  ;;  %v6154_v9 = vmul.f32 1.442695, %v6087_v43 }
0x1a07   : > { %9231 = vpow2.f32 %v6150_v17  ;;  %v6529_v55 = vpop.permute.xlu1 %6528 }
0x1a08   : > { %9233 = vpow2.f32 %v6152_v62  ;;  %8105 = vmatpush3.bf16.msra.mxu1 %v6529_v55 }
0x1a09   : > { %9235 = vpow2.f32 %v6154_v9  ;;  %v5996_v44 = vpop.xlane.xlu0 %5995 }
0x1a0a   : > { %v6088_v13 = vsub.f32 %v13882_v38, %v5996_v44  ;;  %v6089_v40 = vsub.f32 %v13887_v6, %v5996_v44 }
0x1a0c   : > { %v6156_v25 = vmul.f32 1.442695, %v6088_v13  ;;  %v6158_v48 = vmul.f32 1.442695, %v6089_v40  ;;  %v15352_v40 = vld [vmem:[#allocation24_spill] sm:$0xff] }
0x1a0d   : > { %v5999_v32 = vpop.xlane.xlu0 %5998 }
0x1a0e   : > { %9237 = vpow2.f32 %v6156_v25  ;;  %v6090_v10 = vsub.f32 %v13894_v52, %v5999_v32  ;;  %v6091_v8 = vsub.f32 %v13899_v12, %v5999_v32 }
0x1a0f   : > { %9239 = vpow2.f32 %v6158_v48 }
0x1a10   : > { %v14233_v45 = vpop.eup %9229  ;;  %v6160_v17 = vmul.f32 1.442695, %v6090_v10  ;;  %v6162_v14 = vmul.f32 1.442695, %v6091_v8 }
0x1a11   : > { %v14235_v55 = vpop.eup %9231 }
0x1a12   : > { %v14237_v9 = vpop.eup %9233  ;;  %9241 = vpow2.f32 %v6160_v17  ;;  %v6276_v38 = vadd.f32 %v14235_v55, %v14233_v45 }
0x1a13   : > { %v14241_v6 = vpop.eup %9235  ;;  %9243 = vpow2.f32 %v6162_v14 }
0x1a14   : > { %6277 = vadd.xlane.f32.xlu1 %v6276_v38  ;;  %v6279_v52 = vadd.f32 %v14241_v6, %v14237_v9 }
0x1a16   : > { %6280 = vadd.xlane.f32.xlu0 %v6279_v52 }
0x1a18   : > { %v14245_v12 = vpop.eup %9237  ;;  %v6005_v25 = vpop.xlane.xlu0 %6004 }
0x1a19   : > { %15348 = vst [vmem:[#allocation40_spill] sm:$0xff] %v14245_v12  ;;  %v14247_v44 = vpop.eup %9239  ;;  %v6094_v32 = vsub.f32 %v13906_v18, %v6005_v25  ;;  %v6095_v8 = vsub.f32 %v13911_v42, %v6005_v25 }
0x1a1a   : > { %15349 = vst [vmem:[#allocation42_spill] sm:$0xff] %v14247_v44  ;;  %v6282_v28 = vadd.f32 %v14247_v44, %v14245_v12 }
0x1a1b   : > { %v6168_v12 = vmul.f32 1.442695, %v6094_v32 }
0x1a1c   : > { %v14251_v43 = vpop.eup %9241  ;;  %6283 = vadd.xlane.f32.xlu0 %v6282_v28 }
0x1a1d   : > { %15350 = vst [vmem:[#allocation34_spill] sm:$0xff] %v14251_v43  ;;  %v14253_v62 = vpop.eup %9243 }
0x1a1e   : > { %15351 = vst [vmem:[#allocation3_spill] sm:$0xff] %v14253_v62  ;;  %v6285_v13 = vadd.f32 %v14253_v62, %v14251_v43  ;;  %v6170_v43 = vmul.f32 1.442695, %v6095_v8 }
0x1a20   : > { %6286 = vadd.xlane.f32.xlu0 %v6285_v13  ;;  %v6011_v48 = vpop.xlane.xlu0 %6010 }
0x1a21   : > { %v6098_v38 = vsub.f32 %v13920_v2, %v6011_v48  ;;  %v6099_v42 = vsub.f32 %v13925_v46, %v6011_v48  ;;  %v9706_v46 = vld [vmem:[%s15053_s5 + $0x1e8] sm:$0xff] }
0x1a23   : > { %v6176_v62 = vmul.f32 1.442695, %v6098_v38 }
0x1a25   : > { %6530 = vrot.lane.b32.xlu1 %v15352_v40, %s9749_s12 }
0x1a28   : > { %v6017_v44 = vpop.xlane.xlu0 %6016 }
0x1a29   : > { %v6103_v32 = vsub.f32 %v13937_v35, %v6017_v44  ;;  %v6178_v35 = vmul.f32 1.442695, %v6099_v42 }
0x1a38   : > { %v6002_v10 = vpop.xlane.xlu1 %6001 }
0x1a39   : > { %v6092_v17 = vsub.f32 %v13956_v4, %v6002_v10  ;;  %v6093_v14 = vsub.f32 %v13961_v51, %v6002_v10  ;;  %v6102_v51 = vsub.f32 %v13932_v7, %v6017_v44  ;;  %v14281_v7 = vadd.f32 %v9706_v46, %v14219_v49 }
0x1a3b   : > { %v6164_v52 = vmul.f32 1.442695, %v6092_v17  ;;  %v6166_v28 = vmul.f32 1.442695, %v6093_v14  ;;  %v14285_v17 = vpop.xlane.xlu0 %6022 }
0x1a3c   : > { %v6008_v13 = vpop.xlane.xlu1 %6007 }
0x1a3d   : > { %9245 = vpow2.f32 %v6164_v52  ;;  %v6096_v40 = vsub.f32 %v13978_v61, %v6008_v13  ;;  %v6097_v18 = vsub.f32 %v13983_v29, %v6008_v13  ;;  %v9705_v61 = vld [vmem:[%s15053_s5 + $0x1e0] sm:$0xff] }
0x1a3e   : > { %9247 = vpow2.f32 %v6166_v28  ;;  %v14275_v29 = vadd.f32 %v9705_v61, %v14217_v33 }
0x1a3f   : > { %v6172_v4 = vmul.f32 1.442695, %v6096_v40  ;;  %9249 = vpow2.f32 %v6168_v12  ;;  %v6174_v2 = vmul.f32 1.442695, %v6097_v18  ;;  %v14297_v40 = vpop.xlane.xlu0 %6028 }
0x1a40   : > { %v6014_v25 = vpop.xlane.xlu1 %6013  ;;  %9251 = vpow2.f32 %v6170_v43  ;;  %v6186_v43 = vmul.f32 1.442695, %v6103_v32  ;;  %v6078_v49 = vmax.f32 %v14275_v29, %v14281_v7 }
0x1a41   : > { %v6100_v10 = vsub.f32 %v13992_v1, %v6014_v25  ;;  %v6101_v8 = vsub.f32 %v13997_v21, %v6014_v25  ;;  %9253 = vpow2.f32 %v6176_v62  ;;  %v6184_v21 = vmul.f32 1.442695, %v6102_v51 }
0x1a42   : > { %9255 = vpow2.f32 %v6172_v4 }
0x1a43   : > { %v6180_v1 = vmul.f32 1.442695, %v6100_v10  ;;  %v6182_v12 = vmul.f32 1.442695, %v6101_v8  ;;  %9257 = vpow2.f32 %v6174_v2  ;;  %v14311_v8 = vpop.xlane.xlu0 %6034 }
0x1a44   : > { %v6020_v44 = vpop.xlane.xlu1 %6019 }
0x1a45   : > { %9259 = vpow2.f32 %v6180_v1  ;;  %v6104_v33 = vsub.f32 %v14014_v34, %v6020_v44  ;;  %v6105_v48 = vsub.f32 %v14019_v19, %v6020_v44 }
0x1a46   : > { %9261 = vpow2.f32 %v6182_v12 }
0x1a47   : > { %v14287_v14 = vpop.eup %9245  ;;  %9263 = vpow2.f32 %v6178_v35  ;;  %v6188_v38 = vmul.f32 1.442695, %v6104_v33  ;;  %v6190_v28 = vmul.f32 1.442695, %v6105_v48 }
0x1a48   : > { %v14291_v62 = vpop.eup %9247  ;;  %9265 = vpow2.f32 %v6184_v21  ;;  %v6026_v52 = vpop.xlane.xlu1 %6025 }
0x1a49   : > { %9267 = vpow2.f32 %v6186_v43  ;;  %v6108_v34 = vsub.f32 %v14028_v11, %v6026_v52  ;;  %v6109_v19 = vsub.f32 %v14033_v54, %v6026_v52  ;;  %6079 = vmax.xlane.f32.xlu1 %v6078_v49  ;;  %v14295_v13 = vpop.eup %9249  ;;  %v6288_v18 = vadd.f32 %v14291_v62, %v14287_v14  ;;  %v14325_v33 = vpop.xlane.xlu0 %6040 }
0x1a4a   : > { %v14301_v42 = vpop.eup %9251  ;;  %9269 = vpow2.f32 %v6188_v38 }
0x1a4b   : > { %v14303_v4 = vpop.eup %9253  ;;  %v6196_v51 = vmul.f32 1.442695, %v6108_v34  ;;  %6289 = vadd.xlane.f32.xlu0 %v6288_v18  ;;  %9271 = vpow2.f32 %v6190_v28  ;;  %v6198_v11 = vmul.f32 1.442695, %v6109_v19  ;;  %v6291_v61 = vadd.f32 %v14301_v42, %v14295_v13 }
0x1a4c   : > { %v6032_v2 = vpop.xlane.xlu1 %6031  ;;  %v14305_v25 = vpop.eup %9255 }
0x1a4d   : > { %v6112_v54 = vsub.f32 %v14050_v3, %v6032_v2  ;;  %v6113_v32 = vsub.f32 %v14055_v0, %v6032_v2  ;;  %v14309_v10 = vpop.eup %9257  ;;  %9273 = vpow2.f32 %v6196_v51 }
0x1a4e   : > { %9275 = vpow2.f32 %v6198_v11  ;;  %v6294_v49 = vadd.f32 %v14309_v10, %v14305_v25 }
0x1a4f   : > { %v14315_v46 = vpop.eup %9259  ;;  %v6204_v1 = vmul.f32 1.442695, %v6112_v54  ;;  %6292 = vadd.xlane.f32.xlu0 %v6291_v61  ;;  %v6206_v3 = vmul.f32 1.442695, %v6113_v32 }
0x1a50   : > { %v14317_v35 = vpop.eup %9261  ;;  %v6038_v12 = vpop.xlane.xlu1 %6037 }
0x1a51   : > { %v14319_v21 = vpop.eup %9263  ;;  %v6116_v0 = vsub.f32 %v14064_v57, %v6038_v12  ;;  %v6117_v44 = vsub.f32 %v14069_v60, %v6038_v12  ;;  %v6300_v48 = vadd.f32 %v14317_v35, %v14315_v46  ;;  %9277 = vpow2.f32 %v6204_v1  ;;  %v14337_v18 = vpop.xlane.xlu0 %6046 }
0x1a52   : > { %v14323_v43 = vpop.eup %9265  ;;  %9279 = vpow2.f32 %v6206_v3  ;;  %v6297_v51 = vadd.f32 %v14319_v21, %v14303_v4 }
0x1a53   : > { %v14331_v38 = vpop.eup %9267  ;;  %v6212_v52 = vmul.f32 1.442695, %v6116_v0  ;;  %6301 = vadd.xlane.f32.xlu1 %v6300_v48  ;;  %6295 = vadd.xlane.f32.xlu0 %v6294_v49  ;;  %v6214_v57 = vmul.f32 1.442695, %v6117_v44 }
0x1a54   : > { %v6044_v28 = vpop.xlane.xlu1 %6043  ;;  %v14335_v19 = vpop.eup %9269  ;;  %v6303_v2 = vadd.f32 %v14331_v38, %v14323_v43 }
0x1a55   : > { %v6120_v60 = vsub.f32 %v14086_v5, %v6044_v28  ;;  %v6121_v34 = vsub.f32 %v14091_v26, %v6044_v28  ;;  %v14343_v11 = vpop.eup %9271  ;;  %9281 = vpow2.f32 %v6212_v52 }
0x1a56   : > { %9283 = vpow2.f32 %v6214_v57  ;;  %v6306_v3 = vadd.f32 %v14343_v11, %v14335_v19 }
0x1a57   : > { %v6220_v54 = vmul.f32 1.442695, %v6120_v60  ;;  %6298 = vadd.xlane.f32.xlu0 %v6297_v51  ;;  %6304 = vadd.xlane.f32.xlu1 %v6303_v2  ;;  %v6222_v5 = vmul.f32 1.442695, %v6121_v34  ;;  %v14347_v1 = vpop.eup %9273 }
0x1a58   : > { %v6050_v32 = vpop.xlane.xlu1 %6049  ;;  %v14349_v12 = vpop.xlane.xlu0 %6052 }
0x1a59   : > { %v6124_v26 = vsub.f32 %v14100_v31, %v6050_v32  ;;  %v6125_v61 = vsub.f32 %v14105_v22, %v6050_v32  ;;  %v14353_v0 = vpop.eup %9275  ;;  %9285 = vpow2.f32 %v6220_v54 }
0x1a5a   : > { %9287 = vpow2.f32 %v6222_v5  ;;  %v6312_v31 = vadd.f32 %v14353_v0, %v14347_v1 }
0x1a5b   : > { %v6228_v44 = vmul.f32 1.442695, %v6124_v26  ;;  %6307 = vadd.xlane.f32.xlu1 %v6306_v3  ;;  %v6230_v48 = vmul.f32 1.442695, %v6125_v61  ;;  %v14355_v49 = vpop.eup %9277 }
0x1a5c   : > { %v14359_v52 = vpop.eup %9279 }
0x1a5d   : > { %9289 = vpow2.f32 %v6228_v44  ;;  %v6318_v2 = vadd.f32 %v14359_v52, %v14355_v49 }
0x1a5e   : > { %v6056_v22 = vpop.xlane.xlu0 %6055  ;;  %9291 = vpow2.f32 %v6230_v48 }
0x1a5f   : > { %v6128_v28 = vsub.f32 %v14124_v63, %v6056_v22  ;;  %v6129_v57 = vsub.f32 %v14129_v41, %v6056_v22  ;;  %6313 = vadd.xlane.f32.xlu1 %v6312_v31  ;;  %v14363_v51 = vpop.eup %9281 }
0x1a60   : > { %v14367_v54 = vpop.eup %9283 }
0x1a61   : > { %v6236_v60 = vmul.f32 1.442695, %v6128_v28  ;;  %v6238_v34 = vmul.f32 1.442695, %v6129_v57  ;;  %v6324_v41 = vadd.f32 %v14367_v54, %v14363_v51  ;;  %v15353_v57 = vld [vmem:[#allocation32_spill] sm:$0xff] }
0x1a63   : > { %9293 = vpow2.f32 %v6236_v60  ;;  %6319 = vadd.xlane.f32.xlu1 %v6318_v2  ;;  %v14369_v32 = vpop.eup %9285 }
0x1a64   : > { %9295 = vpow2.f32 %v6238_v34  ;;  %v14373_v5 = vpop.eup %9287 }
0x1a65   : > { %v6330_v31 = vadd.f32 %v14373_v5, %v14369_v32 }
0x1a66   : > { %v6062_v63 = vpop.xlane.xlu1 %6061 }
0x1a67   : > { %v6132_v26 = vsub.f32 %v14148_v20, %v6062_v63  ;;  %v6133_v61 = vsub.f32 %v14153_v56, %v6062_v63  ;;  %6325 = vadd.xlane.f32.xlu1 %v6324_v41  ;;  %v14377_v48 = vpop.eup %9289 }
0x1a68   : > { %v14381_v22 = vpop.eup %9291 }
0x1a69   : > { %v6244_v3 = vmul.f32 1.442695, %v6132_v26  ;;  %v6246_v44 = vmul.f32 1.442695, %v6133_v61  ;;  %v6336_v56 = vadd.f32 %v14381_v22, %v14377_v48 }
0x1a6b   : > { %9297 = vpow2.f32 %v6244_v3  ;;  %6331 = vadd.xlane.f32.xlu1 %v6330_v31 }
0x1a6c   : > { %9299 = vpow2.f32 %v6246_v44 }
0x1a6d   : > { %v14383_v28 = vpop.eup %9293  ;;  %6546 = vrot.lane.b32.xlu0 %v15353_v57, %s9749_s12  ;;  %v6106_v57 = vsub.f32 %v13944_v50, %v14285_v17  ;;  %v6111_v50 = vsub.f32 %v13971_v27, %v14297_v40  ;;  %v6118_v27 = vsub.f32 %v14038_v37, %v14325_v33 }
0x1a6e   : > { %v6068_v20 = vpop.xlane.xlu1 %6067  ;;  %v14389_v60 = vpop.eup %9295 }
0x1a6f   : > { %v6136_v34 = vsub.f32 %v14172_v47, %v6068_v20  ;;  %v6137_v2 = vsub.f32 %v14177_v30, %v6068_v20  ;;  %6337 = vadd.xlane.f32.xlu1 %v6336_v56  ;;  %v6342_v26 = vadd.f32 %v14389_v60, %v14383_v28 }
0x1a71   : > { %v6252_v63 = vmul.f32 1.442695, %v6136_v34  ;;  %v6254_v41 = vmul.f32 1.442695, %v6137_v2  ;;  %v6107_v34 = vsub.f32 %v13949_v23, %v14285_v17  ;;  %v6114_v23 = vsub.f32 %v14002_v36, %v14311_v8 }
0x1a72   : > { %v6202_v17 = vmul.f32 1.442695, %v6111_v50  ;;  %v6119_v36 = vsub.f32 %v14043_v16, %v14325_v33  ;;  %v15360_v16 = vld [vmem:[#allocation50_spill] sm:$0xff] }
0x1a73   : > { %9301 = vpow2.f32 %v6252_v63  ;;  %6343 = vadd.xlane.f32.xlu1 %v6342_v26  ;;  %v6192_v63 = vmul.f32 1.442695, %v6106_v57  ;;  %v9707_v57 = vld [vmem:[%s15053_s5 + $0x1f0] sm:$0xff]  ;;  %v6122_v33 = vsub.f32 %v15360_v16, %v14337_v18 }
0x1a74   : > { %9303 = vpow2.f32 %v6254_v41  ;;  %v6194_v41 = vmul.f32 1.442695, %v6107_v34  ;;  %v6218_v34 = vmul.f32 1.442695, %v6119_v36  ;;  %v15365_v16 = vld [vmem:[#allocation52_spill] sm:$0xff] }
0x1a75   : > { %v14395_v61 = vpop.eup %9297  ;;  %v6224_v50 = vmul.f32 1.442695, %v6122_v33 }
0x1a76   : > { %15354 = vst [vmem:[#allocation2_spill] sm:$0xff] %v14395_v61  ;;  %v14397_v3 = vpop.eup %9299  ;;  %v6074_v44 = vpop.xlane.xlu1 %6073 }
0x1a77   : > { %15355 = vst [vmem:[#allocation11_spill] sm:$0xff] %v14397_v3  ;;  %v6140_v31 = vsub.f32 %v14196_v58, %v6074_v44  ;;  %v6141_v47 = vsub.f32 %v14201_v59, %v6074_v44  ;;  %v6348_v30 = vadd.f32 %v14397_v3, %v14395_v61  ;;  %v6110_v59 = vsub.f32 %v13966_v15, %v14297_v40 }
0x1a78   : > { %v6115_v15 = vsub.f32 %v14007_v39, %v14311_v8  ;;  %v14433_v39 = vadd.f32 %v9707_v57, %v14221_v53  ;;  %v9708_v8 = vld [vmem:[%s15053_s5 + $0x1f8] sm:$0xff]  ;;  %v15364_v57 = vld [vmem:[#allocation54_spill] sm:$0xff] }
0x1a79   : > { %v6260_v20 = vmul.f32 1.442695, %v6140_v31  ;;  %v6262_v56 = vmul.f32 1.442695, %v6141_v47  ;;  %6349 = vadd.xlane.f32.xlu1 %v6348_v30  ;;  %v6200_v44 = vmul.f32 1.442695, %v6110_v59  ;;  %v14439_v37 = vadd.f32 %v9708_v8, %v14223_v24 }
0x1a7a   : > { %v6208_v47 = vmul.f32 1.442695, %v6114_v23  ;;  %v6210_v30 = vmul.f32 1.442695, %v6115_v15  ;;  %v15361_v53 = vld [vmem:[#allocation49_spill] sm:$0xff]  ;;  %v6059_v23 = vpop.xlane.xlu0 %6058  ;;  %v15363_v15 = vld [vmem:[#allocation55_spill] sm:$0xff] }
0x1a7b   : > { %9305 = vpow2.f32 %v6260_v20  ;;  %v6081_v24 = vmax.f32 %v14433_v39, %v14439_v37  ;;  %v6130_v8 = vsub.f32 %v15364_v57, %v6059_v23  ;;  %v6131_v33 = vsub.f32 %v15365_v16, %v6059_v23  ;;  %v15368_v57 = vld [vmem:[#allocation36_spill] sm:$0xff] }
0x1a7c   : > { %9307 = vpow2.f32 %v6262_v56  ;;  %v6216_v56 = vmul.f32 1.442695, %v6118_v27 }
0x1a7d   : > { %v14407_v2 = vpop.eup %9301  ;;  %9309 = vpow2.f32 %v6192_v63  ;;  %v6123_v63 = vsub.f32 %v15361_v53, %v14337_v18 }
0x1a7e   : > { %15356 = vst [vmem:[#allocation10_spill] sm:$0xff] %v14407_v2  ;;  %v14411_v58 = vpop.eup %9303  ;;  %9311 = vpow2.f32 %v6194_v41 }
0x1a7f   : > { %15357 = vst [vmem:[#allocation5_spill] sm:$0xff] %v14411_v58  ;;  %v6354_v26 = vadd.f32 %v14411_v58, %v14407_v2  ;;  %9313 = vpow2.f32 %v6200_v44  ;;  %v15370_v2 = vld [vmem:[#allocation39_spill] sm:$0xff] }
0x1a80   : > { %9315 = vpow2.f32 %v6202_v17  ;;  %v6226_v17 = vmul.f32 1.442695, %v6123_v63  ;;  %v6240_v63 = vmul.f32 1.442695, %v6130_v8  ;;  %v15369_v8 = vld [vmem:[#allocation38_spill] sm:$0xff] }
0x1a81   : > { %6355 = vadd.xlane.f32.xlu1 %v6354_v26  ;;  %9317 = vpow2.f32 %v6208_v47  ;;  %v15362_v26 = vld [vmem:[#allocation53_spill] sm:$0xff]  ;;  %v6127_v47 = vsub.f32 %v15363_v15, %v14349_v12 }
0x1a82   : > { %9319 = vpow2.f32 %v6210_v30  ;;  %v6126_v44 = vsub.f32 %v15362_v26, %v14349_v12  ;;  %v15367_v15 = vld [vmem:[#allocation37_spill] sm:$0xff] }
0x1a83   : > { %9321 = vpow2.f32 %v6216_v56  ;;  %v6234_v56 = vmul.f32 1.442695, %v6127_v47 }
0x1a84   : > { %9323 = vpow2.f32 %v6218_v34  ;;  %v6232_v36 = vmul.f32 1.442695, %v6126_v44  ;;  %v6242_v44 = vmul.f32 1.442695, %v6131_v33 }
0x1a85   : > { %v14421_v31 = vpop.eup %9305  ;;  %9325 = vpow2.f32 %v6224_v50 }
0x1a86   : > { %15358 = vst [vmem:[#allocation13_spill] sm:$0xff] %v14421_v31  ;;  %v14425_v40 = vpop.eup %9307  ;;  %9327 = vpow2.f32 %v6226_v17 }
0x1a87   : > { %15359 = vst [vmem:[#allocation4_spill] sm:$0xff] %v14425_v40  ;;  %v6360_v20 = vadd.f32 %v14425_v40, %v14421_v31  ;;  %v14447_v59 = vpop.eup %9309  ;;  %9329 = vpow2.f32 %v6232_v36 }
0x1a88   : > { %v14451_v41 = vpop.eup %9311  ;;  %9331 = vpow2.f32 %v6234_v56 }
0x1a89   : > { %6361 = vadd.xlane.f32.xlu1 %v6360_v20  ;;  %v14457_v18 = vpop.eup %9313  ;;  %v6309_v27 = vadd.f32 %v14451_v41, %v14447_v59  ;;  %v6065_v20 = vpop.xlane.xlu0 %6064  ;;  %9333 = vpow2.f32 %v6240_v63  ;;  %v15371_v63 = vld [vmem:[#allocation41_spill] sm:$0xff] }
0x1a8a   : > { %v14461_v30 = vpop.eup %9315  ;;  %v6135_v17 = vsub.f32 %v15367_v15, %v6065_v20  ;;  %9335 = vpow2.f32 %v6242_v44 }
0x1a8b   : > { %v14465_v34 = vpop.eup %9317  ;;  %v6315_v12 = vadd.f32 %v14461_v30, %v14457_v18 }
0x1a8c   : > { %6082 = vmax.xlane.f32.xlu0 %v6081_v24  ;;  %v14469_v53 = vpop.eup %9319  ;;  %v15366_v24 = vld [vmem:[#allocation35_spill] sm:$0xff] }
0x1a8d   : > { %v6134_v50 = vsub.f32 %v15366_v24, %v6065_v20  ;;  %v6071_v26 = vpop.xlane.xlu0 %6070  ;;  %v14473_v47 = vpop.eup %9321  ;;  %v6321_v23 = vadd.f32 %v14469_v53, %v14465_v34 }
0x1a8e   : > { %v6138_v16 = vsub.f32 %v15368_v57, %v6071_v26  ;;  %v6139_v31 = vsub.f32 %v15369_v8, %v6071_v26 }
0x1a8f   : > { %v6248_v36 = vmul.f32 1.442695, %v6134_v50 }
0x1a90   : > { %6310 = vadd.xlane.f32.xlu0 %v6309_v27  ;;  %v14477_v27 = vpop.eup %9323  ;;  %v6256_v15 = vmul.f32 1.442695, %v6138_v16  ;;  %v6258_v40 = vmul.f32 1.442695, %v6139_v31 }
0x1a91   : > { %v6077_v56 = vpop.xlane.xlu0 %6076  ;;  %v14481_v33 = vpop.eup %9325  ;;  %v6327_v20 = vadd.f32 %v14477_v27, %v14473_v47  ;;  %9337 = vpow2.f32 %v6248_v36 }
0x1a92   : > { %v14485_v24 = vpop.eup %9327  ;;  %v6142_v57 = vsub.f32 %v15370_v2, %v6077_v56  ;;  %v6143_v50 = vsub.f32 %v15371_v63, %v6077_v56 }
0x1a93   : > { %v14489_v26 = vpop.eup %9329  ;;  %v6333_v44 = vadd.f32 %v14485_v24, %v14481_v33 }
0x1a94   : > { %6316 = vadd.xlane.f32.xlu0 %v6315_v12  ;;  %v6250_v12 = vmul.f32 1.442695, %v6135_v17  ;;  %v14493_v17 = vpop.eup %9331  ;;  %v6266_v36 = vmul.f32 1.442695, %v6143_v50 }
0x1a95   : > { %v14495_v31 = vpop.eup %9333  ;;  %v6339_v8 = vadd.f32 %v14493_v17, %v14489_v26 }
0x1a96   : > { %9339 = vpow2.f32 %v6250_v12  ;;  %v14499_v12 = vpop.eup %9335 }
0x1a97   : > { %9341 = vpow2.f32 %v6256_v15 }
0x1a98   : > { %6322 = vadd.xlane.f32.xlu0 %v6321_v23  ;;  %9343 = vpow2.f32 %v6258_v40  ;;  %v6264_v23 = vmul.f32 1.442695, %v6142_v57  ;;  %v6345_v40 = vadd.f32 %v14499_v12, %v14495_v31 }
0x1a9b   : > { %v14501_v56 = vpop.eup %9337 }
0x1a9c   : > { %6328 = vadd.xlane.f32.xlu0 %v6327_v20  ;;  %15372 = vst [vmem:[#allocation12_spill] sm:$0xff] %v14501_v56 }
0x1aa0   : > { %6334 = vadd.xlane.f32.xlu0 %v6333_v44  ;;  %v14505_v20 = vpop.eup %9339 }
0x1aa1   : > { %v6278_v16 = vpop.xlane.xlu1 %6277  ;;  %v14507_v15 = vpop.eup %9341  ;;  %v6351_v63 = vadd.f32 %v14505_v20, %v14501_v56 }
0x1aa2   : > { %9345 = vrcp.f32 %v6278_v16  ;;  %15373 = vst [vmem:[#allocation7_spill] sm:$0xff] %v14507_v15  ;;  %v14509_v57 = vpop.eup %9343 }
0x1aa3   : > { %v6281_v2 = vpop.xlane.xlu0 %6280  ;;  %15374 = vst [vmem:[#allocation15_spill] sm:$0xff] %v14509_v57 }
0x1aa4   : > { %9347 = vrcp.f32 %v6281_v2  ;;  %6340 = vadd.xlane.f32.xlu0 %v6339_v8 }
0x1aa5   : > { %9349 = vpow2.f32 %v6264_v23  ;;  %v6357_v23 = vadd.f32 %v14509_v57, %v14507_v15  ;;  %v6531_v57 = vpop.permute.xlu1 %6530 }
0x1aa6   : > { %9351 = vpow2.f32 %v6266_v36 }
0x1aa8   : > { %6346 = vadd.xlane.f32.xlu0 %v6345_v40 }
0x1aa9   : > { %v6284_v15 = vpop.xlane.xlu0 %6283 }
0x1aac   : > { %v9346_v50 = vpop.eup %9345  ;;  %6352 = vadd.xlane.f32.xlu0 %v6351_v63 }
0x1aad   : > { %v6404_v36 = vmul.f32 %v9346_v50, %v14233_v45  ;;  %v6405_v8 = vmul.f32 %v9346_v50, %v14235_v55  ;;  %v6287_v3 = vpop.xlane.xlu0 %6286 }
0x1aae   : > { %v9348_v44 = vpop.eup %9347  ;;  %9353 = vrcp.f32 %v6287_v3  ;;  %v15379_v3 = vld [vmem:[#allocation3_spill] sm:$0xff] }
0x1aaf   : > { %v14515_v16 = vpop.eup %9349  ;;  %v6406_v2 = vmul.f32 %v9348_v44, %v14237_v9  ;;  %v6407_v40 = vmul.f32 %v9348_v44, %v14241_v6 }
0x1ab0   : > { %15375 = vst [vmem:[#allocation6_spill] sm:$0xff] %v14515_v16  ;;  %v14521_v58 = vpop.eup %9351  ;;  %6358 = vadd.xlane.f32.xlu0 %v6357_v23 }
0x1ab1   : > { %15376 = vst [vmem:[#allocation14_spill] sm:$0xff] %v14521_v58  ;;  %v6469_v61 = vpack.c.bf16 %v6407_v40, %v6405_v8  ;;  %v6468_v56 = vpack.c.bf16 %v6406_v2, %v6404_v36  ;;  %v6363_v63 = vadd.f32 %v14521_v58, %v14515_v16 }
0x1ab3   : > { %6596 = vmatprep.mubr.bf16.mxu1 %v6469_v61 }
0x1ab4   : > { %6364 = vadd.xlane.f32.xlu0 %v6363_v63 }
0x1ab8   : > { %v9354_v36 = vpop.eup %9353 }
0x1ad6   : > { %v6080_v45 = vpop.xlane.xlu1 %6079 }
0x1ad7   : > { %v6144_v9 = vsub.f32 %v14275_v29, %v6080_v45  ;;  %v6145_v55 = vsub.f32 %v14281_v7, %v6080_v45  ;;  %v6411_v45 = vmul.f32 %v9354_v36, %v15379_v3 }
0x1ad8   : > { %v6290_v44 = vpop.xlane.xlu0 %6289 }
0x1ad9   : > { %v6268_v50 = vmul.f32 1.442695, %v6144_v9  ;;  %v6270_v6 = vmul.f32 1.442695, %v6145_v55 }
0x1adb   : > { %9355 = vpow2.f32 %v6268_v50 }
0x1adc   : > { %9357 = vpow2.f32 %v6270_v6  ;;  %v6293_v23 = vpop.xlane.xlu0 %6292 }
0x1add   : > { %9359 = vrcp.f32 %v6284_v15  ;;  %v15380_v15 = vld [vmem:[#allocation42_spill] sm:$0xff] }
0x1ade   : > { %9361 = vrcp.f32 %v6293_v23  ;;  %v15381_v23 = vld [vmem:[#allocation34_spill] sm:$0xff] }
0x1adf   : > { %9363 = vrcp.f32 %v6290_v44  ;;  %v6410_v16 = vmul.f32 %v9354_v36, %v15381_v23 }
0x1ae0   : > { %v6296_v61 = vpop.xlane.xlu0 %6295  ;;  %v6302_v9 = vpop.xlane.xlu1 %6301 }
0x1ae4   : > { %v6299_v8 = vpop.xlane.xlu0 %6298 }
0x1ae5   : > { %v14527_v2 = vpop.eup %9355  ;;  %9365 = vrcp.f32 %v6299_v8 }
0x1ae6   : > { %15377 = vst [vmem:[#allocation9_spill] sm:$0xff] %v14527_v2  ;;  %v14529_v40 = vpop.eup %9357  ;;  %9367 = vrcp.f32 %v6296_v61 }
0x1ae7   : > { %15378 = vst [vmem:[#allocation17_spill] sm:$0xff] %v14529_v40  ;;  %v6366_v29 = vadd.f32 %v14529_v40, %v14527_v2  ;;  %v9360_v7 = vpop.eup %9359  ;;  %v6305_v2 = vpop.xlane.xlu1 %6304  ;;  %v15382_v40 = vld [vmem:[#allocation40_spill] sm:$0xff] }
0x1ae8   : > { %v6547_v63 = vpop.permute.xlu0 %6546  ;;  %v6409_v55 = vmul.f32 %v9360_v7, %v15380_v15  ;;  %v9362_v6 = vpop.eup %9361  ;;  %v6408_v58 = vmul.f32 %v9360_v7, %v15382_v40  ;;  %9369 = vrcp.f32 %v6305_v2 }
0x1ae9   : > { %6367 = vadd.xlane.f32.xlu1 %v6366_v29  ;;  %8106 = vmatprep.subr.bf16.mxu1 %v6547_v63  ;;  %v9364_v44 = vpop.eup %9363  ;;  %v6415_v29 = vmul.f32 %v9362_v6, %v14301_v42  ;;  %9371 = vrcp.f32 %v6302_v9 }
0x1aea   : > { %8107 = vmatpush3.bf16.msra.mxu1 %v6531_v57  ;;  %v6471_v50 = vpack.c.bf16 %v6411_v45, %v6409_v55  ;;  %v6413_v63 = vmul.f32 %v9364_v44, %v14291_v62  ;;  %v6470_v57 = vpack.c.bf16 %v6410_v16, %v6408_v58  ;;  %v6412_v36 = vmul.f32 %v9364_v44, %v14287_v14 }
0x1aec   : > { %v6473_v3 = vpack.c.bf16 %v6415_v29, %v6413_v63 }
0x1aed   : > { %6597 = vmatmul.mubr.bf16.vlgmr.msra.gmra.mrb[192].mxu1 %v6468_v56  ;;  %v6414_v56 = vmul.f32 %v9362_v6, %v14295_v13 }
0x1aee   : > { %6604 = vmatprep.mubr.bf16.mxu1 %v6471_v50  ;;  %v6308_v50 = vpop.xlane.xlu1 %6307 }
0x1aef   : > { %v9366_v15 = vpop.eup %9365  ;;  %v6472_v45 = vpack.c.bf16 %v6414_v56, %v6412_v36  ;;  %9373 = vrcp.f32 %v6308_v50 }
0x1af0   : > { %v9368_v61 = vpop.eup %9367  ;;  %v6419_v8 = vmul.f32 %v9366_v15, %v14319_v21  ;;  %v6418_v58 = vmul.f32 %v9366_v15, %v14303_v4 }
0x1af1   : > { %v6417_v42 = vmul.f32 %v9368_v61, %v14309_v10  ;;  %v6416_v2 = vmul.f32 %v9368_v61, %v14305_v25 }
0x1af2   : > { %v9370_v7 = vpop.eup %9369  ;;  %v6314_v44 = vpop.xlane.xlu1 %6313 }
0x1af3   : > { %v6475_v40 = vpack.c.bf16 %v6419_v8, %v6417_v42  ;;  %v9372_v62 = vpop.eup %9371  ;;  %v6423_v16 = vmul.f32 %v9370_v7, %v14331_v38  ;;  %v6474_v9 = vpack.c.bf16 %v6418_v58, %v6416_v2  ;;  %v6422_v14 = vmul.f32 %v9370_v7, %v14323_v43 }
0x1af4   : > { %v6421_v13 = vmul.f32 %v9372_v62, %v14317_v35  ;;  %v6420_v10 = vmul.f32 %v9372_v62, %v14315_v46  ;;  %9375 = vrcp.f32 %v6314_v44 }
0x1af5   : > { %6605 = vmatmul.mubr.bf16.gmra.mrb[196].mxu1 %v6470_v57 }
0x1af6   : > { %6612 = vmatprep.mubr.bf16.mxu1 %v6473_v3  ;;  %v6477_v21 = vpack.c.bf16 %v6423_v16, %v6421_v13  ;;  %v6476_v55 = vpack.c.bf16 %v6422_v14, %v6420_v10  ;;  %v6320_v46 = vpop.xlane.xlu1 %6319 }
0x1af9   : > { %v9374_v63 = vpop.eup %9373 }
0x1afa   : > { %v6425_v56 = vmul.f32 %v9374_v63, %v14343_v11  ;;  %v6424_v36 = vmul.f32 %v9374_v63, %v14335_v19 }
0x1afd   : > { %6613 = vmatmul.mubr.bf16.gmra.mrb[200].mxu1 %v6472_v45 }
0x1afe   : > { %6620 = vmatprep.mubr.bf16.mxu1 %v6475_v40  ;;  %v9376_v57 = vpop.eup %9375  ;;  %v6326_v40 = vpop.xlane.xlu1 %6325 }
0x1aff   : > { %v6429_v58 = vmul.f32 %v9376_v57, %v14353_v0 }
0x1b05   : > { %6621 = vmatmul.mubr.bf16.gmra.mrb[204].mxu1 %v6474_v9  ;;  %v6428_v9 = vmul.f32 %v9376_v57, %v14347_v1 }
0x1b06   : > { %6628 = vmatprep.mubr.bf16.mxu1 %v6477_v21  ;;  %v6332_v21 = vpop.xlane.xlu1 %6331 }
0x1b0a   : > { %v6338_v44 = vpop.xlane.xlu1 %6337 }
0x1b0d   : > { %6629 = vmatmul.mubr.bf16.gmra.mrb[208].mxu1 %v6476_v55 }
0x1b19   : > { %v6083_v6 = vpop.xlane.xlu0 %6082 }
0x1b1a   : > { %v6146_v4 = vsub.f32 %v14433_v39, %v6083_v6  ;;  %v6147_v38 = vsub.f32 %v14439_v37, %v6083_v6 }
0x1b1c   : > { %v6272_v25 = vmul.f32 1.442695, %v6146_v4  ;;  %v6274_v35 = vmul.f32 1.442695, %v6147_v38 }
0x1b1d   : > { %v6311_v23 = vpop.xlane.xlu0 %6310 }
0x1b1e   : > { %9377 = vpow2.f32 %v6272_v25 }
0x1b1f   : > { %9379 = vpow2.f32 %v6274_v35 }
0x1b20   : > { %9381 = vrcp.f32 %v6311_v23 }
0x1b21   : > { %v6317_v43 = vpop.xlane.xlu0 %6316 }
0x1b22   : > { %9383 = vrcp.f32 %v6317_v43  ;;  %v6344_v43 = vpop.xlane.xlu1 %6343 }
0x1b25   : > { %v6323_v29 = vpop.xlane.xlu0 %6322 }
0x1b26   : > { %9385 = vrcp.f32 %v6323_v29 }
0x1b27   : > { %9387 = vrcp.f32 %v6320_v46 }
0x1b28   : > { %v14551_v3 = vpop.eup %9377 }
0x1b29   : > { %v14553_v39 = vpop.eup %9379  ;;  %v6329_v61 = vpop.xlane.xlu0 %6328 }
0x1b2a   : > { %v9382_v37 = vpop.eup %9381  ;;  %v6369_v15 = vadd.f32 %v14553_v39, %v14551_v3  ;;  %9389 = vrcp.f32 %v6329_v61 }
0x1b2b   : > { %v6427_v8 = vmul.f32 %v9382_v37, %v14451_v41  ;;  %v6426_v42 = vmul.f32 %v9382_v37, %v14447_v59  ;;  %9391 = vrcp.f32 %v6326_v40 }
0x1b2c   : > { %v9384_v45 = vpop.eup %9383  ;;  %6370 = vadd.xlane.f32.xlu0 %v6369_v15  ;;  %v6350_v15 = vpop.xlane.xlu1 %6349 }
0x1b2d   : > { %v6479_v7 = vpack.c.bf16 %v6427_v8, %v6425_v56  ;;  %v6478_v62 = vpack.c.bf16 %v6426_v42, %v6424_v36  ;;  %v6431_v16 = vmul.f32 %v9384_v45, %v14461_v30  ;;  %v6430_v19 = vmul.f32 %v9384_v45, %v14457_v18  ;;  %v6335_v59 = vpop.xlane.xlu0 %6334 }
0x1b2e   : > { %9393 = vrcp.f32 %v6335_v59 }
0x1b2f   : > { %6636 = vmatprep.mubr.bf16.mxu1 %v6479_v7  ;;  %v6481_v2 = vpack.c.bf16 %v6431_v16, %v6429_v58  ;;  %v6480_v30 = vpack.c.bf16 %v6430_v19, %v6428_v9  ;;  %9395 = vrcp.f32 %v6332_v21  ;;  %v15385_v21 = vld [vmem:[#allocation15_spill] sm:$0xff] }
0x1b30   : > { %v9386_v13 = vpop.eup %9385  ;;  %6637 = vmatmul.mubr.bf16.gmra.mrb[212].mxu1 %v6478_v62  ;;  %v6356_v45 = vpop.xlane.xlu1 %6355 }
0x1b31   : > { %6644 = vmatprep.mubr.bf16.mxu1 %v6481_v2  ;;  %v9388_v11 = vpop.eup %9387  ;;  %v6435_v41 = vmul.f32 %v9386_v13, %v14469_v53  ;;  %v6434_v50 = vmul.f32 %v9386_v13, %v14465_v34  ;;  %v6341_v6 = vpop.xlane.xlu0 %6340 }
0x1b32   : > { %v6433_v0 = vmul.f32 %v9388_v11, %v14359_v52  ;;  %v6432_v53 = vmul.f32 %v9388_v11, %v14355_v49  ;;  %9397 = vrcp.f32 %v6341_v6  ;;  %v15388_v6 = vld [vmem:[#allocation7_spill] sm:$0xff] }
0x1b33   : > { %9399 = vrcp.f32 %v6338_v44 }
0x1b34   : > { %v6483_v14 = vpack.c.bf16 %v6435_v41, %v6433_v0  ;;  %v9390_v10 = vpop.eup %9389  ;;  %v6482_v52 = vpack.c.bf16 %v6434_v50, %v6432_v53  ;;  %v6362_v2 = vpop.xlane.xlu1 %6361  ;;  %v15384_v41 = vld [vmem:[#allocation12_spill] sm:$0xff]  ;;  %v15386_v0 = vld [vmem:[#allocation2_spill] sm:$0xff] }
0x1b35   : > { %v9392_v55 = vpop.eup %9391  ;;  %v6439_v18 = vmul.f32 %v9390_v10, %v14477_v27  ;;  %v6438_v35 = vmul.f32 %v9390_v10, %v14473_v47  ;;  %v6347_v23 = vpop.xlane.xlu0 %6346  ;;  %v15389_v53 = vld [vmem:[#allocation14_spill] sm:$0xff] }
0x1b36   : > { %v6437_v1 = vmul.f32 %v9392_v55, %v14367_v54  ;;  %v6436_v27 = vmul.f32 %v9392_v55, %v14363_v51  ;;  %9401 = vrcp.f32 %v6347_v23  ;;  %v15392_v23 = vld [vmem:[#allocation6_spill] sm:$0xff] }
0x1b37   : > { %9403 = vrcp.f32 %v6344_v43 }
0x1b38   : > { %6645 = vmatmul.mubr.bf16.gmra.mrb[216].mxu1 %v6480_v30  ;;  %v6485_v4 = vpack.c.bf16 %v6439_v18, %v6437_v1  ;;  %v9394_v38 = vpop.eup %9393  ;;  %v6484_v54 = vpack.c.bf16 %v6438_v35, %v6436_v27  ;;  %v15390_v1 = vld [vmem:[#allocation10_spill] sm:$0xff]  ;;  %v15393_v27 = vld [vmem:[#allocation13_spill] sm:$0xff] }
0x1b39   : > { %6652 = vmatprep.mubr.bf16.mxu1 %v6483_v14  ;;  %v9396_v25 = vpop.eup %9395  ;;  %v6443_v34 = vmul.f32 %v9394_v38, %v14485_v24  ;;  %v6442_v57 = vmul.f32 %v9394_v38, %v14481_v33  ;;  %v6353_v37 = vpop.xlane.xlu0 %6352 }
0x1b3a   : > { %v6441_v49 = vmul.f32 %v9396_v25, %v14373_v5  ;;  %v6440_v24 = vmul.f32 %v9396_v25, %v14369_v32  ;;  %9405 = vrcp.f32 %v6353_v37 }
0x1b3b   : > { %9407 = vrcp.f32 %v6350_v15 }
0x1b3c   : > { %v6487_v46 = vpack.c.bf16 %v6443_v34, %v6441_v49  ;;  %v9398_v29 = vpop.eup %9397  ;;  %v6486_v5 = vpack.c.bf16 %v6442_v57, %v6440_v24 }
0x1b3d   : > { %v9400_v63 = vpop.eup %9399  ;;  %v6447_v47 = vmul.f32 %v9398_v29, %v14493_v17  ;;  %v6446_v36 = vmul.f32 %v9398_v29, %v14489_v26  ;;  %v6359_v42 = vpop.xlane.xlu0 %6358  ;;  %v6813_v29 = vld [vmem:[%s15050_s2 + $0x4e0] sm:$0xff] }
0x1b3e   : > { %v6445_v51 = vmul.f32 %v9400_v63, %v14381_v22  ;;  %v6444_v17 = vmul.f32 %v9400_v63, %v14377_v48  ;;  %9409 = vrcp.f32 %v6359_v42  ;;  %v15383_v48 = vld [vmem:[#allocation11_spill] sm:$0xff] }
0x1b3f   : > { %9411 = vrcp.f32 %v6356_v45  ;;  %v6814_v63 = vld [vmem:[%s15050_s2 + $0x4e8] sm:$0xff] }
0x1b40   : > { %6653 = vmatmul.mubr.bf16.gmra.mrb[220].mxu1 %v6482_v52  ;;  %v6489_v61 = vpack.c.bf16 %v6447_v47, %v6445_v51  ;;  %v9402_v56 = vpop.eup %9401  ;;  %v6488_v22 = vpack.c.bf16 %v6446_v36, %v6444_v17  ;;  %v6821_v37 = vpack.c.bf16 %v6814_v63, %v6813_v29  ;;  %v15394_v36 = vld [vmem:[#allocation17_spill] sm:$0xff]  ;;  %v9713_v29 = vld [vmem:[%s15050_s2 + $0x190] sm:$0xff] }
0x1b41   : > { %6660 = vmatprep.mubr.bf16.mxu1 %v6485_v4  ;;  %v9404_v8 = vpop.eup %9403  ;;  %v6451_v33 = vmul.f32 %v9402_v56, %v14499_v12  ;;  %v6450_v58 = vmul.f32 %v9402_v56, %v14495_v31  ;;  %v6365_v16 = vpop.xlane.xlu0 %6364  ;;  %v15391_v4 = vld [vmem:[#allocation4_spill] sm:$0xff]  ;;  %v15395_v17 = vld [vmem:[#allocation9_spill] sm:$0xff] }
0x1b42   : > { %v6449_v32 = vmul.f32 %v9404_v8, %v14389_v60  ;;  %v6448_v12 = vmul.f32 %v9404_v8, %v14383_v28  ;;  %9413 = vrcp.f32 %v6365_v16  ;;  %8700 = vmatprep.subr.msk.bf16.mxu0 %vm553_vm0, %v6821_v37 }
0x1b43   : > { %9415 = vrcp.f32 %v6362_v2 }
0x1b44   : > { %v6491_v40 = vpack.c.bf16 %v6451_v33, %v6449_v32  ;;  %v9406_v7 = vpop.eup %9405  ;;  %v6490_v60 = vpack.c.bf16 %v6450_v58, %v6448_v12 }
0x1b45   : > { %v9408_v62 = vpop.eup %9407  ;;  %v6455_v26 = vmul.f32 %v9406_v7, %v14505_v20  ;;  %v6454_v9 = vmul.f32 %v9406_v7, %v15384_v41  ;;  %v15387_v20 = vld [vmem:[#allocation5_spill] sm:$0xff]  ;;  %v6815_v7 = vld [vmem:[%s15050_s2 + $0x4f0] sm:$0xff] }
0x1b46   : > { %v6453_v13 = vmul.f32 %v9408_v62, %v15383_v48  ;;  %v6452_v30 = vmul.f32 %v9408_v62, %v15386_v0  ;;  %v6816_v62 = vld [vmem:[%s15050_s2 + $0x4f8] sm:$0xff] }
0x1b47   : > { %v6822_v16 = vpack.c.bf16 %v6816_v62, %v6815_v7  ;;  %v9717_v7 = vld [vmem:[%s15050_s2 + $0x1a0] sm:$0xff] }
0x1b48   : > { %6661 = vmatmul.mubr.bf16.gmra.mrb[224].mxu1 %v6484_v54  ;;  %v6493_v11 = vpack.c.bf16 %v6455_v26, %v6453_v13  ;;  %v9410_v19 = vpop.eup %9409  ;;  %v6492_v28 = vpack.c.bf16 %v6454_v9, %v6452_v30 }
0x1b49   : > { %6668 = vmatprep.mubr.bf16.mxu1 %v6487_v46  ;;  %v9412_v59 = vpop.eup %9411  ;;  %v6459_v31 = vmul.f32 %v9410_v19, %v15385_v21  ;;  %v6458_v18 = vmul.f32 %v9410_v19, %v15388_v6 }
0x1b4a   : > { %v6457_v14 = vmul.f32 %v9412_v59, %v15387_v20  ;;  %v6456_v52 = vmul.f32 %v9412_v59, %v15390_v1  ;;  %v9711_v1 = vld [vmem:[%s15050_s2 + $0x1c0] sm:$0xff] }
0x1b4c   : > { %v6495_v10 = vpack.c.bf16 %v6459_v31, %v6457_v14  ;;  %v9414_v55 = vpop.eup %9413  ;;  %v6494_v25 = vpack.c.bf16 %v6458_v18, %v6456_v52 }
0x1b4d   : > { %v9416_v50 = vpop.eup %9415  ;;  %v6463_v44 = vmul.f32 %v9414_v55, %v15389_v53  ;;  %v6462_v34 = vmul.f32 %v9414_v55, %v15392_v23  ;;  %v9710_v53 = vld [vmem:[%s15050_s2 + $0x188] sm:$0xff] }
0x1b4e   : > { %v6461_v38 = vmul.f32 %v9416_v50, %v15391_v4  ;;  %v6460_v43 = vmul.f32 %v9416_v50, %v15393_v27 }
0x1b50   : > { %6669 = vmatmul.mubr.bf16.gmra.mrb[228].mxu1 %v6486_v5  ;;  %v6497_v35 = vpack.c.bf16 %v6463_v44, %v6461_v38  ;;  %v6496_v49 = vpack.c.bf16 %v6462_v34, %v6460_v43  ;;  %v6841_v5 = vsel %vm553_vm0, %v6821_v37, 0 }
0x1b51   : > { %6676 = vmatprep.mubr.bf16.mxu1 %v6489_v61  ;;  %8599 = vmatpush3.bf16.xpose.msra.mxu0 %v6841_v5 }
0x1b52   : > { %8701 = vmatprep.subr.msk.bf16.mxu0 %vm553_vm0, %v6822_v16 }
0x1b58   : > { %6677 = vmatmul.mubr.bf16.gmra.mrb[232].mxu1 %v6488_v22 }
0x1b59   : > { %6684 = vmatprep.mubr.bf16.mxu1 %v6491_v40 }
0x1b60   : > { %6685 = vmatmul.mubr.bf16.gmra.mrb[236].mxu1 %v6490_v60 }
0x1b61   : > { %6692 = vmatprep.mubr.bf16.mxu1 %v6493_v11 }
0x1b68   : > { %6693 = vmatmul.mubr.bf16.gmra.mrb[240].mxu1 %v6492_v28 }
0x1b69   : > { %6700 = vmatprep.mubr.bf16.mxu1 %v6495_v10  ;;  %v9709_v10 = vld [vmem:[%s15050_s2 + $0x180] sm:$0xff] }
0x1b70   : > { %6701 = vmatmul.mubr.bf16.gmra.mrb[244].mxu1 %v6494_v25 }
0x1b71   : > { %6708 = vmatprep.mubr.bf16.mxu1 %v6497_v35  ;;  %v9712_v35 = vld [vmem:[%s15050_s2 + $0x1c8] sm:$0xff] }
0x1b76   : > { %v6368_v54 = vpop.xlane.xlu1 %6367 }
0x1b77   : > { %9417 = vrcp.f32 %v6368_v54 }
0x1b78   : > { %6709 = vmatmul.mubr.bf16.gmra.mrb[248].mxu1 %v6496_v49 }
0x1b81   : > { %v9418_v24 = vpop.eup %9417 }
0x1b82   : > { %v6465_v42 = vmul.f32 %v9418_v24, %v15394_v36  ;;  %v6464_v45 = vmul.f32 %v9418_v24, %v15395_v17  ;;  %v9714_v24 = vld [vmem:[%s15050_s2 + $0x198] sm:$0xff] }
0x1b83   : > { %v9716_v36 = vld [vmem:[%s15050_s2 + $0x1d8] sm:$0xff] }
0x1bb9   : > { %v6371_v46 = vpop.xlane.xlu0 %6370 }
0x1bba   : > { %9419 = vrcp.f32 %v6371_v46 }
0x1bc0   : > { %v8108_v57 = vpop.f32.mrb[192].mxu1 }
0x1bc1   : > { %v8109_v47 = vpop.f32.mrb[193].mxu1 }
0x1bc2   : > { %v8110_v15 = vadd.f32 %v8109_v47, %v8108_v57  ;;  %v8111_v51 = vpop.f32.mrb[194].mxu1 }
0x1bc3   : > { %v8112_v61 = vpop.f32.mrb[195].mxu1 }
0x1bc4   : > { %v9420_v56 = vpop.eup %9419  ;;  %v8113_v8 = vadd.f32 %v8112_v61, %v8111_v51  ;;  %v6725_v55 = vmul.f32 %v9709_v10, %v8110_v15  ;;  %v9715_v51 = vld [vmem:[%s15050_s2 + $0x1d0] sm:$0xff] }
0x1bc5   : > { %v6467_v33 = vmul.f32 %v9420_v56, %v14553_v39  ;;  %v6466_v32 = vmul.f32 %v9420_v56, %v14551_v3  ;;  %v6844_v3 = vsel %vm553_vm0, %v6822_v16, 0 }
0x1bc6   : > { %8601 = vmatpush3.bf16.xpose.msra.mxu0 %v6844_v3  ;;  %v6726_v44 = vmul.f32 %v9710_v53, %v8113_v8  ;;  %v6757_v38 = vsel %vm553_vm0, %v6725_v55, 0.0  ;;  %v9719_v3 = vld [vmem:[%s15050_s2 + $0x1e0] sm:$0xff]  ;;  %v9723_v53 = vld [vmem:[%s15050_s2 + $0x1f0] sm:$0xff] }
0x1bc7   : > { %v6499_v22 = vpack.c.bf16 %v6467_v33, %v6465_v42  ;;  %v6498_v40 = vpack.c.bf16 %v6466_v32, %v6464_v45 }
0x1bc8   : > { %v8114_v58 = vpop.f32.mrb[196].mxu1  ;;  %v6764_v27 = vsel %vm553_vm0, %v6726_v44, 0.0 }
0x1bc9   : > { %6716 = vmatprep.mubr.bf16.mxu1 %v6499_v22  ;;  %v8115_v26 = vpop.f32.mrb[197].mxu1 }
0x1bca   : > { %v8116_v12 = vadd.f32 %v8115_v26, %v8114_v58  ;;  %6717 = vmatmul.mubr.bf16.gmra.mrb[252].mxu1 %v6498_v40  ;;  %v8117_v39 = vpop.f32.mrb[198].mxu1 }
0x1bcb   : > { %v8118_v2 = vpop.f32.mrb[199].mxu1 }
0x1bcc   : > { %v8119_v48 = vadd.f32 %v8118_v2, %v8117_v39  ;;  %v6727_v63 = vmul.f32 %v9713_v29, %v8116_v12  ;;  %v9718_v12 = vld [vmem:[%s15050_s2 + $0x1a8] sm:$0xff] }
0x1bce   : > { %v6728_v15 = vmul.f32 %v9714_v24, %v8119_v48  ;;  %v6771_v56 = vsel %vm553_vm0, %v6727_v63, 0.0  ;;  %v9725_v63 = vld [vmem:[%s15050_s2 + $0x200] sm:$0xff]  ;;  %v9726_v24 = vld [vmem:[%s15050_s2 + $0x208] sm:$0xff] }
0x1bd0   : > { %v8120_v13 = vpop.f32.mrb[200].mxu1  ;;  %v6778_v17 = vsel %vm553_vm0, %v6728_v15, 0.0 }
0x1bd1   : > { %v8121_v60 = vpop.f32.mrb[201].mxu1 }
0x1bd2   : > { %v8122_v11 = vadd.f32 %v8121_v60, %v8120_v13  ;;  %v8123_v19 = vpop.f32.mrb[202].mxu1 }
0x1bd3   : > { %v8124_v59 = vpop.f32.mrb[203].mxu1 }
0x1bd4   : > { %v8125_v41 = vadd.f32 %v8124_v59, %v8123_v19  ;;  %v6729_v62 = vmul.f32 %v9717_v7, %v8122_v11  ;;  %v9720_v11 = vld [vmem:[%s15050_s2 + $0x1e8] sm:$0xff] }
0x1bd6   : > { %v6730_v39 = vmul.f32 %v9718_v12, %v8125_v41  ;;  %v6785_v13 = vsel %vm553_vm0, %v6729_v62, 0.0 }
0x1bd8   : > { %v8126_v9 = vpop.f32.mrb[204].mxu1 }
0x1bd9   : > { %v8127_v21 = vpop.f32.mrb[205].mxu1 }
0x1bda   : > { %v14617_v31 = vadd.f32 %v8127_v21, %v8126_v9  ;;  %v8129_v0 = vpop.f32.mrb[206].mxu1  ;;  %v6792_v9 = vsel %vm553_vm0, %v6730_v39, 0.0 }
0x1bdb   : > { %v8130_v30 = vpop.f32.mrb[207].mxu1 }
0x1bdc   : > { %v14619_v20 = vadd.f32 %v8130_v30, %v8129_v0 }
0x1be0   : > { %v8132_v14 = vpop.f32.mrb[208].mxu1 }
0x1be1   : > { %v8133_v28 = vpop.f32.mrb[209].mxu1 }
0x1be2   : > { %v8134_v50 = vadd.f32 %v8133_v28, %v8132_v14  ;;  %v8135_v6 = vpop.f32.mrb[210].mxu1  ;;  %v9721_v14 = vld [vmem:[%s15050_s2 + $0x1b0] sm:$0xff] }
0x1be3   : > { %v8136_v18 = vpop.f32.mrb[211].mxu1  ;;  %v6731_v28 = vmul.f32 %v9721_v14, %v14617_v31  ;;  %v9724_v31 = vld [vmem:[%s15050_s2 + $0x1f8] sm:$0xff] }
0x1be4   : > { %v6733_v52 = vmul.f32 %v9711_v1, %v8134_v50  ;;  %v8137_v4 = vadd.f32 %v8136_v18, %v8135_v6  ;;  %v9722_v6 = vld [vmem:[%s15050_s2 + $0x1b8] sm:$0xff] }
0x1be5   : > { %v6732_v18 = vmul.f32 %v9722_v6, %v14619_v20 }
0x1be6   : > { %v6758_v25 = vsel %vm553_vm0, %v6733_v52, 0.0  ;;  %v6734_v23 = vmul.f32 %v9712_v35, %v8137_v4  ;;  %v6799_v52 = vsel %vm553_vm0, %v6731_v28, 0.0 }
0x1be7   : > { %v14635_v34 = vadd.f32 %v6758_v25, %v6757_v38  ;;  %v6806_v35 = vsel %vm553_vm0, %v6732_v18, 0.0 }
0x1be8   : > { %v6765_v43 = vsel %vm553_vm0, %v6734_v23, 0.0 }
0x1be9   : > { %v14639_v49 = vadd.f32 %v6765_v43, %v6764_v27 }
0x1c03   : > { %v8138_v54 = vpop.f32.mrb[212].mxu1 }
0x1c04   : > { %v8139_v46 = vpop.f32.mrb[213].mxu1 }
0x1c05   : > { %v8140_v57 = vadd.f32 %v8139_v46, %v8138_v54  ;;  %v8141_v37 = vpop.f32.mrb[214].mxu1 }
0x1c06   : > { %v8142_v47 = vpop.f32.mrb[215].mxu1 }
0x1c07   : > { %v6735_v5 = vmul.f32 %v9715_v51, %v8140_v57  ;;  %v8143_v61 = vadd.f32 %v8142_v47, %v8141_v37 }
0x1c09   : > { %v6772_v8 = vsel %vm553_vm0, %v6735_v5, 0.0  ;;  %v6736_v42 = vmul.f32 %v9716_v36, %v8143_v61 }
0x1c0a   : > { %v14655_v33 = vadd.f32 %v6772_v8, %v6771_v56 }
0x1c0b   : > { %v6779_v45 = vsel %vm553_vm0, %v6736_v42, 0.0  ;;  %v8144_v32 = vpop.f32.mrb[216].mxu1 }
0x1c0c   : > { %v14659_v22 = vadd.f32 %v6779_v45, %v6778_v17  ;;  %v8145_v40 = vpop.f32.mrb[217].mxu1  ;;  %v9727_v45 = vld [vmem:[%s15050_s2 + $0x210] sm:$0xff] }
0x1c0d   : > { %v8146_v58 = vadd.f32 %v8145_v40, %v8144_v32  ;;  %v8147_v16 = vpop.f32.mrb[218].mxu1 }
0x1c0e   : > { %v8148_v26 = vpop.f32.mrb[219].mxu1 }
0x1c0f   : > { %v6737_v2 = vmul.f32 %v9719_v3, %v8146_v58  ;;  %v8149_v48 = vadd.f32 %v8148_v26, %v8147_v16 }
0x1c11   : > { %v6786_v60 = vsel %vm553_vm0, %v6737_v2, 0.0  ;;  %v6738_v19 = vmul.f32 %v9720_v11, %v8149_v48  ;;  %v9729_v48 = vld [vmem:[%s15050_s2 + $0x220] sm:$0xff] }
0x1c12   : > { %v14675_v59 = vadd.f32 %v6786_v60, %v6785_v13 }
0x1c13   : > { %v6793_v41 = vsel %vm553_vm0, %v6738_v19, 0.0  ;;  %v8150_v21 = vpop.f32.mrb[220].mxu1 }
0x1c14   : > { %v6794_v0 = vadd.f32 %v6793_v41, %v6792_v9  ;;  %v8151_v30 = vpop.f32.mrb[221].mxu1 }
0x1c15   : > { %v8152_v10 = vadd.f32 %v8151_v30, %v8150_v21  ;;  %v8153_v55 = vpop.f32.mrb[222].mxu1 }
0x1c16   : > { %v8154_v50 = vpop.f32.mrb[223].mxu1 }
0x1c17   : > { %v6739_v44 = vmul.f32 %v9723_v53, %v8152_v10  ;;  %v8155_v1 = vadd.f32 %v8154_v50, %v8153_v55  ;;  %v9731_v55 = vld [vmem:[%s15050_s2 + $0x230] sm:$0xff] }
0x1c19   : > { %v6800_v4 = vsel %vm553_vm0, %v6739_v44, 0.0  ;;  %v6740_v38 = vmul.f32 %v9724_v31, %v8155_v1 }
0x1c1a   : > { %v6801_v25 = vadd.f32 %v6800_v4, %v6799_v52 }
0x1c1b   : > { %v6807_v20 = vsel %vm553_vm0, %v6740_v38, 0.0  ;;  %v8156_v23 = vpop.f32.mrb[224].mxu1 }
0x1c1c   : > { %v6808_v27 = vadd.f32 %v6807_v20, %v6806_v35  ;;  %v8157_v43 = vpop.f32.mrb[225].mxu1  ;;  %v9733_v20 = vld [vmem:[%s15050_s2 + $0x240] sm:$0xff] }
0x1c1d   : > { %v8158_v54 = vadd.f32 %v8157_v43, %v8156_v23  ;;  %v8159_v46 = vpop.f32.mrb[226].mxu1 }
0x1c1e   : > { %v8160_v29 = vpop.f32.mrb[227].mxu1 }
0x1c1f   : > { %v6741_v57 = vmul.f32 %v9725_v63, %v8158_v54  ;;  %v8161_v37 = vadd.f32 %v8160_v29, %v8159_v46 }
0x1c21   : > { %v6760_v47 = vsel %vm553_vm0, %v6741_v57, 0.0  ;;  %v6742_v15 = vmul.f32 %v9726_v24, %v8161_v37 }
0x1c22   : > { %v6761_v51 = vadd.f32 %v6760_v47, %v14635_v34  ;;  %v9728_v34 = vld [vmem:[%s15050_s2 + $0x218] sm:$0xff] }
0x1c23   : > { %v6767_v5 = vsel %vm553_vm0, %v6742_v15, 0.0  ;;  %v8162_v61 = vpop.f32.mrb[228].mxu1 }
0x1c24   : > { %v6768_v56 = vadd.f32 %v6767_v5, %v14639_v49  ;;  %v8163_v8 = vpop.f32.mrb[229].mxu1 }
0x1c25   : > { %v8164_v36 = vadd.f32 %v8163_v8, %v8162_v61  ;;  %v8165_v42 = vpop.f32.mrb[230].mxu1  ;;  %v9735_v61 = vld [vmem:[%s15050_s2 + $0x250] sm:$0xff] }
0x1c26   : > { %v8166_v17 = vpop.f32.mrb[231].mxu1 }
0x1c27   : > { %v6743_v32 = vmul.f32 %v9727_v45, %v8164_v36  ;;  %v8167_v40 = vadd.f32 %v8166_v17, %v8165_v42 }
0x1c29   : > { %v6774_v7 = vsel %vm553_vm0, %v6743_v32, 0.0  ;;  %v6744_v62 = vmul.f32 %v9728_v34, %v8167_v40 }
0x1c2a   : > { %v6775_v58 = vadd.f32 %v6774_v7, %v14655_v33  ;;  %v9730_v33 = vld [vmem:[%s15050_s2 + $0x228] sm:$0xff] }
0x1c2b   : > { %v6781_v49 = vsel %vm553_vm0, %v6744_v62, 0.0  ;;  %v8168_v16 = vpop.f32.mrb[232].mxu1 }
0x1c2c   : > { %v6782_v26 = vadd.f32 %v6781_v49, %v14659_v22  ;;  %v8169_v12 = vpop.f32.mrb[233].mxu1 }
0x1c2d   : > { %v8170_v39 = vadd.f32 %v8169_v12, %v8168_v16  ;;  %v8171_v3 = vpop.f32.mrb[234].mxu1  ;;  %v9737_v12 = vld [vmem:[%s15050_s2 + $0x260] sm:$0xff] }
0x1c2e   : > { %v8172_v2 = vpop.f32.mrb[235].mxu1 }
0x1c2f   : > { %v6745_v13 = vmul.f32 %v9729_v48, %v8170_v39  ;;  %v8173_v60 = vadd.f32 %v8172_v2, %v8171_v3 }
0x1c31   : > { %v6788_v11 = vsel %vm553_vm0, %v6745_v13, 0.0  ;;  %v6746_v19 = vmul.f32 %v9730_v33, %v8173_v60 }
0x1c32   : > { %v6789_v9 = vadd.f32 %v6788_v11, %v14675_v59  ;;  %v9732_v59 = vld [vmem:[%s15050_s2 + $0x238] sm:$0xff] }
0x1c33   : > { %v6795_v22 = vsel %vm553_vm0, %v6746_v19, 0.0  ;;  %v8174_v41 = vpop.f32.mrb[236].mxu1 }
0x1c34   : > { %v6796_v21 = vadd.f32 %v6795_v22, %v6794_v0  ;;  %v8175_v30 = vpop.f32.mrb[237].mxu1 }
0x1c35   : > { %v8176_v14 = vadd.f32 %v8175_v30, %v8174_v41  ;;  %v8177_v28 = vpop.f32.mrb[238].mxu1 }
0x1c36   : > { %v8178_v10 = vpop.f32.mrb[239].mxu1 }
0x1c37   : > { %v6747_v50 = vmul.f32 %v9731_v55, %v8176_v14  ;;  %v8179_v6 = vadd.f32 %v8178_v10, %v8177_v28  ;;  %v9739_v14 = vld [vmem:[%s15050_s2 + $0x270] sm:$0xff] }
0x1c39   : > { %v6802_v18 = vsel %vm553_vm0, %v6747_v50, 0.0  ;;  %v6748_v53 = vmul.f32 %v9732_v59, %v8179_v6 }
0x1c3a   : > { %v6803_v44 = vadd.f32 %v6802_v18, %v6801_v25  ;;  %v9734_v25 = vld [vmem:[%s15050_s2 + $0x248] sm:$0xff] }
0x1c3b   : > { %v6809_v0 = vsel %vm553_vm0, %v6748_v53, 0.0  ;;  %v8180_v1 = vpop.f32.mrb[240].mxu1  ;;  %v7674_v53 = vld [vmem:[%s15052_s4 + $0xd] ss:$0 sm:$0xff] }
0x1c3c   : > { %v6810_v52 = vadd.f32 %v6809_v0, %v6808_v27  ;;  %v8181_v4 = vpop.f32.mrb[241].mxu1 }
0x1c3d   : > { %v8182_v31 = vadd.f32 %v8181_v4, %v8180_v1  ;;  %v8183_v38 = vpop.f32.mrb[242].mxu1 }
0x1c3e   : > { %v8184_v35 = vpop.f32.mrb[243].mxu1 }
0x1c3f   : > { %v6749_v23 = vmul.f32 %v9733_v20, %v8182_v31  ;;  %v8185_v43 = vadd.f32 %v8184_v35, %v8183_v38  ;;  %v15396_v20 = vld [vmem:[#allocation44_spill] sm:$0xff] }
0x1c41   : > { %v6762_v54 = vsel %vm553_vm0, %v6749_v23, 0.0  ;;  %v6750_v46 = vmul.f32 %v9734_v25, %v8185_v43 }
0x1c42   : > { %v6763_v29 = vadd.f32 %v6762_v54, %v6761_v51  ;;  %v9736_v51 = vld [vmem:[%s15050_s2 + $0x258] sm:$0xff]  ;;  %v15397_v54 = vld [vmem:[#allocation43_spill] sm:$0xff] }
0x1c43   : > { %v6769_v27 = vsel %vm553_vm0, %v6750_v46, 0.0  ;;  %v8186_v63 = vpop.f32.mrb[244].mxu1 }
0x1c44   : > { %v6770_v57 = vadd.f32 %v6769_v27, %v6768_v56  ;;  %v8187_v37 = vpop.f32.mrb[245].mxu1  ;;  %v15399_v27 = vld [vmem:[#allocation46_spill] sm:$0xff] }
0x1c45   : > { %v8188_v47 = vadd.f32 %v8187_v37, %v8186_v63  ;;  %v8189_v24 = vpop.f32.mrb[246].mxu1 }
0x1c46   : > { %v8190_v15 = vpop.f32.mrb[247].mxu1  ;;  %v6817_v5 = vpack.c.bf16 %v6770_v57, %v6763_v29 }
0x1c47   : > { %v6751_v8 = vmul.f32 %v9735_v61, %v8188_v47  ;;  %v8191_v36 = vadd.f32 %v8190_v15, %v8189_v24 }
0x1c48   : > { %8602 = vmatprep.mubr.msk.bf16.mxu0 %vm553_vm0, %v6817_v5 }
0x1c49   : > { %v6776_v42 = vsel %vm553_vm0, %v6751_v8, 0.0  ;;  %v6752_v56 = vmul.f32 %v9736_v51, %v8191_v36 }
0x1c4a   : > { %v6777_v17 = vadd.f32 %v6776_v42, %v6775_v58  ;;  %v9738_v58 = vld [vmem:[%s15050_s2 + $0x268] sm:$0xff]  ;;  %v15400_v42 = vld [vmem:[#allocation48_spill] sm:$0xff] }
0x1c4b   : > { %v6783_v45 = vsel %vm553_vm0, %v6752_v56, 0.0  ;;  %v8192_v32 = vpop.f32.mrb[248].mxu1 }
0x1c4c   : > { %v6784_v40 = vadd.f32 %v6783_v45, %v6782_v26  ;;  %v8193_v7 = vpop.f32.mrb[249].mxu1  ;;  %v15401_v45 = vld [vmem:[#allocation45_spill] sm:$0xff] }
0x1c4d   : > { %v8194_v34 = vadd.f32 %v8193_v7, %v8192_v32  ;;  %v8195_v62 = vpop.f32.mrb[250].mxu1 }
0x1c4e   : > { %v6818_v49 = vpack.c.bf16 %v6784_v40, %v6777_v17  ;;  %v8196_v16 = vpop.f32.mrb[251].mxu1  ;;  %v15402_v40 = vld [vmem:[#allocation47_spill] sm:$0xff] }
0x1c4f   : > { %v6753_v39 = vmul.f32 %v9737_v12, %v8194_v34  ;;  %v8197_v3 = vadd.f32 %v8196_v16, %v8195_v62  ;;  %v15403_v62 = vld [vmem:[#allocation51_spill] sm:$0xff] }
0x1c50   : > { %8603 = vmatmul.mubr.msk.bf16.vlgmr.msra.gmra.mrb[8].mxu0 %vm553_vm0, %v6818_v49 }
0x1c51   : > { %v6790_v2 = vsel %vm553_vm0, %v6753_v39, 0.0  ;;  %v6754_v26 = vmul.f32 %v9738_v58, %v8197_v3  ;;  %v7049_v3 = vld [vmem:[%s15050_s2 + $0x500] sm:$0xff] }
0x1c52   : > { %v6791_v48 = vadd.f32 %v6790_v2, %v6789_v9  ;;  %v9740_v9 = vld [vmem:[%s15050_s2 + $0x278] sm:$0xff]  ;;  %v7050_v2 = vld [vmem:[%s15050_s2 + $0x508] sm:$0xff] }
0x1c53   : > { %v6797_v13 = vsel %vm553_vm0, %v6754_v26, 0.0  ;;  %v7061_v58 = vpack.c.bf16 %v7050_v2, %v7049_v3 }
0x1c54   : > { %v6798_v60 = vadd.f32 %v6797_v13, %v6796_v21 }
0x1c55   : > { %8702 = vmatprep.subr.msk.bf16.mxu1 %vm553_vm0, %v7061_v58  ;;  %v7083_v26 = vsel %vm553_vm0, %v7061_v58, 0 }
0x1c56   : > { %v6819_v11 = vpack.c.bf16 %v6798_v60, %v6791_v48  ;;  %8611 = vmatpush3.bf16.xpose.msra.mxu1 %v7083_v26 }
0x1c58   : > { %8606 = vmatprep.mubr.msk.bf16.mxu0 %vm553_vm0, %v6819_v11 }
0x1c9d   : > { %v8198_v33 = vpop.f32.mrb[252].mxu1 }
0x1c9e   : > { %v8199_v19 = vpop.f32.mrb[253].mxu1 }
0x1c9f   : > { %v8200_v22 = vadd.f32 %v8199_v19, %v8198_v33  ;;  %v8201_v41 = vpop.f32.mrb[254].mxu1 }
0x1ca0   : > { %v8202_v30 = vpop.f32.mrb[255].mxu1 }
0x1ca1   : > { %v6755_v28 = vmul.f32 %v9739_v14, %v8200_v22  ;;  %v8203_v10 = vadd.f32 %v8202_v30, %v8201_v41 }
0x1ca3   : > { %v6804_v55 = vsel %vm553_vm0, %v6755_v28, 0.0  ;;  %v6756_v21 = vmul.f32 %v9740_v9, %v8203_v10 }
0x1ca4   : > { %v6805_v50 = vadd.f32 %v6804_v55, %v6803_v44 }
0x1ca5   : > { %v6811_v6 = vsel %vm553_vm0, %v6756_v21, 0.0 }
0x1ca6   : > { %v6812_v18 = vadd.f32 %v6811_v6, %v6810_v52  ;;  %v15398_v52 = vld [vmem:[#allocation56_spill] sm:$0xff] }
0x1ca8   : > { %v6820_v59 = vpack.c.bf16 %v6812_v18, %v6805_v50 }
0x1caa   : > { %8607 = vmatmul.mubr.msk.bf16.gmra.mrb[12].mxu0 %vm553_vm0, %v6820_v59 }
0x1d23   : > { %v8604_v0 = vpop.f32.mrb[8].mxu0 }
0x1d24   : > { %v6880_v1 = vpop.f32.mrb[9].mxu0  ;;  %v6889_v4 = vadd.f32 %v8604_v0, %v7674_v53  ;;  %v7051_v0 = vld [vmem:[%s15050_s2 + $0x510] sm:$0xff] }
0x1d25   : > { %v6881_v31 = vadd.f32 %v7674_v53, %v6880_v1  ;;  %v8605_v38 = vpop.f32.mrb[10].mxu0  ;;  %v7052_v1 = vld [vmem:[%s15050_s2 + $0x518] sm:$0xff] }
0x1d26   : > { %v6883_v35 = vpop.f32.mrb[11].mxu0  ;;  %v6892_v43 = vadd.f32 %v8605_v38, %v7674_v53  ;;  %v6913_v25 = vadd.f32 %v6889_v4, %v15397_v54  ;;  %v7062_v4 = vpack.c.bf16 %v7052_v1, %v7051_v0  ;;  %v7053_v38 = vld [vmem:[%s15050_s2 + $0x520] sm:$0xff] }
0x1d27   : > { %v6911_v23 = vadd.f32 %v6881_v31, %v15396_v20  ;;  %v6884_v44 = vadd.f32 %v7674_v53, %v6883_v35  ;;  %v7054_v35 = vld [vmem:[%s15050_s2 + $0x528] sm:$0xff] }
0x1d28   : > { %v6914_v63 = vadd.f32 %v6892_v43, %v15399_v27  ;;  %v6927_v37 = vsel %vm553_vm0, %v6913_v25, 0.0  ;;  %8703 = vmatprep.subr.msk.bf16.mxu1 %vm553_vm0, %v7062_v4  ;;  %v7086_v31 = vsel %vm553_vm0, %v7062_v4, 0  ;;  %v7063_v20 = vpack.c.bf16 %v7054_v35, %v7053_v38  ;;  %v7055_v43 = vld [vmem:[%s15050_s2 + $0x530] sm:$0xff] }
0x1d29   : > { %v6912_v46 = vadd.f32 %v6884_v44, %v15398_v52  ;;  %v6921_v29 = vsel %vm553_vm0, %v6911_v23, 0.0  ;;  %8613 = vmatpush3.bf16.xpose.msra.mxu1 %v7086_v31  ;;  %v7056_v44 = vld [vmem:[%s15050_s2 + $0x538] sm:$0xff] }
0x1d2a   : > { %6922 = vadd.xlane.f32.xlu1 %v6921_v29  ;;  %v6930_v47 = vsel %vm553_vm0, %v6914_v63, 0.0  ;;  %8704 = vmatprep.subr.msk.bf16.mxu1 %vm553_vm0, %v7063_v20  ;;  %v7064_v54 = vpack.c.bf16 %v7056_v44, %v7055_v43 }
0x1d2b   : > { %v6924_v57 = vsel %vm553_vm0, %v6912_v46, 0.0 }
0x1d2c   : > { %6925 = vadd.xlane.f32.xlu0 %v6924_v57 }
0x1d2e   : > { %6928 = vadd.xlane.f32.xlu1 %v6927_v37 }
0x1d30   : > { %6931 = vadd.xlane.f32.xlu0 %v6930_v47 }
0x1d7d   : > { %v8608_v24 = vpop.f32.mrb[12].mxu0 }
0x1d7e   : > { %v6896_v15 = vpop.f32.mrb[13].mxu0  ;;  %v6905_v5 = vadd.f32 %v8608_v24, %v7674_v53 }
0x1d7f   : > { %v6897_v61 = vadd.f32 %v7674_v53, %v6896_v15  ;;  %v8609_v8 = vpop.f32.mrb[14].mxu0 }
0x1d80   : > { %v6899_v36 = vpop.f32.mrb[15].mxu0  ;;  %v6908_v56 = vadd.f32 %v8609_v8, %v7674_v53  ;;  %v14785_v32 = vadd.f32 %v6905_v5, %v15401_v45 }
0x1d81   : > { %v14782_v51 = vadd.f32 %v6897_v61, %v15400_v42  ;;  %v6900_v17 = vadd.f32 %v7674_v53, %v6899_v36 }
0x1d82   : > { %v14793_v49 = vadd.f32 %v6908_v56, %v15403_v62  ;;  %v6939_v12 = vsel %vm553_vm0, %v14785_v32, 0.0 }
0x1d83   : > { %v14788_v7 = vadd.f32 %v6900_v17, %v15402_v40  ;;  %v6933_v34 = vsel %vm553_vm0, %v14782_v51, 0.0  ;;  %v7167_v40 = vld [vmem:[%s15050_s2 + $0x540] sm:$0xff] }
0x1d84   : > { %6934 = vadd.xlane.f32.xlu1 %v6933_v34  ;;  %v6942_v39 = vsel %vm553_vm0, %v14793_v49, 0.0  ;;  %v7169_v34 = vld [vmem:[%s15050_s2 + $0x550] sm:$0xff] }
0x1d85   : > { %v6936_v16 = vsel %vm553_vm0, %v14788_v7, 0.0 }
0x1d86   : > { %6937 = vadd.xlane.f32.xlu0 %v6936_v16 }
0x1d88   : > { %6940 = vadd.xlane.f32.xlu1 %v6939_v12 }
0x1d8a   : > { %6943 = vadd.xlane.f32.xlu0 %v6942_v39 }
0x1db7   : > { %v6923_v48 = vpop.xlane.xlu1 %6922 }
0x1db8   : > { %v6945_v13 = vmul.f32 0.03125, %v6923_v48 }
0x1db9   : > { %v6926_v60 = vpop.xlane.xlu0 %6925 }
0x1dba   : > { %v14809_v11 = vsub.f32 %v6911_v23, %v6945_v13  ;;  %v6946_v33 = vmul.f32 0.03125, %v6926_v60  ;;  %v7089_v23 = vsel %vm553_vm0, %v7063_v20, 0 }
0x1dbb   : > { %v6929_v19 = vpop.xlane.xlu1 %6928  ;;  %8615 = vmatpush3.bf16.xpose.msra.mxu1 %v7089_v23 }
0x1dbc   : > { %v14811_v22 = vsub.f32 %v6912_v46, %v6946_v33  ;;  %v6947_v41 = vmul.f32 0.03125, %v6929_v19  ;;  %v6961_v30 = vmul.f32 %v14809_v11, %v14809_v11  ;;  %8705 = vmatprep.subr.msk.bf16.mxu1 %vm553_vm0, %v7064_v54 }
0x1dbd   : > { %v6932_v14 = vpop.xlane.xlu0 %6931 }
0x1dbe   : > { %v14815_v28 = vsub.f32 %v6913_v25, %v6947_v41  ;;  %v6948_v10 = vmul.f32 0.03125, %v6932_v14  ;;  %v6969_v55 = vsel %vm553_vm0, %v6961_v30, 0.0  ;;  %v6962_v9 = vmul.f32 %v14811_v22, %v14811_v22  ;;  %v7679_v14 = vld [vmem:[%s15052_s4 + $0xe] ss:$0 sm:$0xff] }
0x1dbf   : > { %6970 = vadd.xlane.f32.xlu1 %v6969_v55  ;;  %v7092_v25 = vsel %vm553_vm0, %v7064_v54, 0 }
0x1dc0   : > { %v14820_v21 = vsub.f32 %v6914_v63, %v6948_v10  ;;  %v6972_v50 = vsel %vm553_vm0, %v6962_v9, 0.0  ;;  %v6963_v6 = vmul.f32 %v14815_v28, %v14815_v28 }
0x1dc1   : > { %6973 = vadd.xlane.f32.xlu0 %v6972_v50 }
0x1dc2   : > { %v6975_v18 = vsel %vm553_vm0, %v6963_v6, 0.0  ;;  %v6964_v59 = vmul.f32 %v14820_v21, %v14820_v21 }
0x1dc3   : > { %6976 = vadd.xlane.f32.xlu1 %v6975_v18  ;;  %8617 = vmatpush3.bf16.xpose.msra.mxu1 %v7092_v25  ;;  %v7680_v18 = vld [vmem:[%s15052_s4 + $0xf] ss:$0 sm:$0xff] }
0x1dc4   : > { %v6978_v53 = vsel %vm553_vm0, %v6964_v59, 0.0 }
0x1dc5   : > { %6979 = vadd.xlane.f32.xlu0 %v6978_v53 }
0x1e11   : > { %v6935_v52 = vpop.xlane.xlu1 %6934 }
0x1e12   : > { %v6949_v46 = vmul.f32 0.03125, %v6935_v52 }
0x1e13   : > { %v6938_v29 = vpop.xlane.xlu0 %6937 }
0x1e14   : > { %v14854_v27 = vsub.f32 %v14782_v51, %v6949_v46  ;;  %v6950_v63 = vmul.f32 0.03125, %v6938_v29 }
0x1e15   : > { %v6941_v57 = vpop.xlane.xlu1 %6940 }
0x1e16   : > { %v14857_v37 = vsub.f32 %v14788_v7, %v6950_v63  ;;  %v6951_v47 = vmul.f32 0.03125, %v6941_v57  ;;  %v6965_v24 = vmul.f32 %v14854_v27, %v14854_v27  ;;  %v7168_v7 = vld [vmem:[%s15050_s2 + $0x548] sm:$0xff] }
0x1e17   : > { %v6944_v15 = vpop.xlane.xlu0 %6943  ;;  %v7179_v62 = vpack.c.bf16 %v7168_v7, %v7167_v40 }
0x1e18   : > { %v14862_v5 = vsub.f32 %v14785_v32, %v6951_v47  ;;  %v6952_v61 = vmul.f32 0.03125, %v6944_v15  ;;  %v6981_v8 = vsel %vm553_vm0, %v6965_v24, 0.0  ;;  %v6966_v36 = vmul.f32 %v14857_v37, %v14857_v37 }
0x1e19   : > { %6982 = vadd.xlane.f32.xlu1 %v6981_v8  ;;  %8626 = vmatprep.subr.bf16.mxu0 %v7179_v62 }
0x1e1a   : > { %v14868_v42 = vsub.f32 %v14793_v49, %v6952_v61  ;;  %v6984_v51 = vsel %vm553_vm0, %v6966_v36, 0.0  ;;  %v6967_v56 = vmul.f32 %v14862_v5, %v14862_v5  ;;  %v7170_v49 = vld [vmem:[%s15050_s2 + $0x558] sm:$0xff]  ;;  %8627 = vmatpush3.bf16.msra.mxu0 %v7179_v62 }
0x1e1b   : > { %6985 = vadd.xlane.f32.xlu0 %v6984_v51  ;;  %v7180_v16 = vpack.c.bf16 %v7170_v49, %v7169_v34 }
0x1e1c   : > { %v6987_v17 = vsel %vm553_vm0, %v6967_v56, 0.0  ;;  %v6968_v45 = vmul.f32 %v14868_v42, %v14868_v42 }
0x1e1d   : > { %6988 = vadd.xlane.f32.xlu1 %v6987_v17  ;;  %8628 = vmatprep.subr.bf16.mxu0 %v7180_v16 }
0x1e1e   : > { %v6990_v32 = vsel %vm553_vm0, %v6968_v45, 0.0  ;;  %8629 = vmatpush3.bf16.msra.mxu0 %v7180_v16 }
0x1e1f   : > { %6991 = vadd.xlane.f32.xlu0 %v6990_v32 }
0x1e4c   : > { %v6971_v12 = vpop.xlane.xlu1 %6970 }
0x1e4d   : > { %v6993_v39 = vmul.f32 0.03125, %v6971_v12 }
0x1e4e   : > { %v6974_v3 = vpop.xlane.xlu0 %6973 }
0x1e4f   : > { %v7001_v2 = vadd.f32 1e-05, %v6993_v39  ;;  %v6994_v58 = vmul.f32 0.03125, %v6974_v3  ;;  %v7173_v39 = vld [vmem:[%s15050_s2 + $0x570] sm:$0xff]  ;;  %v7174_v3 = vld [vmem:[%s15050_s2 + $0x578] sm:$0xff] }
0x1e50   : > { %v6977_v26 = vpop.xlane.xlu1 %6976 }
0x1e51   : > { %9421 = vrsqrt.f32 %v7001_v2  ;;  %v7002_v48 = vadd.f32 1e-05, %v6994_v58  ;;  %v6995_v13 = vmul.f32 0.03125, %v6977_v26  ;;  %v7182_v2 = vpack.c.bf16 %v7174_v3, %v7173_v39  ;;  %v7681_v58 = vld [vmem:[%s15052_s4 + $0x10] ss:$0 sm:$0xff] }
0x1e52   : > { %v6980_v60 = vpop.xlane.xlu0 %6979 }
0x1e53   : > { %9423 = vrsqrt.f32 %v7002_v48  ;;  %v7003_v33 = vadd.f32 1e-05, %v6995_v13  ;;  %v6996_v19 = vmul.f32 0.03125, %v6980_v60 }
0x1e55   : > { %9425 = vrsqrt.f32 %v7003_v33  ;;  %v7004_v41 = vadd.f32 1e-05, %v6996_v19 }
0x1e57   : > { %9427 = vrsqrt.f32 %v7004_v41 }
0x1e5b   : > { %v9422_v30 = vpop.eup %9421 }
0x1e5c   : > { %v7017_v10 = vmul.f32 %v9422_v30, %v14809_v11 }
0x1e5d   : > { %v9424_v55 = vpop.eup %9423 }
0x1e5e   : > { %v7018_v9 = vmul.f32 %v9424_v55, %v14811_v22  ;;  %v7029_v50 = vmul.f32 %v7679_v14, %v7017_v10 }
0x1e5f   : > { %v9426_v6 = vpop.eup %9425 }
0x1e60   : > { %v7019_v59 = vmul.f32 %v9426_v6, %v14815_v28  ;;  %v7030_v53 = vmul.f32 %v7679_v14, %v7018_v9  ;;  %v14899_v31 = vadd.f32 %v7680_v18, %v7029_v50 }
0x1e61   : > { %v9428_v0 = vpop.eup %9427 }
0x1e62   : > { %v7031_v1 = vmul.f32 %v7679_v14, %v7019_v59  ;;  %v7020_v4 = vmul.f32 %v9428_v0, %v14820_v21  ;;  %v14901_v38 = vadd.f32 %v7680_v18, %v7030_v53 }
0x1e64   : > { %v7032_v11 = vmul.f32 %v7679_v14, %v7020_v4  ;;  %v7057_v22 = vpack.c.bf16 %v14901_v38, %v14899_v31  ;;  %v14905_v35 = vadd.f32 %v7680_v18, %v7031_v1 }
0x1e66   : > { %v14907_v20 = vadd.f32 %v7680_v18, %v7032_v11  ;;  %8618 = vmatprep.mubr.msk.bf16.mxu1 %vm553_vm0, %v7057_v22 }
0x1e68   : > { %v7058_v28 = vpack.c.bf16 %v14907_v20, %v14905_v35 }
0x1e6a   : > { %8619 = vmatmul.mubr.msk.bf16.vlgmr.msra.gmra.mrb[0].mxu1 %vm553_vm0, %v7058_v28 }
0x1ea6   : > { %v6983_v21 = vpop.xlane.xlu1 %6982 }
0x1ea7   : > { %v6997_v23 = vmul.f32 0.03125, %v6983_v21 }
0x1ea8   : > { %v6986_v43 = vpop.xlane.xlu0 %6985 }
0x1ea9   : > { %v7005_v44 = vadd.f32 1e-05, %v6997_v23  ;;  %v6998_v54 = vmul.f32 0.03125, %v6986_v43 }
0x1eaa   : > { %v6989_v25 = vpop.xlane.xlu1 %6988 }
0x1eab   : > { %9429 = vrsqrt.f32 %v7005_v44  ;;  %v7006_v52 = vadd.f32 1e-05, %v6998_v54  ;;  %v6999_v46 = vmul.f32 0.03125, %v6989_v25  ;;  %v7686_v25 = vld [vmem:[%s15052_s4 + $0x11] ss:$0 sm:$0xff] }
0x1eac   : > { %v6992_v29 = vpop.xlane.xlu0 %6991 }
0x1ead   : > { %9431 = vrsqrt.f32 %v7006_v52  ;;  %v7007_v63 = vadd.f32 1e-05, %v6999_v46  ;;  %v7000_v57 = vmul.f32 0.03125, %v6992_v29 }
0x1eaf   : > { %9433 = vrsqrt.f32 %v7007_v63  ;;  %v7008_v47 = vadd.f32 1e-05, %v7000_v57 }
0x1eb1   : > { %9435 = vrsqrt.f32 %v7008_v47 }
0x1eb5   : > { %v9430_v24 = vpop.eup %9429 }
0x1eb6   : > { %v7021_v15 = vmul.f32 %v9430_v24, %v14854_v27 }
0x1eb7   : > { %v9432_v61 = vpop.eup %9431 }
0x1eb8   : > { %v7022_v8 = vmul.f32 %v9432_v61, %v14857_v37  ;;  %v7033_v36 = vmul.f32 %v7679_v14, %v7021_v15  ;;  %v7171_v37 = vld [vmem:[%s15050_s2 + $0x560] sm:$0xff] }
0x1eb9   : > { %v9434_v51 = vpop.eup %9433 }
0x1eba   : > { %v7023_v56 = vmul.f32 %v9434_v51, %v14862_v5  ;;  %v7034_v17 = vmul.f32 %v7679_v14, %v7022_v8  ;;  %v14917_v7 = vadd.f32 %v7680_v18, %v7033_v36  ;;  %v7172_v5 = vld [vmem:[%s15050_s2 + $0x568] sm:$0xff] }
0x1ebb   : > { %v9436_v45 = vpop.eup %9435 }
0x1ebc   : > { %v7035_v32 = vmul.f32 %v7679_v14, %v7023_v56  ;;  %v7024_v40 = vmul.f32 %v9436_v45, %v14868_v42  ;;  %v14919_v34 = vadd.f32 %v7680_v18, %v7034_v17  ;;  %v7181_v42 = vpack.c.bf16 %v7172_v5, %v7171_v37 }
0x1ebe   : > { %v7036_v62 = vmul.f32 %v7679_v14, %v7024_v40  ;;  %v7059_v27 = vpack.c.bf16 %v14919_v34, %v14917_v7  ;;  %v14929_v49 = vadd.f32 %v7680_v18, %v7035_v32  ;;  %8630 = vmatprep.subr.bf16.mxu0 %v7181_v42 }
0x1ebf   : > { %8631 = vmatpush3.bf16.msra.mxu0 %v7181_v42 }
0x1ec0   : > { %v14931_v16 = vadd.f32 %v7680_v18, %v7036_v62  ;;  %8622 = vmatprep.mubr.msk.bf16.mxu1 %vm553_vm0, %v7059_v27  ;;  %8632 = vmatprep.subr.bf16.mxu0 %v7182_v2 }
0x1ec2   : > { %v7060_v12 = vpack.c.bf16 %v14931_v16, %v14929_v49 }
0x1ec3   : > { %8633 = vmatpush3.bf16.msra.mxu0 %v7182_v2 }
0x1ec4   : > { %8623 = vmatmul.mubr.msk.bf16.gmra.mrb[4].mxu1 %vm553_vm0, %v7060_v12 }
0x1f3d   : > { %v8620_v26 = vpop.f32.mrb[0].mxu1 }
0x1f3e   : > { %v7137_v48 = vadd.f32 %v8620_v26, %v7681_v58  ;;  %v7128_v13 = vpop.f32.mrb[1].mxu1 }
0x1f3f   : > { %v7129_v60 = vadd.f32 %v7681_v58, %v7128_v13  ;;  %v8621_v33 = vpop.f32.mrb[2].mxu1 }
0x1f40   : > { %v7140_v19 = vadd.f32 %v8621_v33, %v7681_v58  ;;  %v7131_v41 = vpop.f32.mrb[3].mxu1  ;;  %v7161_v14 = vmax.f32 %v7137_v48, 0.0 }
0x1f41   : > { %v7132_v30 = vadd.f32 %v7681_v58, %v7131_v41  ;;  %v7159_v55 = vmax.f32 %v7129_v60, 0.0 }
0x1f42   : > { %v7162_v10 = vmax.f32 %v7140_v19, 0.0 }
0x1f43   : > { %v7160_v9 = vmax.f32 %v7132_v30, 0.0 }
0x1f44   : > { %v7176_v50 = vpack.c.bf16 %v7162_v10, %v7161_v14 }
0x1f45   : > { %v7175_v6 = vpack.c.bf16 %v7160_v9, %v7159_v55 }
0x1f47   : > { %8634 = vmatprep.mubr.msk.bf16.mxu0 %vm1434_vm2, %v7175_v6 }
0x1f48   : > { %8635 = vmatmul.mubr.msk.bf16.vlgmr.msra.gmra.mrb[16].mxu0 %vm1434_vm2, %v7176_v50 }
0x1f97   : > { %v8624_v18 = vpop.f32.mrb[4].mxu1 }
0x1f98   : > { %v7153_v59 = vadd.f32 %v8624_v18, %v7681_v58  ;;  %v7144_v53 = vpop.f32.mrb[5].mxu1 }
0x1f99   : > { %v7145_v0 = vadd.f32 %v7681_v58, %v7144_v53  ;;  %v8625_v1 = vpop.f32.mrb[6].mxu1 }
0x1f9a   : > { %v7156_v4 = vadd.f32 %v8625_v1, %v7681_v58  ;;  %v7147_v11 = vpop.f32.mrb[7].mxu1  ;;  %v7165_v28 = vmax.f32 %v7153_v59, 0.0 }
0x1f9b   : > { %v7148_v22 = vadd.f32 %v7681_v58, %v7147_v11  ;;  %v7163_v23 = vmax.f32 %v7145_v0, 0.0 }
0x1f9c   : > { %v7166_v21 = vmax.f32 %v7156_v4, 0.0 }
0x1f9d   : > { %v7164_v43 = vmax.f32 %v7148_v22, 0.0 }
0x1f9e   : > { %v7178_v44 = vpack.c.bf16 %v7166_v21, %v7165_v28 }
0x1f9f   : > { %v7177_v54 = vpack.c.bf16 %v7164_v43, %v7163_v23 }
0x1fa1   : > { %8638 = vmatprep.mubr.msk.bf16.mxu0 %vm1434_vm2, %v7177_v54 }
0x1fa2   : > { %8639 = vmatmul.mubr.msk.bf16.gmra.mrb[20].mxu0 %vm1434_vm2, %v7178_v44 }
0x201b   : > { %v8636_v52 = vpop.f32.mrb[16].mxu0 }
0x201c   : > { %v7243_v46 = vadd.f32 %v8636_v52, %v7686_v25  ;;  %v7234_v29 = vpop.f32.mrb[17].mxu0 }
0x201d   : > { %v7235_v63 = vadd.f32 %v7686_v25, %v7234_v29  ;;  %v8637_v57 = vpop.f32.mrb[18].mxu0 }
0x201e   : > { %v7267_v47 = vadd.f32 %v7243_v46, %v14905_v35  ;;  %v7246_v24 = vadd.f32 %v8637_v57, %v7686_v25  ;;  %v7237_v15 = vpop.f32.mrb[19].mxu0 }
0x201f   : > { %v7238_v61 = vadd.f32 %v7686_v25, %v7237_v15  ;;  %v7265_v8 = vadd.f32 %v7235_v63, %v14899_v31 }
0x2020   : > { %v7268_v36 = vadd.f32 %v7246_v24, %v14907_v20  ;;  %v7281_v51 = vsel %vm553_vm0, %v7267_v47, 0.0 }
0x2021   : > { %7282 = vadd.xlane.f32.xlu1 %v7281_v51  ;;  %v7266_v56 = vadd.f32 %v7238_v61, %v14901_v38  ;;  %v7275_v45 = vsel %vm553_vm0, %v7265_v8, 0.0 }
0x2022   : > { %v7284_v17 = vsel %vm553_vm0, %v7268_v36, 0.0 }
0x2023   : > { %7285 = vadd.xlane.f32.xlu0 %v7284_v17  ;;  %v7278_v35 = vsel %vm553_vm0, %v7266_v56, 0.0 }
0x2025   : > { %7276 = vadd.xlane.f32.xlu1 %v7275_v45 }
0x2027   : > { %7279 = vadd.xlane.f32.xlu0 %v7278_v35 }
0x2075   : > { %v8640_v32 = vpop.f32.mrb[20].mxu0 }
0x2076   : > { %v7250_v40 = vpop.f32.mrb[21].mxu0  ;;  %v7259_v62 = vadd.f32 %v8640_v32, %v7686_v25 }
0x2077   : > { %v7251_v31 = vadd.f32 %v7686_v25, %v7250_v40  ;;  %v8641_v27 = vpop.f32.mrb[22].mxu0 }
0x2078   : > { %v7253_v20 = vpop.f32.mrb[23].mxu0  ;;  %v7262_v5 = vadd.f32 %v8641_v27, %v7686_v25  ;;  %v7271_v38 = vadd.f32 %v7259_v62, %v14929_v49 }
0x2079   : > { %v7269_v37 = vadd.f32 %v7251_v31, %v14917_v7  ;;  %v7254_v42 = vadd.f32 %v7686_v25, %v7253_v20  ;;  %v7691_v20 = vld [vmem:[%s15052_s4 + $0x12] ss:$0 sm:$0xff] }
0x207a   : > { %v7272_v3 = vadd.f32 %v7262_v5, %v14931_v16  ;;  %v7293_v58 = vsel %vm553_vm0, %v7271_v38, 0.0 }
0x207b   : > { %v7270_v12 = vadd.f32 %v7254_v42, %v14919_v34  ;;  %v7287_v39 = vsel %vm553_vm0, %v7269_v37, 0.0  ;;  %v7692_v42 = vld [vmem:[%s15052_s4 + $0x13] ss:$0 sm:$0xff] }
0x207c   : > { %7288 = vadd.xlane.f32.xlu1 %v7287_v39  ;;  %v7296_v26 = vsel %vm553_vm0, %v7272_v3, 0.0 }
0x207d   : > { %v7290_v2 = vsel %vm553_vm0, %v7270_v12, 0.0 }
0x207e   : > { %7291 = vadd.xlane.f32.xlu0 %v7290_v2 }
0x2080   : > { %7294 = vadd.xlane.f32.xlu1 %v7293_v58 }
0x2082   : > { %7297 = vadd.xlane.f32.xlu0 %v7296_v26 }
0x20ae   : > { %v7283_v7 = vpop.xlane.xlu1 %7282 }
0x20af   : > { %v7301_v48 = vmul.f32 0.03125, %v7283_v7 }
0x20b0   : > { %v7286_v13 = vpop.xlane.xlu0 %7285 }
0x20b1   : > { %v14969_v49 = vsub.f32 %v7267_v47, %v7301_v48  ;;  %v7302_v34 = vmul.f32 0.03125, %v7286_v13 }
0x20b2   : > { %v7277_v60 = vpop.xlane.xlu1 %7276 }
0x20b3   : > { %v14971_v33 = vsub.f32 %v7268_v36, %v7302_v34  ;;  %v7299_v19 = vmul.f32 0.03125, %v7277_v60  ;;  %v7317_v16 = vmul.f32 %v14969_v49, %v14969_v49 }
0x20b4   : > { %v7280_v41 = vpop.xlane.xlu0 %7279 }
0x20b5   : > { %v14975_v30 = vsub.f32 %v7265_v8, %v7299_v19  ;;  %v7300_v14 = vmul.f32 0.03125, %v7280_v41  ;;  %v7329_v10 = vsel %vm553_vm0, %v7317_v16, 0.0  ;;  %v7318_v55 = vmul.f32 %v14971_v33, %v14971_v33 }
0x20b6   : > { %7330 = vadd.xlane.f32.xlu1 %v7329_v10 }
0x20b7   : > { %v14980_v9 = vsub.f32 %v7266_v56, %v7300_v14  ;;  %v7332_v50 = vsel %vm553_vm0, %v7318_v55, 0.0  ;;  %v7315_v6 = vmul.f32 %v14975_v30, %v14975_v30 }
0x20b8   : > { %7333 = vadd.xlane.f32.xlu0 %v7332_v50 }
0x20b9   : > { %v7323_v18 = vsel %vm553_vm0, %v7315_v6, 0.0  ;;  %v7316_v59 = vmul.f32 %v14980_v9, %v14980_v9 }
0x20ba   : > { %7324 = vadd.xlane.f32.xlu1 %v7323_v18 }
0x20bb   : > { %v7326_v53 = vsel %vm553_vm0, %v7316_v59, 0.0 }
0x20bc   : > { %7327 = vadd.xlane.f32.xlu0 %v7326_v53 }
0x2109   : > { %v7289_v0 = vpop.xlane.xlu1 %7288 }
0x210a   : > { %v7303_v1 = vmul.f32 0.03125, %v7289_v0 }
0x210b   : > { %v7292_v4 = vpop.xlane.xlu0 %7291 }
0x210c   : > { %v14989_v11 = vsub.f32 %v7269_v37, %v7303_v1  ;;  %v7304_v22 = vmul.f32 0.03125, %v7292_v4 }
0x210d   : > { %v7295_v28 = vpop.xlane.xlu1 %7294 }
0x210e   : > { %v14991_v21 = vsub.f32 %v7270_v12, %v7304_v22  ;;  %v7305_v23 = vmul.f32 0.03125, %v7295_v28  ;;  %v7319_v43 = vmul.f32 %v14989_v11, %v14989_v11 }
0x210f   : > { %v7298_v44 = vpop.xlane.xlu0 %7297 }
0x2110   : > { %v14995_v54 = vsub.f32 %v7271_v38, %v7305_v23  ;;  %v7306_v25 = vmul.f32 0.03125, %v7298_v44  ;;  %v7335_v52 = vsel %vm553_vm0, %v7319_v43, 0.0  ;;  %v7320_v46 = vmul.f32 %v14991_v21, %v14991_v21 }
0x2111   : > { %7336 = vadd.xlane.f32.xlu1 %v7335_v52 }
0x2112   : > { %v15000_v29 = vsub.f32 %v7272_v3, %v7306_v25  ;;  %v7338_v63 = vsel %vm553_vm0, %v7320_v46, 0.0  ;;  %v7321_v57 = vmul.f32 %v14995_v54, %v14995_v54 }
0x2113   : > { %7339 = vadd.xlane.f32.xlu0 %v7338_v63 }
0x2114   : > { %v7341_v47 = vsel %vm553_vm0, %v7321_v57, 0.0  ;;  %v7322_v24 = vmul.f32 %v15000_v29, %v15000_v29 }
0x2115   : > { %7342 = vadd.xlane.f32.xlu1 %v7341_v47 }
0x2116   : > { %v7344_v15 = vsel %vm553_vm0, %v7322_v24, 0.0 }
0x2117   : > { %7345 = vadd.xlane.f32.xlu0 %v7344_v15 }
0x2143   : > { %v7331_v61 = vpop.xlane.xlu1 %7330 }
0x2144   : > { %v7349_v8 = vmul.f32 0.03125, %v7331_v61 }
0x2145   : > { %v7334_v36 = vpop.xlane.xlu0 %7333 }
0x2146   : > { %v7357_v51 = vadd.f32 1e-05, %v7349_v8  ;;  %v7350_v56 = vmul.f32 0.03125, %v7334_v36 }
0x2147   : > { %v7325_v17 = vpop.xlane.xlu1 %7324 }
0x2148   : > { %9437 = vrsqrt.f32 %v7357_v51  ;;  %v7358_v45 = vadd.f32 1e-05, %v7350_v56  ;;  %v7347_v35 = vmul.f32 0.03125, %v7325_v17 }
0x2149   : > { %v7328_v32 = vpop.xlane.xlu0 %7327 }
0x214a   : > { %9439 = vrsqrt.f32 %v7358_v45  ;;  %v7355_v40 = vadd.f32 1e-05, %v7347_v35  ;;  %v7348_v62 = vmul.f32 0.03125, %v7328_v32 }
0x214c   : > { %9441 = vrsqrt.f32 %v7355_v40  ;;  %v7356_v31 = vadd.f32 1e-05, %v7348_v62 }
0x214e   : > { %9443 = vrsqrt.f32 %v7356_v31 }
0x2152   : > { %v9438_v27 = vpop.eup %9437 }
0x2153   : > { %v7373_v37 = vmul.f32 %v9438_v27, %v14969_v49 }
0x2154   : > { %v9440_v5 = vpop.eup %9439 }
0x2155   : > { %v7385_v38 = vmul.f32 %v7691_v20, %v7373_v37  ;;  %v7374_v12 = vmul.f32 %v9440_v5, %v14971_v33 }
0x2156   : > { %v9442_v39 = vpop.eup %9441 }
0x2157   : > { %v7397_v3 = vadd.f32 %v7692_v42, %v7385_v38  ;;  %v7386_v2 = vmul.f32 %v7691_v20, %v7374_v12  ;;  %v7371_v58 = vmul.f32 %v9442_v39, %v14975_v30 }
0x2158   : > { %v9444_v26 = vpop.eup %9443 }
0x2159   : > { %7405 = vst.msk [vmem:[%s15021_s17 + $0x10] sm:$0xff] %vm553_vm0, %v7397_v3  ;;  %v7398_v7 = vadd.f32 %v7692_v42, %v7386_v2  ;;  %v7383_v48 = vmul.f32 %v7691_v20, %v7371_v58  ;;  %v7372_v13 = vmul.f32 %v9444_v26, %v14980_v9 }
0x215b   : > { %7406 = vst.msk [vmem:[%s15021_s17 + $0x18] sm:$0xff] %vm553_vm0, %v7398_v7  ;;  %v7395_v49 = vadd.f32 %v7692_v42, %v7383_v48  ;;  %v7384_v34 = vmul.f32 %v7691_v20, %v7372_v13 }
0x215d   : > { %7403 = vst.msk [vmem:[%s15021_s17] sm:$0xff] %vm553_vm0, %v7395_v49  ;;  %v7396_v60 = vadd.f32 %v7692_v42, %v7384_v34 }
0x215f   : > { %7404 = vst.msk [vmem:[%s15021_s17 + $0x8] sm:$0xff] %vm553_vm0, %v7396_v60 }
0x219e   : > { %v7337_v33 = vpop.xlane.xlu1 %7336 }
0x219f   : > { %v7351_v19 = vmul.f32 0.03125, %v7337_v33 }
0x21a0   : > { %v7340_v16 = vpop.xlane.xlu0 %7339 }
0x21a1   : > { %v7359_v41 = vadd.f32 1e-05, %v7351_v19  ;;  %v7352_v30 = vmul.f32 0.03125, %v7340_v16 }
0x21a2   : > { %v7343_v14 = vpop.xlane.xlu1 %7342 }
0x21a3   : > { %9445 = vrsqrt.f32 %v7359_v41  ;;  %v7360_v10 = vadd.f32 1e-05, %v7352_v30  ;;  %v7353_v55 = vmul.f32 0.03125, %v7343_v14 }
0x21a4   : > { %v7346_v50 = vpop.xlane.xlu0 %7345 }
0x21a5   : > { %9447 = vrsqrt.f32 %v7360_v10  ;;  %v7361_v9 = vadd.f32 1e-05, %v7353_v55  ;;  %v7354_v6 = vmul.f32 0.03125, %v7346_v50 }
0x21a7   : > { %9449 = vrsqrt.f32 %v7361_v9  ;;  %v7362_v18 = vadd.f32 1e-05, %v7354_v6 }
0x21a9   : > { %9451 = vrsqrt.f32 %v7362_v18 }
0x21ad   : > { %v9446_v59 = vpop.eup %9445 }
0x21ae   : > { %v7375_v53 = vmul.f32 %v9446_v59, %v14989_v11 }
0x21af   : > { %v9448_v0 = vpop.eup %9447 }
0x21b0   : > { %v7387_v1 = vmul.f32 %v7691_v20, %v7375_v53  ;;  %v7376_v4 = vmul.f32 %v9448_v0, %v14991_v21 }
0x21b1   : > { %v9450_v22 = vpop.eup %9449 }
0x21b2   : > { %v7399_v28 = vadd.f32 %v7692_v42, %v7387_v1  ;;  %v7388_v23 = vmul.f32 %v7691_v20, %v7376_v4  ;;  %v7377_v43 = vmul.f32 %v9450_v22, %v14995_v54 }
0x21b3   : > { %v9452_v44 = vpop.eup %9451 }
0x21b4   : > { %7407 = vst.msk [vmem:[%s15021_s17 + $0x20] sm:$0xff] %vm553_vm0, %v7399_v28  ;;  %v7400_v25 = vadd.f32 %v7692_v42, %v7388_v23  ;;  %v7389_v52 = vmul.f32 %v7691_v20, %v7377_v43  ;;  %v7378_v46 = vmul.f32 %v9452_v44, %v15000_v29 }
0x21b6   : > { %7408 = vst.msk [vmem:[%s15021_s17 + $0x28] sm:$0xff] %vm553_vm0, %v7400_v25  ;;  %v7401_v11 = vadd.f32 %v7692_v42, %v7389_v52  ;;  %v7390_v63 = vmul.f32 %v7691_v20, %v7378_v46 }
0x21b8   : > { %7409 = vst.msk [vmem:[%s15021_s17 + $0x30] sm:$0xff] %vm553_vm0, %v7401_v11  ;;  %v7402_v57 = vadd.f32 %v7692_v42, %v7390_v63 }
0x21ba   : > { %7410 = vst.msk [vmem:[%s15021_s17 + $0x38] sm:$0xff] %vm553_vm0, %v7402_v57 }
0x21bb PF: > { %s16_s21 = sadd.s32 1, %s9747_s21  }
0x21bc   : > { %p13_p4 = scmp.ge.s32.totalorder %s16_s21, 4  }
0x21be   :  { %15 = sbr.rel (!%p13_p4) target bundleno = 1 (0x1), region = 78 }

</bundles_post_ra>
